<compile_context>
chip_gen: v5e
topology: v5e:2x2
jax: 0.10.0
libtpu: 0.0.40
codegen_flags: <defaults>
</compile_context>

<pallas_src>
import functools

import numpy as np
import jax
import jax.numpy as jnp
from jax.experimental import pallas as pl
from jax.experimental.pallas import tpu as pltpu


_VMEM_SPEC = pl.BlockSpec(memory_space=pltpu.MemorySpace.VMEM)
_HIDDEN = 512       # fc1 out_features per head (module spec)
_FC_TN = 512        # lane-tile of the fused fc1 weight == one head per step


# ----------------------------------------------------------------------------
# Conv GEMM kernel: patches @ W + b, ReLU  (bf16 operands, f32 accumulation).
# Operands are tiny (<= ~0.5 MB) -> whole-array blocks, no grid.
# ----------------------------------------------------------------------------

def _matmul_bias_relu_kernel(x_ref, w_ref, b_ref, o_ref):
    y = jnp.dot(x_ref[...], w_ref[...], preferred_element_type=jnp.float32)
    o_ref[...] = jnp.maximum(y + b_ref[...], 0.0).astype(o_ref.dtype)


def conv_gemm_relu(pat, w_mat, b_row):
    M = pat.shape[0]
    N = w_mat.shape[1]
    # N is 32/64 (<128 lanes) so stores are masked; tensors are <=100 KB, so
    # this is left as-is (review: low priority).
    return pl.pallas_call(
        _matmul_bias_relu_kernel,
        out_shape=jax.ShapeDtypeStruct((M, N), jnp.bfloat16),
        in_specs=[_VMEM_SPEC, _VMEM_SPEC, _VMEM_SPEC],
        out_specs=_VMEM_SPEC,
    )(pat, w_mat, b_row)


def conv2d_relu_nhwc(x_nhwc, w_mat, b_row, kh, kw, stride):
    """x: (B,H,W,C) NHWC bf16; w_mat: (C*KH*KW, Cout) bf16 in (c,kh,kw) row order."""
    B = x_nhwc.shape[0]
    pat = jax.lax.conv_general_dilated_patches(
        x_nhwc, (kh, kw), (stride, stride), "VALID",
        dimension_numbers=("NHWC", "HWIO", "NHWC"))
    _, oh, ow, kf = pat.shape
    pat = pat.reshape(B * oh * ow, kf).astype(jnp.bfloat16)
    y = conv_gemm_relu(pat, w_mat, b_row)
    return y.reshape(B, oh, ow, w_mat.shape[1])          # stays NHWC, bf16


# ----------------------------------------------------------------------------
# Fused fc path: fc1(adv|val) -> ReLU -> fused block-diag fc2 -> dueling combine
# Grid (2,) over the fused fc1 N halves; hidden slab lives in VMEM scratch.
# ----------------------------------------------------------------------------

def _fc_dueling_kernel(flat_ref, w1_ref, b1_ref, w2_ref, b2_ref, q_ref, h_ref,
                       *, hidden, num_actions):
    n = pl.program_id(0)

    # fc1 half: (B, 512) = relu(flat @ W1[:, n*512:(n+1)*512] + b1_half)
    hb = jnp.dot(flat_ref[...], w1_ref[...], preferred_element_type=jnp.float32)
    hb = jnp.maximum(hb + b1_ref[...], 0.0)

    # Contiguous hidden slab, static slice writes: block 0 = adv, block 1 = val.
    @pl.when(n == 0)
    def _():
        h_ref[:, :hidden] = hb

    @pl.when(n == 1)
    def _():
        h_ref[:, hidden:] = hb

    @pl.when(n == pl.num_programs(0) - 1)
    def _():
        # Single block-diagonal fc2 matmul: columns [0:A] = adv, column A = val.
        y = jnp.dot(h_ref[...], w2_ref[...],
                    preferred_element_type=jnp.float32) + b2_ref[...]
        adv = y[:, :num_actions]
        val = y[:, num_actions:]
        q_ref[...] = (val + adv
                      - jnp.mean(adv, axis=1, keepdims=True)).astype(q_ref.dtype)


def fused_fc_dueling(flat, w1, b1, w2, b2):
    B, K = flat.shape
    N1 = w1.shape[1]                  # 2 * hidden (adv | val)
    A1 = w2.shape[1]                  # num_actions + 1
    A = A1 - 1
    tn = _FC_TN
    nblk = N1 // tn
    assert N1 == 2 * _HIDDEN and tn == _HIDDEN and nblk == 2

    cost = pl.CostEstimate(
        flops=int(2 * B * K * N1 + 2 * B * N1 * A1),
        transcendentals=0,
        bytes_accessed=int(w1.size * w1.dtype.itemsize
                           + flat.size * flat.dtype.itemsize
                           + (b1.size + w2.size + b2.size + B * A) * 4))

    return pl.pallas_call(
        functools.partial(_fc_dueling_kernel, hidden=_HIDDEN, num_actions=A),
        out_shape=jax.ShapeDtypeStruct((B, A), jnp.float32),
        grid_spec=pltpu.PrefetchScalarGridSpec(
            num_scalar_prefetch=0,
            grid=(nblk,),
            in_specs=[
                pl.BlockSpec((B, K), lambda n: (0, 0)),             # flat (bf16, resident)
                pl.BlockSpec((K, tn), lambda n: (0, n)),            # fused fc1 W (bf16)
                pl.BlockSpec((1, tn), lambda n: (0, n)),            # fused fc1 b
                pl.BlockSpec((2 * _HIDDEN, A1), lambda n: (0, 0)),  # fused fc2 W
                pl.BlockSpec((1, A1), lambda n: (0, 0)),            # fused fc2 b
            ],
            out_specs=pl.BlockSpec((B, A), lambda n: (0, 0)),
            scratch_shapes=[pltpu.VMEM((B, 2 * _HIDDEN), jnp.float32)],
        ),
        compiler_params=pltpu.CompilerParams(
            dimension_semantics=("arbitrary",)),
        cost_estimate=cost,
    )(flat, w1, b1, w2, b2)


# ----------------------------------------------------------------------------
# Dueling_CNN forward (kernel-layout params)
# ----------------------------------------------------------------------------

@jax.jit
def dueling_cnn_forward(kp, x):
    # x arrives NCHW like PyTorch; switch to NHWC + bf16 once and stay there.
    h = jnp.transpose(x, (0, 2, 3, 1)).astype(jnp.bfloat16)
    h = conv2d_relu_nhwc(h, kp["conv1_wm"], kp["conv1_b"], 8, 8, 4)  # (B,20,20,32)
    h = conv2d_relu_nhwc(h, kp["conv2_wm"], kp["conv2_b"], 4, 4, 2)  # (B, 9, 9,64)
    h = conv2d_relu_nhwc(h, kp["conv3_wm"], kp["conv3_b"], 3, 3, 1)  # (B, 7, 7,64)
    B = x.shape[0]
    flat = h.reshape(B, -1)   # NHWC flatten (bf16); fc1 rows pre-permuted to match
    return fused_fc_dueling(flat, kp["fc1_w"], kp["fc1_b"],
                            kp["fc2_w"], kp["fc2_b"])


# ----------------------------------------------------------------------------
# One-time weight layout preparation (PyTorch layout -> kernel layout)
# ----------------------------------------------------------------------------

def prepare_params(p):
    def conv_w(w):
        # (Cout, Cin, KH, KW) -> (Cin*KH*KW, Cout); rows in (c, kh, kw) order,
        # matching both torch weight.view(Cout,-1) and the patches feature order.
        cout = w.shape[0]
        return jnp.asarray(w.reshape(cout, -1).T, jnp.bfloat16)

    def fc1_rows_nhwc(w):
        # torch fc1 weight (512, 64*7*7) expects NCHW flatten (c,h,w);
        # permute its input rows to NHWC flatten order (h,w,c) once.
        w4 = w.reshape(_HIDDEN, 64, 7, 7)
        return jnp.transpose(w4, (2, 3, 1, 0)).reshape(7 * 7 * 64, _HIDDEN)

    fc1_w = jnp.concatenate([fc1_rows_nhwc(p["fc1_adv_w"]),
                             fc1_rows_nhwc(p["fc1_val_w"])], axis=1)
    fc1_b = jnp.concatenate([p["fc1_adv_b"], p["fc1_val_b"]]).reshape(1, -1)

    # Fused block-diagonal fc2: columns [0:A] <- adv head, column A <- val head.
    A = p["fc2_adv_w"].shape[0]
    w2 = jnp.zeros((2 * _HIDDEN, A + 1), jnp.float32)
    w2 = w2.at[:_HIDDEN, :A].set(jnp.asarray(p["fc2_adv_w"].T, jnp.float32))
    w2 = w2.at[_HIDDEN:, A:].set(jnp.asarray(p["fc2_val_w"].T, jnp.float32))
    b2 = jnp.concatenate([p["fc2_adv_b"], p["fc2_val_b"]]).reshape(1, A + 1)

    return {
        "conv1_wm": conv_w(p["conv1_w"]),
        "conv1_b": p["conv1_b"].reshape(1, -1).astype(jnp.float32),
        "conv2_wm": conv_w(p["conv2_w"]),
        "conv2_b": p["conv2_b"].reshape(1, -1).astype(jnp.float32),
        "conv3_wm": conv_w(p["conv3_w"]),
        "conv3_b": p["conv3_b"].reshape(1, -1).astype(jnp.float32),
        "fc1_w": fc1_w.astype(jnp.bfloat16),      # dominant HBM stream, halved
        "fc1_b": fc1_b.astype(jnp.float32),
        "fc2_w": w2.astype(jnp.float32),
        "fc2_b": b2.astype(jnp.float32),
    }


# ----------------------------------------------------------------------------
# Deterministic parameter init (xavier-normal-ish, PyTorch weight shapes)
# ----------------------------------------------------------------------------

def _xavier_normal(key, shape, fan_in, fan_out):
    std = (2.0 / (fan_in + fan_out)) ** 0.5
    return std * jax.random.normal(key, shape, dtype=jnp.float32)


def init_params(key, in_channels, num_actions):
    ks = jax.random.split(key, 14)
    p = {}
    p["conv1_w"] = _xavier_normal(ks[0], (32, in_channels, 8, 8),
                                  in_channels * 64, 32 * 64)
    p["conv1_b"] = 0.01 * jax.random.normal(ks[1], (32,), dtype=jnp.float32)
    p["conv2_w"] = _xavier_normal(ks[2], (64, 32, 4, 4), 32 * 16, 64 * 16)
    p["conv2_b"] = 0.01 * jax.random.normal(ks[3], (64,), dtype=jnp.float32)
    p["conv3_w"] = _xavier_normal(ks[4], (64, 64, 3, 3), 64 * 9, 64 * 9)
    p["conv3_b"] = 0.01 * jax.random.normal(ks[5], (64,), dtype=jnp.float32)
    p["fc1_adv_w"] = _xavier_normal(ks[6], (512, 7 * 7 * 64), 7 * 7 * 64, 512)
    p["fc1_adv_b"] = 0.01 * jax.random.normal(ks[7], (512,), dtype=jnp.float32)
    p["fc1_val_w"] = _xavier_normal(ks[8], (512, 7 * 7 * 64), 7 * 7 * 64, 512)
    p["fc1_val_b"] = 0.01 * jax.random.normal(ks[9], (512,), dtype=jnp.float32)
    p["fc2_adv_w"] = _xavier_normal(ks[10], (num_actions, 512), 512, num_actions)
    p["fc2_adv_b"] = 0.01 * jax.random.normal(ks[11], (num_actions,), dtype=jnp.float32)
    p["fc2_val_w"] = _xavier_normal(ks[12], (1, 512), 512, 1)
    p["fc2_val_b"] = 0.01 * jax.random.normal(ks[13], (1,), dtype=jnp.float32)
    return p


# ----------------------------------------------------------------------------
# Pure-JAX reference (PyTorch-layout params, f32) for correctness sanity check
# ----------------------------------------------------------------------------

def reference_forward(params, x):
    def conv(h, w, b, s):
        y = jax.lax.conv_general_dilated(
            h, w, (s, s), "VALID",
            dimension_numbers=("NCHW", "OIHW", "NCHW"),
            precision=jax.lax.Precision.HIGHEST)
        return jax.nn.relu(y + b[None, :, None, None])

    h = conv(x, params["conv1_w"], params["conv1_b"], 4)
    h = conv(h, params["conv2_w"], params["conv2_b"], 2)
    h = conv(h, params["conv3_w"], params["conv3_b"], 1)
    B = x.shape[0]
    flat = h.reshape(B, -1)
    adv = jax.nn.relu(flat @ params["fc1_adv_w"].T + params["fc1_adv_b"])
    val = jax.nn.relu(flat @ params["fc1_val_w"].T + params["fc1_val_b"])
    adv = adv @ params["fc2_adv_w"].T + params["fc2_adv_b"]
    val = val @ params["fc2_val_w"].T + params["fc2_val_b"]
    return val + adv - adv.mean(1, keepdims=True)


if __name__ == "__main__":
    num_actions = 6
    batch = 2
    in_channels = 4

    key = jax.random.PRNGKey(0)
    kx, kp = jax.random.split(key)
    # 84x84 is forced by the module's hard-coded fc1 in_features = 7*7*64.
    x = jax.random.normal(kx, (batch, in_channels, 84, 84), dtype=jnp.float32)
    params = init_params(kp, in_channels, num_actions)
    kparams = prepare_params(params)          # one-time layout / bf16 prep

    out = jax.block_until_ready(dueling_cnn_forward(kparams, x))
    assert out.shape == (batch, num_actions), out.shape
    assert bool(jnp.all(jnp.isfinite(out)))

    ref = reference_forward(params, x)
    # conv + fc1 weights/activations run in bf16 on the MXU (f32 accumulation);
    # the loose tolerance covers that documented precision difference.
    np.testing.assert_allclose(np.asarray(out), np.asarray(ref),
                               rtol=5e-2, atol=5e-2)

    print("KERNEL_OK")
</pallas_src>

<mosaic_0001>
module attributes {stable_mosaic.version = 11 : i64} {
  func.func @_matmul_bias_relu_kernel(%arg0: memref<800x256xbf16, #tpu.memory_space<vmem>>, %arg1: memref<256x32xbf16, #tpu.memory_space<vmem>>, %arg2: memref<1x32xf32, #tpu.memory_space<vmem>>, %arg3: memref<800x32xbf16, #tpu.memory_space<vmem>>) attributes {dimension_semantics = [], scalar_prefetch = 0 : i64, scratch_operands = 0 : i64, tpu.core_type = #tpu.core_type<tc>} {
    %c0 = arith.constant 0 : index
    %c0_0 = arith.constant 0 : index
    %0 = vector.load %arg0[%c0, %c0_0] : memref<800x256xbf16, #tpu.memory_space<vmem>>, vector<800x256xbf16>
    %c0_1 = arith.constant 0 : index
    %c0_2 = arith.constant 0 : index
    %1 = vector.load %arg1[%c0_1, %c0_2] : memref<256x32xbf16, #tpu.memory_space<vmem>>, vector<256x32xbf16>
    %cst = arith.constant dense<0.000000e+00> : vector<800x32xf32>
    %2 = tpu.matmul %0, %1, %cst {dimension_numbers = #tpu.dot_dimension_numbers<[1], [0], [0], [1], [0, 0, 1, 1], [], []>} : vector<800x256xbf16>, vector<256x32xbf16>, vector<800x32xf32> -> vector<800x32xf32>
    %c0_3 = arith.constant 0 : index
    %c0_4 = arith.constant 0 : index
    %3 = vector.load %arg2[%c0_3, %c0_4] : memref<1x32xf32, #tpu.memory_space<vmem>>, vector<1x32xf32>
    %4 = vector.broadcast %3 : vector<1x32xf32> to vector<800x32xf32>
    %5 = arith.addf %2, %4 : vector<800x32xf32>
    %cst_5 = arith.constant 0.000000e+00 : f32
    %6 = vector.broadcast %cst_5 : f32 to vector<800x32xf32>
    %7 = arith.maximumf %5, %6 : vector<800x32xf32>
    %8 = arith.truncf %7 : vector<800x32xf32> to vector<800x32xbf16>
    %c0_6 = arith.constant 0 : index
    %c0_7 = arith.constant 0 : index
    %9 = vector.load %arg3[%c0_6, %c0_7] : memref<800x32xbf16, #tpu.memory_space<vmem>>, vector<800x32xbf16>
    tpu.vector_store %arg3[%c0_6, %c0_7], %8 {strides = array<i32>} : memref<800x32xbf16, #tpu.memory_space<vmem>>, vector<800x32xbf16>,
    return
  }
}

module attributes {stable_mosaic.version = 11 : i64} {
  func.func @_matmul_bias_relu_kernel(%arg0: memref<162x512xbf16, #tpu.memory_space<vmem>>, %arg1: memref<512x64xbf16, #tpu.memory_space<vmem>>, %arg2: memref<1x64xf32, #tpu.memory_space<vmem>>, %arg3: memref<162x64xbf16, #tpu.memory_space<vmem>>) attributes {dimension_semantics = [], scalar_prefetch = 0 : i64, scratch_operands = 0 : i64, tpu.core_type = #tpu.core_type<tc>} {
    %c0 = arith.constant 0 : index
    %c0_0 = arith.constant 0 : index
    %0 = vector.load %arg0[%c0, %c0_0] : memref<162x512xbf16, #tpu.memory_space<vmem>>, vector<162x512xbf16>
    %c0_1 = arith.constant 0 : index
    %c0_2 = arith.constant 0 : index
    %1 = vector.load %arg1[%c0_1, %c0_2] : memref<512x64xbf16, #tpu.memory_space<vmem>>, vector<512x64xbf16>
    %cst = arith.constant dense<0.000000e+00> : vector<162x64xf32>
    %2 = tpu.matmul %0, %1, %cst {dimension_numbers = #tpu.dot_dimension_numbers<[1], [0], [0], [1], [0, 0, 1, 1], [], []>} : vector<162x512xbf16>, vector<512x64xbf16>, vector<162x64xf32> -> vector<162x64xf32>
    %c0_3 = arith.constant 0 : index
    %c0_4 = arith.constant 0 : index
    %3 = vector.load %arg2[%c0_3, %c0_4] : memref<1x64xf32, #tpu.memory_space<vmem>>, vector<1x64xf32>
    %4 = vector.broadcast %3 : vector<1x64xf32> to vector<162x64xf32>
    %5 = arith.addf %2, %4 : vector<162x64xf32>
    %cst_5 = arith.constant 0.000000e+00 : f32
    %6 = vector.broadcast %cst_5 : f32 to vector<162x64xf32>
    %7 = arith.maximumf %5, %6 : vector<162x64xf32>
    %8 = arith.truncf %7 : vector<162x64xf32> to vector<162x64xbf16>
    %c0_6 = arith.constant 0 : index
    %c0_7 = arith.constant 0 : index
    %9 = vector.load %arg3[%c0_6, %c0_7] : memref<162x64xbf16, #tpu.memory_space<vmem>>, vector<162x64xbf16>
    tpu.vector_store %arg3[%c0_6, %c0_7], %8 {strides = array<i32>} : memref<162x64xbf16, #tpu.memory_space<vmem>>, vector<162x64xbf16>,
    return
  }
}

module attributes {stable_mosaic.version = 11 : i64} {
  func.func @_matmul_bias_relu_kernel(%arg0: memref<98x576xbf16, #tpu.memory_space<vmem>>, %arg1: memref<576x64xbf16, #tpu.memory_space<vmem>>, %arg2: memref<1x64xf32, #tpu.memory_space<vmem>>, %arg3: memref<98x64xbf16, #tpu.memory_space<vmem>>) attributes {dimension_semantics = [], scalar_prefetch = 0 : i64, scratch_operands = 0 : i64, tpu.core_type = #tpu.core_type<tc>} {
    %c0 = arith.constant 0 : index
    %c0_0 = arith.constant 0 : index
    %0 = vector.load %arg0[%c0, %c0_0] : memref<98x576xbf16, #tpu.memory_space<vmem>>, vector<98x576xbf16>
    %c0_1 = arith.constant 0 : index
    %c0_2 = arith.constant 0 : index
    %1 = vector.load %arg1[%c0_1, %c0_2] : memref<576x64xbf16, #tpu.memory_space<vmem>>, vector<576x64xbf16>
    %cst = arith.constant dense<0.000000e+00> : vector<98x64xf32>
    %2 = tpu.matmul %0, %1, %cst {dimension_numbers = #tpu.dot_dimension_numbers<[1], [0], [0], [1], [0, 0, 1, 1], [], []>} : vector<98x576xbf16>, vector<576x64xbf16>, vector<98x64xf32> -> vector<98x64xf32>
    %c0_3 = arith.constant 0 : index
    %c0_4 = arith.constant 0 : index
    %3 = vector.load %arg2[%c0_3, %c0_4] : memref<1x64xf32, #tpu.memory_space<vmem>>, vector<1x64xf32>
    %4 = vector.broadcast %3 : vector<1x64xf32> to vector<98x64xf32>
    %5 = arith.addf %2, %4 : vector<98x64xf32>
    %cst_5 = arith.constant 0.000000e+00 : f32
    %6 = vector.broadcast %cst_5 : f32 to vector<98x64xf32>
    %7 = arith.maximumf %5, %6 : vector<98x64xf32>
    %8 = arith.truncf %7 : vector<98x64xf32> to vector<98x64xbf16>
    %c0_6 = arith.constant 0 : index
    %c0_7 = arith.constant 0 : index
    %9 = vector.load %arg3[%c0_6, %c0_7] : memref<98x64xbf16, #tpu.memory_space<vmem>>, vector<98x64xbf16>
    tpu.vector_store %arg3[%c0_6, %c0_7], %8 {strides = array<i32>} : memref<98x64xbf16, #tpu.memory_space<vmem>>, vector<98x64xbf16>,
    return
  }
}

module attributes {stable_mosaic.version = 11 : i64} {
  func.func @_fc_dueling_kernel(%arg0: i32, %arg1: memref<2x3136xbf16, #tpu.memory_space<vmem>>, %arg2: memref<3136x512xbf16, #tpu.memory_space<vmem>>, %arg3: memref<1x512xf32, #tpu.memory_space<vmem>>, %arg4: memref<1024x7xf32, #tpu.memory_space<vmem>>, %arg5: memref<1x7xf32, #tpu.memory_space<vmem>>, %arg6: memref<2x6xf32, #tpu.memory_space<vmem>>, %arg7: memref<2x1024xf32, #tpu.memory_space<vmem>>) attributes {dimension_semantics = [#tpu.dimension_semantics<arbitrary>], iteration_bounds = array<i64: 2>, scalar_prefetch = 0 : i64, scratch_operands = 1 : i64, tpu.core_type = #tpu.core_type<tc>, window_params = [{pipeline_mode = #tpu.pipeline_mode<synchronous>, transform_indices = @transform_0, window_bounds = array<i64: 2, 3136>}, {transform_indices = @transform_1, window_bounds = array<i64: 3136, 512>}, {transform_indices = @transform_2, window_bounds = array<i64: 1, 512>}, {pipeline_mode = #tpu.pipeline_mode<synchronous>, transform_indices = @transform_3, window_bounds = array<i64: 1024, 7>}, {pipeline_mode = #tpu.pipeline_mode<synchronous>, transform_indices = @transform_4, window_bounds = array<i64: 1, 7>}, {pipeline_mode = #tpu.pipeline_mode<synchronous>, transform_indices = @transform_5, window_bounds = array<i64: 2, 6>}]} {
    %c0 = arith.constant 0 : index
    %c0_0 = arith.constant 0 : index
    %0 = vector.load %arg1[%c0, %c0_0] : memref<2x3136xbf16, #tpu.memory_space<vmem>>, vector<2x3136xbf16>
    %c0_1 = arith.constant 0 : index
    %c0_2 = arith.constant 0 : index
    %1 = vector.load %arg2[%c0_1, %c0_2] : memref<3136x512xbf16, #tpu.memory_space<vmem>>, vector<3136x512xbf16>
    %cst = arith.constant dense<0.000000e+00> : vector<2x512xf32>
    %2 = tpu.matmul %0, %1, %cst {dimension_numbers = #tpu.dot_dimension_numbers<[1], [0], [0], [1], [0, 0, 1, 1], [], []>} : vector<2x3136xbf16>, vector<3136x512xbf16>, vector<2x512xf32> -> vector<2x512xf32>
    %c0_3 = arith.constant 0 : index
    %c0_4 = arith.constant 0 : index
    %3 = vector.load %arg3[%c0_3, %c0_4] : memref<1x512xf32, #tpu.memory_space<vmem>>, vector<1x512xf32>
    %4 = vector.broadcast %3 : vector<1x512xf32> to vector<2x512xf32>
    %5 = arith.addf %2, %4 : vector<2x512xf32>
    %cst_5 = arith.constant 0.000000e+00 : f32
    %6 = vector.broadcast %cst_5 : f32 to vector<2x512xf32>
    %7 = arith.maximumf %5, %6 : vector<2x512xf32>
    %c0_i32 = arith.constant 0 : i32
    %8 = arith.cmpi eq, %arg0, %c0_i32 : i32
    %9 = arith.extui %8 : i1 to i32
    %c0_i32_6 = arith.constant 0 : i32
    %10 = arith.cmpi ne, %9, %c0_i32_6 : i32
    scf.if %10 {
      %c0_10 = arith.constant 0 : index
      %c0_11 = arith.constant 0 : index
      %17 = vector.load %arg7[%c0_10, %c0_11] : memref<2x1024xf32, #tpu.memory_space<vmem>>, vector<2x512xf32>
      tpu.vector_store %arg7[%c0_10, %c0_11], %7 {strides = array<i32>} : memref<2x1024xf32, #tpu.memory_space<vmem>>, vector<2x512xf32>,
    } else {
    }
    %c1_i32 = arith.constant 1 : i32
    %11 = arith.cmpi eq, %arg0, %c1_i32 : i32
    %12 = arith.extui %11 : i1 to i32
    %c0_i32_7 = arith.constant 0 : i32
    %13 = arith.cmpi ne, %12, %c0_i32_7 : i32
    scf.if %13 {
      %c0_10 = arith.constant 0 : index
      %c512 = arith.constant 512 : index
      %17 = vector.load %arg7[%c0_10, %c512] : memref<2x1024xf32, #tpu.memory_space<vmem>>, vector<2x512xf32>
      tpu.vector_store %arg7[%c0_10, %c512], %7 {strides = array<i32>} : memref<2x1024xf32, #tpu.memory_space<vmem>>, vector<2x512xf32>,
    } else {
    }
    %c1_i32_8 = arith.constant 1 : i32
    %14 = arith.cmpi eq, %arg0, %c1_i32_8 : i32
    %15 = arith.extui %14 : i1 to i32
    %c0_i32_9 = arith.constant 0 : i32
    %16 = arith.cmpi ne, %15, %c0_i32_9 : i32
    scf.if %16 {
      %c0_10 = arith.constant 0 : index
      %c0_11 = arith.constant 0 : index
      %17 = vector.load %arg7[%c0_10, %c0_11] : memref<2x1024xf32, #tpu.memory_space<vmem>>, vector<2x1024xf32>
      %c0_12 = arith.constant 0 : index
      %c0_13 = arith.constant 0 : index
      %18 = vector.load %arg4[%c0_12, %c0_13] : memref<1024x7xf32, #tpu.memory_space<vmem>>, vector<1024x7xf32>
      %cst_14 = arith.constant dense<0.000000e+00> : vector<2x7xf32>
      %19 = tpu.matmul %17, %18, %cst_14 {dimension_numbers = #tpu.dot_dimension_numbers<[1], [0], [0], [1], [0, 0, 1, 1], [], []>} : vector<2x1024xf32>, vector<1024x7xf32>, vector<2x7xf32> -> vector<2x7xf32>
      %c0_15 = arith.constant 0 : index
      %c0_16 = arith.constant 0 : index
      %20 = vector.load %arg5[%c0_15, %c0_16] : memref<1x7xf32, #tpu.memory_space<vmem>>, vector<1x7xf32>
      %21 = vector.broadcast %20 : vector<1x7xf32> to vector<2x7xf32>
      %22 = arith.addf %19, %21 : vector<2x7xf32>
      %23 = vector.extract_strided_slice %22 {offsets = [0, 0], sizes = [2, 6], strides = [1, 1]} : vector<2x7xf32> to vector<2x6xf32>
      %24 = vector.extract_strided_slice %22 {offsets = [0, 6], sizes = [2, 1], strides = [1, 1]} : vector<2x7xf32> to vector<2x1xf32>
      %25 = vector.broadcast %24 : vector<2x1xf32> to vector<2x6xf32>
      %26 = arith.addf %25, %23 : vector<2x6xf32>
      %cst_17 = arith.constant dense<0.000000e+00> : vector<2xf32>
      %27 = vector.multi_reduction <add>, %23, %cst_17 [1] : vector<2x6xf32> to vector<2xf32>
      %28 = vector.shape_cast %27 : vector<2xf32> to vector<2x1xf32>
      %cst_18 = arith.constant 6.000000e+00 : f32
      %29 = vector.broadcast %cst_18 : f32 to vector<2x1xf32>
      %30 = arith.divf %28, %29 : vector<2x1xf32>
      %31 = vector.broadcast %30 : vector<2x1xf32> to vector<2x6xf32>
      %32 = arith.subf %26, %31 : vector<2x6xf32>
      %c0_19 = arith.constant 0 : index
      %c0_20 = arith.constant 0 : index
      %33 = vector.load %arg6[%c0_19, %c0_20] : memref<2x6xf32, #tpu.memory_space<vmem>>, vector<2x6xf32>
      tpu.vector_store %arg6[%c0_19, %c0_20], %32 {strides = array<i32>} : memref<2x6xf32, #tpu.memory_space<vmem>>, vector<2x6xf32>,
    } else {
    }
    return
  }
  func.func @transform_0(%arg0: i32) -> (i32, i32) {
    %c0_i32 = arith.constant 0 : i32
    %c0_i32_0 = arith.constant 0 : i32
    %c0_i32_1 = arith.constant 0 : i32
    return %c0_i32, %c0_i32_0 : i32, i32
  }
  func.func @transform_1(%arg0: i32) -> (i32, i32) {
    %c0_i32 = arith.constant 0 : i32
    %c0_i32_0 = arith.constant 0 : i32
    return %c0_i32, %arg0 : i32, i32
  }
  func.func @transform_2(%arg0: i32) -> (i32, i32) {
    %c0_i32 = arith.constant 0 : i32
    %c0_i32_0 = arith.constant 0 : i32
    return %c0_i32, %arg0 : i32, i32
  }
  func.func @transform_3(%arg0: i32) -> (i32, i32) {
    %c0_i32 = arith.constant 0 : i32
    %c0_i32_0 = arith.constant 0 : i32
    %c0_i32_1 = arith.constant 0 : i32
    return %c0_i32, %c0_i32_0 : i32, i32
  }
  func.func @transform_4(%arg0: i32) -> (i32, i32) {
    %c0_i32 = arith.constant 0 : i32
    %c0_i32_0 = arith.constant 0 : i32
    %c0_i32_1 = arith.constant 0 : i32
    return %c0_i32, %c0_i32_0 : i32, i32
  }
  func.func @transform_5(%arg0: i32) -> (i32, i32) {
    %c0_i32 = arith.constant 0 : i32
    %c0_i32_0 = arith.constant 0 : i32
    %c0_i32_1 = arith.constant 0 : i32
    return %c0_i32, %c0_i32_0 : i32, i32
  }
}

</mosaic_0001>

<bundles_post_ra>
// kernel: dueling_cnn_forward.5
= control target key start
LH: loop header
LB: loop body
LE: loop exit
PB: predicated region body
PF: predicated region fallthrough
CT: control target
= control target key end

     0   :  { %vm824_vm0 = vcmask 519168   ;;  %vm845_vm1 = vcmask 516096   ;;  %s1683_s1 = inlined_call_operand.vmem [shape: bf16[512,64], index: 1, kind: input, shape index: {}]   ;;  %s1684_s2 = inlined_call_operand.vmem [shape: f32[1,64], index: 2, kind: input, shape index: {}]   ;;  %s1685_s0 = inlined_call_operand.vmem [shape: bf16[162,512], index: 0, kind: input, shape index: {}]   ;;  %s1686_s3 = inlined_call_operand.vmem [shape: bf16[162,64], index: 3, kind: output, shape index: {}]  }
   0x1   :  { %v1186_v0 = vld [vmem:[%s1683_s1 + $0x38] sm:$0xff]  ;;  %v1185_v4 = vld [vmem:[%s1683_s1 + $0x30] sm:$0xff]  ;;  %v1184_v8 = vld [vmem:[%s1683_s1 + $0x28] sm:$0xff] }
   0x2   :  { %v1194_v1 = vld [vmem:[%s1683_s1 + $0x78] sm:$0xff]  ;;  %530 = vmatpush.bf16.msra.mxu0 %v1186_v0  ;;  %v1193_v5 = vld [vmem:[%s1683_s1 + $0x70] sm:$0xff]  ;;  %v1192_v9 = vld [vmem:[%s1683_s1 + $0x68] sm:$0xff] }
   0x3   :  { %v1202_v2 = vld [vmem:[%s1683_s1 + $0xb8] sm:$0xff]  ;;  %593 = vmatpush.bf16.msra.mxu1 %v1194_v1  ;;  %v1201_v6 = vld [vmem:[%s1683_s1 + $0xb0] sm:$0xff]  ;;  %v1200_v10 = vld [vmem:[%s1683_s1 + $0xa8] sm:$0xff] }
   0x4   :  { %v1210_v3 = vld [vmem:[%s1683_s1 + $0xf8] sm:$0xff]  ;;  %656 = vmatpush.bf16.msra.mxu2 %v1202_v2  ;;  %v1209_v7 = vld [vmem:[%s1683_s1 + $0xf0] sm:$0xff]  ;;  %v1208_v11 = vld [vmem:[%s1683_s1 + $0xe8] sm:$0xff] }
   0x5   :  { %719 = vmatpush.bf16.msra.mxu3 %v1210_v3  ;;  %v1183_v12 = vld [vmem:[%s1683_s1 + $0x20] sm:$0xff]  ;;  %v1182_v16 = vld [vmem:[%s1683_s1 + $0x18] sm:$0xff]  ;;  %v1181_v20 = vld [vmem:[%s1683_s1 + $0x10] sm:$0xff] }
   0x6   :  { %531 = vmatpush.bf16.msra.mxu0 %v1185_v4  ;;  %v1191_v13 = vld [vmem:[%s1683_s1 + $0x60] sm:$0xff]  ;;  %v1190_v17 = vld [vmem:[%s1683_s1 + $0x58] sm:$0xff]  ;;  %v1189_v21 = vld [vmem:[%s1683_s1 + $0x50] sm:$0xff] }
   0x7   :  { %594 = vmatpush.bf16.msra.mxu1 %v1193_v5  ;;  %v1199_v14 = vld [vmem:[%s1683_s1 + $0xa0] sm:$0xff]  ;;  %v1198_v18 = vld [vmem:[%s1683_s1 + $0x98] sm:$0xff]  ;;  %v1197_v22 = vld [vmem:[%s1683_s1 + $0x90] sm:$0xff] }
   0x8   :  { %657 = vmatpush.bf16.msra.mxu2 %v1201_v6  ;;  %v1207_v15 = vld [vmem:[%s1683_s1 + $0xe0] sm:$0xff]  ;;  %v1206_v19 = vld [vmem:[%s1683_s1 + $0xd8] sm:$0xff]  ;;  %v1205_v23 = vld [vmem:[%s1683_s1 + $0xd0] sm:$0xff] }
   0x9   :  { %720 = vmatpush.bf16.msra.mxu3 %v1209_v7  ;;  %v1180_v24 = vld [vmem:[%s1683_s1 + $0x8] sm:$0xff]  ;;  %v1179_v28 = vld [vmem:[%s1683_s1] sm:$0xff]  ;;  %v1141_v33 = vld [vmem:[%s1685_s0 + $0xc] sm:$0xf0] }
   0xa   :  { %532 = vmatpush.bf16.msra.mxu0 %v1184_v8  ;;  %v1188_v25 = vld [vmem:[%s1683_s1 + $0x48] sm:$0xff]  ;;  %v1187_v29 = vld [vmem:[%s1683_s1 + $0x40] sm:$0xff]  ;;  %v855_v35 = vld [vmem:[%s1685_s0 + $0x10] sm:$0xf0] }
   0xb   :  { %595 = vmatpush.bf16.msra.mxu1 %v1192_v9  ;;  %v1196_v26 = vld [vmem:[%s1683_s1 + $0x88] sm:$0xff]  ;;  %v1195_v30 = vld [vmem:[%s1683_s1 + $0x80] sm:$0xff]  ;;  %v1142_v37 = vld [vmem:[%s1685_s0 + $0x14] sm:$0xf0] }
   0xc   :  { %658 = vmatpush.bf16.msra.mxu2 %v1200_v10  ;;  %v1204_v27 = vld [vmem:[%s1683_s1 + $0xc8] sm:$0xff]  ;;  %v1203_v31 = vld [vmem:[%s1683_s1 + $0xc0] sm:$0xff]  ;;  %v863_v39 = vld [vmem:[%s1685_s0 + $0x18] sm:$0xf0] }
   0xd   :  { %721 = vmatpush.bf16.msra.mxu3 %v1208_v11  ;;  %v853_v32 = vld [vmem:[%s1685_s0] sm:$0xf]  ;;  %v1139_v34 = vld [vmem:[%s1685_s0 + $0x4] sm:$0xf]  ;;  %v861_v36 = vld [vmem:[%s1685_s0 + $0x8] sm:$0xf] }
   0xe   :  { %533 = vmatpush.bf16.msra.mxu0 %v1183_v12  ;;  %v1140_v38 = vld [vmem:[%s1685_s0 + $0xc] sm:$0xf]  ;;  %v854_v40 = vor.u32 %v1141_v33, %v853_v32  ;;  %v858_v41 = vor.u32 %v1139_v34, %v855_v35  ;;  %v862_v42 = vor.u32 %v1142_v37, %v861_v36  ;;  %v869_v44 = vld [vmem:[%s1685_s0 + $0x20] sm:$0xf]  ;;  %v1145_v45 = vld [vmem:[%s1685_s0 + $0x2c] sm:$0xf0] }
   0xf   :  { %596 = vmatpush.bf16.msra.mxu1 %v1191_v13  ;;  %v866_v43 = vor.u32 %v1140_v38, %v863_v39  ;;  %v1143_v46 = vld [vmem:[%s1685_s0 + $0x24] sm:$0xf]  ;;  %v871_v47 = vld [vmem:[%s1685_s0 + $0x30] sm:$0xf0]  ;;  %v877_v48 = vld [vmem:[%s1685_s0 + $0x28] sm:$0xf]  ;;  %v870_v52 = vor.u32 %v1145_v45, %v869_v44 }
  0x10   :  { %659 = vmatpush.bf16.msra.mxu2 %v1199_v14  ;;  %v1146_v49 = vld [vmem:[%s1685_s0 + $0x34] sm:$0xf0]  ;;  %v1144_v50 = vld [vmem:[%s1685_s0 + $0x2c] sm:$0xf]  ;;  %v879_v51 = vld [vmem:[%s1685_s0 + $0x38] sm:$0xf0]  ;;  %v874_v53 = vor.u32 %v1143_v46, %v871_v47 }
  0x11   :  { %722 = vmatpush.bf16.msra.mxu3 %v1207_v15  ;;  %v878_v54 = vor.u32 %v1146_v49, %v877_v48  ;;  %v882_v55 = vor.u32 %v1144_v50, %v879_v51  ;;  %v885_v56 = vld [vmem:[%s1685_s0 + $0x40] sm:$0xf]  ;;  %v1149_v57 = vld [vmem:[%s1685_s0 + $0x4c] sm:$0xf0]  ;;  %v1147_v58 = vld [vmem:[%s1685_s0 + $0x44] sm:$0xf] }
  0x12   :  { %534 = vmatpush.bf16.msra.mxu0 %v1182_v16  ;;  %v887_v59 = vld [vmem:[%s1685_s0 + $0x50] sm:$0xf0]  ;;  %v893_v60 = vld [vmem:[%s1685_s0 + $0x48] sm:$0xf]  ;;  %v1150_v61 = vld [vmem:[%s1685_s0 + $0x54] sm:$0xf0]  ;;  %v886_v0 = vor.u32 %v1149_v57, %v885_v56 }
  0x13   :  { %597 = vmatpush.bf16.msra.mxu1 %v1190_v17  ;;  %v1148_v62 = vld [vmem:[%s1685_s0 + $0x4c] sm:$0xf]  ;;  %v895_v63 = vld [vmem:[%s1685_s0 + $0x58] sm:$0xf0]  ;;  %v890_v1 = vor.u32 %v1147_v58, %v887_v59  ;;  %v894_v2 = vor.u32 %v1150_v61, %v893_v60  ;;  %v901_v4 = vld [vmem:[%s1685_s0 + $0x60] sm:$0xf] }
  0x14   :  { %660 = vmatpush.bf16.msra.mxu2 %v1198_v18  ;;  %v898_v3 = vor.u32 %v1148_v62, %v895_v63  ;;  %v1153_v5 = vld [vmem:[%s1685_s0 + $0x6c] sm:$0xf0]  ;;  %v1151_v6 = vld [vmem:[%s1685_s0 + $0x64] sm:$0xf]  ;;  %v903_v7 = vld [vmem:[%s1685_s0 + $0x70] sm:$0xf0] }
  0x15   :  { %723 = vmatpush.bf16.msra.mxu3 %v1206_v19  ;;  %v909_v8 = vld [vmem:[%s1685_s0 + $0x68] sm:$0xf]  ;;  %v1154_v9 = vld [vmem:[%s1685_s0 + $0x74] sm:$0xf0]  ;;  %v1152_v10 = vld [vmem:[%s1685_s0 + $0x6c] sm:$0xf]  ;;  %v902_v12 = vor.u32 %v1153_v5, %v901_v4  ;;  %v906_v13 = vor.u32 %v1151_v6, %v903_v7 }
  0x16   :  { %535 = vmatpush.bf16.msra.mxu0 %v1181_v20  ;;  %v911_v11 = vld [vmem:[%s1685_s0 + $0x78] sm:$0xf0]  ;;  %v910_v14 = vor.u32 %v1154_v9, %v909_v8  ;;  %v917_v16 = vld [vmem:[%s1685_s0 + $0x80] sm:$0xf]  ;;  %v1157_v17 = vld [vmem:[%s1685_s0 + $0x8c] sm:$0xf0] }
  0x17   :  { %598 = vmatpush.bf16.msra.mxu1 %v1189_v21  ;;  %v914_v15 = vor.u32 %v1152_v10, %v911_v11  ;;  %v1155_v18 = vld [vmem:[%s1685_s0 + $0x84] sm:$0xf]  ;;  %v919_v19 = vld [vmem:[%s1685_s0 + $0x90] sm:$0xf0]  ;;  %v925_v20 = vld [vmem:[%s1685_s0 + $0x88] sm:$0xf] }
  0x18   :  { %661 = vmatpush.bf16.msra.mxu2 %v1197_v22  ;;  %v1158_v21 = vld [vmem:[%s1685_s0 + $0x94] sm:$0xf0]  ;;  %v1156_v22 = vld [vmem:[%s1685_s0 + $0x8c] sm:$0xf]  ;;  %v941_v32 = vld [vmem:[%s1685_s0 + $0xa8] sm:$0xf] }
  0x19   :  { %724 = vmatpush.bf16.msra.mxu3 %v1205_v23  ;;  %v927_v23 = vld [vmem:[%s1685_s0 + $0x98] sm:$0xf0]  ;;  %v1162_v33 = vld [vmem:[%s1685_s0 + $0xb4] sm:$0xf0]  ;;  %v1160_v34 = vld [vmem:[%s1685_s0 + $0xac] sm:$0xf] }
  0x1a   :  { %536 = vmatpush.bf16.msra.mxu0 %v1180_v24  ;;  %v918_v24 = vor.u32 %v1157_v17, %v917_v16  ;;  %v943_v35 = vld [vmem:[%s1685_s0 + $0xb8] sm:$0xf0]  ;;  %v942_v38 = vor.u32 %v1162_v33, %v941_v32  ;;  %v957_v44 = vld [vmem:[%s1685_s0 + $0xc8] sm:$0xf]  ;;  %v1166_v45 = vld [vmem:[%s1685_s0 + $0xd4] sm:$0xf0] }
  0x1b   :  { %599 = vmatpush.bf16.msra.mxu1 %v1188_v25  ;;  %v922_v25 = vor.u32 %v1155_v18, %v919_v19  ;;  %v946_v39 = vor.u32 %v1160_v34, %v943_v35  ;;  %v1164_v46 = vld [vmem:[%s1685_s0 + $0xcc] sm:$0xf]  ;;  %v959_v47 = vld [vmem:[%s1685_s0 + $0xd8] sm:$0xf0]  ;;  %v958_v50 = vor.u32 %v1166_v45, %v957_v44  ;;  %v973_v56 = vld [vmem:[%s1685_s0 + $0xe8] sm:$0xf] }
  0x1c   :  { %662 = vmatpush.bf16.msra.mxu2 %v1196_v26  ;;  %v926_v26 = vor.u32 %v1158_v21, %v925_v20  ;;  %v962_v51 = vor.u32 %v1164_v46, %v959_v47  ;;  %v1170_v57 = vld [vmem:[%s1685_s0 + $0xf4] sm:$0xf0]  ;;  %v1168_v58 = vld [vmem:[%s1685_s0 + $0xec] sm:$0xf]  ;;  %v975_v59 = vld [vmem:[%s1685_s0 + $0xf8] sm:$0xf0] }
  0x1d   :  { %725 = vmatpush.bf16.msra.mxu3 %v1204_v27  ;;  %v930_v27 = vor.u32 %v1156_v22, %v927_v23  ;;  %v974_v62 = vor.u32 %v1170_v57, %v973_v56  ;;  %v978_v63 = vor.u32 %v1168_v58, %v975_v59  ;;  %v983_v4 = vld [vmem:[%s1685_s0 + $0x110] sm:$0xf0]  ;;  %v989_v5 = vld [vmem:[%s1685_s0 + $0x108] sm:$0xf]  ;;  %v1174_v6 = vld [vmem:[%s1685_s0 + $0x114] sm:$0xf0] }
  0x1e   :  { %537 = vmatpush.bf16.msra.mxu0 %v1179_v28  ;;  %v933_v28 = vld [vmem:[%s1685_s0 + $0xa0] sm:$0xf]  ;;  %v1172_v7 = vld [vmem:[%s1685_s0 + $0x10c] sm:$0xf]  ;;  %v991_v8 = vld [vmem:[%s1685_s0 + $0x118] sm:$0xf0] }
  0x1f   :  { %600 = vmatpush.bf16.msra.mxu1 %v1187_v29  ;;  %v1161_v29 = vld [vmem:[%s1685_s0 + $0xac] sm:$0xf0]  ;;  %v1007_v32 = vld [vmem:[%s1685_s0 + $0x138] sm:$0xf0] }
  0x20   :  { %663 = vmatpush.bf16.msra.mxu2 %v1195_v30  ;;  %v1159_v30 = vld [vmem:[%s1685_s0 + $0xa4] sm:$0xf]  ;;  %v934_v36 = vor.u32 %v1161_v29, %v933_v28  ;;  %v999_v28 = vld [vmem:[%s1685_s0 + $0x130] sm:$0xf0]  ;;  %v1005_v29 = vld [vmem:[%s1685_s0 + $0x128] sm:$0xf] }
  0x21   :  { %726 = vmatpush.bf16.msra.mxu3 %v1203_v31  ;;  %538 = vmatmul.bf16.vlgmr.msra.gmra.mxu0 %v854_v40  ;;  %v935_v31 = vld [vmem:[%s1685_s0 + $0xb0] sm:$0xf0]  ;;  %v949_v40 = vld [vmem:[%s1685_s0 + $0xc0] sm:$0xf] }
  0x22   :  { %601 = vmatmul.bf16.vlgmr.msra.gmra.mxu1 %v858_v41  ;;  %v938_v37 = vor.u32 %v1159_v30, %v935_v31  ;;  %v1165_v41 = vld [vmem:[%s1685_s0 + $0xcc] sm:$0xf0]  ;;  %v1178_v30 = vld [vmem:[%s1685_s0 + $0x134] sm:$0xf0]  ;;  %v1176_v31 = vld [vmem:[%s1685_s0 + $0x12c] sm:$0xf] }
  0x23   :  { %664 = vmatmul.bf16.vlgmr.msra.gmra.mxu2 %v862_v42  ;;  %v1163_v42 = vld [vmem:[%s1685_s0 + $0xc4] sm:$0xf]  ;;  %v950_v48 = vor.u32 %v1165_v41, %v949_v40 }
  0x24   :  { %727 = vmatmul.bf16.vlgmr.msra.gmra.mxu3 %v866_v43  ;;  %v951_v43 = vld [vmem:[%s1685_s0 + $0xd0] sm:$0xf0] }
  0x25   :  { %v954_v49 = vor.u32 %v1163_v42, %v951_v43  ;;  %v1006_v42 = vor.u32 %v1178_v30, %v1005_v29  ;;  %v1010_v43 = vor.u32 %v1176_v31, %v1007_v32 }
  0x31   :  { %543 = vmatmul.bf16.gmra.mxu0 %v870_v52  ;;  %v965_v52 = vld [vmem:[%s1685_s0 + $0xe0] sm:$0xf] }
  0x32   :  { %606 = vmatmul.bf16.gmra.mxu1 %v874_v53  ;;  %v1169_v53 = vld [vmem:[%s1685_s0 + $0xec] sm:$0xf0] }
  0x33   :  { %669 = vmatmul.bf16.gmra.mxu2 %v878_v54  ;;  %v1167_v54 = vld [vmem:[%s1685_s0 + $0xe4] sm:$0xf]  ;;  %v966_v60 = vor.u32 %v1169_v53, %v965_v52 }
  0x34   :  { %732 = vmatmul.bf16.gmra.mxu3 %v882_v55  ;;  %v967_v55 = vld [vmem:[%s1685_s0 + $0xf0] sm:$0xf0] }
  0x35   :  { %v970_v61 = vor.u32 %v1167_v54, %v967_v55  ;;  %v54_v54 = vld [vmem:[%s1685_s0 + $0x140] sm:$0x11]  ;;  %v55_v55 = vld [vmem:[%s1685_s0 + $0x148] sm:$0x11] }
  0x36   :  { %v246_v58 = vunpack.c.l.b16 %v54_v54  ;;  %v247_v59 = vunpack.c.h.b16 %v54_v54 }
  0x41   :  { %548 = vmatmul.bf16.gmra.mxu0 %v886_v0  ;;  %v1523_v0 = vld [vmem:[%s1684_s2] ss:$0 sm:$0xff] }
  0x42   :  { %611 = vmatmul.bf16.gmra.mxu1 %v890_v1  ;;  %v981_v1 = vld [vmem:[%s1685_s0 + $0x100] sm:$0xf] }
  0x43   :  { %674 = vmatmul.bf16.gmra.mxu2 %v894_v2  ;;  %v1173_v2 = vld [vmem:[%s1685_s0 + $0x10c] sm:$0xf0] }
  0x44   :  { %737 = vmatmul.bf16.gmra.mxu3 %v898_v3  ;;  %v1171_v3 = vld [vmem:[%s1685_s0 + $0x104] sm:$0xf]  ;;  %v982_v9 = vor.u32 %v1173_v2, %v981_v1 }
  0x45   :  { %v986_v10 = vor.u32 %v1171_v3, %v983_v4  ;;  %v290_v4 = vpack.c.b16 %v246_v58, %v246_v58 }
  0x51   :  { %553 = vmatmul.bf16.gmra.mxu0 %v902_v12 }
  0x52   :  { %616 = vmatmul.bf16.gmra.mxu1 %v906_v13  ;;  %v990_v13 = vor.u32 %v1174_v6, %v989_v5  ;;  %v291_v5 = vpack.c.b16 %v247_v59, %v247_v59 }
  0x53   :  { %679 = vmatmul.bf16.gmra.mxu2 %v910_v14  ;;  %v994_v14 = vor.u32 %v1172_v7, %v991_v8 }
  0x54   :  { %742 = vmatmul.bf16.gmra.mxu3 %v914_v15 }
  0x61   :  { %558 = vmatmul.bf16.gmra.mxu0 %v918_v24  ;;  %v997_v24 = vld [vmem:[%s1685_s0 + $0x120] sm:$0xf] }
  0x62   :  { %621 = vmatmul.bf16.gmra.mxu1 %v922_v25  ;;  %v1177_v25 = vld [vmem:[%s1685_s0 + $0x12c] sm:$0xf0] }
  0x63   :  { %684 = vmatmul.bf16.gmra.mxu2 %v926_v26  ;;  %v1175_v26 = vld [vmem:[%s1685_s0 + $0x124] sm:$0xf] }
  0x64   :  { %747 = vmatmul.bf16.gmra.mxu3 %v930_v27 }
  0x71   :  { %563 = vmatmul.bf16.gmra.mxu0 %v934_v36 }
  0x72   :  { %626 = vmatmul.bf16.gmra.mxu1 %v938_v37  ;;  %v998_v37 = vor.u32 %v1177_v25, %v997_v24 }
  0x73   :  { %689 = vmatmul.bf16.gmra.mxu2 %v942_v38  ;;  %v1002_v38 = vor.u32 %v1175_v26, %v999_v28 }
  0x74   :  { %752 = vmatmul.bf16.gmra.mxu3 %v946_v39 }
  0x81   :  { %568 = vmatmul.bf16.gmra.mxu0 %v950_v48 }
  0x82   :  { %631 = vmatmul.bf16.gmra.mxu1 %v954_v49 }
  0x83   :  { %694 = vmatmul.bf16.gmra.mxu2 %v958_v50 }
  0x84   :  { %757 = vmatmul.bf16.gmra.mxu3 %v962_v51 }
  0x91   :  { %573 = vmatmul.bf16.gmra.mxu0 %v966_v60 }
  0x92   :  { %636 = vmatmul.bf16.gmra.mxu1 %v970_v61  ;;  %v248_v61 = vunpack.c.l.b16 %v55_v55 }
  0x93   :  { %699 = vmatmul.bf16.gmra.mxu2 %v974_v62  ;;  %v249_v62 = vunpack.c.h.b16 %v55_v55 }
  0x94   :  { %762 = vmatmul.bf16.gmra.mxu3 %v978_v63 }
  0x9e   :  { %v539_v11 = vpop.f32.mrf.mxu0 }
  0x9f   :  { %v602_v12 = vpop.f32.mrf.mxu1  ;;  %v540_v15 = vadd.f32 %v1523_v0, %v539_v11 }
  0xa1   :  { %578 = vmatmul.bf16.gmra.mxu0 %v982_v9  ;;  %v603_v16 = vadd.f32 %v602_v12, %v540_v15  ;;  %v292_v9 = vpack.c.b16 %v248_v61, %v248_v61 }
  0xa2   :  { %641 = vmatmul.bf16.gmra.mxu1 %v986_v10  ;;  %v293_v10 = vpack.c.b16 %v249_v62, %v249_v62 }
  0xa3   :  { %704 = vmatmul.bf16.gmra.mxu2 %v990_v13 }
  0xa4   :  { %767 = vmatmul.bf16.gmra.mxu3 %v994_v14 }
  0xa6   :  { %v665_v17 = vpop.f32.mrf.mxu2  ;;  %v541_v20 = vpop.f32.mrf.mxu0 }
  0xa7   :  { %v728_v18 = vpop.f32.mrf.mxu3  ;;  %v666_v19 = vadd.f32 %v665_v17, %v603_v16  ;;  %v604_v21 = vpop.f32.mrf.mxu1  ;;  %v542_v23 = vadd.f32 %v1523_v0, %v541_v20 }
  0xa9   :  { %v729_v22 = vadd.f32 %v728_v18, %v666_v19  ;;  %v605_v34 = vadd.f32 %v604_v21, %v542_v23 }
  0xab   :  { %v782_v27 = vmax.f32 %v729_v22, 0.0 }
  0xad   :  { %v803_v33 = vpack.c.bf16 %v782_v27, %v782_v27 }
  0xae   :  { %v667_v35 = vpop.f32.mrf.mxu2  ;;  %v544_v40 = vpop.f32.mrf.mxu0 }
  0xaf   :  { %v730_v36 = vpop.f32.mrf.mxu3  ;;  %825 = vst.msk [vmem:[%s1686_s3] sm:$0xf] %vm824_vm0, %v803_v33  ;;  %v668_v39 = vadd.f32 %v667_v35, %v605_v34  ;;  %v607_v41 = vpop.f32.mrf.mxu1  ;;  %v545_v44 = vadd.f32 %v1523_v0, %v544_v40 }
  0xb1   :  { %v731_v45 = vadd.f32 %v730_v36, %v668_v39  ;;  %583 = vmatmul.bf16.gmra.mxu0 %v998_v37  ;;  %v608_v47 = vadd.f32 %v607_v41, %v545_v44 }
  0xb2   :  { %646 = vmatmul.bf16.gmra.mxu1 %v1002_v38 }
  0xb3   :  { %v783_v46 = vmax.f32 %v731_v45, 0.0  ;;  %709 = vmatmul.bf16.gmra.mxu2 %v1006_v42 }
  0xb4   :  { %772 = vmatmul.bf16.gmra.mxu3 %v1010_v43 }
  0xb5   :  { %v804_v48 = vpack.c.bf16 %v783_v46, %v783_v46 }
  0xb6   :  { %v670_v49 = vpop.f32.mrf.mxu2  ;;  %v546_v52 = vpop.f32.mrf.mxu0 }
  0xb7   :  { %v733_v50 = vpop.f32.mrf.mxu3  ;;  %826 = vst.msk [vmem:[%s1686_s3 + $0x4] sm:$0xf] %vm824_vm0, %v804_v48  ;;  %v671_v51 = vadd.f32 %v670_v49, %v608_v47  ;;  %v609_v53 = vpop.f32.mrf.mxu1  ;;  %v547_v57 = vadd.f32 %v1523_v0, %v546_v52 }
  0xb9   :  { %v734_v56 = vadd.f32 %v733_v50, %v671_v51  ;;  %v610_v1 = vadd.f32 %v609_v53, %v547_v57 }
  0xbb   :  { %v784_v60 = vmax.f32 %v734_v56, 0.0 }
  0xbd   :  { %v805_v63 = vpack.c.bf16 %v784_v60, %v784_v60 }
  0xbe   :  { %v672_v2 = vpop.f32.mrf.mxu2  ;;  %v549_v7 = vpop.f32.mrf.mxu0 }
  0xbf   :  { %v735_v3 = vpop.f32.mrf.mxu3  ;;  %827 = vst.msk [vmem:[%s1686_s3 + $0x8] sm:$0xf] %vm824_vm0, %v805_v63  ;;  %v673_v6 = vadd.f32 %v672_v2, %v610_v1  ;;  %v612_v8 = vpop.f32.mrf.mxu1  ;;  %v550_v11 = vadd.f32 %v1523_v0, %v549_v7 }
  0xc1   :  { %v736_v12 = vadd.f32 %v735_v3, %v673_v6  ;;  %588 = vmatmul.bf16.gmra.mxu0 %v290_v4  ;;  %v613_v14 = vadd.f32 %v612_v8, %v550_v11 }
  0xc2   :  { %651 = vmatmul.bf16.gmra.mxu1 %v291_v5 }
  0xc3   :  { %v785_v13 = vmax.f32 %v736_v12, 0.0  ;;  %714 = vmatmul.bf16.gmra.mxu2 %v292_v9 }
  0xc4   :  { %777 = vmatmul.bf16.gmra.mxu3 %v293_v10 }
  0xc5   :  { %v806_v15 = vpack.c.bf16 %v785_v13, %v785_v13 }
  0xc6   :  { %v675_v16 = vpop.f32.mrf.mxu2  ;;  %v551_v19 = vpop.f32.mrf.mxu0 }
  0xc7   :  { %v738_v17 = vpop.f32.mrf.mxu3  ;;  %828 = vst.msk [vmem:[%s1686_s3 + $0xc] sm:$0xf] %vm824_vm0, %v806_v15  ;;  %v676_v18 = vadd.f32 %v675_v16, %v613_v14  ;;  %v614_v20 = vpop.f32.mrf.mxu1  ;;  %v552_v22 = vadd.f32 %v1523_v0, %v551_v19 }
  0xc9   :  { %v739_v21 = vadd.f32 %v738_v17, %v676_v18  ;;  %v615_v25 = vadd.f32 %v614_v20, %v552_v22 }
  0xcb   :  { %v786_v23 = vmax.f32 %v739_v21, 0.0 }
  0xcd   :  { %v807_v24 = vpack.c.bf16 %v786_v23, %v786_v23 }
  0xce   :  { %v677_v26 = vpop.f32.mrf.mxu2  ;;  %v554_v29 = vpop.f32.mrf.mxu0 }
  0xcf   :  { %v740_v27 = vpop.f32.mrf.mxu3  ;;  %829 = vst.msk [vmem:[%s1686_s3 + $0x10] sm:$0xf] %vm824_vm0, %v807_v24  ;;  %v678_v28 = vadd.f32 %v677_v26, %v615_v25  ;;  %v617_v30 = vpop.f32.mrf.mxu1  ;;  %v555_v31 = vadd.f32 %v1523_v0, %v554_v29 }
  0xd1   :  { %v741_v32 = vadd.f32 %v740_v27, %v678_v28  ;;  %v618_v34 = vadd.f32 %v617_v30, %v555_v31 }
  0xd3   :  { %v787_v33 = vmax.f32 %v741_v32, 0.0 }
  0xd5   :  { %v808_v35 = vpack.c.bf16 %v787_v33, %v787_v33 }
  0xd6   :  { %v680_v36 = vpop.f32.mrf.mxu2  ;;  %v556_v39 = vpop.f32.mrf.mxu0 }
  0xd7   :  { %v743_v37 = vpop.f32.mrf.mxu3  ;;  %830 = vst.msk [vmem:[%s1686_s3 + $0x14] sm:$0xf] %vm824_vm0, %v808_v35  ;;  %v681_v38 = vadd.f32 %v680_v36, %v618_v34  ;;  %v619_v40 = vpop.f32.mrf.mxu1  ;;  %v557_v42 = vadd.f32 %v1523_v0, %v556_v39 }
  0xd9   :  { %v744_v41 = vadd.f32 %v743_v37, %v681_v38  ;;  %v620_v45 = vadd.f32 %v619_v40, %v557_v42 }
  0xdb   :  { %v788_v43 = vmax.f32 %v744_v41, 0.0 }
  0xdd   :  { %v809_v44 = vpack.c.bf16 %v788_v43, %v788_v43 }
  0xde   :  { %v682_v46 = vpop.f32.mrf.mxu2  ;;  %v559_v49 = vpop.f32.mrf.mxu0 }
  0xdf   :  { %v745_v47 = vpop.f32.mrf.mxu3  ;;  %831 = vst.msk [vmem:[%s1686_s3 + $0x18] sm:$0xf] %vm824_vm0, %v809_v44  ;;  %v683_v48 = vadd.f32 %v682_v46, %v620_v45  ;;  %v622_v50 = vpop.f32.mrf.mxu1  ;;  %v560_v51 = vadd.f32 %v1523_v0, %v559_v49 }
  0xe1   :  { %v746_v52 = vadd.f32 %v745_v47, %v683_v48  ;;  %v623_v54 = vadd.f32 %v622_v50, %v560_v51 }
  0xe3   :  { %v789_v53 = vmax.f32 %v746_v52, 0.0 }
  0xe5   :  { %v810_v55 = vpack.c.bf16 %v789_v53, %v789_v53 }
  0xe6   :  { %v685_v56 = vpop.f32.mrf.mxu2  ;;  %v561_v59 = vpop.f32.mrf.mxu0 }
  0xe7   :  { %v748_v57 = vpop.f32.mrf.mxu3  ;;  %832 = vst.msk [vmem:[%s1686_s3 + $0x1c] sm:$0xf] %vm824_vm0, %v810_v55  ;;  %v686_v58 = vadd.f32 %v685_v56, %v623_v54  ;;  %v624_v60 = vpop.f32.mrf.mxu1  ;;  %v562_v62 = vadd.f32 %v1523_v0, %v561_v59 }
  0xe9   :  { %v749_v61 = vadd.f32 %v748_v57, %v686_v58  ;;  %v625_v2 = vadd.f32 %v624_v60, %v562_v62 }
  0xeb   :  { %v790_v63 = vmax.f32 %v749_v61, 0.0 }
  0xed   :  { %v811_v1 = vpack.c.bf16 %v790_v63, %v790_v63 }
  0xee   :  { %v687_v3 = vpop.f32.mrf.mxu2  ;;  %v564_v6 = vpop.f32.mrf.mxu0 }
  0xef   :  { %v750_v4 = vpop.f32.mrf.mxu3  ;;  %833 = vst.msk [vmem:[%s1686_s3 + $0x20] sm:$0xf] %vm824_vm0, %v811_v1  ;;  %v688_v5 = vadd.f32 %v687_v3, %v625_v2  ;;  %v627_v7 = vpop.f32.mrf.mxu1  ;;  %v565_v8 = vadd.f32 %v1523_v0, %v564_v6 }
  0xf1   :  { %v751_v9 = vadd.f32 %v750_v4, %v688_v5  ;;  %v628_v11 = vadd.f32 %v627_v7, %v565_v8 }
  0xf3   :  { %v791_v10 = vmax.f32 %v751_v9, 0.0 }
  0xf5   :  { %v812_v12 = vpack.c.bf16 %v791_v10, %v791_v10 }
  0xf6   :  { %v690_v13 = vpop.f32.mrf.mxu2  ;;  %v566_v16 = vpop.f32.mrf.mxu0 }
  0xf7   :  { %v753_v14 = vpop.f32.mrf.mxu3  ;;  %834 = vst.msk [vmem:[%s1686_s3 + $0x24] sm:$0xf] %vm824_vm0, %v812_v12  ;;  %v691_v15 = vadd.f32 %v690_v13, %v628_v11  ;;  %v629_v17 = vpop.f32.mrf.mxu1  ;;  %v567_v19 = vadd.f32 %v1523_v0, %v566_v16 }
  0xf9   :  { %v754_v18 = vadd.f32 %v753_v14, %v691_v15  ;;  %v630_v22 = vadd.f32 %v629_v17, %v567_v19 }
  0xfb   :  { %v792_v20 = vmax.f32 %v754_v18, 0.0 }
  0xfd   :  { %v813_v21 = vpack.c.bf16 %v792_v20, %v792_v20 }
  0xfe   :  { %v692_v23 = vpop.f32.mrf.mxu2  ;;  %v569_v26 = vpop.f32.mrf.mxu0 }
  0xff   :  { %v755_v24 = vpop.f32.mrf.mxu3  ;;  %835 = vst.msk [vmem:[%s1686_s3 + $0x28] sm:$0xf] %vm824_vm0, %v813_v21  ;;  %v693_v25 = vadd.f32 %v692_v23, %v630_v22  ;;  %v632_v27 = vpop.f32.mrf.mxu1  ;;  %v570_v28 = vadd.f32 %v1523_v0, %v569_v26 }
 0x101   :  { %v756_v29 = vadd.f32 %v755_v24, %v693_v25  ;;  %v633_v31 = vadd.f32 %v632_v27, %v570_v28 }
 0x103   :  { %v793_v30 = vmax.f32 %v756_v29, 0.0 }
 0x105   :  { %v814_v32 = vpack.c.bf16 %v793_v30, %v793_v30 }
 0x106   :  { %v695_v33 = vpop.f32.mrf.mxu2  ;;  %v571_v36 = vpop.f32.mrf.mxu0 }
 0x107   :  { %v758_v34 = vpop.f32.mrf.mxu3  ;;  %836 = vst.msk [vmem:[%s1686_s3 + $0x2c] sm:$0xf] %vm824_vm0, %v814_v32  ;;  %v696_v35 = vadd.f32 %v695_v33, %v633_v31  ;;  %v634_v37 = vpop.f32.mrf.mxu1  ;;  %v572_v39 = vadd.f32 %v1523_v0, %v571_v36 }
 0x109   :  { %v759_v38 = vadd.f32 %v758_v34, %v696_v35  ;;  %v635_v42 = vadd.f32 %v634_v37, %v572_v39 }
 0x10b   :  { %v794_v40 = vmax.f32 %v759_v38, 0.0 }
 0x10d   :  { %v815_v41 = vpack.c.bf16 %v794_v40, %v794_v40 }
 0x10e   :  { %v697_v43 = vpop.f32.mrf.mxu2  ;;  %v574_v46 = vpop.f32.mrf.mxu0 }
 0x10f   :  { %v760_v44 = vpop.f32.mrf.mxu3  ;;  %837 = vst.msk [vmem:[%s1686_s3 + $0x30] sm:$0xf] %vm824_vm0, %v815_v41  ;;  %v698_v45 = vadd.f32 %v697_v43, %v635_v42  ;;  %v637_v47 = vpop.f32.mrf.mxu1  ;;  %v575_v48 = vadd.f32 %v1523_v0, %v574_v46 }
 0x111   :  { %v761_v49 = vadd.f32 %v760_v44, %v698_v45  ;;  %v638_v51 = vadd.f32 %v637_v47, %v575_v48 }
 0x113   :  { %v795_v50 = vmax.f32 %v761_v49, 0.0 }
 0x115   :  { %v816_v52 = vpack.c.bf16 %v795_v50, %v795_v50 }
 0x116   :  { %v700_v53 = vpop.f32.mrf.mxu2  ;;  %v576_v56 = vpop.f32.mrf.mxu0 }
 0x117   :  { %v763_v54 = vpop.f32.mrf.mxu3  ;;  %838 = vst.msk [vmem:[%s1686_s3 + $0x34] sm:$0xf] %vm824_vm0, %v816_v52  ;;  %v701_v55 = vadd.f32 %v700_v53, %v638_v51  ;;  %v639_v57 = vpop.f32.mrf.mxu1  ;;  %v577_v59 = vadd.f32 %v1523_v0, %v576_v56 }
 0x119   :  { %v764_v58 = vadd.f32 %v763_v54, %v701_v55  ;;  %v640_v62 = vadd.f32 %v639_v57, %v577_v59 }
 0x11b   :  { %v796_v60 = vmax.f32 %v764_v58, 0.0 }
 0x11d   :  { %v817_v61 = vpack.c.bf16 %v796_v60, %v796_v60 }
 0x11e   :  { %v702_v63 = vpop.f32.mrf.mxu2  ;;  %v579_v3 = vpop.f32.mrf.mxu0 }
 0x11f   :  { %v765_v1 = vpop.f32.mrf.mxu3  ;;  %839 = vst.msk [vmem:[%s1686_s3 + $0x38] sm:$0xf] %vm824_vm0, %v817_v61  ;;  %v703_v2 = vadd.f32 %v702_v63, %v640_v62  ;;  %v642_v4 = vpop.f32.mrf.mxu1  ;;  %v580_v5 = vadd.f32 %v1523_v0, %v579_v3 }
 0x121   :  { %v766_v6 = vadd.f32 %v765_v1, %v703_v2  ;;  %v643_v8 = vadd.f32 %v642_v4, %v580_v5 }
 0x123   :  { %v797_v7 = vmax.f32 %v766_v6, 0.0 }
 0x125   :  { %v818_v9 = vpack.c.bf16 %v797_v7, %v797_v7 }
 0x126   :  { %v705_v10 = vpop.f32.mrf.mxu2  ;;  %v581_v13 = vpop.f32.mrf.mxu0 }
 0x127   :  { %v768_v11 = vpop.f32.mrf.mxu3  ;;  %840 = vst.msk [vmem:[%s1686_s3 + $0x3c] sm:$0xf] %vm824_vm0, %v818_v9  ;;  %v706_v12 = vadd.f32 %v705_v10, %v643_v8  ;;  %v644_v14 = vpop.f32.mrf.mxu1  ;;  %v582_v16 = vadd.f32 %v1523_v0, %v581_v13 }
 0x129   :  { %v769_v15 = vadd.f32 %v768_v11, %v706_v12  ;;  %v645_v19 = vadd.f32 %v644_v14, %v582_v16 }
 0x12b   :  { %v798_v17 = vmax.f32 %v769_v15, 0.0 }
 0x12d   :  { %v819_v18 = vpack.c.bf16 %v798_v17, %v798_v17 }
 0x12e   :  { %v707_v20 = vpop.f32.mrf.mxu2  ;;  %v584_v23 = vpop.f32.mrf.mxu0 }
 0x12f   :  { %v770_v21 = vpop.f32.mrf.mxu3  ;;  %841 = vst.msk [vmem:[%s1686_s3 + $0x40] sm:$0xf] %vm824_vm0, %v819_v18  ;;  %v708_v22 = vadd.f32 %v707_v20, %v645_v19  ;;  %v647_v24 = vpop.f32.mrf.mxu1  ;;  %v585_v25 = vadd.f32 %v1523_v0, %v584_v23 }
 0x131   :  { %v771_v26 = vadd.f32 %v770_v21, %v708_v22  ;;  %v648_v28 = vadd.f32 %v647_v24, %v585_v25 }
 0x133   :  { %v799_v27 = vmax.f32 %v771_v26, 0.0 }
 0x135   :  { %v820_v29 = vpack.c.bf16 %v799_v27, %v799_v27 }
 0x136   :  { %v710_v30 = vpop.f32.mrf.mxu2  ;;  %v586_v33 = vpop.f32.mrf.mxu0 }
 0x137   :  { %v773_v31 = vpop.f32.mrf.mxu3  ;;  %842 = vst.msk [vmem:[%s1686_s3 + $0x44] sm:$0xf] %vm824_vm0, %v820_v29  ;;  %v711_v32 = vadd.f32 %v710_v30, %v648_v28  ;;  %v649_v34 = vpop.f32.mrf.mxu1  ;;  %v587_v36 = vadd.f32 %v1523_v0, %v586_v33 }
 0x139   :  { %v774_v35 = vadd.f32 %v773_v31, %v711_v32  ;;  %v650_v39 = vadd.f32 %v649_v34, %v587_v36 }
 0x13b   :  { %v800_v37 = vmax.f32 %v774_v35, 0.0 }
 0x13d   :  { %v821_v38 = vpack.c.bf16 %v800_v37, %v800_v37 }
 0x13e   :  { %v712_v40 = vpop.f32.mrf.mxu2  ;;  %v589_v43 = vpop.f32.mrf.mxu0 }
 0x13f   :  { %v775_v41 = vpop.f32.mrf.mxu3  ;;  %843 = vst.msk [vmem:[%s1686_s3 + $0x48] sm:$0xf] %vm824_vm0, %v821_v38  ;;  %v713_v42 = vadd.f32 %v712_v40, %v650_v39  ;;  %v652_v44 = vpop.f32.mrf.mxu1  ;;  %v590_v45 = vadd.f32 %v1523_v0, %v589_v43 }
 0x141   :  { %v776_v46 = vadd.f32 %v775_v41, %v713_v42  ;;  %v653_v48 = vadd.f32 %v652_v44, %v590_v45 }
 0x143   :  { %v801_v47 = vmax.f32 %v776_v46, 0.0 }
 0x145   :  { %v822_v49 = vpack.c.bf16 %v801_v47, %v801_v47 }
 0x146   :  { %v715_v50 = vpop.f32.mrf.mxu2  ;;  %v591_v53 = vpop.f32.mrf.mxu0 }
 0x147   :  { %v778_v51 = vpop.f32.mrf.mxu3  ;;  %844 = vst.msk [vmem:[%s1686_s3 + $0x4c] sm:$0xf] %vm824_vm0, %v822_v49  ;;  %v716_v52 = vadd.f32 %v715_v50, %v653_v48  ;;  %v654_v54 = vpop.f32.mrf.mxu1 }
 0x149   :  { %v779_v55 = vadd.f32 %v778_v51, %v716_v52 }
 0x14b   :  { %v802_v56 = vmax.f32 %v779_v55, 0.0 }
 0x14d   :  { %v823_v57 = vpack.c.bf16 %v802_v56, %v802_v56 }
 0x14e   :  { %v717_v58 = vpop.f32.mrf.mxu2 }
 0x14f   :  { %v780_v0 = vpop.f32.mrf.mxu3  ;;  %846 = vst.msk [vmem:[%s1686_s3 + $0x50] sm:$0x1] %vm845_vm1, %v823_v57 }

// kernel: dueling_cnn_forward.4
= control target key start
LH: loop header
LB: loop body
LE: loop exit
PB: predicated region body
PF: predicated region fallthrough
CT: control target
= control target key end

     0   :  { %vm1464_vm0 = vcmask 257024   ;;  %s3345_s1 = inlined_call_operand.vmem [shape: bf16[256,32], index: 1, kind: input, shape index: {}]   ;;  %s3346_s2 = inlined_call_operand.vmem [shape: f32[1,32], index: 2, kind: input, shape index: {}]   ;;  %s3347_s0 = inlined_call_operand.vmem [shape: bf16[800,256], index: 0, kind: input, shape index: {}]   ;;  %s3348_s3 = inlined_call_operand.vmem [shape: bf16[800,32], index: 3, kind: output, shape index: {}]  }
   0x1   :  { %v2140_v0 = vld [vmem:[%s3345_s1 + $0x38] sm:$0xff]  ;;  %v2139_v2 = vld [vmem:[%s3345_s1 + $0x30] sm:$0xff]  ;;  %v2138_v4 = vld [vmem:[%s3345_s1 + $0x28] sm:$0xff] }
   0x2   :  { %v2148_v1 = vld [vmem:[%s3345_s1 + $0x78] sm:$0xff]  ;;  %746 = vmatpush.bf16.msra.mxu0 %v2140_v0  ;;  %2149 = vmatpush.bf16.msra.mxu2 %v2140_v0  ;;  %v2147_v3 = vld [vmem:[%s3345_s1 + $0x70] sm:$0xff]  ;;  %v2146_v5 = vld [vmem:[%s3345_s1 + $0x68] sm:$0xff] }
   0x3   :  { %1005 = vmatpush.bf16.msra.mxu1 %v2148_v1  ;;  %2157 = vmatpush.bf16.msra.mxu3 %v2148_v1  ;;  %v2137_v6 = vld [vmem:[%s3345_s1 + $0x20] sm:$0xff]  ;;  %v2136_v8 = vld [vmem:[%s3345_s1 + $0x18] sm:$0xff]  ;;  %v2135_v10 = vld [vmem:[%s3345_s1 + $0x10] sm:$0xff] }
   0x4   :  { %v2145_v7 = vld [vmem:[%s3345_s1 + $0x60] sm:$0xff]  ;;  %v2144_v9 = vld [vmem:[%s3345_s1 + $0x58] sm:$0xff]  ;;  %v2143_v11 = vld [vmem:[%s3345_s1 + $0x50] sm:$0xff] }
   0x5   :  { %v2134_v12 = vld [vmem:[%s3345_s1 + $0x8] sm:$0xff]  ;;  %v2133_v14 = vld [vmem:[%s3345_s1] sm:$0xff]  ;;  %v1771_v18 = vld [vmem:[%s3347_s0 + $0x190] sm:$0xf] }
   0x6   :  { %747 = vmatpush.bf16.msra.mxu0 %v2139_v2  ;;  %2150 = vmatpush.bf16.msra.mxu2 %v2139_v2  ;;  %v2142_v13 = vld [vmem:[%s3345_s1 + $0x48] sm:$0xff]  ;;  %v2141_v15 = vld [vmem:[%s3345_s1 + $0x40] sm:$0xff]  ;;  %v2084_v19 = vld [vmem:[%s3347_s0 + $0x194] sm:$0xf0] }
   0x7   :  { %1006 = vmatpush.bf16.msra.mxu1 %v2147_v3  ;;  %2158 = vmatpush.bf16.msra.mxu3 %v2147_v3  ;;  %v1571_v16 = vld [vmem:[%s3347_s0] sm:$0xf]  ;;  %v2034_v17 = vld [vmem:[%s3347_s0 + $0x4] sm:$0xf0]  ;;  %v2033_v20 = vld [vmem:[%s3347_s0 + $0x4] sm:$0xf]  ;;  %v1772_v25 = vor.u32 %v2084_v19, %v1771_v18 }
   0x8   :  { %v1573_v21 = vld [vmem:[%s3347_s0 + $0x8] sm:$0xf0]  ;;  %v2083_v22 = vld [vmem:[%s3347_s0 + $0x194] sm:$0xf]  ;;  %v1773_v23 = vld [vmem:[%s3347_s0 + $0x198] sm:$0xf0]  ;;  %v1572_v24 = vor.u32 %v2034_v17, %v1571_v16 }
   0x9   :  { %v1576_v26 = vor.u32 %v2033_v20, %v1573_v21  ;;  %v1776_v27 = vor.u32 %v2083_v22, %v1773_v23  ;;  %v1579_v28 = vld [vmem:[%s3347_s0 + $0x10] sm:$0xf]  ;;  %v2036_v29 = vld [vmem:[%s3347_s0 + $0x14] sm:$0xf0]  ;;  %v1779_v30 = vld [vmem:[%s3347_s0 + $0x1a0] sm:$0xf] }
   0xa   :  { %748 = vmatpush.bf16.msra.mxu0 %v2138_v4  ;;  %2151 = vmatpush.bf16.msra.mxu2 %v2138_v4  ;;  %v2086_v31 = vld [vmem:[%s3347_s0 + $0x1a4] sm:$0xf0]  ;;  %v2035_v32 = vld [vmem:[%s3347_s0 + $0x14] sm:$0xf]  ;;  %v1581_v33 = vld [vmem:[%s3347_s0 + $0x18] sm:$0xf0]  ;;  %v1580_v36 = vor.u32 %v2036_v29, %v1579_v28 }
   0xb   :  { %1007 = vmatpush.bf16.msra.mxu1 %v2146_v5  ;;  %2159 = vmatpush.bf16.msra.mxu3 %v2146_v5  ;;  %v2085_v34 = vld [vmem:[%s3347_s0 + $0x1a4] sm:$0xf]  ;;  %v1781_v35 = vld [vmem:[%s3347_s0 + $0x1a8] sm:$0xf0]  ;;  %v1780_v37 = vor.u32 %v2086_v31, %v1779_v30  ;;  %v1584_v38 = vor.u32 %v2035_v32, %v1581_v33  ;;  %v1587_v40 = vld [vmem:[%s3347_s0 + $0x20] sm:$0xf] }
   0xc   :  { %v1784_v39 = vor.u32 %v2085_v34, %v1781_v35  ;;  %v2038_v41 = vld [vmem:[%s3347_s0 + $0x24] sm:$0xf0]  ;;  %v1787_v42 = vld [vmem:[%s3347_s0 + $0x1b0] sm:$0xf]  ;;  %v2088_v43 = vld [vmem:[%s3347_s0 + $0x1b4] sm:$0xf0] }
   0xd   :  { %v2037_v44 = vld [vmem:[%s3347_s0 + $0x24] sm:$0xf]  ;;  %v1589_v45 = vld [vmem:[%s3347_s0 + $0x28] sm:$0xf0]  ;;  %v2087_v46 = vld [vmem:[%s3347_s0 + $0x1b4] sm:$0xf]  ;;  %v1588_v48 = vor.u32 %v2038_v41, %v1587_v40  ;;  %v1788_v49 = vor.u32 %v2088_v43, %v1787_v42 }
   0xe   :  { %749 = vmatpush.bf16.msra.mxu0 %v2137_v6  ;;  %2152 = vmatpush.bf16.msra.mxu2 %v2137_v6  ;;  %v1789_v47 = vld [vmem:[%s3347_s0 + $0x1b8] sm:$0xf0]  ;;  %v1592_v50 = vor.u32 %v2037_v44, %v1589_v45  ;;  %v1595_v52 = vld [vmem:[%s3347_s0 + $0x30] sm:$0xf]  ;;  %v2040_v53 = vld [vmem:[%s3347_s0 + $0x34] sm:$0xf0] }
   0xf   :  { %1008 = vmatpush.bf16.msra.mxu1 %v2145_v7  ;;  %2160 = vmatpush.bf16.msra.mxu3 %v2145_v7  ;;  %v1792_v51 = vor.u32 %v2087_v46, %v1789_v47  ;;  %v1795_v54 = vld [vmem:[%s3347_s0 + $0x1c0] sm:$0xf]  ;;  %v2090_v55 = vld [vmem:[%s3347_s0 + $0x1c4] sm:$0xf0]  ;;  %v2039_v56 = vld [vmem:[%s3347_s0 + $0x34] sm:$0xf]  ;;  %v1596_v60 = vor.u32 %v2040_v53, %v1595_v52 }
  0x10   :  { %v1597_v57 = vld [vmem:[%s3347_s0 + $0x38] sm:$0xf0]  ;;  %v2089_v58 = vld [vmem:[%s3347_s0 + $0x1c4] sm:$0xf]  ;;  %v1797_v59 = vld [vmem:[%s3347_s0 + $0x1c8] sm:$0xf0]  ;;  %v1796_v61 = vor.u32 %v2090_v55, %v1795_v54 }
  0x11   :  { %v1600_v62 = vor.u32 %v2039_v56, %v1597_v57  ;;  %v1800_v63 = vor.u32 %v2089_v58, %v1797_v59  ;;  %v1603_v0 = vld [vmem:[%s3347_s0 + $0x40] sm:$0xf]  ;;  %v2042_v1 = vld [vmem:[%s3347_s0 + $0x44] sm:$0xf0]  ;;  %v1803_v2 = vld [vmem:[%s3347_s0 + $0x1d0] sm:$0xf] }
  0x12   :  { %750 = vmatpush.bf16.msra.mxu0 %v2136_v8  ;;  %2153 = vmatpush.bf16.msra.mxu2 %v2136_v8  ;;  %v2092_v3 = vld [vmem:[%s3347_s0 + $0x1d4] sm:$0xf0]  ;;  %v2041_v4 = vld [vmem:[%s3347_s0 + $0x44] sm:$0xf]  ;;  %v1605_v5 = vld [vmem:[%s3347_s0 + $0x48] sm:$0xf0]  ;;  %v1604_v8 = vor.u32 %v2042_v1, %v1603_v0 }
  0x13   :  { %1009 = vmatpush.bf16.msra.mxu1 %v2144_v9  ;;  %2161 = vmatpush.bf16.msra.mxu3 %v2144_v9  ;;  %v2091_v6 = vld [vmem:[%s3347_s0 + $0x1d4] sm:$0xf]  ;;  %v1805_v7 = vld [vmem:[%s3347_s0 + $0x1d8] sm:$0xf0]  ;;  %v1804_v9 = vor.u32 %v2092_v3, %v1803_v2  ;;  %v2093_v18 = vld [vmem:[%s3347_s0 + $0x1e4] sm:$0xf] }
  0x14   :  { %v2043_v16 = vld [vmem:[%s3347_s0 + $0x54] sm:$0xf]  ;;  %v1613_v17 = vld [vmem:[%s3347_s0 + $0x58] sm:$0xf0]  ;;  %v1813_v19 = vld [vmem:[%s3347_s0 + $0x1e8] sm:$0xf0] }
  0x15   :  { %v1616_v22 = vor.u32 %v2043_v16, %v1613_v17  ;;  %v1816_v23 = vor.u32 %v2093_v18, %v1813_v19  ;;  %v2045_v28 = vld [vmem:[%s3347_s0 + $0x64] sm:$0xf]  ;;  %v1621_v29 = vld [vmem:[%s3347_s0 + $0x68] sm:$0xf0]  ;;  %v2095_v30 = vld [vmem:[%s3347_s0 + $0x1f4] sm:$0xf] }
  0x16   :  { %751 = vmatpush.bf16.msra.mxu0 %v2135_v10  ;;  %2154 = vmatpush.bf16.msra.mxu2 %v2135_v10  ;;  %v1608_v10 = vor.u32 %v2041_v4, %v1605_v5  ;;  %v1821_v31 = vld [vmem:[%s3347_s0 + $0x1f8] sm:$0xf0]  ;;  %v1624_v34 = vor.u32 %v2045_v28, %v1621_v29  ;;  %v2047_v40 = vld [vmem:[%s3347_s0 + $0x74] sm:$0xf]  ;;  %v2097_v42 = vld [vmem:[%s3347_s0 + $0x204] sm:$0xf] }
  0x17   :  { %1010 = vmatpush.bf16.msra.mxu1 %v2143_v11  ;;  %2162 = vmatpush.bf16.msra.mxu3 %v2143_v11  ;;  %v1808_v11 = vor.u32 %v2091_v6, %v1805_v7  ;;  %v1824_v35 = vor.u32 %v2095_v30, %v1821_v31  ;;  %v1629_v41 = vld [vmem:[%s3347_s0 + $0x78] sm:$0xf0]  ;;  %v1829_v43 = vld [vmem:[%s3347_s0 + $0x208] sm:$0xf0]  ;;  %v2100_v52 = vld [vmem:[%s3347_s0 + $0x214] sm:$0xf0] }
  0x18   :  { %v1632_v46 = vor.u32 %v2047_v40, %v1629_v41  ;;  %v1832_v47 = vor.u32 %v2097_v42, %v1829_v43  ;;  %v2049_v53 = vld [vmem:[%s3347_s0 + $0x84] sm:$0xf]  ;;  %v1637_v54 = vld [vmem:[%s3347_s0 + $0x88] sm:$0xf0]  ;;  %v2099_v55 = vld [vmem:[%s3347_s0 + $0x214] sm:$0xf] }
  0x19   :  { %v1837_v56 = vld [vmem:[%s3347_s0 + $0x218] sm:$0xf0]  ;;  %v2051_v16 = vld [vmem:[%s3347_s0 + $0x94] sm:$0xf] }
  0x1a   :  { %752 = vmatpush.bf16.msra.mxu0 %v2134_v12  ;;  %2155 = vmatpush.bf16.msra.mxu2 %v2134_v12  ;;  %v1611_v12 = vld [vmem:[%s3347_s0 + $0x50] sm:$0xf]  ;;  %v1645_v17 = vld [vmem:[%s3347_s0 + $0x98] sm:$0xf0] }
  0x1b   :  { %1011 = vmatpush.bf16.msra.mxu1 %v2142_v13  ;;  %2163 = vmatpush.bf16.msra.mxu3 %v2142_v13  ;;  %v2044_v13 = vld [vmem:[%s3347_s0 + $0x54] sm:$0xf0]  ;;  %v1648_v29 = vor.u32 %v2051_v16, %v1645_v17 }
  0x1c   :  { %v1612_v20 = vor.u32 %v2044_v13, %v1611_v12  ;;  %v2052_v13 = vld [vmem:[%s3347_s0 + $0x94] sm:$0xf0] }
  0x1e   :  { %753 = vmatpush.bf16.msra.mxu0 %v2133_v14  ;;  %2156 = vmatpush.bf16.msra.mxu2 %v2133_v14  ;;  %v1811_v14 = vld [vmem:[%s3347_s0 + $0x1e0] sm:$0xf] }
  0x1f   :  { %1012 = vmatpush.bf16.msra.mxu1 %v2141_v15  ;;  %2164 = vmatpush.bf16.msra.mxu3 %v2141_v15  ;;  %v2094_v15 = vld [vmem:[%s3347_s0 + $0x1e4] sm:$0xf0] }
  0x20   :  { %v1812_v21 = vor.u32 %v2094_v15, %v1811_v14  ;;  %v1843_v14 = vld [vmem:[%s3347_s0 + $0x220] sm:$0xf]  ;;  %v2102_v15 = vld [vmem:[%s3347_s0 + $0x224] sm:$0xf0] }
  0x21   :  { %754 = vmatmul.bf16.vlgmr.msra.gmra.mxu0 %v1572_v24  ;;  %879 = vmatmul.bf16.vlgmr.msra.gmra.mxu2 %v1772_v25  ;;  %v1619_v24 = vld [vmem:[%s3347_s0 + $0x60] sm:$0xf]  ;;  %v2046_v25 = vld [vmem:[%s3347_s0 + $0x64] sm:$0xf0] }
  0x22   :  { %1013 = vmatmul.bf16.vlgmr.msra.gmra.mxu1 %v1576_v26  ;;  %1138 = vmatmul.bf16.vlgmr.msra.gmra.mxu3 %v1776_v27  ;;  %v1819_v26 = vld [vmem:[%s3347_s0 + $0x1f0] sm:$0xf]  ;;  %v2096_v27 = vld [vmem:[%s3347_s0 + $0x1f4] sm:$0xf0]  ;;  %v1620_v32 = vor.u32 %v2046_v25, %v1619_v24 }
  0x23   :  { %v1820_v33 = vor.u32 %v2096_v27, %v1819_v26  ;;  %v1844_v27 = vor.u32 %v2102_v15, %v1843_v14 }
  0x31   :  { %759 = vmatmul.bf16.gmra.mxu0 %v1580_v36  ;;  %884 = vmatmul.bf16.gmra.mxu2 %v1780_v37  ;;  %v1627_v36 = vld [vmem:[%s3347_s0 + $0x70] sm:$0xf]  ;;  %v2048_v37 = vld [vmem:[%s3347_s0 + $0x74] sm:$0xf0] }
  0x32   :  { %1018 = vmatmul.bf16.gmra.mxu1 %v1584_v38  ;;  %1143 = vmatmul.bf16.gmra.mxu3 %v1784_v39  ;;  %v1827_v38 = vld [vmem:[%s3347_s0 + $0x200] sm:$0xf]  ;;  %v2098_v39 = vld [vmem:[%s3347_s0 + $0x204] sm:$0xf0]  ;;  %v1628_v44 = vor.u32 %v2048_v37, %v1627_v36 }
  0x33   :  { %v1828_v45 = vor.u32 %v2098_v39, %v1827_v38 }
  0x41   :  { %764 = vmatmul.bf16.gmra.mxu0 %v1588_v48  ;;  %889 = vmatmul.bf16.gmra.mxu2 %v1788_v49  ;;  %v2430_v48 = vld [vmem:[%s3346_s2] ss:$0 sm:$0xff] }
  0x42   :  { %1023 = vmatmul.bf16.gmra.mxu1 %v1592_v50  ;;  %1148 = vmatmul.bf16.gmra.mxu3 %v1792_v51  ;;  %v1635_v49 = vld [vmem:[%s3347_s0 + $0x80] sm:$0xf]  ;;  %v2050_v50 = vld [vmem:[%s3347_s0 + $0x84] sm:$0xf0]  ;;  %v1835_v51 = vld [vmem:[%s3347_s0 + $0x210] sm:$0xf] }
  0x43   :  { %v1636_v57 = vor.u32 %v2050_v50, %v1635_v49  ;;  %v1836_v58 = vor.u32 %v2100_v52, %v1835_v51  ;;  %v2054_v50 = vld [vmem:[%s3347_s0 + $0xa4] sm:$0xf0]  ;;  %v1851_v51 = vld [vmem:[%s3347_s0 + $0x230] sm:$0xf]  ;;  %v2104_v52 = vld [vmem:[%s3347_s0 + $0x234] sm:$0xf0] }
  0x51   :  { %769 = vmatmul.bf16.gmra.mxu0 %v1596_v60  ;;  %894 = vmatmul.bf16.gmra.mxu2 %v1796_v61  ;;  %v1640_v60 = vor.u32 %v2049_v53, %v1637_v54  ;;  %v1840_v61 = vor.u32 %v2099_v55, %v1837_v56  ;;  %v2053_v53 = vld [vmem:[%s3347_s0 + $0xa4] sm:$0xf]  ;;  %v1653_v54 = vld [vmem:[%s3347_s0 + $0xa8] sm:$0xf0] }
  0x52   :  { %1028 = vmatmul.bf16.gmra.mxu1 %v1600_v62  ;;  %1153 = vmatmul.bf16.gmra.mxu3 %v1800_v63 }
  0x61   :  { %774 = vmatmul.bf16.gmra.mxu0 %v1604_v8  ;;  %899 = vmatmul.bf16.gmra.mxu2 %v1804_v9 }
  0x62   :  { %1033 = vmatmul.bf16.gmra.mxu1 %v1608_v10  ;;  %1158 = vmatmul.bf16.gmra.mxu3 %v1808_v11  ;;  %v1643_v10 = vld [vmem:[%s3347_s0 + $0x90] sm:$0xf] }
  0x63   :  { %v1644_v26 = vor.u32 %v2052_v13, %v1643_v10 }
  0x71   :  { %779 = vmatmul.bf16.gmra.mxu0 %v1612_v20  ;;  %904 = vmatmul.bf16.gmra.mxu2 %v1812_v21  ;;  %v2101_v20 = vld [vmem:[%s3347_s0 + $0x224] sm:$0xf]  ;;  %v1845_v21 = vld [vmem:[%s3347_s0 + $0x228] sm:$0xf0] }
  0x72   :  { %1038 = vmatmul.bf16.gmra.mxu1 %v1616_v22  ;;  %1163 = vmatmul.bf16.gmra.mxu3 %v1816_v23  ;;  %v1848_v30 = vor.u32 %v2101_v20, %v1845_v21 }
  0x81   :  { %784 = vmatmul.bf16.gmra.mxu0 %v1620_v32  ;;  %909 = vmatmul.bf16.gmra.mxu2 %v1820_v33 }
  0x82   :  { %1043 = vmatmul.bf16.gmra.mxu1 %v1624_v34  ;;  %1168 = vmatmul.bf16.gmra.mxu3 %v1824_v35 }
  0x91   :  { %789 = vmatmul.bf16.gmra.mxu0 %v1628_v44  ;;  %914 = vmatmul.bf16.gmra.mxu2 %v1828_v45 }
  0x92   :  { %1048 = vmatmul.bf16.gmra.mxu1 %v1632_v46  ;;  %1173 = vmatmul.bf16.gmra.mxu3 %v1832_v47  ;;  %v1651_v46 = vld [vmem:[%s3347_s0 + $0xa0] sm:$0xf] }
  0x9e   :  { %v755_v59 = vpop.f32.mrf.mxu0 }
  0x9f   :  { %v756_v62 = vadd.f32 %v2430_v48, %v755_v59  ;;  %v1014_v63 = vpop.f32.mrf.mxu1 }
  0xa1   :  { %v1015_v0 = vadd.f32 %v1014_v63, %v756_v62  ;;  %794 = vmatmul.bf16.gmra.mxu0 %v1636_v57  ;;  %919 = vmatmul.bf16.gmra.mxu2 %v1836_v58  ;;  %v2103_v57 = vld [vmem:[%s3347_s0 + $0x234] sm:$0xf]  ;;  %v1853_v58 = vld [vmem:[%s3347_s0 + $0x238] sm:$0xf0]  ;;  %v1652_v63 = vor.u32 %v2054_v50, %v1651_v46 }
  0xa2   :  { %1053 = vmatmul.bf16.gmra.mxu1 %v1640_v60  ;;  %1178 = vmatmul.bf16.gmra.mxu3 %v1840_v61 }
  0xa3   :  { %v1264_v1 = vmax.f32 %v1015_v0, 0.0  ;;  %v1852_v0 = vor.u32 %v2104_v52, %v1851_v51 }
  0xa4   :  { %v880_v2 = vpop.f32.mrf.mxu2 }
  0xa5   :  { %v1364_v3 = vpack.c.bf16 %v1264_v1, %v1264_v1  ;;  %v881_v4 = vadd.f32 %v2430_v48, %v880_v2  ;;  %v1139_v5 = vpop.f32.mrf.mxu3  ;;  %v1656_v2 = vor.u32 %v2053_v53, %v1653_v54 }
  0xa6   :  { %v757_v6 = vpop.f32.mrf.mxu0 }
  0xa7   :  { %1465 = vst.msk [vmem:[%s3348_s3] sm:$0xf] %vm1464_vm0, %v1364_v3  ;;  %v1140_v7 = vadd.f32 %v1139_v5, %v881_v4  ;;  %v758_v8 = vadd.f32 %v2430_v48, %v757_v6  ;;  %v1016_v9 = vpop.f32.mrf.mxu1  ;;  %v1856_v3 = vor.u32 %v2103_v57, %v1853_v58 }
  0xa9   :  { %v1314_v11 = vmax.f32 %v1140_v7, 0.0  ;;  %v1017_v12 = vadd.f32 %v1016_v9, %v758_v8 }
  0xab   :  { %v1414_v18 = vpack.c.bf16 %v1314_v11, %v1314_v11  ;;  %v1265_v19 = vmax.f32 %v1017_v12, 0.0 }
  0xac   :  { %v882_v22 = vpop.f32.mrf.mxu2 }
  0xad   :  { %1515 = vst.msk [vmem:[%s3348_s3 + $0xc8] sm:$0xf] %vm1464_vm0, %v1414_v18  ;;  %v1365_v23 = vpack.c.bf16 %v1265_v19, %v1265_v19  ;;  %v883_v24 = vadd.f32 %v2430_v48, %v882_v22  ;;  %v1141_v25 = vpop.f32.mrf.mxu3  ;;  %v1659_v19 = vld [vmem:[%s3347_s0 + $0xb0] sm:$0xf]  ;;  %v2056_v22 = vld [vmem:[%s3347_s0 + $0xb4] sm:$0xf0] }
  0xae   :  { %v760_v28 = vpop.f32.mrf.mxu0 }
  0xaf   :  { %1466 = vst.msk [vmem:[%s3348_s3 + $0x4] sm:$0xf] %vm1464_vm0, %v1365_v23  ;;  %v1142_v31 = vadd.f32 %v1141_v25, %v883_v24  ;;  %v761_v32 = vadd.f32 %v2430_v48, %v760_v28  ;;  %v1019_v33 = vpop.f32.mrf.mxu1  ;;  %v1859_v23 = vld [vmem:[%s3347_s0 + $0x240] sm:$0xf]  ;;  %v2106_v24 = vld [vmem:[%s3347_s0 + $0x244] sm:$0xf0] }
  0xb0   :  { %v2055_v25 = vld [vmem:[%s3347_s0 + $0xb4] sm:$0xf] }
  0xb1   :  { %v1315_v34 = vmax.f32 %v1142_v31, 0.0  ;;  %v1020_v35 = vadd.f32 %v1019_v33, %v761_v32  ;;  %799 = vmatmul.bf16.gmra.mxu0 %v1644_v26  ;;  %924 = vmatmul.bf16.gmra.mxu2 %v1844_v27  ;;  %v1661_v26 = vld [vmem:[%s3347_s0 + $0xb8] sm:$0xf0] }
  0xb2   :  { %1058 = vmatmul.bf16.gmra.mxu1 %v1648_v29  ;;  %1183 = vmatmul.bf16.gmra.mxu3 %v1848_v30  ;;  %v2105_v29 = vld [vmem:[%s3347_s0 + $0x244] sm:$0xf]  ;;  %v1861_v30 = vld [vmem:[%s3347_s0 + $0x248] sm:$0xf0] }
  0xb3   :  { %v1415_v36 = vpack.c.bf16 %v1315_v34, %v1315_v34  ;;  %v1266_v37 = vmax.f32 %v1020_v35, 0.0  ;;  %v1660_v35 = vor.u32 %v2056_v22, %v1659_v19 }
  0xb4   :  { %v885_v38 = vpop.f32.mrf.mxu2 }
  0xb5   :  { %1516 = vst.msk [vmem:[%s3348_s3 + $0xcc] sm:$0xf] %vm1464_vm0, %v1415_v36  ;;  %v1366_v39 = vpack.c.bf16 %v1266_v37, %v1266_v37  ;;  %v886_v40 = vadd.f32 %v2430_v48, %v885_v38  ;;  %v1144_v41 = vpop.f32.mrf.mxu3  ;;  %v1860_v36 = vor.u32 %v2106_v24, %v1859_v23  ;;  %v1664_v38 = vor.u32 %v2055_v25, %v1661_v26 }
  0xb6   :  { %v762_v42 = vpop.f32.mrf.mxu0 }
  0xb7   :  { %1467 = vst.msk [vmem:[%s3348_s3 + $0x8] sm:$0xf] %vm1464_vm0, %v1366_v39  ;;  %v1145_v43 = vadd.f32 %v1144_v41, %v886_v40  ;;  %v763_v44 = vadd.f32 %v2430_v48, %v762_v42  ;;  %v1021_v45 = vpop.f32.mrf.mxu1  ;;  %v1864_v39 = vor.u32 %v2105_v29, %v1861_v30 }
  0xb9   :  { %v1316_v47 = vmax.f32 %v1145_v43, 0.0  ;;  %v1022_v49 = vadd.f32 %v1021_v45, %v763_v44 }
  0xbb   :  { %v1416_v55 = vpack.c.bf16 %v1316_v47, %v1316_v47  ;;  %v1267_v56 = vmax.f32 %v1022_v49, 0.0 }
  0xbc   :  { %v887_v59 = vpop.f32.mrf.mxu2 }
  0xbd   :  { %1517 = vst.msk [vmem:[%s3348_s3 + $0xd0] sm:$0xf] %vm1464_vm0, %v1416_v55  ;;  %v1367_v60 = vpack.c.bf16 %v1267_v56, %v1267_v56  ;;  %v888_v61 = vadd.f32 %v2430_v48, %v887_v59  ;;  %v1146_v62 = vpop.f32.mrf.mxu3  ;;  %v1667_v56 = vld [vmem:[%s3347_s0 + $0xc0] sm:$0xf]  ;;  %v2058_v59 = vld [vmem:[%s3347_s0 + $0xc4] sm:$0xf0] }
  0xbe   :  { %v765_v1 = vpop.f32.mrf.mxu0 }
  0xbf   :  { %1468 = vst.msk [vmem:[%s3348_s3 + $0xc] sm:$0xf] %vm1464_vm0, %v1367_v60  ;;  %v1147_v4 = vadd.f32 %v1146_v62, %v888_v61  ;;  %v766_v5 = vadd.f32 %v2430_v48, %v765_v1  ;;  %v1024_v6 = vpop.f32.mrf.mxu1  ;;  %v1867_v60 = vld [vmem:[%s3347_s0 + $0x250] sm:$0xf]  ;;  %v2108_v61 = vld [vmem:[%s3347_s0 + $0x254] sm:$0xf0] }
  0xc0   :  { %v2057_v62 = vld [vmem:[%s3347_s0 + $0xc4] sm:$0xf] }
  0xc1   :  { %v1317_v7 = vmax.f32 %v1147_v4, 0.0  ;;  %v1025_v8 = vadd.f32 %v1024_v6, %v766_v5  ;;  %804 = vmatmul.bf16.gmra.mxu0 %v1652_v63  ;;  %929 = vmatmul.bf16.gmra.mxu2 %v1852_v0  ;;  %v1669_v63 = vld [vmem:[%s3347_s0 + $0xc8] sm:$0xf0] }
  0xc2   :  { %1063 = vmatmul.bf16.gmra.mxu1 %v1656_v2  ;;  %1188 = vmatmul.bf16.gmra.mxu3 %v1856_v3  ;;  %v2107_v2 = vld [vmem:[%s3347_s0 + $0x254] sm:$0xf]  ;;  %v1869_v3 = vld [vmem:[%s3347_s0 + $0x258] sm:$0xf0] }
  0xc3   :  { %v1417_v9 = vpack.c.bf16 %v1317_v7, %v1317_v7  ;;  %v1268_v10 = vmax.f32 %v1025_v8, 0.0  ;;  %v1668_v8 = vor.u32 %v2058_v59, %v1667_v56 }
  0xc4   :  { %v890_v11 = vpop.f32.mrf.mxu2 }
  0xc5   :  { %1518 = vst.msk [vmem:[%s3348_s3 + $0xd4] sm:$0xf] %vm1464_vm0, %v1417_v9  ;;  %v1368_v12 = vpack.c.bf16 %v1268_v10, %v1268_v10  ;;  %v891_v13 = vadd.f32 %v2430_v48, %v890_v11  ;;  %v1149_v14 = vpop.f32.mrf.mxu3  ;;  %v1868_v9 = vor.u32 %v2108_v61, %v1867_v60  ;;  %v1672_v11 = vor.u32 %v2057_v62, %v1669_v63 }
  0xc6   :  { %v767_v15 = vpop.f32.mrf.mxu0 }
  0xc7   :  { %1469 = vst.msk [vmem:[%s3348_s3 + $0x10] sm:$0xf] %vm1464_vm0, %v1368_v12  ;;  %v1150_v16 = vadd.f32 %v1149_v14, %v891_v13  ;;  %v768_v17 = vadd.f32 %v2430_v48, %v767_v15  ;;  %v1026_v18 = vpop.f32.mrf.mxu1  ;;  %v1872_v12 = vor.u32 %v2107_v2, %v1869_v3 }
  0xc9   :  { %v1318_v20 = vmax.f32 %v1150_v16, 0.0  ;;  %v1027_v21 = vadd.f32 %v1026_v18, %v768_v17 }
  0xcb   :  { %v1418_v27 = vpack.c.bf16 %v1318_v20, %v1318_v20  ;;  %v1269_v28 = vmax.f32 %v1027_v21, 0.0 }
  0xcc   :  { %v892_v31 = vpop.f32.mrf.mxu2 }
  0xcd   :  { %1519 = vst.msk [vmem:[%s3348_s3 + $0xd8] sm:$0xf] %vm1464_vm0, %v1418_v27  ;;  %v1369_v32 = vpack.c.bf16 %v1269_v28, %v1269_v28  ;;  %v893_v33 = vadd.f32 %v2430_v48, %v892_v31  ;;  %v1151_v34 = vpop.f32.mrf.mxu3  ;;  %v1675_v28 = vld [vmem:[%s3347_s0 + $0xd0] sm:$0xf]  ;;  %v2060_v31 = vld [vmem:[%s3347_s0 + $0xd4] sm:$0xf0] }
  0xce   :  { %v770_v37 = vpop.f32.mrf.mxu0 }
  0xcf   :  { %1470 = vst.msk [vmem:[%s3348_s3 + $0x14] sm:$0xf] %vm1464_vm0, %v1369_v32  ;;  %v1152_v40 = vadd.f32 %v1151_v34, %v893_v33  ;;  %v771_v41 = vadd.f32 %v2430_v48, %v770_v37  ;;  %v1029_v42 = vpop.f32.mrf.mxu1  ;;  %v1875_v32 = vld [vmem:[%s3347_s0 + $0x260] sm:$0xf]  ;;  %v2110_v33 = vld [vmem:[%s3347_s0 + $0x264] sm:$0xf0] }
  0xd0   :  { %v2059_v34 = vld [vmem:[%s3347_s0 + $0xd4] sm:$0xf] }
  0xd1   :  { %v1319_v43 = vmax.f32 %v1152_v40, 0.0  ;;  %v1030_v44 = vadd.f32 %v1029_v42, %v771_v41  ;;  %809 = vmatmul.bf16.gmra.mxu0 %v1660_v35  ;;  %934 = vmatmul.bf16.gmra.mxu2 %v1860_v36  ;;  %v1677_v35 = vld [vmem:[%s3347_s0 + $0xd8] sm:$0xf0] }
  0xd2   :  { %1068 = vmatmul.bf16.gmra.mxu1 %v1664_v38  ;;  %1193 = vmatmul.bf16.gmra.mxu3 %v1864_v39  ;;  %v2109_v38 = vld [vmem:[%s3347_s0 + $0x264] sm:$0xf]  ;;  %v1877_v39 = vld [vmem:[%s3347_s0 + $0x268] sm:$0xf0] }
  0xd3   :  { %v1419_v45 = vpack.c.bf16 %v1319_v43, %v1319_v43  ;;  %v1270_v46 = vmax.f32 %v1030_v44, 0.0  ;;  %v1676_v44 = vor.u32 %v2060_v31, %v1675_v28 }
  0xd4   :  { %v895_v47 = vpop.f32.mrf.mxu2 }
  0xd5   :  { %1520 = vst.msk [vmem:[%s3348_s3 + $0xdc] sm:$0xf] %vm1464_vm0, %v1419_v45  ;;  %v1370_v49 = vpack.c.bf16 %v1270_v46, %v1270_v46  ;;  %v896_v50 = vadd.f32 %v2430_v48, %v895_v47  ;;  %v1154_v51 = vpop.f32.mrf.mxu3  ;;  %v1876_v45 = vor.u32 %v2110_v33, %v1875_v32  ;;  %v1680_v47 = vor.u32 %v2059_v34, %v1677_v35 }
  0xd6   :  { %v772_v52 = vpop.f32.mrf.mxu0 }
  0xd7   :  { %1471 = vst.msk [vmem:[%s3348_s3 + $0x18] sm:$0xf] %vm1464_vm0, %v1370_v49  ;;  %v1155_v53 = vadd.f32 %v1154_v51, %v896_v50  ;;  %v773_v54 = vadd.f32 %v2430_v48, %v772_v52  ;;  %v1031_v55 = vpop.f32.mrf.mxu1  ;;  %v1880_v49 = vor.u32 %v2109_v38, %v1877_v39 }
  0xd9   :  { %v1320_v57 = vmax.f32 %v1155_v53, 0.0  ;;  %v1032_v58 = vadd.f32 %v1031_v55, %v773_v54 }
  0xdb   :  { %v1420_v0 = vpack.c.bf16 %v1320_v57, %v1320_v57  ;;  %v1271_v1 = vmax.f32 %v1032_v58, 0.0 }
  0xdc   :  { %v897_v4 = vpop.f32.mrf.mxu2 }
  0xdd   :  { %1521 = vst.msk [vmem:[%s3348_s3 + $0xe0] sm:$0xf] %vm1464_vm0, %v1420_v0  ;;  %v1371_v5 = vpack.c.bf16 %v1271_v1, %v1271_v1  ;;  %v898_v6 = vadd.f32 %v2430_v48, %v897_v4  ;;  %v1156_v7 = vpop.f32.mrf.mxu3  ;;  %v1683_v1 = vld [vmem:[%s3347_s0 + $0xe0] sm:$0xf]  ;;  %v2062_v4 = vld [vmem:[%s3347_s0 + $0xe4] sm:$0xf0] }
  0xde   :  { %v775_v10 = vpop.f32.mrf.mxu0 }
  0xdf   :  { %1472 = vst.msk [vmem:[%s3348_s3 + $0x1c] sm:$0xf] %vm1464_vm0, %v1371_v5  ;;  %v1157_v13 = vadd.f32 %v1156_v7, %v898_v6  ;;  %v776_v14 = vadd.f32 %v2430_v48, %v775_v10  ;;  %v1034_v15 = vpop.f32.mrf.mxu1  ;;  %v1883_v5 = vld [vmem:[%s3347_s0 + $0x270] sm:$0xf]  ;;  %v2112_v6 = vld [vmem:[%s3347_s0 + $0x274] sm:$0xf0] }
  0xe0   :  { %v2061_v7 = vld [vmem:[%s3347_s0 + $0xe4] sm:$0xf] }
  0xe1   :  { %v1321_v16 = vmax.f32 %v1157_v13, 0.0  ;;  %v1035_v17 = vadd.f32 %v1034_v15, %v776_v14  ;;  %814 = vmatmul.bf16.gmra.mxu0 %v1668_v8  ;;  %939 = vmatmul.bf16.gmra.mxu2 %v1868_v9  ;;  %v1685_v8 = vld [vmem:[%s3347_s0 + $0xe8] sm:$0xf0] }
  0xe2   :  { %1073 = vmatmul.bf16.gmra.mxu1 %v1672_v11  ;;  %1198 = vmatmul.bf16.gmra.mxu3 %v1872_v12  ;;  %v2111_v11 = vld [vmem:[%s3347_s0 + $0x274] sm:$0xf]  ;;  %v1885_v12 = vld [vmem:[%s3347_s0 + $0x278] sm:$0xf0] }
  0xe3   :  { %v1421_v18 = vpack.c.bf16 %v1321_v16, %v1321_v16  ;;  %v1272_v19 = vmax.f32 %v1035_v17, 0.0  ;;  %v1684_v17 = vor.u32 %v2062_v4, %v1683_v1 }
  0xe4   :  { %v900_v20 = vpop.f32.mrf.mxu2 }
  0xe5   :  { %1522 = vst.msk [vmem:[%s3348_s3 + $0xe4] sm:$0xf] %vm1464_vm0, %v1421_v18  ;;  %v1372_v21 = vpack.c.bf16 %v1272_v19, %v1272_v19  ;;  %v901_v22 = vadd.f32 %v2430_v48, %v900_v20  ;;  %v1159_v23 = vpop.f32.mrf.mxu3  ;;  %v1884_v18 = vor.u32 %v2112_v6, %v1883_v5  ;;  %v1688_v20 = vor.u32 %v2061_v7, %v1685_v8 }
  0xe6   :  { %v777_v24 = vpop.f32.mrf.mxu0 }
  0xe7   :  { %1473 = vst.msk [vmem:[%s3348_s3 + $0x20] sm:$0xf] %vm1464_vm0, %v1372_v21  ;;  %v1160_v25 = vadd.f32 %v1159_v23, %v901_v22  ;;  %v778_v26 = vadd.f32 %v2430_v48, %v777_v24  ;;  %v1036_v27 = vpop.f32.mrf.mxu1  ;;  %v1888_v21 = vor.u32 %v2111_v11, %v1885_v12 }
  0xe9   :  { %v1322_v29 = vmax.f32 %v1160_v25, 0.0  ;;  %v1037_v30 = vadd.f32 %v1036_v27, %v778_v26 }
  0xeb   :  { %v1422_v36 = vpack.c.bf16 %v1322_v29, %v1322_v29  ;;  %v1273_v37 = vmax.f32 %v1037_v30, 0.0 }
  0xec   :  { %v902_v40 = vpop.f32.mrf.mxu2 }
  0xed   :  { %1523 = vst.msk [vmem:[%s3348_s3 + $0xe8] sm:$0xf] %vm1464_vm0, %v1422_v36  ;;  %v1373_v41 = vpack.c.bf16 %v1273_v37, %v1273_v37  ;;  %v903_v42 = vadd.f32 %v2430_v48, %v902_v40  ;;  %v1161_v43 = vpop.f32.mrf.mxu3  ;;  %v1691_v37 = vld [vmem:[%s3347_s0 + $0xf0] sm:$0xf]  ;;  %v2064_v40 = vld [vmem:[%s3347_s0 + $0xf4] sm:$0xf0] }
  0xee   :  { %v780_v46 = vpop.f32.mrf.mxu0 }
  0xef   :  { %1474 = vst.msk [vmem:[%s3348_s3 + $0x24] sm:$0xf] %vm1464_vm0, %v1373_v41  ;;  %v1162_v50 = vadd.f32 %v1161_v43, %v903_v42  ;;  %v781_v51 = vadd.f32 %v2430_v48, %v780_v46  ;;  %v1039_v52 = vpop.f32.mrf.mxu1  ;;  %v1891_v41 = vld [vmem:[%s3347_s0 + $0x280] sm:$0xf]  ;;  %v2114_v42 = vld [vmem:[%s3347_s0 + $0x284] sm:$0xf0] }
  0xf0   :  { %v2063_v43 = vld [vmem:[%s3347_s0 + $0xf4] sm:$0xf] }
  0xf1   :  { %v1323_v53 = vmax.f32 %v1162_v50, 0.0  ;;  %v1040_v54 = vadd.f32 %v1039_v52, %v781_v51  ;;  %819 = vmatmul.bf16.gmra.mxu0 %v1676_v44  ;;  %944 = vmatmul.bf16.gmra.mxu2 %v1876_v45  ;;  %v1693_v44 = vld [vmem:[%s3347_s0 + $0xf8] sm:$0xf0] }
  0xf2   :  { %1078 = vmatmul.bf16.gmra.mxu1 %v1680_v47  ;;  %1203 = vmatmul.bf16.gmra.mxu3 %v1880_v49  ;;  %v2113_v47 = vld [vmem:[%s3347_s0 + $0x284] sm:$0xf]  ;;  %v1893_v49 = vld [vmem:[%s3347_s0 + $0x288] sm:$0xf0] }
  0xf3   :  { %v1423_v55 = vpack.c.bf16 %v1323_v53, %v1323_v53  ;;  %v1274_v56 = vmax.f32 %v1040_v54, 0.0  ;;  %v1692_v54 = vor.u32 %v2064_v40, %v1691_v37 }
  0xf4   :  { %v905_v57 = vpop.f32.mrf.mxu2 }
  0xf5   :  { %1524 = vst.msk [vmem:[%s3348_s3 + $0xec] sm:$0xf] %vm1464_vm0, %v1423_v55  ;;  %v1374_v58 = vpack.c.bf16 %v1274_v56, %v1274_v56  ;;  %v906_v59 = vadd.f32 %v2430_v48, %v905_v57  ;;  %v1164_v60 = vpop.f32.mrf.mxu3  ;;  %v1892_v55 = vor.u32 %v2114_v42, %v1891_v41  ;;  %v1696_v57 = vor.u32 %v2063_v43, %v1693_v44 }
  0xf6   :  { %v782_v61 = vpop.f32.mrf.mxu0 }
  0xf7   :  { %1475 = vst.msk [vmem:[%s3348_s3 + $0x28] sm:$0xf] %vm1464_vm0, %v1374_v58  ;;  %v1165_v62 = vadd.f32 %v1164_v60, %v906_v59  ;;  %v783_v63 = vadd.f32 %v2430_v48, %v782_v61  ;;  %v1041_v0 = vpop.f32.mrf.mxu1  ;;  %v1896_v58 = vor.u32 %v2113_v47, %v1893_v49 }
  0xf9   :  { %v1324_v2 = vmax.f32 %v1165_v62, 0.0  ;;  %v1042_v3 = vadd.f32 %v1041_v0, %v783_v63 }
  0xfb   :  { %v1424_v9 = vpack.c.bf16 %v1324_v2, %v1324_v2  ;;  %v1275_v10 = vmax.f32 %v1042_v3, 0.0 }
  0xfc   :  { %v907_v13 = vpop.f32.mrf.mxu2 }
  0xfd   :  { %1525 = vst.msk [vmem:[%s3348_s3 + $0xf0] sm:$0xf] %vm1464_vm0, %v1424_v9  ;;  %v1375_v14 = vpack.c.bf16 %v1275_v10, %v1275_v10  ;;  %v908_v15 = vadd.f32 %v2430_v48, %v907_v13  ;;  %v1166_v16 = vpop.f32.mrf.mxu3  ;;  %v1699_v10 = vld [vmem:[%s3347_s0 + $0x100] sm:$0xf]  ;;  %v2066_v13 = vld [vmem:[%s3347_s0 + $0x104] sm:$0xf0] }
  0xfe   :  { %v785_v19 = vpop.f32.mrf.mxu0 }
  0xff   :  { %1476 = vst.msk [vmem:[%s3348_s3 + $0x2c] sm:$0xf] %vm1464_vm0, %v1375_v14  ;;  %v1167_v22 = vadd.f32 %v1166_v16, %v908_v15  ;;  %v786_v23 = vadd.f32 %v2430_v48, %v785_v19  ;;  %v1044_v24 = vpop.f32.mrf.mxu1  ;;  %v1899_v14 = vld [vmem:[%s3347_s0 + $0x290] sm:$0xf]  ;;  %v2116_v15 = vld [vmem:[%s3347_s0 + $0x294] sm:$0xf0] }
 0x100   :  { %v2065_v16 = vld [vmem:[%s3347_s0 + $0x104] sm:$0xf] }
 0x101   :  { %v1325_v25 = vmax.f32 %v1167_v22, 0.0  ;;  %v1045_v26 = vadd.f32 %v1044_v24, %v786_v23  ;;  %824 = vmatmul.bf16.gmra.mxu0 %v1684_v17  ;;  %949 = vmatmul.bf16.gmra.mxu2 %v1884_v18  ;;  %v1701_v17 = vld [vmem:[%s3347_s0 + $0x108] sm:$0xf0] }
 0x102   :  { %1083 = vmatmul.bf16.gmra.mxu1 %v1688_v20  ;;  %1208 = vmatmul.bf16.gmra.mxu3 %v1888_v21  ;;  %v2115_v20 = vld [vmem:[%s3347_s0 + $0x294] sm:$0xf]  ;;  %v1901_v21 = vld [vmem:[%s3347_s0 + $0x298] sm:$0xf0] }
 0x103   :  { %v1425_v27 = vpack.c.bf16 %v1325_v25, %v1325_v25  ;;  %v1276_v28 = vmax.f32 %v1045_v26, 0.0  ;;  %v1700_v26 = vor.u32 %v2066_v13, %v1699_v10 }
 0x104   :  { %v910_v29 = vpop.f32.mrf.mxu2 }
 0x105   :  { %1526 = vst.msk [vmem:[%s3348_s3 + $0xf4] sm:$0xf] %vm1464_vm0, %v1425_v27  ;;  %v1376_v30 = vpack.c.bf16 %v1276_v28, %v1276_v28  ;;  %v911_v31 = vadd.f32 %v2430_v48, %v910_v29  ;;  %v1169_v32 = vpop.f32.mrf.mxu3  ;;  %v1900_v27 = vor.u32 %v2116_v15, %v1899_v14  ;;  %v1704_v29 = vor.u32 %v2065_v16, %v1701_v17 }
 0x106   :  { %v787_v33 = vpop.f32.mrf.mxu0 }
 0x107   :  { %1477 = vst.msk [vmem:[%s3348_s3 + $0x30] sm:$0xf] %vm1464_vm0, %v1376_v30  ;;  %v1170_v34 = vadd.f32 %v1169_v32, %v911_v31  ;;  %v788_v35 = vadd.f32 %v2430_v48, %v787_v33  ;;  %v1046_v36 = vpop.f32.mrf.mxu1  ;;  %v1904_v30 = vor.u32 %v2115_v20, %v1901_v21 }
 0x109   :  { %v1326_v38 = vmax.f32 %v1170_v34, 0.0  ;;  %v1047_v39 = vadd.f32 %v1046_v36, %v788_v35 }
 0x10b   :  { %v1426_v45 = vpack.c.bf16 %v1326_v38, %v1326_v38  ;;  %v1277_v46 = vmax.f32 %v1047_v39, 0.0 }
 0x10c   :  { %v912_v50 = vpop.f32.mrf.mxu2 }
 0x10d   :  { %1527 = vst.msk [vmem:[%s3348_s3 + $0xf8] sm:$0xf] %vm1464_vm0, %v1426_v45  ;;  %v1377_v51 = vpack.c.bf16 %v1277_v46, %v1277_v46  ;;  %v913_v52 = vadd.f32 %v2430_v48, %v912_v50  ;;  %v1171_v53 = vpop.f32.mrf.mxu3  ;;  %v1707_v46 = vld [vmem:[%s3347_s0 + $0x110] sm:$0xf]  ;;  %v2068_v50 = vld [vmem:[%s3347_s0 + $0x114] sm:$0xf0] }
 0x10e   :  { %v790_v56 = vpop.f32.mrf.mxu0 }
 0x10f   :  { %1478 = vst.msk [vmem:[%s3348_s3 + $0x34] sm:$0xf] %vm1464_vm0, %v1377_v51  ;;  %v1172_v59 = vadd.f32 %v1171_v53, %v913_v52  ;;  %v791_v60 = vadd.f32 %v2430_v48, %v790_v56  ;;  %v1049_v61 = vpop.f32.mrf.mxu1  ;;  %v1907_v51 = vld [vmem:[%s3347_s0 + $0x2a0] sm:$0xf]  ;;  %v2118_v52 = vld [vmem:[%s3347_s0 + $0x2a4] sm:$0xf0] }
 0x110   :  { %v2067_v53 = vld [vmem:[%s3347_s0 + $0x114] sm:$0xf] }
 0x111   :  { %v1327_v62 = vmax.f32 %v1172_v59, 0.0  ;;  %v1050_v63 = vadd.f32 %v1049_v61, %v791_v60  ;;  %829 = vmatmul.bf16.gmra.mxu0 %v1692_v54  ;;  %954 = vmatmul.bf16.gmra.mxu2 %v1892_v55  ;;  %v1709_v54 = vld [vmem:[%s3347_s0 + $0x118] sm:$0xf0] }
 0x112   :  { %1088 = vmatmul.bf16.gmra.mxu1 %v1696_v57  ;;  %1213 = vmatmul.bf16.gmra.mxu3 %v1896_v58  ;;  %v2117_v57 = vld [vmem:[%s3347_s0 + $0x2a4] sm:$0xf]  ;;  %v1909_v58 = vld [vmem:[%s3347_s0 + $0x2a8] sm:$0xf0] }
 0x113   :  { %v1427_v0 = vpack.c.bf16 %v1327_v62, %v1327_v62  ;;  %v1278_v1 = vmax.f32 %v1050_v63, 0.0  ;;  %v1708_v63 = vor.u32 %v2068_v50, %v1707_v46 }
 0x114   :  { %v915_v2 = vpop.f32.mrf.mxu2 }
 0x115   :  { %1528 = vst.msk [vmem:[%s3348_s3 + $0xfc] sm:$0xf] %vm1464_vm0, %v1427_v0  ;;  %v1378_v3 = vpack.c.bf16 %v1278_v1, %v1278_v1  ;;  %v916_v4 = vadd.f32 %v2430_v48, %v915_v2  ;;  %v1174_v5 = vpop.f32.mrf.mxu3  ;;  %v1908_v0 = vor.u32 %v2118_v52, %v1907_v51  ;;  %v1712_v2 = vor.u32 %v2067_v53, %v1709_v54 }
 0x116   :  { %v792_v6 = vpop.f32.mrf.mxu0 }
 0x117   :  { %1479 = vst.msk [vmem:[%s3348_s3 + $0x38] sm:$0xf] %vm1464_vm0, %v1378_v3  ;;  %v1175_v7 = vadd.f32 %v1174_v5, %v916_v4  ;;  %v793_v8 = vadd.f32 %v2430_v48, %v792_v6  ;;  %v1051_v9 = vpop.f32.mrf.mxu1  ;;  %v1912_v3 = vor.u32 %v2117_v57, %v1909_v58 }
 0x119   :  { %v1328_v11 = vmax.f32 %v1175_v7, 0.0  ;;  %v1052_v12 = vadd.f32 %v1051_v9, %v793_v8 }
 0x11b   :  { %v1428_v18 = vpack.c.bf16 %v1328_v11, %v1328_v11  ;;  %v1279_v19 = vmax.f32 %v1052_v12, 0.0 }
 0x11c   :  { %v917_v22 = vpop.f32.mrf.mxu2 }
 0x11d   :  { %1529 = vst.msk [vmem:[%s3348_s3 + $0x100] sm:$0xf] %vm1464_vm0, %v1428_v18  ;;  %v1379_v23 = vpack.c.bf16 %v1279_v19, %v1279_v19  ;;  %v918_v24 = vadd.f32 %v2430_v48, %v917_v22  ;;  %v1176_v25 = vpop.f32.mrf.mxu3  ;;  %v1715_v19 = vld [vmem:[%s3347_s0 + $0x120] sm:$0xf]  ;;  %v2070_v22 = vld [vmem:[%s3347_s0 + $0x124] sm:$0xf0] }
 0x11e   :  { %v795_v28 = vpop.f32.mrf.mxu0 }
 0x11f   :  { %1480 = vst.msk [vmem:[%s3348_s3 + $0x3c] sm:$0xf] %vm1464_vm0, %v1379_v23  ;;  %v1177_v31 = vadd.f32 %v1176_v25, %v918_v24  ;;  %v796_v32 = vadd.f32 %v2430_v48, %v795_v28  ;;  %v1054_v33 = vpop.f32.mrf.mxu1  ;;  %v1915_v23 = vld [vmem:[%s3347_s0 + $0x2b0] sm:$0xf]  ;;  %v2120_v24 = vld [vmem:[%s3347_s0 + $0x2b4] sm:$0xf0] }
 0x120   :  { %v2069_v25 = vld [vmem:[%s3347_s0 + $0x124] sm:$0xf] }
 0x121   :  { %v1329_v34 = vmax.f32 %v1177_v31, 0.0  ;;  %v1055_v35 = vadd.f32 %v1054_v33, %v796_v32  ;;  %834 = vmatmul.bf16.gmra.mxu0 %v1700_v26  ;;  %959 = vmatmul.bf16.gmra.mxu2 %v1900_v27  ;;  %v1717_v26 = vld [vmem:[%s3347_s0 + $0x128] sm:$0xf0] }
 0x122   :  { %1093 = vmatmul.bf16.gmra.mxu1 %v1704_v29  ;;  %1218 = vmatmul.bf16.gmra.mxu3 %v1904_v30  ;;  %v2119_v29 = vld [vmem:[%s3347_s0 + $0x2b4] sm:$0xf]  ;;  %v1917_v30 = vld [vmem:[%s3347_s0 + $0x2b8] sm:$0xf0] }
 0x123   :  { %v1429_v36 = vpack.c.bf16 %v1329_v34, %v1329_v34  ;;  %v1280_v37 = vmax.f32 %v1055_v35, 0.0  ;;  %v1716_v35 = vor.u32 %v2070_v22, %v1715_v19 }
 0x124   :  { %v920_v38 = vpop.f32.mrf.mxu2 }
 0x125   :  { %1530 = vst.msk [vmem:[%s3348_s3 + $0x104] sm:$0xf] %vm1464_vm0, %v1429_v36  ;;  %v1380_v39 = vpack.c.bf16 %v1280_v37, %v1280_v37  ;;  %v921_v40 = vadd.f32 %v2430_v48, %v920_v38  ;;  %v1179_v41 = vpop.f32.mrf.mxu3  ;;  %v1916_v36 = vor.u32 %v2120_v24, %v1915_v23  ;;  %v1720_v38 = vor.u32 %v2069_v25, %v1717_v26  ;;  %v2949_v26 = vld [vmem:[%s3346_s2] ss:$0 sm:$0xff] }
 0x126   :  { %v797_v42 = vpop.f32.mrf.mxu0 }
 0x127   :  { %1481 = vst.msk [vmem:[%s3348_s3 + $0x40] sm:$0xf] %vm1464_vm0, %v1380_v39  ;;  %v1180_v43 = vadd.f32 %v1179_v41, %v921_v40  ;;  %v798_v44 = vadd.f32 %v2430_v48, %v797_v42  ;;  %v1056_v45 = vpop.f32.mrf.mxu1  ;;  %v1920_v39 = vor.u32 %v2119_v29, %v1917_v30 }
 0x129   :  { %v1330_v47 = vmax.f32 %v1180_v43, 0.0  ;;  %v1057_v49 = vadd.f32 %v1056_v45, %v798_v44 }
 0x12b   :  { %v1430_v55 = vpack.c.bf16 %v1330_v47, %v1330_v47  ;;  %v1281_v56 = vmax.f32 %v1057_v49, 0.0 }
 0x12c   :  { %v922_v59 = vpop.f32.mrf.mxu2 }
 0x12d   :  { %1531 = vst.msk [vmem:[%s3348_s3 + $0x108] sm:$0xf] %vm1464_vm0, %v1430_v55  ;;  %v1381_v60 = vpack.c.bf16 %v1281_v56, %v1281_v56  ;;  %v923_v61 = vadd.f32 %v2430_v48, %v922_v59  ;;  %v1181_v62 = vpop.f32.mrf.mxu3  ;;  %v1723_v56 = vld [vmem:[%s3347_s0 + $0x130] sm:$0xf]  ;;  %v2072_v59 = vld [vmem:[%s3347_s0 + $0x134] sm:$0xf0] }
 0x12e   :  { %v800_v1 = vpop.f32.mrf.mxu0 }
 0x12f   :  { %1482 = vst.msk [vmem:[%s3348_s3 + $0x44] sm:$0xf] %vm1464_vm0, %v1381_v60  ;;  %v1182_v4 = vadd.f32 %v1181_v62, %v923_v61  ;;  %v801_v5 = vadd.f32 %v2430_v48, %v800_v1  ;;  %v1059_v6 = vpop.f32.mrf.mxu1  ;;  %v1923_v60 = vld [vmem:[%s3347_s0 + $0x2c0] sm:$0xf]  ;;  %v2122_v61 = vld [vmem:[%s3347_s0 + $0x2c4] sm:$0xf0] }
 0x130   :  { %v2071_v62 = vld [vmem:[%s3347_s0 + $0x134] sm:$0xf] }
 0x131   :  { %v1331_v7 = vmax.f32 %v1182_v4, 0.0  ;;  %v1060_v8 = vadd.f32 %v1059_v6, %v801_v5  ;;  %839 = vmatmul.bf16.gmra.mxu0 %v1708_v63  ;;  %964 = vmatmul.bf16.gmra.mxu2 %v1908_v0  ;;  %v1725_v63 = vld [vmem:[%s3347_s0 + $0x138] sm:$0xf0] }
 0x132   :  { %1098 = vmatmul.bf16.gmra.mxu1 %v1712_v2  ;;  %1223 = vmatmul.bf16.gmra.mxu3 %v1912_v3  ;;  %v2121_v2 = vld [vmem:[%s3347_s0 + $0x2c4] sm:$0xf]  ;;  %v1925_v3 = vld [vmem:[%s3347_s0 + $0x2c8] sm:$0xf0] }
 0x133   :  { %v1431_v9 = vpack.c.bf16 %v1331_v7, %v1331_v7  ;;  %v1282_v10 = vmax.f32 %v1060_v8, 0.0  ;;  %v1724_v8 = vor.u32 %v2072_v59, %v1723_v56 }
 0x134   :  { %v925_v11 = vpop.f32.mrf.mxu2 }
 0x135   :  { %1532 = vst.msk [vmem:[%s3348_s3 + $0x10c] sm:$0xf] %vm1464_vm0, %v1431_v9  ;;  %v1382_v12 = vpack.c.bf16 %v1282_v10, %v1282_v10  ;;  %v926_v13 = vadd.f32 %v2430_v48, %v925_v11  ;;  %v1184_v14 = vpop.f32.mrf.mxu3  ;;  %v1924_v9 = vor.u32 %v2122_v61, %v1923_v60  ;;  %v1728_v11 = vor.u32 %v2071_v62, %v1725_v63 }
 0x136   :  { %v802_v15 = vpop.f32.mrf.mxu0 }
 0x137   :  { %1483 = vst.msk [vmem:[%s3348_s3 + $0x48] sm:$0xf] %vm1464_vm0, %v1382_v12  ;;  %v1185_v16 = vadd.f32 %v1184_v14, %v926_v13  ;;  %v803_v17 = vadd.f32 %v2430_v48, %v802_v15  ;;  %v1061_v18 = vpop.f32.mrf.mxu1  ;;  %v1928_v12 = vor.u32 %v2121_v2, %v1925_v3 }
 0x139   :  { %v1332_v20 = vmax.f32 %v1185_v16, 0.0  ;;  %v1062_v21 = vadd.f32 %v1061_v18, %v803_v17 }
 0x13b   :  { %v1432_v27 = vpack.c.bf16 %v1332_v20, %v1332_v20  ;;  %v1283_v28 = vmax.f32 %v1062_v21, 0.0 }
 0x13c   :  { %v927_v31 = vpop.f32.mrf.mxu2 }
 0x13d   :  { %1533 = vst.msk [vmem:[%s3348_s3 + $0x110] sm:$0xf] %vm1464_vm0, %v1432_v27  ;;  %v1383_v32 = vpack.c.bf16 %v1283_v28, %v1283_v28  ;;  %v928_v33 = vadd.f32 %v2430_v48, %v927_v31  ;;  %v1186_v34 = vpop.f32.mrf.mxu3  ;;  %v2074_v31 = vld [vmem:[%s3347_s0 + $0x144] sm:$0xf0] }
 0x13e   :  { %v805_v37 = vpop.f32.mrf.mxu0 }
 0x13f   :  { %1484 = vst.msk [vmem:[%s3348_s3 + $0x4c] sm:$0xf] %vm1464_vm0, %v1383_v32  ;;  %v1187_v40 = vadd.f32 %v1186_v34, %v928_v33  ;;  %v806_v41 = vadd.f32 %v2430_v48, %v805_v37  ;;  %v1064_v42 = vpop.f32.mrf.mxu1  ;;  %v1931_v32 = vld [vmem:[%s3347_s0 + $0x2d0] sm:$0xf]  ;;  %v2124_v33 = vld [vmem:[%s3347_s0 + $0x2d4] sm:$0xf0] }
 0x140   :  { %v2073_v34 = vld [vmem:[%s3347_s0 + $0x144] sm:$0xf] }
 0x141   :  { %v1333_v43 = vmax.f32 %v1187_v40, 0.0  ;;  %v1065_v44 = vadd.f32 %v1064_v42, %v806_v41  ;;  %844 = vmatmul.bf16.gmra.mxu0 %v1716_v35  ;;  %969 = vmatmul.bf16.gmra.mxu2 %v1916_v36  ;;  %v1733_v35 = vld [vmem:[%s3347_s0 + $0x148] sm:$0xf0] }
 0x142   :  { %1103 = vmatmul.bf16.gmra.mxu1 %v1720_v38  ;;  %1228 = vmatmul.bf16.gmra.mxu3 %v1920_v39  ;;  %v2123_v38 = vld [vmem:[%s3347_s0 + $0x2d4] sm:$0xf]  ;;  %v1933_v39 = vld [vmem:[%s3347_s0 + $0x2d8] sm:$0xf0] }
 0x143   :  { %v1433_v45 = vpack.c.bf16 %v1333_v43, %v1333_v43  ;;  %v1284_v46 = vmax.f32 %v1065_v44, 0.0 }
 0x144   :  { %v930_v47 = vpop.f32.mrf.mxu2 }
 0x145   :  { %1534 = vst.msk [vmem:[%s3348_s3 + $0x114] sm:$0xf] %vm1464_vm0, %v1433_v45  ;;  %v1384_v49 = vpack.c.bf16 %v1284_v46, %v1284_v46  ;;  %v931_v50 = vadd.f32 %v2430_v48, %v930_v47  ;;  %v1189_v51 = vpop.f32.mrf.mxu3  ;;  %v1932_v45 = vor.u32 %v2124_v33, %v1931_v32  ;;  %v1736_v47 = vor.u32 %v2073_v34, %v1733_v35 }
 0x146   :  { %v807_v52 = vpop.f32.mrf.mxu0 }
 0x147   :  { %1485 = vst.msk [vmem:[%s3348_s3 + $0x50] sm:$0xf] %vm1464_vm0, %v1384_v49  ;;  %v1190_v53 = vadd.f32 %v1189_v51, %v931_v50  ;;  %v808_v54 = vadd.f32 %v2430_v48, %v807_v52  ;;  %v1066_v55 = vpop.f32.mrf.mxu1  ;;  %v1936_v49 = vor.u32 %v2123_v38, %v1933_v39 }
 0x149   :  { %v1334_v57 = vmax.f32 %v1190_v53, 0.0  ;;  %v1067_v58 = vadd.f32 %v1066_v55, %v808_v54 }
 0x14b   :  { %v1434_v0 = vpack.c.bf16 %v1334_v57, %v1334_v57  ;;  %v1285_v1 = vmax.f32 %v1067_v58, 0.0 }
 0x14c   :  { %v932_v4 = vpop.f32.mrf.mxu2 }
 0x14d   :  { %1535 = vst.msk [vmem:[%s3348_s3 + $0x118] sm:$0xf] %vm1464_vm0, %v1434_v0  ;;  %v1385_v5 = vpack.c.bf16 %v1285_v1, %v1285_v1  ;;  %v933_v6 = vadd.f32 %v2430_v48, %v932_v4  ;;  %v1191_v7 = vpop.f32.mrf.mxu3  ;;  %v1739_v1 = vld [vmem:[%s3347_s0 + $0x150] sm:$0xf]  ;;  %v2076_v4 = vld [vmem:[%s3347_s0 + $0x154] sm:$0xf0] }
 0x14e   :  { %v810_v10 = vpop.f32.mrf.mxu0 }
 0x14f   :  { %1486 = vst.msk [vmem:[%s3348_s3 + $0x54] sm:$0xf] %vm1464_vm0, %v1385_v5  ;;  %v1192_v13 = vadd.f32 %v1191_v7, %v933_v6  ;;  %v811_v14 = vadd.f32 %v2430_v48, %v810_v10  ;;  %v1069_v15 = vpop.f32.mrf.mxu1  ;;  %v1939_v5 = vld [vmem:[%s3347_s0 + $0x2e0] sm:$0xf]  ;;  %v2126_v6 = vld [vmem:[%s3347_s0 + $0x2e4] sm:$0xf0] }
 0x150   :  { %v2075_v7 = vld [vmem:[%s3347_s0 + $0x154] sm:$0xf] }
 0x151   :  { %v1335_v16 = vmax.f32 %v1192_v13, 0.0  ;;  %v1070_v17 = vadd.f32 %v1069_v15, %v811_v14  ;;  %849 = vmatmul.bf16.gmra.mxu0 %v1724_v8  ;;  %974 = vmatmul.bf16.gmra.mxu2 %v1924_v9  ;;  %v1741_v8 = vld [vmem:[%s3347_s0 + $0x158] sm:$0xf0] }
 0x152   :  { %1108 = vmatmul.bf16.gmra.mxu1 %v1728_v11  ;;  %1233 = vmatmul.bf16.gmra.mxu3 %v1928_v12  ;;  %v2125_v11 = vld [vmem:[%s3347_s0 + $0x2e4] sm:$0xf]  ;;  %v1941_v12 = vld [vmem:[%s3347_s0 + $0x2e8] sm:$0xf0] }
 0x153   :  { %v1435_v18 = vpack.c.bf16 %v1335_v16, %v1335_v16  ;;  %v1286_v19 = vmax.f32 %v1070_v17, 0.0  ;;  %v1740_v17 = vor.u32 %v2076_v4, %v1739_v1 }
 0x154   :  { %v935_v20 = vpop.f32.mrf.mxu2 }
 0x155   :  { %1536 = vst.msk [vmem:[%s3348_s3 + $0x11c] sm:$0xf] %vm1464_vm0, %v1435_v18  ;;  %v1386_v21 = vpack.c.bf16 %v1286_v19, %v1286_v19  ;;  %v936_v22 = vadd.f32 %v2430_v48, %v935_v20  ;;  %v1194_v23 = vpop.f32.mrf.mxu3  ;;  %v1731_v48 = vld [vmem:[%s3347_s0 + $0x140] sm:$0xf]  ;;  %v1940_v18 = vor.u32 %v2126_v6, %v1939_v5  ;;  %v1744_v20 = vor.u32 %v2075_v7, %v1741_v8 }
 0x156   :  { %v812_v24 = vpop.f32.mrf.mxu0  ;;  %v1732_v44 = vor.u32 %v2074_v31, %v1731_v48 }
 0x157   :  { %1487 = vst.msk [vmem:[%s3348_s3 + $0x58] sm:$0xf] %vm1464_vm0, %v1386_v21  ;;  %v1195_v25 = vadd.f32 %v1194_v23, %v936_v22  ;;  %v813_v27 = vadd.f32 %v2949_v26, %v812_v24  ;;  %v1071_v28 = vpop.f32.mrf.mxu1  ;;  %v1944_v21 = vor.u32 %v2125_v11, %v1941_v12 }
 0x159   :  { %v1336_v29 = vmax.f32 %v1195_v25, 0.0  ;;  %v1072_v30 = vadd.f32 %v1071_v28, %v813_v27 }
 0x15b   :  { %v1436_v36 = vpack.c.bf16 %v1336_v29, %v1336_v29  ;;  %v1287_v37 = vmax.f32 %v1072_v30, 0.0 }
 0x15c   :  { %v937_v40 = vpop.f32.mrf.mxu2 }
 0x15d   :  { %1537 = vst.msk [vmem:[%s3348_s3 + $0x120] sm:$0xf] %vm1464_vm0, %v1436_v36  ;;  %v1387_v41 = vpack.c.bf16 %v1287_v37, %v1287_v37  ;;  %v938_v42 = vadd.f32 %v2949_v26, %v937_v40  ;;  %v1196_v43 = vpop.f32.mrf.mxu3  ;;  %v1747_v37 = vld [vmem:[%s3347_s0 + $0x160] sm:$0xf]  ;;  %v2078_v40 = vld [vmem:[%s3347_s0 + $0x164] sm:$0xf0] }
 0x15e   :  { %v815_v46 = vpop.f32.mrf.mxu0 }
 0x15f   :  { %1488 = vst.msk [vmem:[%s3348_s3 + $0x5c] sm:$0xf] %vm1464_vm0, %v1387_v41  ;;  %v1197_v50 = vadd.f32 %v1196_v43, %v938_v42  ;;  %v816_v51 = vadd.f32 %v2949_v26, %v815_v46  ;;  %v1074_v52 = vpop.f32.mrf.mxu1  ;;  %v1947_v41 = vld [vmem:[%s3347_s0 + $0x2f0] sm:$0xf]  ;;  %v2128_v42 = vld [vmem:[%s3347_s0 + $0x2f4] sm:$0xf0] }
 0x160   :  { %v2077_v43 = vld [vmem:[%s3347_s0 + $0x164] sm:$0xf] }
 0x161   :  { %v1337_v53 = vmax.f32 %v1197_v50, 0.0  ;;  %v1075_v54 = vadd.f32 %v1074_v52, %v816_v51  ;;  %854 = vmatmul.bf16.gmra.mxu0 %v1732_v44  ;;  %979 = vmatmul.bf16.gmra.mxu2 %v1932_v45  ;;  %v1749_v44 = vld [vmem:[%s3347_s0 + $0x168] sm:$0xf0] }
 0x162   :  { %1113 = vmatmul.bf16.gmra.mxu1 %v1736_v47  ;;  %1238 = vmatmul.bf16.gmra.mxu3 %v1936_v49  ;;  %v2127_v47 = vld [vmem:[%s3347_s0 + $0x2f4] sm:$0xf]  ;;  %v1949_v49 = vld [vmem:[%s3347_s0 + $0x2f8] sm:$0xf0] }
 0x163   :  { %v1437_v55 = vpack.c.bf16 %v1337_v53, %v1337_v53  ;;  %v1288_v56 = vmax.f32 %v1075_v54, 0.0  ;;  %v1748_v54 = vor.u32 %v2078_v40, %v1747_v37 }
 0x164   :  { %v940_v57 = vpop.f32.mrf.mxu2 }
 0x165   :  { %1538 = vst.msk [vmem:[%s3348_s3 + $0x124] sm:$0xf] %vm1464_vm0, %v1437_v55  ;;  %v1388_v58 = vpack.c.bf16 %v1288_v56, %v1288_v56  ;;  %v941_v59 = vadd.f32 %v2949_v26, %v940_v57  ;;  %v1199_v60 = vpop.f32.mrf.mxu3  ;;  %v1948_v55 = vor.u32 %v2128_v42, %v1947_v41  ;;  %v1752_v57 = vor.u32 %v2077_v43, %v1749_v44 }
 0x166   :  { %v817_v61 = vpop.f32.mrf.mxu0 }
 0x167   :  { %1489 = vst.msk [vmem:[%s3348_s3 + $0x60] sm:$0xf] %vm1464_vm0, %v1388_v58  ;;  %v1200_v62 = vadd.f32 %v1199_v60, %v941_v59  ;;  %v818_v63 = vadd.f32 %v2949_v26, %v817_v61  ;;  %v1076_v0 = vpop.f32.mrf.mxu1  ;;  %v1952_v58 = vor.u32 %v2127_v47, %v1949_v49 }
 0x169   :  { %v1338_v2 = vmax.f32 %v1200_v62, 0.0  ;;  %v1077_v3 = vadd.f32 %v1076_v0, %v818_v63 }
 0x16b   :  { %v1438_v9 = vpack.c.bf16 %v1338_v2, %v1338_v2  ;;  %v1289_v10 = vmax.f32 %v1077_v3, 0.0 }
 0x16c   :  { %v942_v13 = vpop.f32.mrf.mxu2 }
 0x16d   :  { %1539 = vst.msk [vmem:[%s3348_s3 + $0x128] sm:$0xf] %vm1464_vm0, %v1438_v9  ;;  %v1389_v14 = vpack.c.bf16 %v1289_v10, %v1289_v10  ;;  %v943_v15 = vadd.f32 %v2949_v26, %v942_v13  ;;  %v1201_v16 = vpop.f32.mrf.mxu3  ;;  %v1755_v10 = vld [vmem:[%s3347_s0 + $0x170] sm:$0xf]  ;;  %v2080_v13 = vld [vmem:[%s3347_s0 + $0x174] sm:$0xf0] }
 0x16e   :  { %v820_v19 = vpop.f32.mrf.mxu0 }
 0x16f   :  { %1490 = vst.msk [vmem:[%s3348_s3 + $0x64] sm:$0xf] %vm1464_vm0, %v1389_v14  ;;  %v1202_v22 = vadd.f32 %v1201_v16, %v943_v15  ;;  %v821_v23 = vadd.f32 %v2949_v26, %v820_v19  ;;  %v1079_v24 = vpop.f32.mrf.mxu1  ;;  %v1955_v14 = vld [vmem:[%s3347_s0 + $0x300] sm:$0xf]  ;;  %v2130_v15 = vld [vmem:[%s3347_s0 + $0x304] sm:$0xf0] }
 0x170   :  { %v2079_v16 = vld [vmem:[%s3347_s0 + $0x174] sm:$0xf] }
 0x171   :  { %v1339_v25 = vmax.f32 %v1202_v22, 0.0  ;;  %v1080_v27 = vadd.f32 %v1079_v24, %v821_v23  ;;  %859 = vmatmul.bf16.gmra.mxu0 %v1740_v17  ;;  %984 = vmatmul.bf16.gmra.mxu2 %v1940_v18  ;;  %v1757_v17 = vld [vmem:[%s3347_s0 + $0x178] sm:$0xf0] }
 0x172   :  { %1118 = vmatmul.bf16.gmra.mxu1 %v1744_v20  ;;  %1243 = vmatmul.bf16.gmra.mxu3 %v1944_v21  ;;  %v2129_v20 = vld [vmem:[%s3347_s0 + $0x304] sm:$0xf]  ;;  %v1957_v21 = vld [vmem:[%s3347_s0 + $0x308] sm:$0xf0] }
 0x173   :  { %v1439_v28 = vpack.c.bf16 %v1339_v25, %v1339_v25  ;;  %v1290_v48 = vmax.f32 %v1080_v27, 0.0  ;;  %v1756_v27 = vor.u32 %v2080_v13, %v1755_v10 }
 0x174   :  { %v945_v29 = vpop.f32.mrf.mxu2 }
 0x175   :  { %1540 = vst.msk [vmem:[%s3348_s3 + $0x12c] sm:$0xf] %vm1464_vm0, %v1439_v28  ;;  %v1390_v30 = vpack.c.bf16 %v1290_v48, %v1290_v48  ;;  %v946_v31 = vadd.f32 %v2949_v26, %v945_v29  ;;  %v1204_v32 = vpop.f32.mrf.mxu3  ;;  %v1956_v28 = vor.u32 %v2130_v15, %v1955_v14  ;;  %v1760_v29 = vor.u32 %v2079_v16, %v1757_v17 }
 0x176   :  { %v822_v33 = vpop.f32.mrf.mxu0 }
 0x177   :  { %1491 = vst.msk [vmem:[%s3348_s3 + $0x68] sm:$0xf] %vm1464_vm0, %v1390_v30  ;;  %v1205_v34 = vadd.f32 %v1204_v32, %v946_v31  ;;  %v823_v35 = vadd.f32 %v2949_v26, %v822_v33  ;;  %v1081_v36 = vpop.f32.mrf.mxu1  ;;  %v1960_v30 = vor.u32 %v2129_v20, %v1957_v21 }
 0x179   :  { %v1340_v38 = vmax.f32 %v1205_v34, 0.0  ;;  %v1082_v39 = vadd.f32 %v1081_v36, %v823_v35 }
 0x17b   :  { %v1440_v45 = vpack.c.bf16 %v1340_v38, %v1340_v38  ;;  %v1291_v46 = vmax.f32 %v1082_v39, 0.0 }
 0x17c   :  { %v947_v50 = vpop.f32.mrf.mxu2 }
 0x17d   :  { %1541 = vst.msk [vmem:[%s3348_s3 + $0x130] sm:$0xf] %vm1464_vm0, %v1440_v45  ;;  %v1391_v51 = vpack.c.bf16 %v1291_v46, %v1291_v46  ;;  %v948_v52 = vadd.f32 %v2949_v26, %v947_v50  ;;  %v1206_v53 = vpop.f32.mrf.mxu3  ;;  %v1763_v46 = vld [vmem:[%s3347_s0 + $0x180] sm:$0xf]  ;;  %v2082_v50 = vld [vmem:[%s3347_s0 + $0x184] sm:$0xf0] }
 0x17e   :  { %v825_v56 = vpop.f32.mrf.mxu0 }
 0x17f   :  { %1492 = vst.msk [vmem:[%s3348_s3 + $0x6c] sm:$0xf] %vm1464_vm0, %v1391_v51  ;;  %v1207_v59 = vadd.f32 %v1206_v53, %v948_v52  ;;  %v826_v60 = vadd.f32 %v2949_v26, %v825_v56  ;;  %v1084_v61 = vpop.f32.mrf.mxu1  ;;  %v1963_v51 = vld [vmem:[%s3347_s0 + $0x310] sm:$0xf]  ;;  %v2132_v52 = vld [vmem:[%s3347_s0 + $0x314] sm:$0xf0] }
 0x180   :  { %v2081_v53 = vld [vmem:[%s3347_s0 + $0x184] sm:$0xf] }
 0x181   :  { %v1341_v62 = vmax.f32 %v1207_v59, 0.0  ;;  %v1085_v63 = vadd.f32 %v1084_v61, %v826_v60  ;;  %864 = vmatmul.bf16.gmra.mxu0 %v1748_v54  ;;  %989 = vmatmul.bf16.gmra.mxu2 %v1948_v55  ;;  %v1765_v54 = vld [vmem:[%s3347_s0 + $0x188] sm:$0xf0] }
 0x182   :  { %1123 = vmatmul.bf16.gmra.mxu1 %v1752_v57  ;;  %1248 = vmatmul.bf16.gmra.mxu3 %v1952_v58  ;;  %v2131_v57 = vld [vmem:[%s3347_s0 + $0x314] sm:$0xf]  ;;  %v1965_v58 = vld [vmem:[%s3347_s0 + $0x318] sm:$0xf0] }
 0x183   :  { %v1441_v0 = vpack.c.bf16 %v1341_v62, %v1341_v62  ;;  %v1292_v1 = vmax.f32 %v1085_v63, 0.0  ;;  %v1764_v63 = vor.u32 %v2082_v50, %v1763_v46 }
 0x184   :  { %v950_v2 = vpop.f32.mrf.mxu2 }
 0x185   :  { %1542 = vst.msk [vmem:[%s3348_s3 + $0x134] sm:$0xf] %vm1464_vm0, %v1441_v0  ;;  %v1392_v3 = vpack.c.bf16 %v1292_v1, %v1292_v1  ;;  %v951_v4 = vadd.f32 %v2949_v26, %v950_v2  ;;  %v1209_v5 = vpop.f32.mrf.mxu3  ;;  %v1964_v0 = vor.u32 %v2132_v52, %v1963_v51  ;;  %v1768_v2 = vor.u32 %v2081_v53, %v1765_v54 }
 0x186   :  { %v827_v6 = vpop.f32.mrf.mxu0 }
 0x187   :  { %1493 = vst.msk [vmem:[%s3348_s3 + $0x70] sm:$0xf] %vm1464_vm0, %v1392_v3  ;;  %v1210_v7 = vadd.f32 %v1209_v5, %v951_v4  ;;  %v828_v8 = vadd.f32 %v2949_v26, %v827_v6  ;;  %v1086_v9 = vpop.f32.mrf.mxu1  ;;  %v1968_v3 = vor.u32 %v2131_v57, %v1965_v58 }
 0x189   :  { %v1342_v11 = vmax.f32 %v1210_v7, 0.0  ;;  %v1087_v12 = vadd.f32 %v1086_v9, %v828_v8 }
 0x18b   :  { %v1442_v18 = vpack.c.bf16 %v1342_v11, %v1342_v11  ;;  %v1293_v19 = vmax.f32 %v1087_v12, 0.0 }
 0x18c   :  { %v952_v22 = vpop.f32.mrf.mxu2 }
 0x18d   :  { %1543 = vst.msk [vmem:[%s3348_s3 + $0x138] sm:$0xf] %vm1464_vm0, %v1442_v18  ;;  %v1393_v23 = vpack.c.bf16 %v1293_v19, %v1293_v19  ;;  %v953_v24 = vadd.f32 %v2949_v26, %v952_v22  ;;  %v1211_v25 = vpop.f32.mrf.mxu3 }
 0x18e   :  { %v830_v48 = vpop.f32.mrf.mxu0 }
 0x18f   :  { %1494 = vst.msk [vmem:[%s3348_s3 + $0x74] sm:$0xf] %vm1464_vm0, %v1393_v23  ;;  %v1212_v31 = vadd.f32 %v1211_v25, %v953_v24  ;;  %v831_v32 = vadd.f32 %v2949_v26, %v830_v48  ;;  %v1089_v33 = vpop.f32.mrf.mxu1 }
 0x191   :  { %v1343_v34 = vmax.f32 %v1212_v31, 0.0  ;;  %v1090_v35 = vadd.f32 %v1089_v33, %v831_v32  ;;  %869 = vmatmul.bf16.gmra.mxu0 %v1756_v27  ;;  %994 = vmatmul.bf16.gmra.mxu2 %v1956_v28 }
 0x192   :  { %1128 = vmatmul.bf16.gmra.mxu1 %v1760_v29  ;;  %1253 = vmatmul.bf16.gmra.mxu3 %v1960_v30 }
 0x193   :  { %v1443_v36 = vpack.c.bf16 %v1343_v34, %v1343_v34  ;;  %v1294_v37 = vmax.f32 %v1090_v35, 0.0 }
 0x194   :  { %v955_v38 = vpop.f32.mrf.mxu2 }
 0x195   :  { %1544 = vst.msk [vmem:[%s3348_s3 + $0x13c] sm:$0xf] %vm1464_vm0, %v1443_v36  ;;  %v1394_v39 = vpack.c.bf16 %v1294_v37, %v1294_v37  ;;  %v956_v40 = vadd.f32 %v2949_v26, %v955_v38  ;;  %v1214_v41 = vpop.f32.mrf.mxu3 }
 0x196   :  { %v832_v42 = vpop.f32.mrf.mxu0 }
 0x197   :  { %1495 = vst.msk [vmem:[%s3348_s3 + $0x78] sm:$0xf] %vm1464_vm0, %v1394_v39  ;;  %v1215_v43 = vadd.f32 %v1214_v41, %v956_v40  ;;  %v833_v44 = vadd.f32 %v2949_v26, %v832_v42  ;;  %v1091_v45 = vpop.f32.mrf.mxu1 }
 0x199   :  { %v1344_v47 = vmax.f32 %v1215_v43, 0.0  ;;  %v1092_v49 = vadd.f32 %v1091_v45, %v833_v44 }
 0x19b   :  { %v1444_v55 = vpack.c.bf16 %v1344_v47, %v1344_v47  ;;  %v1295_v56 = vmax.f32 %v1092_v49, 0.0 }
 0x19c   :  { %v957_v59 = vpop.f32.mrf.mxu2 }
 0x19d   :  { %1545 = vst.msk [vmem:[%s3348_s3 + $0x140] sm:$0xf] %vm1464_vm0, %v1444_v55  ;;  %v1395_v60 = vpack.c.bf16 %v1295_v56, %v1295_v56  ;;  %v958_v61 = vadd.f32 %v2949_v26, %v957_v59  ;;  %v1216_v62 = vpop.f32.mrf.mxu3 }
 0x19e   :  { %v835_v1 = vpop.f32.mrf.mxu0 }
 0x19f   :  { %1496 = vst.msk [vmem:[%s3348_s3 + $0x7c] sm:$0xf] %vm1464_vm0, %v1395_v60  ;;  %v1217_v4 = vadd.f32 %v1216_v62, %v958_v61  ;;  %v836_v5 = vadd.f32 %v2949_v26, %v835_v1  ;;  %v1094_v6 = vpop.f32.mrf.mxu1 }
 0x1a1   :  { %v1345_v7 = vmax.f32 %v1217_v4, 0.0  ;;  %v1095_v8 = vadd.f32 %v1094_v6, %v836_v5  ;;  %874 = vmatmul.bf16.gmra.mxu0 %v1764_v63  ;;  %999 = vmatmul.bf16.gmra.mxu2 %v1964_v0 }
 0x1a2   :  { %1133 = vmatmul.bf16.gmra.mxu1 %v1768_v2  ;;  %1258 = vmatmul.bf16.gmra.mxu3 %v1968_v3 }
 0x1a3   :  { %v1445_v9 = vpack.c.bf16 %v1345_v7, %v1345_v7  ;;  %v1296_v10 = vmax.f32 %v1095_v8, 0.0 }
 0x1a4   :  { %v960_v11 = vpop.f32.mrf.mxu2 }
 0x1a5   :  { %1546 = vst.msk [vmem:[%s3348_s3 + $0x144] sm:$0xf] %vm1464_vm0, %v1445_v9  ;;  %v1396_v12 = vpack.c.bf16 %v1296_v10, %v1296_v10  ;;  %v961_v13 = vadd.f32 %v2949_v26, %v960_v11  ;;  %v1219_v14 = vpop.f32.mrf.mxu3 }
 0x1a6   :  { %v837_v15 = vpop.f32.mrf.mxu0 }
 0x1a7   :  { %1497 = vst.msk [vmem:[%s3348_s3 + $0x80] sm:$0xf] %vm1464_vm0, %v1396_v12  ;;  %v1220_v16 = vadd.f32 %v1219_v14, %v961_v13  ;;  %v838_v17 = vadd.f32 %v2949_v26, %v837_v15  ;;  %v1096_v18 = vpop.f32.mrf.mxu1 }
 0x1a9   :  { %v1346_v19 = vmax.f32 %v1220_v16, 0.0  ;;  %v1097_v20 = vadd.f32 %v1096_v18, %v838_v17 }
 0x1ab   :  { %v1446_v21 = vpack.c.bf16 %v1346_v19, %v1346_v19  ;;  %v1297_v22 = vmax.f32 %v1097_v20, 0.0 }
 0x1ac   :  { %v962_v23 = vpop.f32.mrf.mxu2 }
 0x1ad   :  { %1547 = vst.msk [vmem:[%s3348_s3 + $0x148] sm:$0xf] %vm1464_vm0, %v1446_v21  ;;  %v1397_v24 = vpack.c.bf16 %v1297_v22, %v1297_v22  ;;  %v963_v25 = vadd.f32 %v2949_v26, %v962_v23  ;;  %v1221_v27 = vpop.f32.mrf.mxu3 }
 0x1ae   :  { %v840_v28 = vpop.f32.mrf.mxu0 }
 0x1af   :  { %1498 = vst.msk [vmem:[%s3348_s3 + $0x84] sm:$0xf] %vm1464_vm0, %v1397_v24  ;;  %v1222_v48 = vadd.f32 %v1221_v27, %v963_v25  ;;  %v841_v29 = vadd.f32 %v2949_v26, %v840_v28  ;;  %v1099_v30 = vpop.f32.mrf.mxu1 }
 0x1b1   :  { %v1347_v31 = vmax.f32 %v1222_v48, 0.0  ;;  %v1100_v32 = vadd.f32 %v1099_v30, %v841_v29 }
 0x1b3   :  { %v1447_v33 = vpack.c.bf16 %v1347_v31, %v1347_v31  ;;  %v1298_v34 = vmax.f32 %v1100_v32, 0.0 }
 0x1b4   :  { %v965_v35 = vpop.f32.mrf.mxu2 }
 0x1b5   :  { %1548 = vst.msk [vmem:[%s3348_s3 + $0x14c] sm:$0xf] %vm1464_vm0, %v1447_v33  ;;  %v1398_v36 = vpack.c.bf16 %v1298_v34, %v1298_v34  ;;  %v966_v37 = vadd.f32 %v2949_v26, %v965_v35  ;;  %v1224_v38 = vpop.f32.mrf.mxu3 }
 0x1b6   :  { %v842_v39 = vpop.f32.mrf.mxu0 }
 0x1b7   :  { %1499 = vst.msk [vmem:[%s3348_s3 + $0x88] sm:$0xf] %vm1464_vm0, %v1398_v36  ;;  %v1225_v40 = vadd.f32 %v1224_v38, %v966_v37  ;;  %v843_v41 = vadd.f32 %v2949_v26, %v842_v39  ;;  %v1101_v42 = vpop.f32.mrf.mxu1 }
 0x1b9   :  { %v1348_v43 = vmax.f32 %v1225_v40, 0.0  ;;  %v1102_v44 = vadd.f32 %v1101_v42, %v843_v41 }
 0x1bb   :  { %v1448_v45 = vpack.c.bf16 %v1348_v43, %v1348_v43  ;;  %v1299_v46 = vmax.f32 %v1102_v44, 0.0 }
 0x1bc   :  { %v967_v47 = vpop.f32.mrf.mxu2 }
 0x1bd   :  { %1549 = vst.msk [vmem:[%s3348_s3 + $0x150] sm:$0xf] %vm1464_vm0, %v1448_v45  ;;  %v1399_v49 = vpack.c.bf16 %v1299_v46, %v1299_v46  ;;  %v968_v50 = vadd.f32 %v2949_v26, %v967_v47  ;;  %v1226_v51 = vpop.f32.mrf.mxu3 }
 0x1be   :  { %v845_v52 = vpop.f32.mrf.mxu0 }
 0x1bf   :  { %1500 = vst.msk [vmem:[%s3348_s3 + $0x8c] sm:$0xf] %vm1464_vm0, %v1399_v49  ;;  %v1227_v53 = vadd.f32 %v1226_v51, %v968_v50  ;;  %v846_v54 = vadd.f32 %v2949_v26, %v845_v52  ;;  %v1104_v55 = vpop.f32.mrf.mxu1 }
 0x1c1   :  { %v1349_v56 = vmax.f32 %v1227_v53, 0.0  ;;  %v1105_v57 = vadd.f32 %v1104_v55, %v846_v54 }
 0x1c3   :  { %v1449_v58 = vpack.c.bf16 %v1349_v56, %v1349_v56  ;;  %v1300_v59 = vmax.f32 %v1105_v57, 0.0 }
 0x1c4   :  { %v970_v60 = vpop.f32.mrf.mxu2 }
 0x1c5   :  { %1550 = vst.msk [vmem:[%s3348_s3 + $0x154] sm:$0xf] %vm1464_vm0, %v1449_v58  ;;  %v1400_v61 = vpack.c.bf16 %v1300_v59, %v1300_v59  ;;  %v971_v62 = vadd.f32 %v2949_v26, %v970_v60  ;;  %v1229_v63 = vpop.f32.mrf.mxu3 }
 0x1c6   :  { %v847_v0 = vpop.f32.mrf.mxu0 }
 0x1c7   :  { %1501 = vst.msk [vmem:[%s3348_s3 + $0x90] sm:$0xf] %vm1464_vm0, %v1400_v61  ;;  %v1230_v1 = vadd.f32 %v1229_v63, %v971_v62  ;;  %v848_v2 = vadd.f32 %v2949_v26, %v847_v0  ;;  %v1106_v3 = vpop.f32.mrf.mxu1 }
 0x1c9   :  { %v1350_v4 = vmax.f32 %v1230_v1, 0.0  ;;  %v1107_v5 = vadd.f32 %v1106_v3, %v848_v2 }
 0x1cb   :  { %v1450_v6 = vpack.c.bf16 %v1350_v4, %v1350_v4  ;;  %v1301_v7 = vmax.f32 %v1107_v5, 0.0 }
 0x1cc   :  { %v972_v8 = vpop.f32.mrf.mxu2 }
 0x1cd   :  { %1551 = vst.msk [vmem:[%s3348_s3 + $0x158] sm:$0xf] %vm1464_vm0, %v1450_v6  ;;  %v1401_v9 = vpack.c.bf16 %v1301_v7, %v1301_v7  ;;  %v973_v10 = vadd.f32 %v2949_v26, %v972_v8  ;;  %v1231_v11 = vpop.f32.mrf.mxu3 }
 0x1ce   :  { %v850_v12 = vpop.f32.mrf.mxu0 }
 0x1cf   :  { %1502 = vst.msk [vmem:[%s3348_s3 + $0x94] sm:$0xf] %vm1464_vm0, %v1401_v9  ;;  %v1232_v13 = vadd.f32 %v1231_v11, %v973_v10  ;;  %v851_v14 = vadd.f32 %v2949_v26, %v850_v12  ;;  %v1109_v15 = vpop.f32.mrf.mxu1 }
 0x1d1   :  { %v1351_v16 = vmax.f32 %v1232_v13, 0.0  ;;  %v1110_v17 = vadd.f32 %v1109_v15, %v851_v14 }
 0x1d3   :  { %v1451_v18 = vpack.c.bf16 %v1351_v16, %v1351_v16  ;;  %v1302_v19 = vmax.f32 %v1110_v17, 0.0 }
 0x1d4   :  { %v975_v20 = vpop.f32.mrf.mxu2 }
 0x1d5   :  { %1552 = vst.msk [vmem:[%s3348_s3 + $0x15c] sm:$0xf] %vm1464_vm0, %v1451_v18  ;;  %v1402_v21 = vpack.c.bf16 %v1302_v19, %v1302_v19  ;;  %v976_v22 = vadd.f32 %v2949_v26, %v975_v20  ;;  %v1234_v23 = vpop.f32.mrf.mxu3 }
 0x1d6   :  { %v852_v24 = vpop.f32.mrf.mxu0 }
 0x1d7   :  { %1503 = vst.msk [vmem:[%s3348_s3 + $0x98] sm:$0xf] %vm1464_vm0, %v1402_v21  ;;  %v1235_v25 = vadd.f32 %v1234_v23, %v976_v22  ;;  %v853_v27 = vadd.f32 %v2949_v26, %v852_v24  ;;  %v1111_v28 = vpop.f32.mrf.mxu1 }
 0x1d9   :  { %v1352_v48 = vmax.f32 %v1235_v25, 0.0  ;;  %v1112_v29 = vadd.f32 %v1111_v28, %v853_v27 }
 0x1db   :  { %v1452_v30 = vpack.c.bf16 %v1352_v48, %v1352_v48  ;;  %v1303_v31 = vmax.f32 %v1112_v29, 0.0 }
 0x1dc   :  { %v977_v32 = vpop.f32.mrf.mxu2 }
 0x1dd   :  { %1553 = vst.msk [vmem:[%s3348_s3 + $0x160] sm:$0xf] %vm1464_vm0, %v1452_v30  ;;  %v1403_v33 = vpack.c.bf16 %v1303_v31, %v1303_v31  ;;  %v978_v34 = vadd.f32 %v2949_v26, %v977_v32  ;;  %v1236_v35 = vpop.f32.mrf.mxu3 }
 0x1de   :  { %v855_v36 = vpop.f32.mrf.mxu0 }
 0x1df   :  { %1504 = vst.msk [vmem:[%s3348_s3 + $0x9c] sm:$0xf] %vm1464_vm0, %v1403_v33  ;;  %v1237_v37 = vadd.f32 %v1236_v35, %v978_v34  ;;  %v856_v38 = vadd.f32 %v2949_v26, %v855_v36  ;;  %v1114_v39 = vpop.f32.mrf.mxu1 }
 0x1e1   :  { %v1353_v40 = vmax.f32 %v1237_v37, 0.0  ;;  %v1115_v41 = vadd.f32 %v1114_v39, %v856_v38 }
 0x1e3   :  { %v1453_v42 = vpack.c.bf16 %v1353_v40, %v1353_v40  ;;  %v1304_v43 = vmax.f32 %v1115_v41, 0.0 }
 0x1e4   :  { %v980_v44 = vpop.f32.mrf.mxu2 }
 0x1e5   :  { %1554 = vst.msk [vmem:[%s3348_s3 + $0x164] sm:$0xf] %vm1464_vm0, %v1453_v42  ;;  %v1404_v45 = vpack.c.bf16 %v1304_v43, %v1304_v43  ;;  %v981_v46 = vadd.f32 %v2949_v26, %v980_v44  ;;  %v1239_v47 = vpop.f32.mrf.mxu3 }
 0x1e6   :  { %v857_v49 = vpop.f32.mrf.mxu0 }
 0x1e7   :  { %1505 = vst.msk [vmem:[%s3348_s3 + $0xa0] sm:$0xf] %vm1464_vm0, %v1404_v45  ;;  %v1240_v50 = vadd.f32 %v1239_v47, %v981_v46  ;;  %v858_v51 = vadd.f32 %v2949_v26, %v857_v49  ;;  %v1116_v52 = vpop.f32.mrf.mxu1 }
 0x1e9   :  { %v1354_v53 = vmax.f32 %v1240_v50, 0.0  ;;  %v1117_v54 = vadd.f32 %v1116_v52, %v858_v51 }
 0x1eb   :  { %v1454_v55 = vpack.c.bf16 %v1354_v53, %v1354_v53  ;;  %v1305_v56 = vmax.f32 %v1117_v54, 0.0 }
 0x1ec   :  { %v982_v57 = vpop.f32.mrf.mxu2 }
 0x1ed   :  { %1555 = vst.msk [vmem:[%s3348_s3 + $0x168] sm:$0xf] %vm1464_vm0, %v1454_v55  ;;  %v1405_v58 = vpack.c.bf16 %v1305_v56, %v1305_v56  ;;  %v983_v59 = vadd.f32 %v2949_v26, %v982_v57  ;;  %v1241_v60 = vpop.f32.mrf.mxu3 }
 0x1ee   :  { %v860_v61 = vpop.f32.mrf.mxu0 }
 0x1ef   :  { %1506 = vst.msk [vmem:[%s3348_s3 + $0xa4] sm:$0xf] %vm1464_vm0, %v1405_v58  ;;  %v1242_v62 = vadd.f32 %v1241_v60, %v983_v59  ;;  %v861_v63 = vadd.f32 %v2949_v26, %v860_v61  ;;  %v1119_v0 = vpop.f32.mrf.mxu1 }
 0x1f1   :  { %v1355_v1 = vmax.f32 %v1242_v62, 0.0  ;;  %v1120_v2 = vadd.f32 %v1119_v0, %v861_v63 }
 0x1f3   :  { %v1455_v3 = vpack.c.bf16 %v1355_v1, %v1355_v1  ;;  %v1306_v4 = vmax.f32 %v1120_v2, 0.0 }
 0x1f4   :  { %v985_v5 = vpop.f32.mrf.mxu2 }
 0x1f5   :  { %1556 = vst.msk [vmem:[%s3348_s3 + $0x16c] sm:$0xf] %vm1464_vm0, %v1455_v3  ;;  %v1406_v6 = vpack.c.bf16 %v1306_v4, %v1306_v4  ;;  %v986_v7 = vadd.f32 %v2949_v26, %v985_v5  ;;  %v1244_v8 = vpop.f32.mrf.mxu3 }
 0x1f6   :  { %v862_v9 = vpop.f32.mrf.mxu0 }
 0x1f7   :  { %1507 = vst.msk [vmem:[%s3348_s3 + $0xa8] sm:$0xf] %vm1464_vm0, %v1406_v6  ;;  %v1245_v10 = vadd.f32 %v1244_v8, %v986_v7  ;;  %v863_v11 = vadd.f32 %v2949_v26, %v862_v9  ;;  %v1121_v12 = vpop.f32.mrf.mxu1 }
 0x1f9   :  { %v1356_v13 = vmax.f32 %v1245_v10, 0.0  ;;  %v1122_v14 = vadd.f32 %v1121_v12, %v863_v11 }
 0x1fb   :  { %v1456_v15 = vpack.c.bf16 %v1356_v13, %v1356_v13  ;;  %v1307_v16 = vmax.f32 %v1122_v14, 0.0 }
 0x1fc   :  { %v987_v17 = vpop.f32.mrf.mxu2 }
 0x1fd   :  { %1557 = vst.msk [vmem:[%s3348_s3 + $0x170] sm:$0xf] %vm1464_vm0, %v1456_v15  ;;  %v1407_v18 = vpack.c.bf16 %v1307_v16, %v1307_v16  ;;  %v988_v19 = vadd.f32 %v2949_v26, %v987_v17  ;;  %v1246_v20 = vpop.f32.mrf.mxu3 }
 0x1fe   :  { %v865_v21 = vpop.f32.mrf.mxu0 }
 0x1ff   :  { %1508 = vst.msk [vmem:[%s3348_s3 + $0xac] sm:$0xf] %vm1464_vm0, %v1407_v18  ;;  %v1247_v22 = vadd.f32 %v1246_v20, %v988_v19  ;;  %v866_v23 = vadd.f32 %v2949_v26, %v865_v21  ;;  %v1124_v24 = vpop.f32.mrf.mxu1 }
 0x201   :  { %v1357_v25 = vmax.f32 %v1247_v22, 0.0  ;;  %v1125_v27 = vadd.f32 %v1124_v24, %v866_v23 }
 0x203   :  { %v1457_v28 = vpack.c.bf16 %v1357_v25, %v1357_v25  ;;  %v1308_v48 = vmax.f32 %v1125_v27, 0.0 }
 0x204   :  { %v990_v29 = vpop.f32.mrf.mxu2 }
 0x205   :  { %1558 = vst.msk [vmem:[%s3348_s3 + $0x174] sm:$0xf] %vm1464_vm0, %v1457_v28  ;;  %v1408_v30 = vpack.c.bf16 %v1308_v48, %v1308_v48  ;;  %v991_v31 = vadd.f32 %v2949_v26, %v990_v29  ;;  %v1249_v32 = vpop.f32.mrf.mxu3 }
 0x206   :  { %v867_v33 = vpop.f32.mrf.mxu0 }
 0x207   :  { %1509 = vst.msk [vmem:[%s3348_s3 + $0xb0] sm:$0xf] %vm1464_vm0, %v1408_v30  ;;  %v1250_v34 = vadd.f32 %v1249_v32, %v991_v31  ;;  %v868_v35 = vadd.f32 %v2949_v26, %v867_v33  ;;  %v1126_v36 = vpop.f32.mrf.mxu1 }
 0x209   :  { %v1358_v37 = vmax.f32 %v1250_v34, 0.0  ;;  %v1127_v38 = vadd.f32 %v1126_v36, %v868_v35 }
 0x20b   :  { %v1458_v39 = vpack.c.bf16 %v1358_v37, %v1358_v37  ;;  %v1309_v40 = vmax.f32 %v1127_v38, 0.0 }
 0x20c   :  { %v992_v41 = vpop.f32.mrf.mxu2 }
 0x20d   :  { %1559 = vst.msk [vmem:[%s3348_s3 + $0x178] sm:$0xf] %vm1464_vm0, %v1458_v39  ;;  %v1409_v42 = vpack.c.bf16 %v1309_v40, %v1309_v40  ;;  %v993_v43 = vadd.f32 %v2949_v26, %v992_v41  ;;  %v1251_v44 = vpop.f32.mrf.mxu3 }
 0x20e   :  { %v870_v45 = vpop.f32.mrf.mxu0 }
 0x20f   :  { %1510 = vst.msk [vmem:[%s3348_s3 + $0xb4] sm:$0xf] %vm1464_vm0, %v1409_v42  ;;  %v1252_v46 = vadd.f32 %v1251_v44, %v993_v43  ;;  %v871_v47 = vadd.f32 %v2949_v26, %v870_v45  ;;  %v1129_v49 = vpop.f32.mrf.mxu1 }
 0x211   :  { %v1359_v50 = vmax.f32 %v1252_v46, 0.0  ;;  %v1130_v51 = vadd.f32 %v1129_v49, %v871_v47 }
 0x213   :  { %v1459_v52 = vpack.c.bf16 %v1359_v50, %v1359_v50  ;;  %v1310_v53 = vmax.f32 %v1130_v51, 0.0 }
 0x214   :  { %v995_v54 = vpop.f32.mrf.mxu2 }
 0x215   :  { %1560 = vst.msk [vmem:[%s3348_s3 + $0x17c] sm:$0xf] %vm1464_vm0, %v1459_v52  ;;  %v1410_v55 = vpack.c.bf16 %v1310_v53, %v1310_v53  ;;  %v996_v56 = vadd.f32 %v2949_v26, %v995_v54  ;;  %v1254_v57 = vpop.f32.mrf.mxu3 }
 0x216   :  { %v872_v58 = vpop.f32.mrf.mxu0 }
 0x217   :  { %1511 = vst.msk [vmem:[%s3348_s3 + $0xb8] sm:$0xf] %vm1464_vm0, %v1410_v55  ;;  %v1255_v59 = vadd.f32 %v1254_v57, %v996_v56  ;;  %v873_v60 = vadd.f32 %v2949_v26, %v872_v58  ;;  %v1131_v61 = vpop.f32.mrf.mxu1 }
 0x219   :  { %v1360_v62 = vmax.f32 %v1255_v59, 0.0  ;;  %v1132_v63 = vadd.f32 %v1131_v61, %v873_v60 }
 0x21b   :  { %v1460_v0 = vpack.c.bf16 %v1360_v62, %v1360_v62  ;;  %v1311_v1 = vmax.f32 %v1132_v63, 0.0 }
 0x21c   :  { %v997_v2 = vpop.f32.mrf.mxu2 }
 0x21d   :  { %1561 = vst.msk [vmem:[%s3348_s3 + $0x180] sm:$0xf] %vm1464_vm0, %v1460_v0  ;;  %v1411_v3 = vpack.c.bf16 %v1311_v1, %v1311_v1  ;;  %v998_v4 = vadd.f32 %v2949_v26, %v997_v2  ;;  %v1256_v5 = vpop.f32.mrf.mxu3 }
 0x21e   :  { %v875_v6 = vpop.f32.mrf.mxu0 }
 0x21f   :  { %1512 = vst.msk [vmem:[%s3348_s3 + $0xbc] sm:$0xf] %vm1464_vm0, %v1411_v3  ;;  %v1257_v7 = vadd.f32 %v1256_v5, %v998_v4  ;;  %v876_v8 = vadd.f32 %v2949_v26, %v875_v6  ;;  %v1134_v9 = vpop.f32.mrf.mxu1 }
 0x221   :  { %v1361_v10 = vmax.f32 %v1257_v7, 0.0  ;;  %v1135_v11 = vadd.f32 %v1134_v9, %v876_v8 }
 0x223   :  { %v1461_v12 = vpack.c.bf16 %v1361_v10, %v1361_v10  ;;  %v1312_v13 = vmax.f32 %v1135_v11, 0.0 }
 0x224   :  { %v1000_v14 = vpop.f32.mrf.mxu2 }
 0x225   :  { %1562 = vst.msk [vmem:[%s3348_s3 + $0x184] sm:$0xf] %vm1464_vm0, %v1461_v12  ;;  %v1412_v15 = vpack.c.bf16 %v1312_v13, %v1312_v13  ;;  %v1001_v16 = vadd.f32 %v2949_v26, %v1000_v14  ;;  %v1259_v17 = vpop.f32.mrf.mxu3 }
 0x226   :  { %v877_v18 = vpop.f32.mrf.mxu0 }
 0x227   :  { %1513 = vst.msk [vmem:[%s3348_s3 + $0xc0] sm:$0xf] %vm1464_vm0, %v1412_v15  ;;  %v1260_v19 = vadd.f32 %v1259_v17, %v1001_v16  ;;  %v878_v20 = vadd.f32 %v2949_v26, %v877_v18  ;;  %v1136_v21 = vpop.f32.mrf.mxu1 }
 0x229   :  { %v1362_v22 = vmax.f32 %v1260_v19, 0.0  ;;  %v1137_v23 = vadd.f32 %v1136_v21, %v878_v20 }
 0x22b   :  { %v1462_v24 = vpack.c.bf16 %v1362_v22, %v1362_v22  ;;  %v1313_v25 = vmax.f32 %v1137_v23, 0.0 }
 0x22c   :  { %v1002_v27 = vpop.f32.mrf.mxu2 }
 0x22d   :  { %1563 = vst.msk [vmem:[%s3348_s3 + $0x188] sm:$0xf] %vm1464_vm0, %v1462_v24  ;;  %v1413_v28 = vpack.c.bf16 %v1313_v25, %v1313_v25  ;;  %v1003_v48 = vadd.f32 %v2949_v26, %v1002_v27  ;;  %v1261_v29 = vpop.f32.mrf.mxu3 }
 0x22f   :  { %1514 = vst.msk [vmem:[%s3348_s3 + $0xc4] sm:$0xf] %vm1464_vm0, %v1413_v28  ;;  %v1262_v30 = vadd.f32 %v1261_v29, %v1003_v48 }
 0x231   :  { %v1363_v31 = vmax.f32 %v1262_v30, 0.0 }
 0x233   :  { %v1463_v32 = vpack.c.bf16 %v1363_v31, %v1363_v31 }
 0x235   :  { %1564 = vst.msk [vmem:[%s3348_s3 + $0x18c] sm:$0xf] %vm1464_vm0, %v1463_v32 }

// kernel: dueling_cnn_forward.6
= control target key start
LH: loop header
LB: loop body
LE: loop exit
PB: predicated region body
PF: predicated region fallthrough
CT: control target
= control target key end

     0   :  { %vm513_vm0 = vcmask 523264   ;;  %vm776_vm1 = vcmask 519168   ;;  %vm789_vm2 = vcmask 516096   ;;  %s1581_s1 = inlined_call_operand.vmem [shape: bf16[576,64], index: 1, kind: input, shape index: {}]   ;;  %s1582_s2 = inlined_call_operand.vmem [shape: f32[1,64], index: 2, kind: input, shape index: {}]   ;;  %s1583_s0 = inlined_call_operand.vmem [shape: bf16[98,576], index: 0, kind: input, shape index: {}]   ;;  %s1584_s3 = inlined_call_operand.vmem [shape: bf16[98,64], index: 3, kind: output, shape index: {}]  }
   0x1   :  { %v1103_v0 = vld [vmem:[%s1581_s1 + $0x38] sm:$0xff]  ;;  %v1102_v1 = vld [vmem:[%s1581_s1 + $0x30] sm:$0xff]  ;;  %v1101_v2 = vld [vmem:[%s1581_s1 + $0x28] sm:$0xff] }
   0x2   :  { %1132 = vmatpush.bf16.msra.mxu1 %v1103_v0  ;;  %1133 = vmatpush.bf16.msra.mxu2 %v1103_v0  ;;  %v1100_v3 = vld [vmem:[%s1581_s1 + $0x20] sm:$0xff]  ;;  %v1099_v4 = vld [vmem:[%s1581_s1 + $0x18] sm:$0xff]  ;;  %v1098_v5 = vld [vmem:[%s1581_s1 + $0x10] sm:$0xff] }
   0x3   :  { %1134 = vmatpush.bf16.msra.mxu3 %v1103_v0  ;;  %535 = vmatpush.bf16.msra.mxu0 %v1103_v0  ;;  %v1097_v6 = vld [vmem:[%s1581_s1 + $0x8] sm:$0xff]  ;;  %v1201_v7 = vld [vmem:[%s1583_s0 + $0xf0] sm:$0x11]  ;;  %v1096_v8 = vld [vmem:[%s1581_s1] sm:$0xff] }
   0x4   :  { %v837_v9 = vld [vmem:[%s1583_s0 + $0x50] sm:$0xf]  ;;  %v1078_v10 = vld [vmem:[%s1583_s0 + $0x60] sm:$0xf0]  ;;  %v877_v11 = vld [vmem:[%s1583_s0 + $0xa0] sm:$0xf]  ;;  %v229_v15 = vunpack.c.l.b16 %v1201_v7 }
   0x5   :  { %v1088_v12 = vld [vmem:[%s1583_s0 + $0xb0] sm:$0xf0]  ;;  %v797_v13 = vld [vmem:[%s1583_s0] sm:$0xf]  ;;  %v1127_v16 = vld [vmem:[%s1581_s1 + $0xf8] sm:$0xff]  ;;  %v838_v18 = vor.u32 %v1078_v10, %v837_v9 }
   0x6   :  { %1135 = vmatpush.bf16.msra.mxu1 %v1102_v1  ;;  %1136 = vmatpush.bf16.msra.mxu2 %v1102_v1  ;;  %v1068_v14 = vld [vmem:[%s1583_s0 + $0x10] sm:$0xf0]  ;;  %v1119_v17 = vld [vmem:[%s1581_s1 + $0xb8] sm:$0xff]  ;;  %v878_v19 = vor.u32 %v1088_v12, %v877_v11  ;;  %v264_v23 = vpack.c.b16 %v229_v15, %v229_v15  ;;  %v1125_v28 = vld [vmem:[%s1581_s1 + $0xe8] sm:$0xff] }
   0x7   :  { %1137 = vmatpush.bf16.msra.mxu3 %v1102_v1  ;;  %536 = vmatpush.bf16.msra.mxu0 %v1102_v1  ;;  %v798_v20 = vor.u32 %v1068_v14, %v797_v13  ;;  %v1111_v21 = vld [vmem:[%s1581_s1 + $0x78] sm:$0xff]  ;;  %v1126_v24 = vld [vmem:[%s1581_s1 + $0xf0] sm:$0xff]  ;;  %v1117_v29 = vld [vmem:[%s1581_s1 + $0xa8] sm:$0xff] }
   0x8   :  { %v1131_v22 = vld [vmem:[%s1581_s1 + $0x118] sm:$0xff]  ;;  %v1118_v25 = vld [vmem:[%s1581_s1 + $0xb0] sm:$0xff]  ;;  %v1109_v30 = vld [vmem:[%s1581_s1 + $0x68] sm:$0xff] }
   0x9   :  { %v1110_v26 = vld [vmem:[%s1581_s1 + $0x70] sm:$0xff]  ;;  %v1129_v31 = vld [vmem:[%s1581_s1 + $0x108] sm:$0xff]  ;;  %v1124_v32 = vld [vmem:[%s1581_s1 + $0xe0] sm:$0xff] }
   0xa   :  { %1138 = vmatpush.bf16.msra.mxu1 %v1101_v2  ;;  %1139 = vmatpush.bf16.msra.mxu2 %v1101_v2  ;;  %v1130_v27 = vld [vmem:[%s1581_s1 + $0x110] sm:$0xff]  ;;  %v1116_v33 = vld [vmem:[%s1581_s1 + $0xa0] sm:$0xff]  ;;  %v857_v35 = vld [vmem:[%s1583_s0 + $0x78] sm:$0xf] }
   0xb   :  { %1140 = vmatpush.bf16.msra.mxu3 %v1101_v2  ;;  %537 = vmatpush.bf16.msra.mxu0 %v1101_v2  ;;  %v1108_v34 = vld [vmem:[%s1581_s1 + $0x60] sm:$0xff]  ;;  %v1083_v36 = vld [vmem:[%s1583_s0 + $0x88] sm:$0xf0]  ;;  %v897_v37 = vld [vmem:[%s1583_s0 + $0xc8] sm:$0xf] }
   0xc   :  { %v1093_v38 = vld [vmem:[%s1583_s0 + $0xd8] sm:$0xf0]  ;;  %v817_v39 = vld [vmem:[%s1583_s0 + $0x28] sm:$0xf]  ;;  %v1128_v41 = vld [vmem:[%s1581_s1 + $0x100] sm:$0xff]  ;;  %v858_v44 = vor.u32 %v1083_v36, %v857_v35 }
   0xd   :  { %v1073_v40 = vld [vmem:[%s1583_s0 + $0x38] sm:$0xf0]  ;;  %v898_v45 = vor.u32 %v1093_v38, %v897_v37  ;;  %v1122_v48 = vld [vmem:[%s1581_s1 + $0xd0] sm:$0xff]  ;;  %v1121_v51 = vld [vmem:[%s1581_s1 + $0xc8] sm:$0xff] }
   0xe   :  { %1141 = vmatpush.bf16.msra.mxu1 %v1100_v3  ;;  %1142 = vmatpush.bf16.msra.mxu2 %v1100_v3  ;;  %v1123_v42 = vld [vmem:[%s1581_s1 + $0xd8] sm:$0xff]  ;;  %v818_v46 = vor.u32 %v1073_v40, %v817_v39  ;;  %v1114_v49 = vld [vmem:[%s1581_s1 + $0x90] sm:$0xff]  ;;  %v1113_v52 = vld [vmem:[%s1581_s1 + $0x88] sm:$0xff] }
   0xf   :  { %1143 = vmatpush.bf16.msra.mxu3 %v1100_v3  ;;  %538 = vmatpush.bf16.msra.mxu0 %v1100_v3  ;;  %v1115_v43 = vld [vmem:[%s1581_s1 + $0x98] sm:$0xff]  ;;  %v1106_v50 = vld [vmem:[%s1581_s1 + $0x50] sm:$0xff]  ;;  %v1105_v53 = vld [vmem:[%s1581_s1 + $0x48] sm:$0xff] }
  0x10   :  { %v1107_v47 = vld [vmem:[%s1581_s1 + $0x58] sm:$0xff]  ;;  %v1120_v54 = vld [vmem:[%s1581_s1 + $0xc0] sm:$0xff]  ;;  %v1067_v56 = vld [vmem:[%s1583_s0 + $0xc] sm:$0xf] }
  0x11   :  { %v1112_v55 = vld [vmem:[%s1581_s1 + $0x80] sm:$0xff]  ;;  %v799_v60 = vld [vmem:[%s1583_s0 + $0x14] sm:$0xf0]  ;;  %v805_v61 = vld [vmem:[%s1583_s0 + $0x8] sm:$0xf] }
  0x12   :  { %1144 = vmatpush.bf16.msra.mxu1 %v1099_v4  ;;  %1145 = vmatpush.bf16.msra.mxu2 %v1099_v4  ;;  %v807_v57 = vld [vmem:[%s1583_s0 + $0x1c] sm:$0xf0]  ;;  %v1066_v59 = vld [vmem:[%s1583_s0 + $0x4] sm:$0xf]  ;;  %v1069_v62 = vld [vmem:[%s1583_s0 + $0x18] sm:$0xf0] }
  0x13   :  { %1146 = vmatpush.bf16.msra.mxu3 %v1099_v4  ;;  %539 = vmatpush.bf16.msra.mxu0 %v1099_v4  ;;  %v1104_v58 = vld [vmem:[%s1581_s1 + $0x40] sm:$0xff]  ;;  %v810_v63 = vor.u32 %v1067_v56, %v807_v57  ;;  %v813_v0 = vld [vmem:[%s1583_s0 + $0x10] sm:$0xf]  ;;  %v802_v2 = vor.u32 %v1066_v59, %v799_v60  ;;  %v806_v3 = vor.u32 %v1069_v62, %v805_v61  ;;  %v833_v13 = vld [vmem:[%s1583_s0 + $0x38] sm:$0xf] }
  0x14   :  { %v1070_v1 = vld [vmem:[%s1583_s0 + $0x20] sm:$0xf0]  ;;  %v819_v9 = vld [vmem:[%s1583_s0 + $0x3c] sm:$0xf0]  ;;  %v825_v10 = vld [vmem:[%s1583_s0 + $0x30] sm:$0xf] }
  0x15   :  { %v814_v4 = vor.u32 %v1070_v1, %v813_v0  ;;  %v1074_v11 = vld [vmem:[%s1583_s0 + $0x40] sm:$0xf0]  ;;  %v1075_v14 = vld [vmem:[%s1583_s0 + $0x48] sm:$0xf0]  ;;  %v1084_v35 = vld [vmem:[%s1583_s0 + $0x90] sm:$0xf0] }
  0x16   :  { %1147 = vmatpush.bf16.msra.mxu1 %v1098_v5  ;;  %1148 = vmatpush.bf16.msra.mxu2 %v1098_v5  ;;  %v873_v37 = vld [vmem:[%s1583_s0 + $0x88] sm:$0xf]  ;;  %v1085_v38 = vld [vmem:[%s1583_s0 + $0x98] sm:$0xf0]  ;;  %v1091_v56 = vld [vmem:[%s1583_s0 + $0xcc] sm:$0xf] }
  0x17   :  { %1149 = vmatpush.bf16.msra.mxu3 %v1098_v5  ;;  %540 = vmatpush.bf16.msra.mxu0 %v1098_v5  ;;  %v1072_v5 = vld [vmem:[%s1583_s0 + $0x34] sm:$0xf]  ;;  %v899_v57 = vld [vmem:[%s1583_s0 + $0xdc] sm:$0xf0]  ;;  %v1094_v59 = vld [vmem:[%s1583_s0 + $0xe0] sm:$0xf0] }
  0x18   :  { %v913_v61 = vld [vmem:[%s1583_s0 + $0xd8] sm:$0xf]  ;;  %v1095_v62 = vld [vmem:[%s1583_s0 + $0xe8] sm:$0xf0] }
  0x19   :  { %v914_v1 = vor.u32 %v1095_v62, %v913_v61 }
  0x1a   :  { %1150 = vmatpush.bf16.msra.mxu1 %v1097_v6  ;;  %1151 = vmatpush.bf16.msra.mxu2 %v1097_v6 }
  0x1b   :  { %1152 = vmatpush.bf16.msra.mxu3 %v1097_v6  ;;  %541 = vmatpush.bf16.msra.mxu0 %v1097_v6  ;;  %v827_v6 = vld [vmem:[%s1583_s0 + $0x44] sm:$0xf0] }
  0x1c   :  { %v830_v12 = vor.u32 %v1072_v5, %v827_v6  ;;  %v230_v5 = vunpack.c.h.b16 %v1201_v7 }
  0x1e   :  { %1153 = vmatpush.bf16.msra.mxu1 %v1096_v8  ;;  %1154 = vmatpush.bf16.msra.mxu2 %v1096_v8 }
  0x1f   :  { %1155 = vmatpush.bf16.msra.mxu3 %v1096_v8  ;;  %542 = vmatpush.bf16.msra.mxu0 %v1096_v8  ;;  %v1071_v8 = vld [vmem:[%s1583_s0 + $0x2c] sm:$0xf] }
  0x20   :  { %v822_v15 = vor.u32 %v1071_v8, %v819_v9 }
  0x21   :  { %553 = vmatmul.bf16.vlgmr.msra.gmra.mxu1 %v838_v18  ;;  %563 = vmatmul.bf16.vlgmr.msra.gmra.mxu2 %v878_v19  ;;  %v1077_v18 = vld [vmem:[%s1583_s0 + $0x5c] sm:$0xf]  ;;  %v847_v19 = vld [vmem:[%s1583_s0 + $0x6c] sm:$0xf0] }
  0x22   :  { %621 = vmatpush.bf16.msrb.mxu2 %v1119_v17  ;;  %543 = vmatmul.bf16.vlgmr.msra.gmra.mxu0 %v798_v20  ;;  %v834_v17 = vor.u32 %v1075_v14, %v833_v13  ;;  %v1076_v20 = vld [vmem:[%s1583_s0 + $0x54] sm:$0xf] }
  0x23   :  { %664 = vmatpush.bf16.msrb.mxu3 %v1127_v16  ;;  %578 = vmatpush.bf16.msrb.mxu1 %v1111_v21  ;;  %v826_v16 = vor.u32 %v1074_v11, %v825_v10  ;;  %v839_v21 = vld [vmem:[%s1583_s0 + $0x64] sm:$0xf0]  ;;  %v265_v10 = vpack.c.b16 %v230_v5, %v230_v5 }
  0x24   :  { %711 = vmatpush.bf16.msrb.mxu0 %v1131_v22  ;;  %573 = vmatmul.bf16.vlgmr.msra.gmra.mxu3 %v264_v23  ;;  %v845_v22 = vld [vmem:[%s1583_s0 + $0x58] sm:$0xf]  ;;  %v1079_v23 = vld [vmem:[%s1583_s0 + $0x68] sm:$0xf0] }
  0x26   :  { %622 = vmatpush.bf16.msrb.mxu2 %v1118_v25  ;;  %v853_v25 = vld [vmem:[%s1583_s0 + $0x60] sm:$0xf] }
  0x27   :  { %665 = vmatpush.bf16.msrb.mxu3 %v1126_v24  ;;  %579 = vmatpush.bf16.msrb.mxu1 %v1110_v26  ;;  %v850_v24 = vor.u32 %v1077_v18, %v847_v19  ;;  %v1080_v26 = vld [vmem:[%s1583_s0 + $0x70] sm:$0xf0] }
  0x28   :  { %712 = vmatpush.bf16.msrb.mxu0 %v1130_v27  ;;  %v842_v27 = vor.u32 %v1076_v20, %v839_v21 }
  0x2a   :  { %623 = vmatpush.bf16.msrb.mxu2 %v1117_v29  ;;  %v854_v29 = vor.u32 %v1080_v26, %v853_v25 }
  0x2b   :  { %666 = vmatpush.bf16.msrb.mxu3 %v1125_v28  ;;  %580 = vmatpush.bf16.msrb.mxu1 %v1109_v30  ;;  %v846_v28 = vor.u32 %v1079_v23, %v845_v22  ;;  %v1082_v30 = vld [vmem:[%s1583_s0 + $0x84] sm:$0xf] }
  0x2c   :  { %713 = vmatpush.bf16.msrb.mxu0 %v1129_v31  ;;  %v867_v31 = vld [vmem:[%s1583_s0 + $0x94] sm:$0xf0] }
  0x2d   :  { %v870_v36 = vor.u32 %v1082_v30, %v867_v31 }
  0x2e   :  { %624 = vmatpush.bf16.msrb.mxu2 %v1116_v33  ;;  %v859_v33 = vld [vmem:[%s1583_s0 + $0x8c] sm:$0xf0] }
  0x2f   :  { %667 = vmatpush.bf16.msrb.mxu3 %v1124_v32  ;;  %581 = vmatpush.bf16.msrb.mxu1 %v1108_v34  ;;  %v1081_v32 = vld [vmem:[%s1583_s0 + $0x7c] sm:$0xf]  ;;  %v865_v34 = vld [vmem:[%s1583_s0 + $0x80] sm:$0xf] }
  0x30   :  { %714 = vmatpush.bf16.msrb.mxu0 %v1128_v41  ;;  %v862_v39 = vor.u32 %v1081_v32, %v859_v33  ;;  %v866_v40 = vor.u32 %v1084_v35, %v865_v34  ;;  %v874_v41 = vor.u32 %v1085_v38, %v873_v37 }
  0x31   :  { %558 = vmatmul.bf16.gmra.mxu1 %v858_v44  ;;  %568 = vmatmul.bf16.gmra.mxu2 %v898_v45  ;;  %v1086_v44 = vld [vmem:[%s1583_s0 + $0xa4] sm:$0xf]  ;;  %v879_v45 = vld [vmem:[%s1583_s0 + $0xb4] sm:$0xf0] }
  0x32   :  { %625 = vmatpush.bf16.msrb.mxu2 %v1115_v43  ;;  %548 = vmatmul.bf16.gmra.mxu0 %v818_v46  ;;  %v887_v43 = vld [vmem:[%s1583_s0 + $0xbc] sm:$0xf0]  ;;  %v885_v46 = vld [vmem:[%s1583_s0 + $0xa8] sm:$0xf] }
  0x33   :  { %668 = vmatpush.bf16.msrb.mxu3 %v1123_v42  ;;  %582 = vmatpush.bf16.msrb.mxu1 %v1107_v47  ;;  %v1087_v42 = vld [vmem:[%s1583_s0 + $0xac] sm:$0xf]  ;;  %v1089_v47 = vld [vmem:[%s1583_s0 + $0xb8] sm:$0xf0] }
  0x36   :  { %626 = vmatpush.bf16.msrb.mxu2 %v1114_v49  ;;  %v893_v49 = vld [vmem:[%s1583_s0 + $0xb0] sm:$0xf] }
  0x37   :  { %669 = vmatpush.bf16.msrb.mxu3 %v1122_v48  ;;  %583 = vmatpush.bf16.msrb.mxu1 %v1106_v50  ;;  %v890_v48 = vor.u32 %v1087_v42, %v887_v43  ;;  %v1090_v50 = vld [vmem:[%s1583_s0 + $0xc0] sm:$0xf0] }
  0x3a   :  { %627 = vmatpush.bf16.msrb.mxu2 %v1113_v52  ;;  %v886_v52 = vor.u32 %v1089_v47, %v885_v46 }
  0x3b   :  { %670 = vmatpush.bf16.msrb.mxu3 %v1121_v51  ;;  %584 = vmatpush.bf16.msrb.mxu1 %v1105_v53  ;;  %v882_v51 = vor.u32 %v1086_v44, %v879_v45  ;;  %v894_v53 = vor.u32 %v1090_v50, %v893_v49 }
  0x3e   :  { %628 = vmatpush.bf16.msrb.mxu2 %v1112_v55  ;;  %v907_v55 = vld [vmem:[%s1583_s0 + $0xe4] sm:$0xf0] }
  0x3f   :  { %671 = vmatpush.bf16.msrb.mxu3 %v1120_v54  ;;  %585 = vmatpush.bf16.msrb.mxu1 %v1104_v58  ;;  %v1092_v54 = vld [vmem:[%s1583_s0 + $0xd4] sm:$0xf]  ;;  %v905_v58 = vld [vmem:[%s1583_s0 + $0xd0] sm:$0xf] }
  0x40   :  { %v910_v60 = vor.u32 %v1092_v54, %v907_v55  ;;  %v906_v0 = vor.u32 %v1094_v59, %v905_v58 }
  0x41   :  { %629 = vmatmul.bf16.vlgmr.msrb.gmra.mxu2 %v806_v3 }
  0x42   :  { %672 = vmatmul.bf16.vlgmr.msrb.gmra.mxu3 %v810_v63  ;;  %586 = vmatmul.bf16.vlgmr.msrb.gmra.mxu1 %v802_v2  ;;  %v902_v63 = vor.u32 %v1091_v56, %v899_v57  ;;  %v52_v2 = vld [vmem:[%s1583_s0 + $0xf8] sm:$0x11] }
  0x43   :  { %1059 = vmatmul.msk.bf16.vlgmr.msrb.gmra.mxu0 %vm513_vm0, %v814_v4  ;;  %v232_v3 = vunpack.c.h.b16 %v52_v2  ;;  %v53_v4 = vld [vmem:[%s1583_s0 + $0x100] sm:$0x1]  ;;  %v231_v6 = vunpack.c.l.b16 %v52_v2 }
  0x44   :  { %v233_v8 = vunpack.c.l.b16 %v53_v4 }
  0x45   :  { %v267_v9 = vpack.c.b16 %v232_v3, %v232_v3  ;;  %v266_v11 = vpack.c.b16 %v231_v6, %v231_v6 }
  0x46   :  { %v268_v13 = vpack.c.b16 %v233_v8, %v233_v8 }
  0x51   :  { %634 = vmatmul.bf16.gmra.mxu2 %v826_v16 }
  0x52   :  { %677 = vmatmul.bf16.gmra.mxu3 %v830_v12  ;;  %591 = vmatmul.bf16.gmra.mxu1 %v822_v15  ;;  %v1490_v15 = vld [vmem:[%s1582_s2] ss:$0 sm:$0xff] }
  0x53   :  { %1060 = vmatmul.msk.bf16.gmra.mxu0 %vm513_vm0, %v834_v17 }
  0x61   :  { %639 = vmatmul.bf16.gmra.mxu2 %v846_v28 }
  0x62   :  { %682 = vmatmul.bf16.gmra.mxu3 %v850_v24  ;;  %596 = vmatmul.bf16.gmra.mxu1 %v842_v27 }
  0x63   :  { %1061 = vmatmul.msk.bf16.gmra.mxu0 %vm513_vm0, %v854_v29 }
  0x71   :  { %644 = vmatmul.bf16.gmra.mxu2 %v866_v40 }
  0x72   :  { %687 = vmatmul.bf16.gmra.mxu3 %v870_v36  ;;  %601 = vmatmul.bf16.gmra.mxu1 %v862_v39 }
  0x73   :  { %1062 = vmatmul.msk.bf16.gmra.mxu0 %vm513_vm0, %v874_v41 }
  0x81   :  { %649 = vmatmul.bf16.gmra.mxu2 %v886_v52 }
  0x82   :  { %692 = vmatmul.bf16.gmra.mxu3 %v890_v48  ;;  %606 = vmatmul.bf16.gmra.mxu1 %v882_v51 }
  0x83   :  { %1063 = vmatmul.msk.bf16.gmra.mxu0 %vm513_vm0, %v894_v53 }
  0x91   :  { %654 = vmatmul.bf16.gmra.mxu2 %v906_v0 }
  0x92   :  { %697 = vmatmul.bf16.gmra.mxu3 %v910_v60  ;;  %611 = vmatmul.bf16.gmra.mxu1 %v902_v63 }
  0x93   :  { %1064 = vmatmul.msk.bf16.gmra.mxu0 %vm513_vm0, %v914_v1 }
  0x9e   :  { %v1484_v12 = vpop.f32.mrf.mxu1 }
  0x9f   :  { %v544_v14 = vpop.f32.mrf.mxu0 }
  0xa0   :  { %v545_v34 = vadd.f32 %v1490_v15, %v544_v14 }
  0xa1   :  { %659 = vmatmul.bf16.gmra.mxu2 %v266_v11 }
  0xa2   :  { %702 = vmatmul.bf16.gmra.mxu3 %v267_v9  ;;  %616 = vmatmul.bf16.gmra.mxu1 %v265_v10 }
  0xa3   :  { %1065 = vmatmul.msk.bf16.gmra.mxu0 %vm513_vm0, %v268_v13  ;;  %v555_v13 = vadd.f32 %v1490_v15, %v1484_v12 }
  0xa4   :  { %v564_v7 = vpop.f32.mrf.mxu2 }
  0xa5   :  { %v1493_v16 = vadd.f32 %v1490_v15, %v564_v7 }
  0xa6   :  { %v1495_v17 = vpop.f32.mrf.mxu1 }
  0xa7   :  { %v574_v18 = vpop.f32.mrf.mxu3  ;;  %v546_v19 = vpop.f32.mrf.mxu0 }
  0xa8   :  { %v1498_v20 = vadd.f32 %v1490_v15, %v574_v18  ;;  %v547_v42 = vadd.f32 %v1490_v15, %v546_v19 }
  0xac   :  { %v566_v21 = vpop.f32.mrf.mxu2 }
  0xad   :  { %v1501_v22 = vadd.f32 %v1490_v15, %v566_v21 }
  0xae   :  { %v1503_v23 = vpop.f32.mrf.mxu1 }
  0xaf   :  { %v576_v24 = vpop.f32.mrf.mxu3  ;;  %v549_v25 = vpop.f32.mrf.mxu0 }
  0xb0   :  { %v550_v53 = vadd.f32 %v1490_v15, %v549_v25 }
  0xb4   :  { %v569_v26 = vpop.f32.mrf.mxu2 }
  0xb5   :  { %v1506_v27 = vadd.f32 %v1490_v15, %v569_v26 }
  0xb6   :  { %v1508_v28 = vpop.f32.mrf.mxu1 }
  0xb7   :  { %v551_v29 = vpop.f32.mrf.mxu0 }
  0xb8   :  { %v552_v0 = vadd.f32 %v1490_v15, %v551_v29 }
  0xbc   :  { %v571_v30 = vpop.f32.mrf.mxu2 }
  0xbd   :  { %v1511_v31 = vadd.f32 %v1490_v15, %v571_v30 }
  0xbf   :  { %v587_v32 = vpop.f32.mrf.mxu1 }
  0xc0   :  { %v716_v33 = vpop.f32.mrf.mxu0  ;;  %v588_v36 = vadd.f32 %v587_v32, %v545_v34  ;;  %v557_v32 = vadd.f32 %v1490_v15, %v1495_v17 }
  0xc4   :  { %v630_v37 = vpop.f32.mrf.mxu2 }
  0xc5   :  { %v673_v35 = vpop.f32.mrf.mxu3  ;;  %v631_v38 = vadd.f32 %v630_v37, %v588_v36 }
  0xc7   :  { %v589_v39 = vpop.f32.mrf.mxu1  ;;  %v674_v40 = vadd.f32 %v673_v35, %v631_v38 }
  0xc8   :  { %v718_v41 = vpop.f32.mrf.mxu0  ;;  %v590_v46 = vadd.f32 %v589_v39, %v547_v42  ;;  %v560_v42 = vadd.f32 %v1490_v15, %v1503_v23 }
  0xc9   :  { %v717_v43 = vadd.f32 %v716_v33, %v674_v40 }
  0xcb   :  { %v750_v45 = vmax.f32 %v717_v43, 0.0 }
  0xcc   :  { %v632_v47 = vpop.f32.mrf.mxu2 }
  0xcd   :  { %v675_v44 = vpop.f32.mrf.mxu3  ;;  %v763_v48 = vpack.c.bf16 %v750_v45, %v750_v45  ;;  %v633_v49 = vadd.f32 %v632_v47, %v590_v46 }
  0xcf   :  { %v592_v50 = vpop.f32.mrf.mxu1  ;;  %777 = vst.msk [vmem:[%s1584_s3] sm:$0xf] %vm776_vm1, %v763_v48  ;;  %v676_v51 = vadd.f32 %v675_v44, %v633_v49 }
  0xd0   :  { %v721_v52 = vpop.f32.mrf.mxu0  ;;  %v593_v57 = vadd.f32 %v592_v50, %v550_v53 }
  0xd1   :  { %v719_v54 = vadd.f32 %v718_v41, %v676_v51 }
  0xd3   :  { %v751_v56 = vmax.f32 %v719_v54, 0.0 }
  0xd4   :  { %v635_v58 = vpop.f32.mrf.mxu2 }
  0xd5   :  { %v678_v55 = vpop.f32.mrf.mxu3  ;;  %v764_v59 = vpack.c.bf16 %v751_v56, %v751_v56  ;;  %v636_v60 = vadd.f32 %v635_v58, %v593_v57 }
  0xd7   :  { %v594_v61 = vpop.f32.mrf.mxu1  ;;  %778 = vst.msk [vmem:[%s1584_s3 + $0x4] sm:$0xf] %vm776_vm1, %v764_v59  ;;  %v679_v62 = vadd.f32 %v678_v55, %v636_v60 }
  0xd8   :  { %v723_v63 = vpop.f32.mrf.mxu0  ;;  %v595_v4 = vadd.f32 %v594_v61, %v552_v0 }
  0xd9   :  { %v722_v1 = vadd.f32 %v721_v52, %v679_v62  ;;  %v562_v52 = vadd.f32 %v1490_v15, %v1508_v28 }
  0xdb   :  { %v752_v3 = vmax.f32 %v722_v1, 0.0 }
  0xdc   :  { %v637_v5 = vpop.f32.mrf.mxu2 }
  0xdd   :  { %v680_v2 = vpop.f32.mrf.mxu3  ;;  %v765_v6 = vpack.c.bf16 %v752_v3, %v752_v3  ;;  %v638_v8 = vadd.f32 %v637_v5, %v595_v4 }
  0xdf   :  { %v597_v9 = vpop.f32.mrf.mxu1  ;;  %779 = vst.msk [vmem:[%s1584_s3 + $0x8] sm:$0xf] %vm776_vm1, %v765_v6  ;;  %v681_v10 = vadd.f32 %v680_v2, %v638_v8 }
  0xe0   :  { %v726_v11 = vpop.f32.mrf.mxu0  ;;  %v598_v19 = vadd.f32 %v597_v9, %v555_v13 }
  0xe1   :  { %v724_v14 = vadd.f32 %v723_v63, %v681_v10 }
  0xe3   :  { %v753_v18 = vmax.f32 %v724_v14, 0.0 }
  0xe4   :  { %v640_v21 = vpop.f32.mrf.mxu2 }
  0xe5   :  { %v683_v7 = vpop.f32.mrf.mxu3  ;;  %v766_v24 = vpack.c.bf16 %v753_v18, %v753_v18  ;;  %v641_v25 = vadd.f32 %v640_v21, %v598_v19 }
  0xe7   :  { %v599_v26 = vpop.f32.mrf.mxu1  ;;  %780 = vst.msk [vmem:[%s1584_s3 + $0xc] sm:$0xf] %vm776_vm1, %v766_v24  ;;  %v684_v29 = vadd.f32 %v683_v7, %v641_v25 }
  0xe8   :  { %v728_v30 = vpop.f32.mrf.mxu0  ;;  %v600_v35 = vadd.f32 %v599_v26, %v557_v32 }
  0xe9   :  { %v727_v33 = vadd.f32 %v726_v11, %v684_v29 }
  0xeb   :  { %v754_v34 = vmax.f32 %v727_v33, 0.0 }
  0xec   :  { %v642_v36 = vpop.f32.mrf.mxu2 }
  0xed   :  { %v685_v12 = vpop.f32.mrf.mxu3  ;;  %v767_v37 = vpack.c.bf16 %v754_v34, %v754_v34  ;;  %v643_v38 = vadd.f32 %v642_v36, %v600_v35 }
  0xef   :  { %v602_v39 = vpop.f32.mrf.mxu1  ;;  %781 = vst.msk [vmem:[%s1584_s3 + $0x10] sm:$0xf] %vm776_vm1, %v767_v37  ;;  %v686_v40 = vadd.f32 %v685_v12, %v643_v38 }
  0xf0   :  { %v731_v41 = vpop.f32.mrf.mxu0  ;;  %v603_v45 = vadd.f32 %v602_v39, %v560_v42 }
  0xf1   :  { %v729_v43 = vadd.f32 %v728_v30, %v686_v40 }
  0xf3   :  { %v755_v44 = vmax.f32 %v729_v43, 0.0 }
  0xf4   :  { %v645_v46 = vpop.f32.mrf.mxu2 }
  0xf5   :  { %v688_v17 = vpop.f32.mrf.mxu3  ;;  %v768_v47 = vpack.c.bf16 %v755_v44, %v755_v44  ;;  %v646_v48 = vadd.f32 %v645_v46, %v603_v45 }
  0xf7   :  { %v604_v49 = vpop.f32.mrf.mxu1  ;;  %782 = vst.msk [vmem:[%s1584_s3 + $0x14] sm:$0xf] %vm776_vm1, %v768_v47  ;;  %v689_v50 = vadd.f32 %v688_v17, %v646_v48 }
  0xf8   :  { %v733_v51 = vpop.f32.mrf.mxu0  ;;  %v605_v55 = vadd.f32 %v604_v49, %v562_v52 }
  0xf9   :  { %v732_v53 = vadd.f32 %v731_v41, %v689_v50 }
  0xfb   :  { %v756_v54 = vmax.f32 %v732_v53, 0.0 }
  0xfc   :  { %v647_v56 = vpop.f32.mrf.mxu2 }
  0xfd   :  { %v690_v23 = vpop.f32.mrf.mxu3  ;;  %v769_v57 = vpack.c.bf16 %v756_v54, %v756_v54  ;;  %v648_v58 = vadd.f32 %v647_v56, %v605_v55 }
  0xff   :  { %v607_v59 = vpop.f32.mrf.mxu1  ;;  %783 = vst.msk [vmem:[%s1584_s3 + $0x18] sm:$0xf] %vm776_vm1, %v769_v57  ;;  %v691_v60 = vadd.f32 %v690_v23, %v648_v58 }
 0x100   :  { %v736_v61 = vpop.f32.mrf.mxu0  ;;  %v608_v15 = vadd.f32 %v607_v59, %v1493_v16 }
 0x101   :  { %v734_v62 = vadd.f32 %v733_v51, %v691_v60 }
 0x103   :  { %v757_v0 = vmax.f32 %v734_v62, 0.0 }
 0x104   :  { %v650_v28 = vpop.f32.mrf.mxu2 }
 0x105   :  { %v693_v63 = vpop.f32.mrf.mxu3  ;;  %v770_v1 = vpack.c.bf16 %v757_v0, %v757_v0  ;;  %v651_v2 = vadd.f32 %v650_v28, %v608_v15 }
 0x107   :  { %v609_v3 = vpop.f32.mrf.mxu1  ;;  %784 = vst.msk [vmem:[%s1584_s3 + $0x1c] sm:$0xf] %vm776_vm1, %v770_v1  ;;  %v694_v4 = vadd.f32 %v693_v63, %v651_v2 }
 0x108   :  { %v738_v5 = vpop.f32.mrf.mxu0  ;;  %v610_v10 = vadd.f32 %v609_v3, %v1501_v22 }
 0x109   :  { %v737_v6 = vadd.f32 %v736_v61, %v694_v4 }
 0x10b   :  { %v758_v9 = vmax.f32 %v737_v6, 0.0 }
 0x10c   :  { %v652_v11 = vpop.f32.mrf.mxu2 }
 0x10d   :  { %v695_v8 = vpop.f32.mrf.mxu3  ;;  %v771_v13 = vpack.c.bf16 %v758_v9, %v758_v9  ;;  %v653_v14 = vadd.f32 %v652_v11, %v610_v10 }
 0x10f   :  { %v612_v16 = vpop.f32.mrf.mxu1  ;;  %785 = vst.msk [vmem:[%s1584_s3 + $0x20] sm:$0xf] %vm776_vm1, %v771_v13  ;;  %v696_v7 = vadd.f32 %v695_v8, %v653_v14 }
 0x110   :  { %v741_v18 = vpop.f32.mrf.mxu0  ;;  %v613_v25 = vadd.f32 %v612_v16, %v1506_v27 }
 0x111   :  { %v739_v19 = vadd.f32 %v738_v5, %v696_v7 }
 0x113   :  { %v759_v24 = vmax.f32 %v739_v19, 0.0 }
 0x114   :  { %v655_v26 = vpop.f32.mrf.mxu2 }
 0x115   :  { %v698_v21 = vpop.f32.mrf.mxu3  ;;  %v772_v29 = vpack.c.bf16 %v759_v24, %v759_v24  ;;  %v656_v30 = vadd.f32 %v655_v26, %v613_v25 }
 0x117   :  { %v614_v22 = vpop.f32.mrf.mxu1  ;;  %786 = vst.msk [vmem:[%s1584_s3 + $0x24] sm:$0xf] %vm776_vm1, %v772_v29  ;;  %v699_v32 = vadd.f32 %v698_v21, %v656_v30 }
 0x118   :  { %v743_v33 = vpop.f32.mrf.mxu0  ;;  %v615_v36 = vadd.f32 %v614_v22, %v1511_v31 }
 0x119   :  { %v742_v12 = vadd.f32 %v741_v18, %v699_v32 }
 0x11b   :  { %v760_v35 = vmax.f32 %v742_v12, 0.0 }
 0x11c   :  { %v657_v37 = vpop.f32.mrf.mxu2 }
 0x11d   :  { %v700_v34 = vpop.f32.mrf.mxu3  ;;  %v773_v38 = vpack.c.bf16 %v760_v35, %v760_v35  ;;  %v658_v39 = vadd.f32 %v657_v37, %v615_v36 }
 0x11f   :  { %v617_v27 = vpop.f32.mrf.mxu1  ;;  %787 = vst.msk [vmem:[%s1584_s3 + $0x28] sm:$0xf] %vm776_vm1, %v773_v38  ;;  %v701_v40 = vadd.f32 %v700_v34, %v658_v39 }
 0x120   :  { %v746_v41 = vpop.f32.mrf.mxu0  ;;  %v618_v44 = vadd.f32 %v617_v27, %v1498_v20 }
 0x121   :  { %v744_v42 = vadd.f32 %v743_v33, %v701_v40 }
 0x123   :  { %v761_v17 = vmax.f32 %v744_v42, 0.0 }
 0x124   :  { %v660_v45 = vpop.f32.mrf.mxu2 }
 0x125   :  { %v703_v43 = vpop.f32.mrf.mxu3  ;;  %v774_v46 = vpack.c.bf16 %v761_v17, %v761_v17  ;;  %v661_v47 = vadd.f32 %v660_v45, %v618_v44 }
 0x127   :  { %v619_v31 = vpop.f32.mrf.mxu1  ;;  %788 = vst.msk [vmem:[%s1584_s3 + $0x2c] sm:$0xf] %vm776_vm1, %v774_v46  ;;  %v704_v48 = vadd.f32 %v703_v43, %v661_v47 }
 0x128   :  { %v748_v49 = vpop.f32.mrf.mxu0 }
 0x129   :  { %v747_v50 = vadd.f32 %v746_v41, %v704_v48 }
 0x12b   :  { %v762_v52 = vmax.f32 %v747_v50, 0.0 }
 0x12c   :  { %v662_v53 = vpop.f32.mrf.mxu2 }
 0x12d   :  { %v705_v51 = vpop.f32.mrf.mxu3  ;;  %v775_v23 = vpack.c.bf16 %v762_v52, %v762_v52 }
 0x12f   :  { %790 = vst.msk [vmem:[%s1584_s3 + $0x30] sm:$0x1] %vm789_vm2, %v775_v23 }

// kernel: dueling_cnn_forward.7
= control target key start
LH: loop header
LB: loop body
LE: loop exit
PB: predicated region body
PF: predicated region fallthrough
CT: control target
= control target key end

     0   :  { %10 = vsyncpa [#allocation5], 0  ;;  %s13312_s18 = smov 0   ;;  %s13314_s19 = smov 0   ;;  %s16414_s0 = inlined_call_operand.vmem [shape: bf16[2,3136], index: 0, kind: input, shape index: {}]   ;;  %s16415_s1 = inlined_call_operand.vmem [shape: bf16[3136,1024], index: 1, kind: input, shape index: {}]   ;;  %s16416_s2 = inlined_call_operand.vmem [shape: f32[1,1024], index: 2, kind: input, shape index: {}]   ;;  %s16417_s3 = inlined_call_operand.vmem [shape: f32[1024,7], index: 3, kind: input, shape index: {}]   ;;  %s16418_s4 = inlined_call_operand.vmem [shape: f32[1,7], index: 4, kind: input, shape index: {}]   ;;  %s16419_s5 = inlined_call_operand.hbm [shape: f32[2,6], index: 5, kind: output, shape index: {}]  }
   0x1   :  { %s13316_s20 = smov 0  }
   0x2 LB: > { %s13328_s21 = sadd.s32 4294967295, %s13261_s20   ;;  %s13331_s22 = sadd.s32 1, %s13261_s20   ;;  %s13261_s20 = sphi %s13316_s20, %s16428_s20   ;;  %s13257_s19 = sphi %s13314_s19, %s16427_s19   ;;  %s13253_s18 = sphi %s13312_s18, %s16426_s18  }
   0x3   : > { %s41_s23 = ssub.s32 %s13261_s20, %s13331_s22  ;;  %s44_s24 = sadd.s32 1, %s13257_s19 }
   0x4   : > { %p42_p0 = scmp.eq.s32.totalorder %s41_s23, 0  ;;  %p51_p1 = scmp.ne.s32.totalorder %s13257_s19, %s13253_s18 }
   0x5   : > { %p52_p2 = scmp.eq.s32.totalorder %s13261_s20, 0  ;;  %p9176_p4 = scmp.ge.s32.totalorder %s13261_s20, 2 }
   0x6   : > { %s13340_s25 = scalar_select %p42_p0, %s13257_s19, %s44_s24  }
   0x7   : > { %p53_p3 = por %p52_p2, %p51_p1  ;;  %175 = sbr.rel (%p9176_p4) target bundleno = 410 (0x19a), region = 28 }
   0xc   : > { %178 = sbr.rel (!%p53_p3) target bundleno = 410 (0x19a), region = 32  ;;  %s180_s26 = sand.u32 (%p53_p3), 1, %s13257_s19  }
   0xd   : > { %s12329_s27 = sshll.u32 (%p53_p3), %s13261_s20, 4  ;;  %s13345_s28 = smul.u32 (%p53_p3), 6272, %s180_s26 }
   0xe   : > { %s13350_s6 = scalar_lea.vmem (%p53_p3), %s16415_s1, %s12329_s27   ;;  %s13360_s10 = smov (%p53_p3), 0  }
   0xf   : > { %s182_s7 = scalar_lea.vmem (%p53_p3), [#allocation3], %s13345_s28   ;;  %s16421_s9 = smov (%p53_p3), %s13350_s6 }
  0x10   : > { %s16420_s8 = smov (%p53_p3), %s182_s7  ;;  %s13362_s11 = smov (%p53_p3), 0  }
  0x11 LB: >> { %v199_v0 = vld [vmem:[%s13269_s9] sm:$0xff]  ;;  %s983_s12 = sadd.s32 1, %s13273_s10  ;;  %s195_s11 = sadd.s32 1, %s13277_s11   ;;  %s13277_s11 = sphi %s13362_s11, %s195_s11   ;;  %s13273_s10 = sphi %s13360_s10, %s16424_s10   ;;  %s13269_s9 = sphi %s16421_s9, %s16423_s9   ;;  %s13265_s8 = sphi %s16420_s8, %s16422_s8  }
  0x12   : >> { %v201_v1 = vld [vmem:[%s13269_s9 + $0x20] sm:$0xff]  ;;  %200 = vst [vmem:[%s13265_s8] sm:$0xff] %v199_v0  ;;  %p984_p5 = scmp.ge.s32.totalorder %s983_s12, 2  ;;  %p192_p6 = scmp.ge.s32.totalorder %s195_s11, 2  }
  0x13   : >> { %v203_v2 = vld [vmem:[%s13269_s9 + $0x40] sm:$0xff]  ;;  %202 = vst [vmem:[%s13265_s8 + $0x10] sm:$0xff] %v201_v1 }
  0x14   : >> { %v205_v3 = vld [vmem:[%s13269_s9 + $0x60] sm:$0xff]  ;;  %204 = vst [vmem:[%s13265_s8 + $0x20] sm:$0xff] %v203_v2  ;;  %s16430_s12 = smov (%p984_p5, %s983_s12), 0 }
  0x15   : >> { %v207_v4 = vld [vmem:[%s13269_s9 + $0x80] sm:$0xff]  ;;  %206 = vst [vmem:[%s13265_s8 + $0x30] sm:$0xff] %v205_v3  ;;  %s9179_s13 = sshll.u32 %s16430_s12, 3  ;;  %s16424_s10 = smov %s16430_s12 }
  0x16   : >> { %v209_v5 = vld [vmem:[%s13269_s9 + $0xa0] sm:$0xff]  ;;  %208 = vst [vmem:[%s13265_s8 + $0x40] sm:$0xff] %v207_v4  ;;  %s13912_s14 = scalar_lea.vmem %s13350_s6, %s9179_s13   ;;  %s13916_s15 = scalar_lea.vmem %s182_s7, %s9179_s13 [#allocation3]  }
  0x17   : >> { %v211_v6 = vld [vmem:[%s13269_s9 + $0xc0] sm:$0xff]  ;;  %210 = vst [vmem:[%s13265_s8 + $0x50] sm:$0xff] %v209_v5 }
  0x18   : >> { %v213_v7 = vld [vmem:[%s13269_s9 + $0xe0] sm:$0xff]  ;;  %212 = vst [vmem:[%s13265_s8 + $0x60] sm:$0xff] %v211_v6 }
  0x19   : >> { %v215_v8 = vld [vmem:[%s13269_s9 + $0x100] sm:$0xff]  ;;  %214 = vst [vmem:[%s13265_s8 + $0x70] sm:$0xff] %v213_v7 }
  0x1a   : >> { %v217_v9 = vld [vmem:[%s13269_s9 + $0x120] sm:$0xff]  ;;  %216 = vst [vmem:[%s13265_s8 + $0x80] sm:$0xff] %v215_v8 }
  0x1b   : >> { %v219_v10 = vld [vmem:[%s13269_s9 + $0x140] sm:$0xff]  ;;  %218 = vst [vmem:[%s13265_s8 + $0x90] sm:$0xff] %v217_v9 }
  0x1c   : >> { %v221_v11 = vld [vmem:[%s13269_s9 + $0x160] sm:$0xff]  ;;  %220 = vst [vmem:[%s13265_s8 + $0xa0] sm:$0xff] %v219_v10 }
  0x1d   : >> { %v223_v12 = vld [vmem:[%s13269_s9 + $0x180] sm:$0xff]  ;;  %222 = vst [vmem:[%s13265_s8 + $0xb0] sm:$0xff] %v221_v11 }
  0x1e   : >> { %v225_v13 = vld [vmem:[%s13269_s9 + $0x1a0] sm:$0xff]  ;;  %224 = vst [vmem:[%s13265_s8 + $0xc0] sm:$0xff] %v223_v12 }
  0x1f   : >> { %v227_v14 = vld [vmem:[%s13269_s9 + $0x1c0] sm:$0xff]  ;;  %226 = vst [vmem:[%s13265_s8 + $0xd0] sm:$0xff] %v225_v13 }
  0x20   : >> { %v229_v15 = vld [vmem:[%s13269_s9 + $0x1e0] sm:$0xff]  ;;  %228 = vst [vmem:[%s13265_s8 + $0xe0] sm:$0xff] %v227_v14 }
  0x21   : >> { %v231_v16 = vld [vmem:[%s13269_s9 + $0x200] sm:$0xff]  ;;  %230 = vst [vmem:[%s13265_s8 + $0xf0] sm:$0xff] %v229_v15 }
  0x22   : >> { %v233_v17 = vld [vmem:[%s13269_s9 + $0x220] sm:$0xff]  ;;  %232 = vst [vmem:[%s13265_s8 + $0x100] sm:$0xff] %v231_v16 }
  0x23   : >> { %v235_v18 = vld [vmem:[%s13269_s9 + $0x240] sm:$0xff]  ;;  %234 = vst [vmem:[%s13265_s8 + $0x110] sm:$0xff] %v233_v17 }
  0x24   : >> { %v237_v19 = vld [vmem:[%s13269_s9 + $0x260] sm:$0xff]  ;;  %236 = vst [vmem:[%s13265_s8 + $0x120] sm:$0xff] %v235_v18 }
  0x25   : >> { %v239_v20 = vld [vmem:[%s13269_s9 + $0x280] sm:$0xff]  ;;  %238 = vst [vmem:[%s13265_s8 + $0x130] sm:$0xff] %v237_v19 }
  0x26   : >> { %v241_v21 = vld [vmem:[%s13269_s9 + $0x2a0] sm:$0xff]  ;;  %240 = vst [vmem:[%s13265_s8 + $0x140] sm:$0xff] %v239_v20 }
  0x27   : >> { %v243_v22 = vld [vmem:[%s13269_s9 + $0x2c0] sm:$0xff]  ;;  %242 = vst [vmem:[%s13265_s8 + $0x150] sm:$0xff] %v241_v21 }
  0x28   : >> { %v245_v23 = vld [vmem:[%s13269_s9 + $0x2e0] sm:$0xff]  ;;  %244 = vst [vmem:[%s13265_s8 + $0x160] sm:$0xff] %v243_v22 }
  0x29   : >> { %v247_v24 = vld [vmem:[%s13269_s9 + $0x300] sm:$0xff]  ;;  %246 = vst [vmem:[%s13265_s8 + $0x170] sm:$0xff] %v245_v23 }
  0x2a   : >> { %v249_v25 = vld [vmem:[%s13269_s9 + $0x320] sm:$0xff]  ;;  %248 = vst [vmem:[%s13265_s8 + $0x180] sm:$0xff] %v247_v24 }
  0x2b   : >> { %v251_v26 = vld [vmem:[%s13269_s9 + $0x340] sm:$0xff]  ;;  %250 = vst [vmem:[%s13265_s8 + $0x190] sm:$0xff] %v249_v25 }
  0x2c   : >> { %v253_v27 = vld [vmem:[%s13269_s9 + $0x360] sm:$0xff]  ;;  %252 = vst [vmem:[%s13265_s8 + $0x1a0] sm:$0xff] %v251_v26 }
  0x2d   : >> { %v255_v28 = vld [vmem:[%s13269_s9 + $0x380] sm:$0xff]  ;;  %254 = vst [vmem:[%s13265_s8 + $0x1b0] sm:$0xff] %v253_v27 }
  0x2e   : >> { %v257_v29 = vld [vmem:[%s13269_s9 + $0x3a0] sm:$0xff]  ;;  %256 = vst [vmem:[%s13265_s8 + $0x1c0] sm:$0xff] %v255_v28 }
  0x2f   : >> { %v259_v30 = vld [vmem:[%s13269_s9 + $0x3c0] sm:$0xff]  ;;  %258 = vst [vmem:[%s13265_s8 + $0x1d0] sm:$0xff] %v257_v29 }
  0x30   : >> { %v261_v31 = vld [vmem:[%s13269_s9 + $0x3e0] sm:$0xff]  ;;  %260 = vst [vmem:[%s13265_s8 + $0x1e0] sm:$0xff] %v259_v30 }
  0x31   : >> { %v263_v32 = vld [vmem:[%s13269_s9 + $0x400] sm:$0xff]  ;;  %262 = vst [vmem:[%s13265_s8 + $0x1f0] sm:$0xff] %v261_v31 }
  0x32   : >> { %v265_v33 = vld [vmem:[%s13269_s9 + $0x420] sm:$0xff]  ;;  %264 = vst [vmem:[%s13265_s8 + $0x200] sm:$0xff] %v263_v32 }
  0x33   : >> { %v267_v34 = vld [vmem:[%s13269_s9 + $0x440] sm:$0xff]  ;;  %266 = vst [vmem:[%s13265_s8 + $0x210] sm:$0xff] %v265_v33 }
  0x34   : >> { %v269_v35 = vld [vmem:[%s13269_s9 + $0x460] sm:$0xff]  ;;  %268 = vst [vmem:[%s13265_s8 + $0x220] sm:$0xff] %v267_v34 }
  0x35   : >> { %v271_v36 = vld [vmem:[%s13269_s9 + $0x480] sm:$0xff]  ;;  %270 = vst [vmem:[%s13265_s8 + $0x230] sm:$0xff] %v269_v35 }
  0x36   : >> { %v273_v37 = vld [vmem:[%s13269_s9 + $0x4a0] sm:$0xff]  ;;  %272 = vst [vmem:[%s13265_s8 + $0x240] sm:$0xff] %v271_v36 }
  0x37   : >> { %v275_v38 = vld [vmem:[%s13269_s9 + $0x4c0] sm:$0xff]  ;;  %274 = vst [vmem:[%s13265_s8 + $0x250] sm:$0xff] %v273_v37 }
  0x38   : >> { %v277_v39 = vld [vmem:[%s13269_s9 + $0x4e0] sm:$0xff]  ;;  %276 = vst [vmem:[%s13265_s8 + $0x260] sm:$0xff] %v275_v38 }
  0x39   : >> { %v279_v40 = vld [vmem:[%s13269_s9 + $0x500] sm:$0xff]  ;;  %278 = vst [vmem:[%s13265_s8 + $0x270] sm:$0xff] %v277_v39 }
  0x3a   : >> { %v281_v41 = vld [vmem:[%s13269_s9 + $0x520] sm:$0xff]  ;;  %280 = vst [vmem:[%s13265_s8 + $0x280] sm:$0xff] %v279_v40 }
  0x3b   : >> { %v283_v42 = vld [vmem:[%s13269_s9 + $0x540] sm:$0xff]  ;;  %282 = vst [vmem:[%s13265_s8 + $0x290] sm:$0xff] %v281_v41 }
  0x3c   : >> { %v285_v43 = vld [vmem:[%s13269_s9 + $0x560] sm:$0xff]  ;;  %284 = vst [vmem:[%s13265_s8 + $0x2a0] sm:$0xff] %v283_v42 }
  0x3d   : >> { %v287_v44 = vld [vmem:[%s13269_s9 + $0x580] sm:$0xff]  ;;  %286 = vst [vmem:[%s13265_s8 + $0x2b0] sm:$0xff] %v285_v43 }
  0x3e   : >> { %v289_v45 = vld [vmem:[%s13269_s9 + $0x5a0] sm:$0xff]  ;;  %288 = vst [vmem:[%s13265_s8 + $0x2c0] sm:$0xff] %v287_v44 }
  0x3f   : >> { %v291_v46 = vld [vmem:[%s13269_s9 + $0x5c0] sm:$0xff]  ;;  %290 = vst [vmem:[%s13265_s8 + $0x2d0] sm:$0xff] %v289_v45 }
  0x40   : >> { %v293_v47 = vld [vmem:[%s13269_s9 + $0x5e0] sm:$0xff]  ;;  %292 = vst [vmem:[%s13265_s8 + $0x2e0] sm:$0xff] %v291_v46 }
  0x41   : >> { %v295_v48 = vld [vmem:[%s13269_s9 + $0x600] sm:$0xff]  ;;  %294 = vst [vmem:[%s13265_s8 + $0x2f0] sm:$0xff] %v293_v47 }
  0x42   : >> { %v297_v49 = vld [vmem:[%s13269_s9 + $0x620] sm:$0xff]  ;;  %296 = vst [vmem:[%s13265_s8 + $0x300] sm:$0xff] %v295_v48 }
  0x43   : >> { %v299_v50 = vld [vmem:[%s13269_s9 + $0x640] sm:$0xff]  ;;  %298 = vst [vmem:[%s13265_s8 + $0x310] sm:$0xff] %v297_v49 }
  0x44   : >> { %v301_v51 = vld [vmem:[%s13269_s9 + $0x660] sm:$0xff]  ;;  %300 = vst [vmem:[%s13265_s8 + $0x320] sm:$0xff] %v299_v50 }
  0x45   : >> { %v303_v52 = vld [vmem:[%s13269_s9 + $0x680] sm:$0xff]  ;;  %302 = vst [vmem:[%s13265_s8 + $0x330] sm:$0xff] %v301_v51 }
  0x46   : >> { %v305_v53 = vld [vmem:[%s13269_s9 + $0x6a0] sm:$0xff]  ;;  %304 = vst [vmem:[%s13265_s8 + $0x340] sm:$0xff] %v303_v52 }
  0x47   : >> { %v307_v54 = vld [vmem:[%s13269_s9 + $0x6c0] sm:$0xff]  ;;  %306 = vst [vmem:[%s13265_s8 + $0x350] sm:$0xff] %v305_v53 }
  0x48   : >> { %v309_v55 = vld [vmem:[%s13269_s9 + $0x6e0] sm:$0xff]  ;;  %308 = vst [vmem:[%s13265_s8 + $0x360] sm:$0xff] %v307_v54 }
  0x49   : >> { %v311_v56 = vld [vmem:[%s13269_s9 + $0x700] sm:$0xff]  ;;  %310 = vst [vmem:[%s13265_s8 + $0x370] sm:$0xff] %v309_v55 }
  0x4a   : >> { %v313_v57 = vld [vmem:[%s13269_s9 + $0x720] sm:$0xff]  ;;  %312 = vst [vmem:[%s13265_s8 + $0x380] sm:$0xff] %v311_v56 }
  0x4b   : >> { %v315_v58 = vld [vmem:[%s13269_s9 + $0x740] sm:$0xff]  ;;  %314 = vst [vmem:[%s13265_s8 + $0x390] sm:$0xff] %v313_v57 }
  0x4c   : >> { %v317_v59 = vld [vmem:[%s13269_s9 + $0x760] sm:$0xff]  ;;  %316 = vst [vmem:[%s13265_s8 + $0x3a0] sm:$0xff] %v315_v58 }
  0x4d   : >> { %v319_v60 = vld [vmem:[%s13269_s9 + $0x780] sm:$0xff]  ;;  %318 = vst [vmem:[%s13265_s8 + $0x3b0] sm:$0xff] %v317_v59 }
  0x4e   : >> { %v321_v61 = vld [vmem:[%s13269_s9 + $0x7a0] sm:$0xff]  ;;  %320 = vst [vmem:[%s13265_s8 + $0x3c0] sm:$0xff] %v319_v60 }
  0x4f   : >> { %v323_v62 = vld [vmem:[%s13269_s9 + $0x7c0] sm:$0xff]  ;;  %322 = vst [vmem:[%s13265_s8 + $0x3d0] sm:$0xff] %v321_v61 }
  0x50   : >> { %v325_v63 = vld [vmem:[%s13269_s9 + $0x7e0] sm:$0xff]  ;;  %324 = vst [vmem:[%s13265_s8 + $0x3e0] sm:$0xff] %v323_v62 }
  0x51   : >> { %v327_v0 = vld [vmem:[%s13269_s9 + $0x800] sm:$0xff]  ;;  %326 = vst [vmem:[%s13265_s8 + $0x3f0] sm:$0xff] %v325_v63 }
  0x52   : >> { %v329_v1 = vld [vmem:[%s13269_s9 + $0x820] sm:$0xff]  ;;  %328 = vst [vmem:[%s13265_s8 + $0x400] sm:$0xff] %v327_v0 }
  0x53   : >> { %v331_v2 = vld [vmem:[%s13269_s9 + $0x840] sm:$0xff]  ;;  %330 = vst [vmem:[%s13265_s8 + $0x410] sm:$0xff] %v329_v1 }
  0x54   : >> { %v333_v3 = vld [vmem:[%s13269_s9 + $0x860] sm:$0xff]  ;;  %332 = vst [vmem:[%s13265_s8 + $0x420] sm:$0xff] %v331_v2 }
  0x55   : >> { %v335_v4 = vld [vmem:[%s13269_s9 + $0x880] sm:$0xff]  ;;  %334 = vst [vmem:[%s13265_s8 + $0x430] sm:$0xff] %v333_v3 }
  0x56   : >> { %v337_v5 = vld [vmem:[%s13269_s9 + $0x8a0] sm:$0xff]  ;;  %336 = vst [vmem:[%s13265_s8 + $0x440] sm:$0xff] %v335_v4 }
  0x57   : >> { %v339_v6 = vld [vmem:[%s13269_s9 + $0x8c0] sm:$0xff]  ;;  %338 = vst [vmem:[%s13265_s8 + $0x450] sm:$0xff] %v337_v5 }
  0x58   : >> { %v341_v7 = vld [vmem:[%s13269_s9 + $0x8e0] sm:$0xff]  ;;  %340 = vst [vmem:[%s13265_s8 + $0x460] sm:$0xff] %v339_v6 }
  0x59   : >> { %v343_v8 = vld [vmem:[%s13269_s9 + $0x900] sm:$0xff]  ;;  %342 = vst [vmem:[%s13265_s8 + $0x470] sm:$0xff] %v341_v7 }
  0x5a   : >> { %v345_v9 = vld [vmem:[%s13269_s9 + $0x920] sm:$0xff]  ;;  %344 = vst [vmem:[%s13265_s8 + $0x480] sm:$0xff] %v343_v8 }
  0x5b   : >> { %v347_v10 = vld [vmem:[%s13269_s9 + $0x940] sm:$0xff]  ;;  %346 = vst [vmem:[%s13265_s8 + $0x490] sm:$0xff] %v345_v9 }
  0x5c   : >> { %v349_v11 = vld [vmem:[%s13269_s9 + $0x960] sm:$0xff]  ;;  %348 = vst [vmem:[%s13265_s8 + $0x4a0] sm:$0xff] %v347_v10 }
  0x5d   : >> { %v351_v12 = vld [vmem:[%s13269_s9 + $0x980] sm:$0xff]  ;;  %350 = vst [vmem:[%s13265_s8 + $0x4b0] sm:$0xff] %v349_v11 }
  0x5e   : >> { %v353_v13 = vld [vmem:[%s13269_s9 + $0x9a0] sm:$0xff]  ;;  %352 = vst [vmem:[%s13265_s8 + $0x4c0] sm:$0xff] %v351_v12 }
  0x5f   : >> { %v355_v14 = vld [vmem:[%s13269_s9 + $0x9c0] sm:$0xff]  ;;  %354 = vst [vmem:[%s13265_s8 + $0x4d0] sm:$0xff] %v353_v13 }
  0x60   : >> { %v357_v15 = vld [vmem:[%s13269_s9 + $0x9e0] sm:$0xff]  ;;  %356 = vst [vmem:[%s13265_s8 + $0x4e0] sm:$0xff] %v355_v14 }
  0x61   : >> { %v359_v16 = vld [vmem:[%s13269_s9 + $0xa00] sm:$0xff]  ;;  %358 = vst [vmem:[%s13265_s8 + $0x4f0] sm:$0xff] %v357_v15 }
  0x62   : >> { %v361_v17 = vld [vmem:[%s13269_s9 + $0xa20] sm:$0xff]  ;;  %360 = vst [vmem:[%s13265_s8 + $0x500] sm:$0xff] %v359_v16 }
  0x63   : >> { %v363_v18 = vld [vmem:[%s13269_s9 + $0xa40] sm:$0xff]  ;;  %362 = vst [vmem:[%s13265_s8 + $0x510] sm:$0xff] %v361_v17 }
  0x64   : >> { %v365_v19 = vld [vmem:[%s13269_s9 + $0xa60] sm:$0xff]  ;;  %364 = vst [vmem:[%s13265_s8 + $0x520] sm:$0xff] %v363_v18 }
  0x65   : >> { %v367_v20 = vld [vmem:[%s13269_s9 + $0xa80] sm:$0xff]  ;;  %366 = vst [vmem:[%s13265_s8 + $0x530] sm:$0xff] %v365_v19 }
  0x66   : >> { %v369_v21 = vld [vmem:[%s13269_s9 + $0xaa0] sm:$0xff]  ;;  %368 = vst [vmem:[%s13265_s8 + $0x540] sm:$0xff] %v367_v20 }
  0x67   : >> { %v371_v22 = vld [vmem:[%s13269_s9 + $0xac0] sm:$0xff]  ;;  %370 = vst [vmem:[%s13265_s8 + $0x550] sm:$0xff] %v369_v21 }
  0x68   : >> { %v373_v23 = vld [vmem:[%s13269_s9 + $0xae0] sm:$0xff]  ;;  %372 = vst [vmem:[%s13265_s8 + $0x560] sm:$0xff] %v371_v22 }
  0x69   : >> { %v375_v24 = vld [vmem:[%s13269_s9 + $0xb00] sm:$0xff]  ;;  %374 = vst [vmem:[%s13265_s8 + $0x570] sm:$0xff] %v373_v23 }
  0x6a   : >> { %v377_v25 = vld [vmem:[%s13269_s9 + $0xb20] sm:$0xff]  ;;  %376 = vst [vmem:[%s13265_s8 + $0x580] sm:$0xff] %v375_v24 }
  0x6b   : >> { %v379_v26 = vld [vmem:[%s13269_s9 + $0xb40] sm:$0xff]  ;;  %378 = vst [vmem:[%s13265_s8 + $0x590] sm:$0xff] %v377_v25 }
  0x6c   : >> { %v381_v27 = vld [vmem:[%s13269_s9 + $0xb60] sm:$0xff]  ;;  %380 = vst [vmem:[%s13265_s8 + $0x5a0] sm:$0xff] %v379_v26 }
  0x6d   : >> { %v383_v28 = vld [vmem:[%s13269_s9 + $0xb80] sm:$0xff]  ;;  %382 = vst [vmem:[%s13265_s8 + $0x5b0] sm:$0xff] %v381_v27 }
  0x6e   : >> { %v385_v29 = vld [vmem:[%s13269_s9 + $0xba0] sm:$0xff]  ;;  %384 = vst [vmem:[%s13265_s8 + $0x5c0] sm:$0xff] %v383_v28 }
  0x6f   : >> { %v387_v30 = vld [vmem:[%s13269_s9 + $0xbc0] sm:$0xff]  ;;  %386 = vst [vmem:[%s13265_s8 + $0x5d0] sm:$0xff] %v385_v29 }
  0x70   : >> { %v389_v31 = vld [vmem:[%s13269_s9 + $0xbe0] sm:$0xff]  ;;  %388 = vst [vmem:[%s13265_s8 + $0x5e0] sm:$0xff] %v387_v30 }
  0x71   : >> { %v391_v32 = vld [vmem:[%s13269_s9 + $0xc00] sm:$0xff]  ;;  %390 = vst [vmem:[%s13265_s8 + $0x5f0] sm:$0xff] %v389_v31 }
  0x72   : >> { %v393_v33 = vld [vmem:[%s13269_s9 + $0xc20] sm:$0xff]  ;;  %392 = vst [vmem:[%s13265_s8 + $0x600] sm:$0xff] %v391_v32 }
  0x73   : >> { %v395_v34 = vld [vmem:[%s13269_s9 + $0xc40] sm:$0xff]  ;;  %394 = vst [vmem:[%s13265_s8 + $0x610] sm:$0xff] %v393_v33 }
  0x74   : >> { %v397_v35 = vld [vmem:[%s13269_s9 + $0xc60] sm:$0xff]  ;;  %396 = vst [vmem:[%s13265_s8 + $0x620] sm:$0xff] %v395_v34 }
  0x75   : >> { %v399_v36 = vld [vmem:[%s13269_s9 + $0xc80] sm:$0xff]  ;;  %398 = vst [vmem:[%s13265_s8 + $0x630] sm:$0xff] %v397_v35 }
  0x76   : >> { %v401_v37 = vld [vmem:[%s13269_s9 + $0xca0] sm:$0xff]  ;;  %400 = vst [vmem:[%s13265_s8 + $0x640] sm:$0xff] %v399_v36 }
  0x77   : >> { %v403_v38 = vld [vmem:[%s13269_s9 + $0xcc0] sm:$0xff]  ;;  %402 = vst [vmem:[%s13265_s8 + $0x650] sm:$0xff] %v401_v37 }
  0x78   : >> { %v405_v39 = vld [vmem:[%s13269_s9 + $0xce0] sm:$0xff]  ;;  %404 = vst [vmem:[%s13265_s8 + $0x660] sm:$0xff] %v403_v38 }
  0x79   : >> { %v407_v40 = vld [vmem:[%s13269_s9 + $0xd00] sm:$0xff]  ;;  %406 = vst [vmem:[%s13265_s8 + $0x670] sm:$0xff] %v405_v39 }
  0x7a   : >> { %v409_v41 = vld [vmem:[%s13269_s9 + $0xd20] sm:$0xff]  ;;  %408 = vst [vmem:[%s13265_s8 + $0x680] sm:$0xff] %v407_v40 }
  0x7b   : >> { %v411_v42 = vld [vmem:[%s13269_s9 + $0xd40] sm:$0xff]  ;;  %410 = vst [vmem:[%s13265_s8 + $0x690] sm:$0xff] %v409_v41 }
  0x7c   : >> { %v413_v43 = vld [vmem:[%s13269_s9 + $0xd60] sm:$0xff]  ;;  %412 = vst [vmem:[%s13265_s8 + $0x6a0] sm:$0xff] %v411_v42 }
  0x7d   : >> { %v415_v44 = vld [vmem:[%s13269_s9 + $0xd80] sm:$0xff]  ;;  %414 = vst [vmem:[%s13265_s8 + $0x6b0] sm:$0xff] %v413_v43 }
  0x7e   : >> { %v417_v45 = vld [vmem:[%s13269_s9 + $0xda0] sm:$0xff]  ;;  %416 = vst [vmem:[%s13265_s8 + $0x6c0] sm:$0xff] %v415_v44 }
  0x7f   : >> { %v419_v46 = vld [vmem:[%s13269_s9 + $0xdc0] sm:$0xff]  ;;  %418 = vst [vmem:[%s13265_s8 + $0x6d0] sm:$0xff] %v417_v45 }
  0x80   : >> { %v421_v47 = vld [vmem:[%s13269_s9 + $0xde0] sm:$0xff]  ;;  %420 = vst [vmem:[%s13265_s8 + $0x6e0] sm:$0xff] %v419_v46 }
  0x81   : >> { %v423_v48 = vld [vmem:[%s13269_s9 + $0xe00] sm:$0xff]  ;;  %422 = vst [vmem:[%s13265_s8 + $0x6f0] sm:$0xff] %v421_v47 }
  0x82   : >> { %v425_v49 = vld [vmem:[%s13269_s9 + $0xe20] sm:$0xff]  ;;  %424 = vst [vmem:[%s13265_s8 + $0x700] sm:$0xff] %v423_v48 }
  0x83   : >> { %v427_v50 = vld [vmem:[%s13269_s9 + $0xe40] sm:$0xff]  ;;  %426 = vst [vmem:[%s13265_s8 + $0x710] sm:$0xff] %v425_v49 }
  0x84   : >> { %v429_v51 = vld [vmem:[%s13269_s9 + $0xe60] sm:$0xff]  ;;  %428 = vst [vmem:[%s13265_s8 + $0x720] sm:$0xff] %v427_v50 }
  0x85   : >> { %v431_v52 = vld [vmem:[%s13269_s9 + $0xe80] sm:$0xff]  ;;  %430 = vst [vmem:[%s13265_s8 + $0x730] sm:$0xff] %v429_v51 }
  0x86   : >> { %v433_v53 = vld [vmem:[%s13269_s9 + $0xea0] sm:$0xff]  ;;  %432 = vst [vmem:[%s13265_s8 + $0x740] sm:$0xff] %v431_v52 }
  0x87   : >> { %v435_v54 = vld [vmem:[%s13269_s9 + $0xec0] sm:$0xff]  ;;  %434 = vst [vmem:[%s13265_s8 + $0x750] sm:$0xff] %v433_v53 }
  0x88   : >> { %v437_v55 = vld [vmem:[%s13269_s9 + $0xee0] sm:$0xff]  ;;  %436 = vst [vmem:[%s13265_s8 + $0x760] sm:$0xff] %v435_v54 }
  0x89   : >> { %v439_v56 = vld [vmem:[%s13269_s9 + $0xf00] sm:$0xff]  ;;  %438 = vst [vmem:[%s13265_s8 + $0x770] sm:$0xff] %v437_v55 }
  0x8a   : >> { %v441_v57 = vld [vmem:[%s13269_s9 + $0xf20] sm:$0xff]  ;;  %440 = vst [vmem:[%s13265_s8 + $0x780] sm:$0xff] %v439_v56 }
  0x8b   : >> { %v443_v58 = vld [vmem:[%s13269_s9 + $0xf40] sm:$0xff]  ;;  %442 = vst [vmem:[%s13265_s8 + $0x790] sm:$0xff] %v441_v57 }
  0x8c   : >> { %v445_v59 = vld [vmem:[%s13269_s9 + $0xf60] sm:$0xff]  ;;  %444 = vst [vmem:[%s13265_s8 + $0x7a0] sm:$0xff] %v443_v58 }
  0x8d   : >> { %v447_v60 = vld [vmem:[%s13269_s9 + $0xf80] sm:$0xff]  ;;  %446 = vst [vmem:[%s13265_s8 + $0x7b0] sm:$0xff] %v445_v59 }
  0x8e   : >> { %v449_v61 = vld [vmem:[%s13269_s9 + $0xfa0] sm:$0xff]  ;;  %448 = vst [vmem:[%s13265_s8 + $0x7c0] sm:$0xff] %v447_v60 }
  0x8f   : >> { %v451_v62 = vld [vmem:[%s13269_s9 + $0xfc0] sm:$0xff]  ;;  %450 = vst [vmem:[%s13265_s8 + $0x7d0] sm:$0xff] %v449_v61 }
  0x90   : >> { %v453_v63 = vld [vmem:[%s13269_s9 + $0xfe0] sm:$0xff]  ;;  %452 = vst [vmem:[%s13265_s8 + $0x7e0] sm:$0xff] %v451_v62 }
  0x91   : >> { %v455_v0 = vld [vmem:[%s13269_s9 + $0x1000] sm:$0xff]  ;;  %454 = vst [vmem:[%s13265_s8 + $0x7f0] sm:$0xff] %v453_v63 }
  0x92   : >> { %v457_v1 = vld [vmem:[%s13269_s9 + $0x1020] sm:$0xff]  ;;  %456 = vst [vmem:[%s13265_s8 + $0x800] sm:$0xff] %v455_v0 }
  0x93   : >> { %v459_v2 = vld [vmem:[%s13269_s9 + $0x1040] sm:$0xff]  ;;  %458 = vst [vmem:[%s13265_s8 + $0x810] sm:$0xff] %v457_v1 }
  0x94   : >> { %v461_v3 = vld [vmem:[%s13269_s9 + $0x1060] sm:$0xff]  ;;  %460 = vst [vmem:[%s13265_s8 + $0x820] sm:$0xff] %v459_v2 }
  0x95   : >> { %v463_v4 = vld [vmem:[%s13269_s9 + $0x1080] sm:$0xff]  ;;  %462 = vst [vmem:[%s13265_s8 + $0x830] sm:$0xff] %v461_v3 }
  0x96   : >> { %v465_v5 = vld [vmem:[%s13269_s9 + $0x10a0] sm:$0xff]  ;;  %464 = vst [vmem:[%s13265_s8 + $0x840] sm:$0xff] %v463_v4 }
  0x97   : >> { %v467_v6 = vld [vmem:[%s13269_s9 + $0x10c0] sm:$0xff]  ;;  %466 = vst [vmem:[%s13265_s8 + $0x850] sm:$0xff] %v465_v5 }
  0x98   : >> { %v469_v7 = vld [vmem:[%s13269_s9 + $0x10e0] sm:$0xff]  ;;  %468 = vst [vmem:[%s13265_s8 + $0x860] sm:$0xff] %v467_v6 }
  0x99   : >> { %v471_v8 = vld [vmem:[%s13269_s9 + $0x1100] sm:$0xff]  ;;  %470 = vst [vmem:[%s13265_s8 + $0x870] sm:$0xff] %v469_v7 }
  0x9a   : >> { %v473_v9 = vld [vmem:[%s13269_s9 + $0x1120] sm:$0xff]  ;;  %472 = vst [vmem:[%s13265_s8 + $0x880] sm:$0xff] %v471_v8 }
  0x9b   : >> { %v475_v10 = vld [vmem:[%s13269_s9 + $0x1140] sm:$0xff]  ;;  %474 = vst [vmem:[%s13265_s8 + $0x890] sm:$0xff] %v473_v9 }
  0x9c   : >> { %v477_v11 = vld [vmem:[%s13269_s9 + $0x1160] sm:$0xff]  ;;  %476 = vst [vmem:[%s13265_s8 + $0x8a0] sm:$0xff] %v475_v10 }
  0x9d   : >> { %v479_v12 = vld [vmem:[%s13269_s9 + $0x1180] sm:$0xff]  ;;  %478 = vst [vmem:[%s13265_s8 + $0x8b0] sm:$0xff] %v477_v11 }
  0x9e   : >> { %v481_v13 = vld [vmem:[%s13269_s9 + $0x11a0] sm:$0xff]  ;;  %480 = vst [vmem:[%s13265_s8 + $0x8c0] sm:$0xff] %v479_v12 }
  0x9f   : >> { %v483_v14 = vld [vmem:[%s13269_s9 + $0x11c0] sm:$0xff]  ;;  %482 = vst [vmem:[%s13265_s8 + $0x8d0] sm:$0xff] %v481_v13 }
  0xa0   : >> { %v485_v15 = vld [vmem:[%s13269_s9 + $0x11e0] sm:$0xff]  ;;  %484 = vst [vmem:[%s13265_s8 + $0x8e0] sm:$0xff] %v483_v14 }
  0xa1   : >> { %v487_v16 = vld [vmem:[%s13269_s9 + $0x1200] sm:$0xff]  ;;  %486 = vst [vmem:[%s13265_s8 + $0x8f0] sm:$0xff] %v485_v15 }
  0xa2   : >> { %v489_v17 = vld [vmem:[%s13269_s9 + $0x1220] sm:$0xff]  ;;  %488 = vst [vmem:[%s13265_s8 + $0x900] sm:$0xff] %v487_v16 }
  0xa3   : >> { %v491_v18 = vld [vmem:[%s13269_s9 + $0x1240] sm:$0xff]  ;;  %490 = vst [vmem:[%s13265_s8 + $0x910] sm:$0xff] %v489_v17 }
  0xa4   : >> { %v493_v19 = vld [vmem:[%s13269_s9 + $0x1260] sm:$0xff]  ;;  %492 = vst [vmem:[%s13265_s8 + $0x920] sm:$0xff] %v491_v18 }
  0xa5   : >> { %v495_v20 = vld [vmem:[%s13269_s9 + $0x1280] sm:$0xff]  ;;  %494 = vst [vmem:[%s13265_s8 + $0x930] sm:$0xff] %v493_v19 }
  0xa6   : >> { %v497_v21 = vld [vmem:[%s13269_s9 + $0x12a0] sm:$0xff]  ;;  %496 = vst [vmem:[%s13265_s8 + $0x940] sm:$0xff] %v495_v20 }
  0xa7   : >> { %v499_v22 = vld [vmem:[%s13269_s9 + $0x12c0] sm:$0xff]  ;;  %498 = vst [vmem:[%s13265_s8 + $0x950] sm:$0xff] %v497_v21 }
  0xa8   : >> { %v501_v23 = vld [vmem:[%s13269_s9 + $0x12e0] sm:$0xff]  ;;  %500 = vst [vmem:[%s13265_s8 + $0x960] sm:$0xff] %v499_v22 }
  0xa9   : >> { %v503_v24 = vld [vmem:[%s13269_s9 + $0x1300] sm:$0xff]  ;;  %502 = vst [vmem:[%s13265_s8 + $0x970] sm:$0xff] %v501_v23 }
  0xaa   : >> { %v505_v25 = vld [vmem:[%s13269_s9 + $0x1320] sm:$0xff]  ;;  %504 = vst [vmem:[%s13265_s8 + $0x980] sm:$0xff] %v503_v24 }
  0xab   : >> { %v507_v26 = vld [vmem:[%s13269_s9 + $0x1340] sm:$0xff]  ;;  %506 = vst [vmem:[%s13265_s8 + $0x990] sm:$0xff] %v505_v25 }
  0xac   : >> { %v509_v27 = vld [vmem:[%s13269_s9 + $0x1360] sm:$0xff]  ;;  %508 = vst [vmem:[%s13265_s8 + $0x9a0] sm:$0xff] %v507_v26 }
  0xad   : >> { %v511_v28 = vld [vmem:[%s13269_s9 + $0x1380] sm:$0xff]  ;;  %510 = vst [vmem:[%s13265_s8 + $0x9b0] sm:$0xff] %v509_v27 }
  0xae   : >> { %v513_v29 = vld [vmem:[%s13269_s9 + $0x13a0] sm:$0xff]  ;;  %512 = vst [vmem:[%s13265_s8 + $0x9c0] sm:$0xff] %v511_v28 }
  0xaf   : >> { %v515_v30 = vld [vmem:[%s13269_s9 + $0x13c0] sm:$0xff]  ;;  %514 = vst [vmem:[%s13265_s8 + $0x9d0] sm:$0xff] %v513_v29 }
  0xb0   : >> { %v517_v31 = vld [vmem:[%s13269_s9 + $0x13e0] sm:$0xff]  ;;  %516 = vst [vmem:[%s13265_s8 + $0x9e0] sm:$0xff] %v515_v30 }
  0xb1   : >> { %v519_v32 = vld [vmem:[%s13269_s9 + $0x1400] sm:$0xff]  ;;  %518 = vst [vmem:[%s13265_s8 + $0x9f0] sm:$0xff] %v517_v31 }
  0xb2   : >> { %v521_v33 = vld [vmem:[%s13269_s9 + $0x1420] sm:$0xff]  ;;  %520 = vst [vmem:[%s13265_s8 + $0xa00] sm:$0xff] %v519_v32 }
  0xb3   : >> { %v523_v34 = vld [vmem:[%s13269_s9 + $0x1440] sm:$0xff]  ;;  %522 = vst [vmem:[%s13265_s8 + $0xa10] sm:$0xff] %v521_v33 }
  0xb4   : >> { %v525_v35 = vld [vmem:[%s13269_s9 + $0x1460] sm:$0xff]  ;;  %524 = vst [vmem:[%s13265_s8 + $0xa20] sm:$0xff] %v523_v34 }
  0xb5   : >> { %v527_v36 = vld [vmem:[%s13269_s9 + $0x1480] sm:$0xff]  ;;  %526 = vst [vmem:[%s13265_s8 + $0xa30] sm:$0xff] %v525_v35 }
  0xb6   : >> { %v529_v37 = vld [vmem:[%s13269_s9 + $0x14a0] sm:$0xff]  ;;  %528 = vst [vmem:[%s13265_s8 + $0xa40] sm:$0xff] %v527_v36 }
  0xb7   : >> { %v531_v38 = vld [vmem:[%s13269_s9 + $0x14c0] sm:$0xff]  ;;  %530 = vst [vmem:[%s13265_s8 + $0xa50] sm:$0xff] %v529_v37 }
  0xb8   : >> { %v533_v39 = vld [vmem:[%s13269_s9 + $0x14e0] sm:$0xff]  ;;  %532 = vst [vmem:[%s13265_s8 + $0xa60] sm:$0xff] %v531_v38 }
  0xb9   : >> { %v535_v40 = vld [vmem:[%s13269_s9 + $0x1500] sm:$0xff]  ;;  %534 = vst [vmem:[%s13265_s8 + $0xa70] sm:$0xff] %v533_v39 }
  0xba   : >> { %v537_v41 = vld [vmem:[%s13269_s9 + $0x1520] sm:$0xff]  ;;  %536 = vst [vmem:[%s13265_s8 + $0xa80] sm:$0xff] %v535_v40 }
  0xbb   : >> { %v539_v42 = vld [vmem:[%s13269_s9 + $0x1540] sm:$0xff]  ;;  %538 = vst [vmem:[%s13265_s8 + $0xa90] sm:$0xff] %v537_v41 }
  0xbc   : >> { %v541_v43 = vld [vmem:[%s13269_s9 + $0x1560] sm:$0xff]  ;;  %540 = vst [vmem:[%s13265_s8 + $0xaa0] sm:$0xff] %v539_v42 }
  0xbd   : >> { %v543_v44 = vld [vmem:[%s13269_s9 + $0x1580] sm:$0xff]  ;;  %542 = vst [vmem:[%s13265_s8 + $0xab0] sm:$0xff] %v541_v43 }
  0xbe   : >> { %v545_v45 = vld [vmem:[%s13269_s9 + $0x15a0] sm:$0xff]  ;;  %544 = vst [vmem:[%s13265_s8 + $0xac0] sm:$0xff] %v543_v44 }
  0xbf   : >> { %v547_v46 = vld [vmem:[%s13269_s9 + $0x15c0] sm:$0xff]  ;;  %546 = vst [vmem:[%s13265_s8 + $0xad0] sm:$0xff] %v545_v45 }
  0xc0   : >> { %v549_v47 = vld [vmem:[%s13269_s9 + $0x15e0] sm:$0xff]  ;;  %548 = vst [vmem:[%s13265_s8 + $0xae0] sm:$0xff] %v547_v46 }
  0xc1   : >> { %v551_v48 = vld [vmem:[%s13269_s9 + $0x1600] sm:$0xff]  ;;  %550 = vst [vmem:[%s13265_s8 + $0xaf0] sm:$0xff] %v549_v47 }
  0xc2   : >> { %v553_v49 = vld [vmem:[%s13269_s9 + $0x1620] sm:$0xff]  ;;  %552 = vst [vmem:[%s13265_s8 + $0xb00] sm:$0xff] %v551_v48 }
  0xc3   : >> { %v555_v50 = vld [vmem:[%s13269_s9 + $0x1640] sm:$0xff]  ;;  %554 = vst [vmem:[%s13265_s8 + $0xb10] sm:$0xff] %v553_v49 }
  0xc4   : >> { %v557_v51 = vld [vmem:[%s13269_s9 + $0x1660] sm:$0xff]  ;;  %556 = vst [vmem:[%s13265_s8 + $0xb20] sm:$0xff] %v555_v50 }
  0xc5   : >> { %v559_v52 = vld [vmem:[%s13269_s9 + $0x1680] sm:$0xff]  ;;  %558 = vst [vmem:[%s13265_s8 + $0xb30] sm:$0xff] %v557_v51 }
  0xc6   : >> { %v561_v53 = vld [vmem:[%s13269_s9 + $0x16a0] sm:$0xff]  ;;  %560 = vst [vmem:[%s13265_s8 + $0xb40] sm:$0xff] %v559_v52 }
  0xc7   : >> { %v563_v54 = vld [vmem:[%s13269_s9 + $0x16c0] sm:$0xff]  ;;  %562 = vst [vmem:[%s13265_s8 + $0xb50] sm:$0xff] %v561_v53 }
  0xc8   : >> { %v565_v55 = vld [vmem:[%s13269_s9 + $0x16e0] sm:$0xff]  ;;  %564 = vst [vmem:[%s13265_s8 + $0xb60] sm:$0xff] %v563_v54 }
  0xc9   : >> { %v567_v56 = vld [vmem:[%s13269_s9 + $0x1700] sm:$0xff]  ;;  %566 = vst [vmem:[%s13265_s8 + $0xb70] sm:$0xff] %v565_v55 }
  0xca   : >> { %v569_v57 = vld [vmem:[%s13269_s9 + $0x1720] sm:$0xff]  ;;  %568 = vst [vmem:[%s13265_s8 + $0xb80] sm:$0xff] %v567_v56 }
  0xcb   : >> { %v571_v58 = vld [vmem:[%s13269_s9 + $0x1740] sm:$0xff]  ;;  %570 = vst [vmem:[%s13265_s8 + $0xb90] sm:$0xff] %v569_v57 }
  0xcc   : >> { %v573_v59 = vld [vmem:[%s13269_s9 + $0x1760] sm:$0xff]  ;;  %572 = vst [vmem:[%s13265_s8 + $0xba0] sm:$0xff] %v571_v58 }
  0xcd   : >> { %v575_v60 = vld [vmem:[%s13269_s9 + $0x1780] sm:$0xff]  ;;  %574 = vst [vmem:[%s13265_s8 + $0xbb0] sm:$0xff] %v573_v59 }
  0xce   : >> { %v577_v61 = vld [vmem:[%s13269_s9 + $0x17a0] sm:$0xff]  ;;  %576 = vst [vmem:[%s13265_s8 + $0xbc0] sm:$0xff] %v575_v60 }
  0xcf   : >> { %v579_v62 = vld [vmem:[%s13269_s9 + $0x17c0] sm:$0xff]  ;;  %578 = vst [vmem:[%s13265_s8 + $0xbd0] sm:$0xff] %v577_v61 }
  0xd0   : >> { %v581_v63 = vld [vmem:[%s13269_s9 + $0x17e0] sm:$0xff]  ;;  %580 = vst [vmem:[%s13265_s8 + $0xbe0] sm:$0xff] %v579_v62 }
  0xd1   : >> { %v583_v0 = vld [vmem:[%s13269_s9 + $0x1800] sm:$0xff]  ;;  %582 = vst [vmem:[%s13265_s8 + $0xbf0] sm:$0xff] %v581_v63 }
  0xd2   : >> { %v585_v1 = vld [vmem:[%s13269_s9 + $0x1820] sm:$0xff]  ;;  %584 = vst [vmem:[%s13265_s8 + $0xc00] sm:$0xff] %v583_v0 }
  0xd3   : >> { %v587_v2 = vld [vmem:[%s13269_s9 + $0x1840] sm:$0xff]  ;;  %586 = vst [vmem:[%s13265_s8 + $0xc10] sm:$0xff] %v585_v1 }
  0xd4   : >> { %v589_v3 = vld [vmem:[%s13269_s9 + $0x1860] sm:$0xff]  ;;  %588 = vst [vmem:[%s13265_s8 + $0xc20] sm:$0xff] %v587_v2 }
  0xd5   : >> { %v591_v4 = vld [vmem:[%s13269_s9 + $0x1880] sm:$0xff]  ;;  %590 = vst [vmem:[%s13265_s8 + $0xc30] sm:$0xff] %v589_v3 }
  0xd6   : >> { %v593_v5 = vld [vmem:[%s13269_s9 + $0x18a0] sm:$0xff]  ;;  %592 = vst [vmem:[%s13265_s8 + $0xc40] sm:$0xff] %v591_v4 }
  0xd7   : >> { %v595_v6 = vld [vmem:[%s13269_s9 + $0x18c0] sm:$0xff]  ;;  %594 = vst [vmem:[%s13265_s8 + $0xc50] sm:$0xff] %v593_v5 }
  0xd8   : >> { %v597_v7 = vld [vmem:[%s13269_s9 + $0x18e0] sm:$0xff]  ;;  %596 = vst [vmem:[%s13265_s8 + $0xc60] sm:$0xff] %v595_v6 }
  0xd9   : >> { %v599_v8 = vld [vmem:[%s13269_s9 + $0x1900] sm:$0xff]  ;;  %598 = vst [vmem:[%s13265_s8 + $0xc70] sm:$0xff] %v597_v7 }
  0xda   : >> { %v601_v9 = vld [vmem:[%s13269_s9 + $0x1920] sm:$0xff]  ;;  %600 = vst [vmem:[%s13265_s8 + $0xc80] sm:$0xff] %v599_v8 }
  0xdb   : >> { %v603_v10 = vld [vmem:[%s13269_s9 + $0x1940] sm:$0xff]  ;;  %602 = vst [vmem:[%s13265_s8 + $0xc90] sm:$0xff] %v601_v9 }
  0xdc   : >> { %v605_v11 = vld [vmem:[%s13269_s9 + $0x1960] sm:$0xff]  ;;  %604 = vst [vmem:[%s13265_s8 + $0xca0] sm:$0xff] %v603_v10 }
  0xdd   : >> { %v607_v12 = vld [vmem:[%s13269_s9 + $0x1980] sm:$0xff]  ;;  %606 = vst [vmem:[%s13265_s8 + $0xcb0] sm:$0xff] %v605_v11 }
  0xde   : >> { %v609_v13 = vld [vmem:[%s13269_s9 + $0x19a0] sm:$0xff]  ;;  %608 = vst [vmem:[%s13265_s8 + $0xcc0] sm:$0xff] %v607_v12 }
  0xdf   : >> { %v611_v14 = vld [vmem:[%s13269_s9 + $0x19c0] sm:$0xff]  ;;  %610 = vst [vmem:[%s13265_s8 + $0xcd0] sm:$0xff] %v609_v13 }
  0xe0   : >> { %v613_v15 = vld [vmem:[%s13269_s9 + $0x19e0] sm:$0xff]  ;;  %612 = vst [vmem:[%s13265_s8 + $0xce0] sm:$0xff] %v611_v14 }
  0xe1   : >> { %v615_v16 = vld [vmem:[%s13269_s9 + $0x1a00] sm:$0xff]  ;;  %614 = vst [vmem:[%s13265_s8 + $0xcf0] sm:$0xff] %v613_v15 }
  0xe2   : >> { %v617_v17 = vld [vmem:[%s13269_s9 + $0x1a20] sm:$0xff]  ;;  %616 = vst [vmem:[%s13265_s8 + $0xd00] sm:$0xff] %v615_v16 }
  0xe3   : >> { %v619_v18 = vld [vmem:[%s13269_s9 + $0x1a40] sm:$0xff]  ;;  %618 = vst [vmem:[%s13265_s8 + $0xd10] sm:$0xff] %v617_v17 }
  0xe4   : >> { %v621_v19 = vld [vmem:[%s13269_s9 + $0x1a60] sm:$0xff]  ;;  %620 = vst [vmem:[%s13265_s8 + $0xd20] sm:$0xff] %v619_v18 }
  0xe5   : >> { %v623_v20 = vld [vmem:[%s13269_s9 + $0x1a80] sm:$0xff]  ;;  %622 = vst [vmem:[%s13265_s8 + $0xd30] sm:$0xff] %v621_v19 }
  0xe6   : >> { %v625_v21 = vld [vmem:[%s13269_s9 + $0x1aa0] sm:$0xff]  ;;  %624 = vst [vmem:[%s13265_s8 + $0xd40] sm:$0xff] %v623_v20 }
  0xe7   : >> { %v627_v22 = vld [vmem:[%s13269_s9 + $0x1ac0] sm:$0xff]  ;;  %626 = vst [vmem:[%s13265_s8 + $0xd50] sm:$0xff] %v625_v21 }
  0xe8   : >> { %v629_v23 = vld [vmem:[%s13269_s9 + $0x1ae0] sm:$0xff]  ;;  %628 = vst [vmem:[%s13265_s8 + $0xd60] sm:$0xff] %v627_v22 }
  0xe9   : >> { %v631_v24 = vld [vmem:[%s13269_s9 + $0x1b00] sm:$0xff]  ;;  %630 = vst [vmem:[%s13265_s8 + $0xd70] sm:$0xff] %v629_v23 }
  0xea   : >> { %v633_v25 = vld [vmem:[%s13269_s9 + $0x1b20] sm:$0xff]  ;;  %632 = vst [vmem:[%s13265_s8 + $0xd80] sm:$0xff] %v631_v24 }
  0xeb   : >> { %v635_v26 = vld [vmem:[%s13269_s9 + $0x1b40] sm:$0xff]  ;;  %634 = vst [vmem:[%s13265_s8 + $0xd90] sm:$0xff] %v633_v25 }
  0xec   : >> { %v637_v27 = vld [vmem:[%s13269_s9 + $0x1b60] sm:$0xff]  ;;  %636 = vst [vmem:[%s13265_s8 + $0xda0] sm:$0xff] %v635_v26 }
  0xed   : >> { %v639_v28 = vld [vmem:[%s13269_s9 + $0x1b80] sm:$0xff]  ;;  %638 = vst [vmem:[%s13265_s8 + $0xdb0] sm:$0xff] %v637_v27 }
  0xee   : >> { %v641_v29 = vld [vmem:[%s13269_s9 + $0x1ba0] sm:$0xff]  ;;  %640 = vst [vmem:[%s13265_s8 + $0xdc0] sm:$0xff] %v639_v28 }
  0xef   : >> { %v643_v30 = vld [vmem:[%s13269_s9 + $0x1bc0] sm:$0xff]  ;;  %642 = vst [vmem:[%s13265_s8 + $0xdd0] sm:$0xff] %v641_v29 }
  0xf0   : >> { %v645_v31 = vld [vmem:[%s13269_s9 + $0x1be0] sm:$0xff]  ;;  %644 = vst [vmem:[%s13265_s8 + $0xde0] sm:$0xff] %v643_v30 }
  0xf1   : >> { %v647_v32 = vld [vmem:[%s13269_s9 + $0x1c00] sm:$0xff]  ;;  %646 = vst [vmem:[%s13265_s8 + $0xdf0] sm:$0xff] %v645_v31 }
  0xf2   : >> { %v649_v33 = vld [vmem:[%s13269_s9 + $0x1c20] sm:$0xff]  ;;  %648 = vst [vmem:[%s13265_s8 + $0xe00] sm:$0xff] %v647_v32 }
  0xf3   : >> { %v651_v34 = vld [vmem:[%s13269_s9 + $0x1c40] sm:$0xff]  ;;  %650 = vst [vmem:[%s13265_s8 + $0xe10] sm:$0xff] %v649_v33 }
  0xf4   : >> { %v653_v35 = vld [vmem:[%s13269_s9 + $0x1c60] sm:$0xff]  ;;  %652 = vst [vmem:[%s13265_s8 + $0xe20] sm:$0xff] %v651_v34 }
  0xf5   : >> { %v655_v36 = vld [vmem:[%s13269_s9 + $0x1c80] sm:$0xff]  ;;  %654 = vst [vmem:[%s13265_s8 + $0xe30] sm:$0xff] %v653_v35 }
  0xf6   : >> { %v657_v37 = vld [vmem:[%s13269_s9 + $0x1ca0] sm:$0xff]  ;;  %656 = vst [vmem:[%s13265_s8 + $0xe40] sm:$0xff] %v655_v36 }
  0xf7   : >> { %v659_v38 = vld [vmem:[%s13269_s9 + $0x1cc0] sm:$0xff]  ;;  %658 = vst [vmem:[%s13265_s8 + $0xe50] sm:$0xff] %v657_v37 }
  0xf8   : >> { %v661_v39 = vld [vmem:[%s13269_s9 + $0x1ce0] sm:$0xff]  ;;  %660 = vst [vmem:[%s13265_s8 + $0xe60] sm:$0xff] %v659_v38 }
  0xf9   : >> { %v663_v40 = vld [vmem:[%s13269_s9 + $0x1d00] sm:$0xff]  ;;  %662 = vst [vmem:[%s13265_s8 + $0xe70] sm:$0xff] %v661_v39 }
  0xfa   : >> { %v665_v41 = vld [vmem:[%s13269_s9 + $0x1d20] sm:$0xff]  ;;  %664 = vst [vmem:[%s13265_s8 + $0xe80] sm:$0xff] %v663_v40 }
  0xfb   : >> { %v667_v42 = vld [vmem:[%s13269_s9 + $0x1d40] sm:$0xff]  ;;  %666 = vst [vmem:[%s13265_s8 + $0xe90] sm:$0xff] %v665_v41 }
  0xfc   : >> { %v669_v43 = vld [vmem:[%s13269_s9 + $0x1d60] sm:$0xff]  ;;  %668 = vst [vmem:[%s13265_s8 + $0xea0] sm:$0xff] %v667_v42 }
  0xfd   : >> { %v671_v44 = vld [vmem:[%s13269_s9 + $0x1d80] sm:$0xff]  ;;  %670 = vst [vmem:[%s13265_s8 + $0xeb0] sm:$0xff] %v669_v43 }
  0xfe   : >> { %v673_v45 = vld [vmem:[%s13269_s9 + $0x1da0] sm:$0xff]  ;;  %672 = vst [vmem:[%s13265_s8 + $0xec0] sm:$0xff] %v671_v44 }
  0xff   : >> { %v675_v46 = vld [vmem:[%s13269_s9 + $0x1dc0] sm:$0xff]  ;;  %674 = vst [vmem:[%s13265_s8 + $0xed0] sm:$0xff] %v673_v45 }
 0x100   : >> { %v677_v47 = vld [vmem:[%s13269_s9 + $0x1de0] sm:$0xff]  ;;  %676 = vst [vmem:[%s13265_s8 + $0xee0] sm:$0xff] %v675_v46 }
 0x101   : >> { %v679_v48 = vld [vmem:[%s13269_s9 + $0x1e00] sm:$0xff]  ;;  %678 = vst [vmem:[%s13265_s8 + $0xef0] sm:$0xff] %v677_v47 }
 0x102   : >> { %v681_v49 = vld [vmem:[%s13269_s9 + $0x1e20] sm:$0xff]  ;;  %680 = vst [vmem:[%s13265_s8 + $0xf00] sm:$0xff] %v679_v48 }
 0x103   : >> { %v683_v50 = vld [vmem:[%s13269_s9 + $0x1e40] sm:$0xff]  ;;  %682 = vst [vmem:[%s13265_s8 + $0xf10] sm:$0xff] %v681_v49 }
 0x104   : >> { %v685_v51 = vld [vmem:[%s13269_s9 + $0x1e60] sm:$0xff]  ;;  %684 = vst [vmem:[%s13265_s8 + $0xf20] sm:$0xff] %v683_v50 }
 0x105   : >> { %v687_v52 = vld [vmem:[%s13269_s9 + $0x1e80] sm:$0xff]  ;;  %686 = vst [vmem:[%s13265_s8 + $0xf30] sm:$0xff] %v685_v51 }
 0x106   : >> { %v689_v53 = vld [vmem:[%s13269_s9 + $0x1ea0] sm:$0xff]  ;;  %688 = vst [vmem:[%s13265_s8 + $0xf40] sm:$0xff] %v687_v52 }
 0x107   : >> { %v691_v54 = vld [vmem:[%s13269_s9 + $0x1ec0] sm:$0xff]  ;;  %690 = vst [vmem:[%s13265_s8 + $0xf50] sm:$0xff] %v689_v53 }
 0x108   : >> { %v693_v55 = vld [vmem:[%s13269_s9 + $0x1ee0] sm:$0xff]  ;;  %692 = vst [vmem:[%s13265_s8 + $0xf60] sm:$0xff] %v691_v54 }
 0x109   : >> { %v695_v56 = vld [vmem:[%s13269_s9 + $0x1f00] sm:$0xff]  ;;  %694 = vst [vmem:[%s13265_s8 + $0xf70] sm:$0xff] %v693_v55 }
 0x10a   : >> { %v697_v57 = vld [vmem:[%s13269_s9 + $0x1f20] sm:$0xff]  ;;  %696 = vst [vmem:[%s13265_s8 + $0xf80] sm:$0xff] %v695_v56 }
 0x10b   : >> { %v699_v58 = vld [vmem:[%s13269_s9 + $0x1f40] sm:$0xff]  ;;  %698 = vst [vmem:[%s13265_s8 + $0xf90] sm:$0xff] %v697_v57 }
 0x10c   : >> { %v701_v59 = vld [vmem:[%s13269_s9 + $0x1f60] sm:$0xff]  ;;  %700 = vst [vmem:[%s13265_s8 + $0xfa0] sm:$0xff] %v699_v58 }
 0x10d   : >> { %v703_v60 = vld [vmem:[%s13269_s9 + $0x1f80] sm:$0xff]  ;;  %702 = vst [vmem:[%s13265_s8 + $0xfb0] sm:$0xff] %v701_v59 }
 0x10e   : >> { %v705_v61 = vld [vmem:[%s13269_s9 + $0x1fa0] sm:$0xff]  ;;  %704 = vst [vmem:[%s13265_s8 + $0xfc0] sm:$0xff] %v703_v60 }
 0x10f   : >> { %v707_v62 = vld [vmem:[%s13269_s9 + $0x1fc0] sm:$0xff]  ;;  %706 = vst [vmem:[%s13265_s8 + $0xfd0] sm:$0xff] %v705_v61 }
 0x110   : >> { %v709_v63 = vld [vmem:[%s13269_s9 + $0x1fe0] sm:$0xff]  ;;  %708 = vst [vmem:[%s13265_s8 + $0xfe0] sm:$0xff] %v707_v62 }
 0x111   : >> { %v711_v0 = vld [vmem:[%s13269_s9 + $0x2000] sm:$0xff]  ;;  %710 = vst [vmem:[%s13265_s8 + $0xff0] sm:$0xff] %v709_v63 }
 0x112   : >> { %v713_v1 = vld [vmem:[%s13269_s9 + $0x2020] sm:$0xff]  ;;  %712 = vst [vmem:[%s13265_s8 + $0x1000] sm:$0xff] %v711_v0 }
 0x113   : >> { %v715_v2 = vld [vmem:[%s13269_s9 + $0x2040] sm:$0xff]  ;;  %714 = vst [vmem:[%s13265_s8 + $0x1010] sm:$0xff] %v713_v1 }
 0x114   : >> { %v717_v3 = vld [vmem:[%s13269_s9 + $0x2060] sm:$0xff]  ;;  %716 = vst [vmem:[%s13265_s8 + $0x1020] sm:$0xff] %v715_v2 }
 0x115   : >> { %v719_v4 = vld [vmem:[%s13269_s9 + $0x2080] sm:$0xff]  ;;  %718 = vst [vmem:[%s13265_s8 + $0x1030] sm:$0xff] %v717_v3 }
 0x116   : >> { %v721_v5 = vld [vmem:[%s13269_s9 + $0x20a0] sm:$0xff]  ;;  %720 = vst [vmem:[%s13265_s8 + $0x1040] sm:$0xff] %v719_v4 }
 0x117   : >> { %v723_v6 = vld [vmem:[%s13269_s9 + $0x20c0] sm:$0xff]  ;;  %722 = vst [vmem:[%s13265_s8 + $0x1050] sm:$0xff] %v721_v5 }
 0x118   : >> { %v725_v7 = vld [vmem:[%s13269_s9 + $0x20e0] sm:$0xff]  ;;  %724 = vst [vmem:[%s13265_s8 + $0x1060] sm:$0xff] %v723_v6 }
 0x119   : >> { %v727_v8 = vld [vmem:[%s13269_s9 + $0x2100] sm:$0xff]  ;;  %726 = vst [vmem:[%s13265_s8 + $0x1070] sm:$0xff] %v725_v7 }
 0x11a   : >> { %v729_v9 = vld [vmem:[%s13269_s9 + $0x2120] sm:$0xff]  ;;  %728 = vst [vmem:[%s13265_s8 + $0x1080] sm:$0xff] %v727_v8 }
 0x11b   : >> { %v731_v10 = vld [vmem:[%s13269_s9 + $0x2140] sm:$0xff]  ;;  %730 = vst [vmem:[%s13265_s8 + $0x1090] sm:$0xff] %v729_v9 }
 0x11c   : >> { %v733_v11 = vld [vmem:[%s13269_s9 + $0x2160] sm:$0xff]  ;;  %732 = vst [vmem:[%s13265_s8 + $0x10a0] sm:$0xff] %v731_v10 }
 0x11d   : >> { %v735_v12 = vld [vmem:[%s13269_s9 + $0x2180] sm:$0xff]  ;;  %734 = vst [vmem:[%s13265_s8 + $0x10b0] sm:$0xff] %v733_v11 }
 0x11e   : >> { %v737_v13 = vld [vmem:[%s13269_s9 + $0x21a0] sm:$0xff]  ;;  %736 = vst [vmem:[%s13265_s8 + $0x10c0] sm:$0xff] %v735_v12 }
 0x11f   : >> { %v739_v14 = vld [vmem:[%s13269_s9 + $0x21c0] sm:$0xff]  ;;  %738 = vst [vmem:[%s13265_s8 + $0x10d0] sm:$0xff] %v737_v13 }
 0x120   : >> { %v741_v15 = vld [vmem:[%s13269_s9 + $0x21e0] sm:$0xff]  ;;  %740 = vst [vmem:[%s13265_s8 + $0x10e0] sm:$0xff] %v739_v14 }
 0x121   : >> { %v743_v16 = vld [vmem:[%s13269_s9 + $0x2200] sm:$0xff]  ;;  %742 = vst [vmem:[%s13265_s8 + $0x10f0] sm:$0xff] %v741_v15 }
 0x122   : >> { %v745_v17 = vld [vmem:[%s13269_s9 + $0x2220] sm:$0xff]  ;;  %744 = vst [vmem:[%s13265_s8 + $0x1100] sm:$0xff] %v743_v16 }
 0x123   : >> { %v747_v18 = vld [vmem:[%s13269_s9 + $0x2240] sm:$0xff]  ;;  %746 = vst [vmem:[%s13265_s8 + $0x1110] sm:$0xff] %v745_v17 }
 0x124   : >> { %v749_v19 = vld [vmem:[%s13269_s9 + $0x2260] sm:$0xff]  ;;  %748 = vst [vmem:[%s13265_s8 + $0x1120] sm:$0xff] %v747_v18 }
 0x125   : >> { %v751_v20 = vld [vmem:[%s13269_s9 + $0x2280] sm:$0xff]  ;;  %750 = vst [vmem:[%s13265_s8 + $0x1130] sm:$0xff] %v749_v19 }
 0x126   : >> { %v753_v21 = vld [vmem:[%s13269_s9 + $0x22a0] sm:$0xff]  ;;  %752 = vst [vmem:[%s13265_s8 + $0x1140] sm:$0xff] %v751_v20 }
 0x127   : >> { %v755_v22 = vld [vmem:[%s13269_s9 + $0x22c0] sm:$0xff]  ;;  %754 = vst [vmem:[%s13265_s8 + $0x1150] sm:$0xff] %v753_v21 }
 0x128   : >> { %v757_v23 = vld [vmem:[%s13269_s9 + $0x22e0] sm:$0xff]  ;;  %756 = vst [vmem:[%s13265_s8 + $0x1160] sm:$0xff] %v755_v22 }
 0x129   : >> { %v759_v24 = vld [vmem:[%s13269_s9 + $0x2300] sm:$0xff]  ;;  %758 = vst [vmem:[%s13265_s8 + $0x1170] sm:$0xff] %v757_v23 }
 0x12a   : >> { %v761_v25 = vld [vmem:[%s13269_s9 + $0x2320] sm:$0xff]  ;;  %760 = vst [vmem:[%s13265_s8 + $0x1180] sm:$0xff] %v759_v24 }
 0x12b   : >> { %v763_v26 = vld [vmem:[%s13269_s9 + $0x2340] sm:$0xff]  ;;  %762 = vst [vmem:[%s13265_s8 + $0x1190] sm:$0xff] %v761_v25 }
 0x12c   : >> { %v765_v27 = vld [vmem:[%s13269_s9 + $0x2360] sm:$0xff]  ;;  %764 = vst [vmem:[%s13265_s8 + $0x11a0] sm:$0xff] %v763_v26 }
 0x12d   : >> { %v767_v28 = vld [vmem:[%s13269_s9 + $0x2380] sm:$0xff]  ;;  %766 = vst [vmem:[%s13265_s8 + $0x11b0] sm:$0xff] %v765_v27 }
 0x12e   : >> { %v769_v29 = vld [vmem:[%s13269_s9 + $0x23a0] sm:$0xff]  ;;  %768 = vst [vmem:[%s13265_s8 + $0x11c0] sm:$0xff] %v767_v28 }
 0x12f   : >> { %v771_v30 = vld [vmem:[%s13269_s9 + $0x23c0] sm:$0xff]  ;;  %770 = vst [vmem:[%s13265_s8 + $0x11d0] sm:$0xff] %v769_v29 }
 0x130   : >> { %v773_v31 = vld [vmem:[%s13269_s9 + $0x23e0] sm:$0xff]  ;;  %772 = vst [vmem:[%s13265_s8 + $0x11e0] sm:$0xff] %v771_v30 }
 0x131   : >> { %v775_v32 = vld [vmem:[%s13269_s9 + $0x2400] sm:$0xff]  ;;  %774 = vst [vmem:[%s13265_s8 + $0x11f0] sm:$0xff] %v773_v31 }
 0x132   : >> { %v777_v33 = vld [vmem:[%s13269_s9 + $0x2420] sm:$0xff]  ;;  %776 = vst [vmem:[%s13265_s8 + $0x1200] sm:$0xff] %v775_v32 }
 0x133   : >> { %v779_v34 = vld [vmem:[%s13269_s9 + $0x2440] sm:$0xff]  ;;  %778 = vst [vmem:[%s13265_s8 + $0x1210] sm:$0xff] %v777_v33 }
 0x134   : >> { %v781_v35 = vld [vmem:[%s13269_s9 + $0x2460] sm:$0xff]  ;;  %780 = vst [vmem:[%s13265_s8 + $0x1220] sm:$0xff] %v779_v34 }
 0x135   : >> { %v783_v36 = vld [vmem:[%s13269_s9 + $0x2480] sm:$0xff]  ;;  %782 = vst [vmem:[%s13265_s8 + $0x1230] sm:$0xff] %v781_v35 }
 0x136   : >> { %v785_v37 = vld [vmem:[%s13269_s9 + $0x24a0] sm:$0xff]  ;;  %784 = vst [vmem:[%s13265_s8 + $0x1240] sm:$0xff] %v783_v36 }
 0x137   : >> { %v787_v38 = vld [vmem:[%s13269_s9 + $0x24c0] sm:$0xff]  ;;  %786 = vst [vmem:[%s13265_s8 + $0x1250] sm:$0xff] %v785_v37 }
 0x138   : >> { %v789_v39 = vld [vmem:[%s13269_s9 + $0x24e0] sm:$0xff]  ;;  %788 = vst [vmem:[%s13265_s8 + $0x1260] sm:$0xff] %v787_v38 }
 0x139   : >> { %v791_v40 = vld [vmem:[%s13269_s9 + $0x2500] sm:$0xff]  ;;  %790 = vst [vmem:[%s13265_s8 + $0x1270] sm:$0xff] %v789_v39 }
 0x13a   : >> { %v793_v41 = vld [vmem:[%s13269_s9 + $0x2520] sm:$0xff]  ;;  %792 = vst [vmem:[%s13265_s8 + $0x1280] sm:$0xff] %v791_v40 }
 0x13b   : >> { %v795_v42 = vld [vmem:[%s13269_s9 + $0x2540] sm:$0xff]  ;;  %794 = vst [vmem:[%s13265_s8 + $0x1290] sm:$0xff] %v793_v41 }
 0x13c   : >> { %v797_v43 = vld [vmem:[%s13269_s9 + $0x2560] sm:$0xff]  ;;  %796 = vst [vmem:[%s13265_s8 + $0x12a0] sm:$0xff] %v795_v42 }
 0x13d   : >> { %v799_v44 = vld [vmem:[%s13269_s9 + $0x2580] sm:$0xff]  ;;  %798 = vst [vmem:[%s13265_s8 + $0x12b0] sm:$0xff] %v797_v43 }
 0x13e   : >> { %v801_v45 = vld [vmem:[%s13269_s9 + $0x25a0] sm:$0xff]  ;;  %800 = vst [vmem:[%s13265_s8 + $0x12c0] sm:$0xff] %v799_v44 }
 0x13f   : >> { %v803_v46 = vld [vmem:[%s13269_s9 + $0x25c0] sm:$0xff]  ;;  %802 = vst [vmem:[%s13265_s8 + $0x12d0] sm:$0xff] %v801_v45 }
 0x140   : >> { %v805_v47 = vld [vmem:[%s13269_s9 + $0x25e0] sm:$0xff]  ;;  %804 = vst [vmem:[%s13265_s8 + $0x12e0] sm:$0xff] %v803_v46 }
 0x141   : >> { %v807_v48 = vld [vmem:[%s13269_s9 + $0x2600] sm:$0xff]  ;;  %806 = vst [vmem:[%s13265_s8 + $0x12f0] sm:$0xff] %v805_v47 }
 0x142   : >> { %v809_v49 = vld [vmem:[%s13269_s9 + $0x2620] sm:$0xff]  ;;  %808 = vst [vmem:[%s13265_s8 + $0x1300] sm:$0xff] %v807_v48 }
 0x143   : >> { %v811_v50 = vld [vmem:[%s13269_s9 + $0x2640] sm:$0xff]  ;;  %810 = vst [vmem:[%s13265_s8 + $0x1310] sm:$0xff] %v809_v49 }
 0x144   : >> { %v813_v51 = vld [vmem:[%s13269_s9 + $0x2660] sm:$0xff]  ;;  %812 = vst [vmem:[%s13265_s8 + $0x1320] sm:$0xff] %v811_v50 }
 0x145   : >> { %v815_v52 = vld [vmem:[%s13269_s9 + $0x2680] sm:$0xff]  ;;  %814 = vst [vmem:[%s13265_s8 + $0x1330] sm:$0xff] %v813_v51 }
 0x146   : >> { %v817_v53 = vld [vmem:[%s13269_s9 + $0x26a0] sm:$0xff]  ;;  %816 = vst [vmem:[%s13265_s8 + $0x1340] sm:$0xff] %v815_v52 }
 0x147   : >> { %v819_v54 = vld [vmem:[%s13269_s9 + $0x26c0] sm:$0xff]  ;;  %818 = vst [vmem:[%s13265_s8 + $0x1350] sm:$0xff] %v817_v53 }
 0x148   : >> { %v821_v55 = vld [vmem:[%s13269_s9 + $0x26e0] sm:$0xff]  ;;  %820 = vst [vmem:[%s13265_s8 + $0x1360] sm:$0xff] %v819_v54 }
 0x149   : >> { %v823_v56 = vld [vmem:[%s13269_s9 + $0x2700] sm:$0xff]  ;;  %822 = vst [vmem:[%s13265_s8 + $0x1370] sm:$0xff] %v821_v55 }
 0x14a   : >> { %v825_v57 = vld [vmem:[%s13269_s9 + $0x2720] sm:$0xff]  ;;  %824 = vst [vmem:[%s13265_s8 + $0x1380] sm:$0xff] %v823_v56 }
 0x14b   : >> { %v827_v58 = vld [vmem:[%s13269_s9 + $0x2740] sm:$0xff]  ;;  %826 = vst [vmem:[%s13265_s8 + $0x1390] sm:$0xff] %v825_v57 }
 0x14c   : >> { %v829_v59 = vld [vmem:[%s13269_s9 + $0x2760] sm:$0xff]  ;;  %828 = vst [vmem:[%s13265_s8 + $0x13a0] sm:$0xff] %v827_v58 }
 0x14d   : >> { %v831_v60 = vld [vmem:[%s13269_s9 + $0x2780] sm:$0xff]  ;;  %830 = vst [vmem:[%s13265_s8 + $0x13b0] sm:$0xff] %v829_v59 }
 0x14e   : >> { %v833_v61 = vld [vmem:[%s13269_s9 + $0x27a0] sm:$0xff]  ;;  %832 = vst [vmem:[%s13265_s8 + $0x13c0] sm:$0xff] %v831_v60 }
 0x14f   : >> { %v835_v62 = vld [vmem:[%s13269_s9 + $0x27c0] sm:$0xff]  ;;  %834 = vst [vmem:[%s13265_s8 + $0x13d0] sm:$0xff] %v833_v61 }
 0x150   : >> { %v837_v63 = vld [vmem:[%s13269_s9 + $0x27e0] sm:$0xff]  ;;  %836 = vst [vmem:[%s13265_s8 + $0x13e0] sm:$0xff] %v835_v62 }
 0x151   : >> { %v839_v0 = vld [vmem:[%s13269_s9 + $0x2800] sm:$0xff]  ;;  %838 = vst [vmem:[%s13265_s8 + $0x13f0] sm:$0xff] %v837_v63 }
 0x152   : >> { %v841_v1 = vld [vmem:[%s13269_s9 + $0x2820] sm:$0xff]  ;;  %840 = vst [vmem:[%s13265_s8 + $0x1400] sm:$0xff] %v839_v0 }
 0x153   : >> { %v843_v2 = vld [vmem:[%s13269_s9 + $0x2840] sm:$0xff]  ;;  %842 = vst [vmem:[%s13265_s8 + $0x1410] sm:$0xff] %v841_v1 }
 0x154   : >> { %v845_v3 = vld [vmem:[%s13269_s9 + $0x2860] sm:$0xff]  ;;  %844 = vst [vmem:[%s13265_s8 + $0x1420] sm:$0xff] %v843_v2 }
 0x155   : >> { %v847_v4 = vld [vmem:[%s13269_s9 + $0x2880] sm:$0xff]  ;;  %846 = vst [vmem:[%s13265_s8 + $0x1430] sm:$0xff] %v845_v3 }
 0x156   : >> { %v849_v5 = vld [vmem:[%s13269_s9 + $0x28a0] sm:$0xff]  ;;  %848 = vst [vmem:[%s13265_s8 + $0x1440] sm:$0xff] %v847_v4 }
 0x157   : >> { %v851_v6 = vld [vmem:[%s13269_s9 + $0x28c0] sm:$0xff]  ;;  %850 = vst [vmem:[%s13265_s8 + $0x1450] sm:$0xff] %v849_v5 }
 0x158   : >> { %v853_v7 = vld [vmem:[%s13269_s9 + $0x28e0] sm:$0xff]  ;;  %852 = vst [vmem:[%s13265_s8 + $0x1460] sm:$0xff] %v851_v6 }
 0x159   : >> { %v855_v8 = vld [vmem:[%s13269_s9 + $0x2900] sm:$0xff]  ;;  %854 = vst [vmem:[%s13265_s8 + $0x1470] sm:$0xff] %v853_v7 }
 0x15a   : >> { %v857_v9 = vld [vmem:[%s13269_s9 + $0x2920] sm:$0xff]  ;;  %856 = vst [vmem:[%s13265_s8 + $0x1480] sm:$0xff] %v855_v8 }
 0x15b   : >> { %v859_v10 = vld [vmem:[%s13269_s9 + $0x2940] sm:$0xff]  ;;  %858 = vst [vmem:[%s13265_s8 + $0x1490] sm:$0xff] %v857_v9 }
 0x15c   : >> { %v861_v11 = vld [vmem:[%s13269_s9 + $0x2960] sm:$0xff]  ;;  %860 = vst [vmem:[%s13265_s8 + $0x14a0] sm:$0xff] %v859_v10 }
 0x15d   : >> { %v863_v12 = vld [vmem:[%s13269_s9 + $0x2980] sm:$0xff]  ;;  %862 = vst [vmem:[%s13265_s8 + $0x14b0] sm:$0xff] %v861_v11 }
 0x15e   : >> { %v865_v13 = vld [vmem:[%s13269_s9 + $0x29a0] sm:$0xff]  ;;  %864 = vst [vmem:[%s13265_s8 + $0x14c0] sm:$0xff] %v863_v12 }
 0x15f   : >> { %v867_v14 = vld [vmem:[%s13269_s9 + $0x29c0] sm:$0xff]  ;;  %866 = vst [vmem:[%s13265_s8 + $0x14d0] sm:$0xff] %v865_v13 }
 0x160   : >> { %v869_v15 = vld [vmem:[%s13269_s9 + $0x29e0] sm:$0xff]  ;;  %868 = vst [vmem:[%s13265_s8 + $0x14e0] sm:$0xff] %v867_v14 }
 0x161   : >> { %v871_v16 = vld [vmem:[%s13269_s9 + $0x2a00] sm:$0xff]  ;;  %870 = vst [vmem:[%s13265_s8 + $0x14f0] sm:$0xff] %v869_v15 }
 0x162   : >> { %v873_v17 = vld [vmem:[%s13269_s9 + $0x2a20] sm:$0xff]  ;;  %872 = vst [vmem:[%s13265_s8 + $0x1500] sm:$0xff] %v871_v16 }
 0x163   : >> { %v875_v18 = vld [vmem:[%s13269_s9 + $0x2a40] sm:$0xff]  ;;  %874 = vst [vmem:[%s13265_s8 + $0x1510] sm:$0xff] %v873_v17 }
 0x164   : >> { %v877_v19 = vld [vmem:[%s13269_s9 + $0x2a60] sm:$0xff]  ;;  %876 = vst [vmem:[%s13265_s8 + $0x1520] sm:$0xff] %v875_v18 }
 0x165   : >> { %v879_v20 = vld [vmem:[%s13269_s9 + $0x2a80] sm:$0xff]  ;;  %878 = vst [vmem:[%s13265_s8 + $0x1530] sm:$0xff] %v877_v19 }
 0x166   : >> { %v881_v21 = vld [vmem:[%s13269_s9 + $0x2aa0] sm:$0xff]  ;;  %880 = vst [vmem:[%s13265_s8 + $0x1540] sm:$0xff] %v879_v20 }
 0x167   : >> { %v883_v22 = vld [vmem:[%s13269_s9 + $0x2ac0] sm:$0xff]  ;;  %882 = vst [vmem:[%s13265_s8 + $0x1550] sm:$0xff] %v881_v21 }
 0x168   : >> { %v885_v23 = vld [vmem:[%s13269_s9 + $0x2ae0] sm:$0xff]  ;;  %884 = vst [vmem:[%s13265_s8 + $0x1560] sm:$0xff] %v883_v22 }
 0x169   : >> { %v887_v24 = vld [vmem:[%s13269_s9 + $0x2b00] sm:$0xff]  ;;  %886 = vst [vmem:[%s13265_s8 + $0x1570] sm:$0xff] %v885_v23 }
 0x16a   : >> { %v889_v25 = vld [vmem:[%s13269_s9 + $0x2b20] sm:$0xff]  ;;  %888 = vst [vmem:[%s13265_s8 + $0x1580] sm:$0xff] %v887_v24 }
 0x16b   : >> { %v891_v26 = vld [vmem:[%s13269_s9 + $0x2b40] sm:$0xff]  ;;  %890 = vst [vmem:[%s13265_s8 + $0x1590] sm:$0xff] %v889_v25 }
 0x16c   : >> { %v893_v27 = vld [vmem:[%s13269_s9 + $0x2b60] sm:$0xff]  ;;  %892 = vst [vmem:[%s13265_s8 + $0x15a0] sm:$0xff] %v891_v26 }
 0x16d   : >> { %v895_v28 = vld [vmem:[%s13269_s9 + $0x2b80] sm:$0xff]  ;;  %894 = vst [vmem:[%s13265_s8 + $0x15b0] sm:$0xff] %v893_v27 }
 0x16e   : >> { %v897_v29 = vld [vmem:[%s13269_s9 + $0x2ba0] sm:$0xff]  ;;  %896 = vst [vmem:[%s13265_s8 + $0x15c0] sm:$0xff] %v895_v28 }
 0x16f   : >> { %v899_v30 = vld [vmem:[%s13269_s9 + $0x2bc0] sm:$0xff]  ;;  %898 = vst [vmem:[%s13265_s8 + $0x15d0] sm:$0xff] %v897_v29 }
 0x170   : >> { %v901_v31 = vld [vmem:[%s13269_s9 + $0x2be0] sm:$0xff]  ;;  %900 = vst [vmem:[%s13265_s8 + $0x15e0] sm:$0xff] %v899_v30 }
 0x171   : >> { %v903_v32 = vld [vmem:[%s13269_s9 + $0x2c00] sm:$0xff]  ;;  %902 = vst [vmem:[%s13265_s8 + $0x15f0] sm:$0xff] %v901_v31 }
 0x172   : >> { %v905_v33 = vld [vmem:[%s13269_s9 + $0x2c20] sm:$0xff]  ;;  %904 = vst [vmem:[%s13265_s8 + $0x1600] sm:$0xff] %v903_v32 }
 0x173   : >> { %v907_v34 = vld [vmem:[%s13269_s9 + $0x2c40] sm:$0xff]  ;;  %906 = vst [vmem:[%s13265_s8 + $0x1610] sm:$0xff] %v905_v33 }
 0x174   : >> { %v909_v35 = vld [vmem:[%s13269_s9 + $0x2c60] sm:$0xff]  ;;  %908 = vst [vmem:[%s13265_s8 + $0x1620] sm:$0xff] %v907_v34 }
 0x175   : >> { %v911_v36 = vld [vmem:[%s13269_s9 + $0x2c80] sm:$0xff]  ;;  %910 = vst [vmem:[%s13265_s8 + $0x1630] sm:$0xff] %v909_v35 }
 0x176   : >> { %v913_v37 = vld [vmem:[%s13269_s9 + $0x2ca0] sm:$0xff]  ;;  %912 = vst [vmem:[%s13265_s8 + $0x1640] sm:$0xff] %v911_v36 }
 0x177   : >> { %v915_v38 = vld [vmem:[%s13269_s9 + $0x2cc0] sm:$0xff]  ;;  %914 = vst [vmem:[%s13265_s8 + $0x1650] sm:$0xff] %v913_v37 }
 0x178   : >> { %v917_v39 = vld [vmem:[%s13269_s9 + $0x2ce0] sm:$0xff]  ;;  %916 = vst [vmem:[%s13265_s8 + $0x1660] sm:$0xff] %v915_v38 }
 0x179   : >> { %v919_v40 = vld [vmem:[%s13269_s9 + $0x2d00] sm:$0xff]  ;;  %918 = vst [vmem:[%s13265_s8 + $0x1670] sm:$0xff] %v917_v39 }
 0x17a   : >> { %v921_v41 = vld [vmem:[%s13269_s9 + $0x2d20] sm:$0xff]  ;;  %920 = vst [vmem:[%s13265_s8 + $0x1680] sm:$0xff] %v919_v40 }
 0x17b   : >> { %v923_v42 = vld [vmem:[%s13269_s9 + $0x2d40] sm:$0xff]  ;;  %922 = vst [vmem:[%s13265_s8 + $0x1690] sm:$0xff] %v921_v41 }
 0x17c   : >> { %v925_v43 = vld [vmem:[%s13269_s9 + $0x2d60] sm:$0xff]  ;;  %924 = vst [vmem:[%s13265_s8 + $0x16a0] sm:$0xff] %v923_v42 }
 0x17d   : >> { %v927_v44 = vld [vmem:[%s13269_s9 + $0x2d80] sm:$0xff]  ;;  %926 = vst [vmem:[%s13265_s8 + $0x16b0] sm:$0xff] %v925_v43 }
 0x17e   : >> { %v929_v45 = vld [vmem:[%s13269_s9 + $0x2da0] sm:$0xff]  ;;  %928 = vst [vmem:[%s13265_s8 + $0x16c0] sm:$0xff] %v927_v44 }
 0x17f   : >> { %v931_v46 = vld [vmem:[%s13269_s9 + $0x2dc0] sm:$0xff]  ;;  %930 = vst [vmem:[%s13265_s8 + $0x16d0] sm:$0xff] %v929_v45 }
 0x180   : >> { %v933_v47 = vld [vmem:[%s13269_s9 + $0x2de0] sm:$0xff]  ;;  %932 = vst [vmem:[%s13265_s8 + $0x16e0] sm:$0xff] %v931_v46 }
 0x181   : >> { %v935_v48 = vld [vmem:[%s13269_s9 + $0x2e00] sm:$0xff]  ;;  %934 = vst [vmem:[%s13265_s8 + $0x16f0] sm:$0xff] %v933_v47 }
 0x182   : >> { %v937_v49 = vld [vmem:[%s13269_s9 + $0x2e20] sm:$0xff]  ;;  %936 = vst [vmem:[%s13265_s8 + $0x1700] sm:$0xff] %v935_v48 }
 0x183   : >> { %v939_v50 = vld [vmem:[%s13269_s9 + $0x2e40] sm:$0xff]  ;;  %938 = vst [vmem:[%s13265_s8 + $0x1710] sm:$0xff] %v937_v49 }
 0x184   : >> { %v941_v51 = vld [vmem:[%s13269_s9 + $0x2e60] sm:$0xff]  ;;  %940 = vst [vmem:[%s13265_s8 + $0x1720] sm:$0xff] %v939_v50 }
 0x185   : >> { %v943_v52 = vld [vmem:[%s13269_s9 + $0x2e80] sm:$0xff]  ;;  %942 = vst [vmem:[%s13265_s8 + $0x1730] sm:$0xff] %v941_v51 }
 0x186   : >> { %v945_v53 = vld [vmem:[%s13269_s9 + $0x2ea0] sm:$0xff]  ;;  %944 = vst [vmem:[%s13265_s8 + $0x1740] sm:$0xff] %v943_v52 }
 0x187   : >> { %v947_v54 = vld [vmem:[%s13269_s9 + $0x2ec0] sm:$0xff]  ;;  %946 = vst [vmem:[%s13265_s8 + $0x1750] sm:$0xff] %v945_v53 }
 0x188   : >> { %v949_v55 = vld [vmem:[%s13269_s9 + $0x2ee0] sm:$0xff]  ;;  %948 = vst [vmem:[%s13265_s8 + $0x1760] sm:$0xff] %v947_v54 }
 0x189   : >> { %v951_v56 = vld [vmem:[%s13269_s9 + $0x2f00] sm:$0xff]  ;;  %950 = vst [vmem:[%s13265_s8 + $0x1770] sm:$0xff] %v949_v55 }
 0x18a   : >> { %v953_v57 = vld [vmem:[%s13269_s9 + $0x2f20] sm:$0xff]  ;;  %952 = vst [vmem:[%s13265_s8 + $0x1780] sm:$0xff] %v951_v56 }
 0x18b   : >> { %v955_v58 = vld [vmem:[%s13269_s9 + $0x2f40] sm:$0xff]  ;;  %954 = vst [vmem:[%s13265_s8 + $0x1790] sm:$0xff] %v953_v57 }
 0x18c   : >> { %v957_v59 = vld [vmem:[%s13269_s9 + $0x2f60] sm:$0xff]  ;;  %956 = vst [vmem:[%s13265_s8 + $0x17a0] sm:$0xff] %v955_v58 }
 0x18d   : >> { %v959_v60 = vld [vmem:[%s13269_s9 + $0x2f80] sm:$0xff]  ;;  %958 = vst [vmem:[%s13265_s8 + $0x17b0] sm:$0xff] %v957_v59 }
 0x18e   : >> { %v961_v61 = vld [vmem:[%s13269_s9 + $0x2fa0] sm:$0xff]  ;;  %960 = vst [vmem:[%s13265_s8 + $0x17c0] sm:$0xff] %v959_v60 }
 0x18f   : >> { %v963_v62 = vld [vmem:[%s13269_s9 + $0x2fc0] sm:$0xff]  ;;  %962 = vst [vmem:[%s13265_s8 + $0x17d0] sm:$0xff] %v961_v61 }
 0x190   : >> { %v965_v63 = vld [vmem:[%s13269_s9 + $0x2fe0] sm:$0xff]  ;;  %964 = vst [vmem:[%s13265_s8 + $0x17e0] sm:$0xff] %v963_v62 }
 0x191   : >> { %v967_v0 = vld [vmem:[%s13269_s9 + $0x3000] sm:$0xff]  ;;  %966 = vst [vmem:[%s13265_s8 + $0x17f0] sm:$0xff] %v965_v63 }
 0x192   : >> { %v969_v1 = vld [vmem:[%s13269_s9 + $0x3020] sm:$0xff]  ;;  %968 = vst [vmem:[%s13265_s8 + $0x1800] sm:$0xff] %v967_v0 }
 0x193   : >> { %v971_v2 = vld [vmem:[%s13269_s9 + $0x3040] sm:$0xff]  ;;  %970 = vst [vmem:[%s13265_s8 + $0x1810] sm:$0xff] %v969_v1 }
 0x194   : >> { %v973_v3 = vld [vmem:[%s13269_s9 + $0x3060] sm:$0xff]  ;;  %972 = vst [vmem:[%s13265_s8 + $0x1820] sm:$0xff] %v971_v2 }
 0x195   : >> { %v975_v4 = vld [vmem:[%s13269_s9 + $0x3080] sm:$0xff]  ;;  %974 = vst [vmem:[%s13265_s8 + $0x1830] sm:$0xff] %v973_v3  ;;  %194 = sbr.rel (!%p192_p6) target bundleno = 17 (0x11), region = 123 }
 0x196   : >> { %v977_v5 = vld [vmem:[%s13269_s9 + $0x30a0] sm:$0xff]  ;;  %976 = vst [vmem:[%s13265_s8 + $0x1840] sm:$0xff] %v975_v4 }
 0x197   : >> { %v979_v6 = vld [vmem:[%s13269_s9 + $0x30c0] sm:$0xff]  ;;  %978 = vst [vmem:[%s13265_s8 + $0x1850] sm:$0xff] %v977_v5 }
 0x198   : >> { %v981_v7 = vld [vmem:[%s13269_s9 + $0x30e0] sm:$0xff]  ;;  %980 = vst [vmem:[%s13265_s8 + $0x1860] sm:$0xff] %v979_v6  ;;  %s16423_s9 = smov %s13912_s14 }
 0x199   : >> { %982 = vst [vmem:[%s13265_s8 + $0x1870] sm:$0xff] %v981_v7  ;;  %s16422_s8 = smov %s13916_s15 }
 0x19a PF: > { %p9181_p7 = scmp.ge.s32.totalorder %s13261_s20, 1  ;;  %p2598_p8 = scmp.lt.s32.totalorder %s13261_s20, 3 }
 0x19c   : > { %p2599_p9 = pnand %p9181_p7, %p2598_p8 }
 0x19d   : > { %s2605_s16 = sand.u32 (!%p2599_p9), 1, %s13253_s18   ;;  %s9182_s29 = sshll.u32 (!%p2599_p9), %s13328_s21, 2 }
 0x19e   : > { %2602 = sbr.rel (%p2599_p9) target bundleno = 1715 (0x6b3), region = 73  ;;  %p14586_p10 = scmp.lt.s32.totalorder (!%p2599_p9), %s9182_s29, 7 }
 0x19f   : > { %s13115_s17 = smul.u32 (!%p2599_p9), 6272, %s2605_s16  ;;  %p12323_p11 = scmp.ne.s32.totalorder (!%p2599_p9), %s13328_s21, 0 }
 0x1a1   : > { %s14186_s23 = scalar_lea.vmem (!%p2599_p9), [#allocation3], %s13115_s17 }
 0x1a3   : > { %v9297_v8 = vld [vmem:[%s14186_s23 + $0xe0] sm:$0xf]  ;;  %v12360_v9 = vld [vmem:[%s14186_s23 + $0xec] sm:$0xf0]  ;;  %s16432_s29 = smov (!%p14586_p10, %s9182_s29), 7  ;;  %vm7413_vm0 = vcmask 523264  }
 0x1a4   : > { %v9425_v10 = vld [vmem:[%s14186_s23 + $0x1e0] sm:$0xf]  ;;  %v9298_v11 = vor.u32 %v12360_v9, %v9297_v8  ;;  %v12392_v12 = vld [vmem:[%s14186_s23 + $0x1ec] sm:$0xf0]  ;;  %s14625_s8 = scalar_lea.vmem %s16416_s2, %s16432_s29 }
 0x1a5   : > { %v9553_v13 = vld [vmem:[%s14186_s23 + $0x2e0] sm:$0xf]  ;;  %v12424_v14 = vld [vmem:[%s14186_s23 + $0x2ec] sm:$0xf0]  ;;  %v9426_v15 = vor.u32 %v12392_v12, %v9425_v10 }
 0x1a6   : > { %v9554_v16 = vor.u32 %v12424_v14, %v9553_v13  ;;  %v9681_v17 = vld [vmem:[%s14186_s23 + $0x3e0] sm:$0xf]  ;;  %v12456_v18 = vld [vmem:[%s14186_s23 + $0x3ec] sm:$0xf0]  ;;  %7416 = vmatpush.bf16.msra.mxu0 %v9298_v11 }
 0x1a7   : > { %v9281_v19 = vld [vmem:[%s14186_s23 + $0xc0] sm:$0xf]  ;;  %v9682_v20 = vor.u32 %v12456_v18, %v9681_v17  ;;  %v12356_v21 = vld [vmem:[%s14186_s23 + $0xcc] sm:$0xf0]  ;;  %7429 = vmatpush.bf16.msra.mxu1 %v9426_v15 }
 0x1a8   : > { %v9409_v22 = vld [vmem:[%s14186_s23 + $0x1c0] sm:$0xf]  ;;  %v12388_v23 = vld [vmem:[%s14186_s23 + $0x1cc] sm:$0xf0]  ;;  %7442 = vmatpush.bf16.msra.mxu2 %v9554_v16  ;;  %v9282_v24 = vor.u32 %v12356_v21, %v9281_v19 }
 0x1a9   : > { %v9410_v25 = vor.u32 %v12388_v23, %v9409_v22  ;;  %v9537_v26 = vld [vmem:[%s14186_s23 + $0x2c0] sm:$0xf]  ;;  %v12420_v27 = vld [vmem:[%s14186_s23 + $0x2cc] sm:$0xf0]  ;;  %7455 = vmatpush.bf16.msra.mxu3 %v9682_v20 }
 0x1aa   : > { %v9665_v28 = vld [vmem:[%s14186_s23 + $0x3c0] sm:$0xf]  ;;  %v9538_v29 = vor.u32 %v12420_v27, %v9537_v26  ;;  %v12452_v30 = vld [vmem:[%s14186_s23 + $0x3cc] sm:$0xf0]  ;;  %7417 = vmatpush.bf16.msra.mxu0 %v9282_v24 }
 0x1ab   : > { %v9265_v31 = vld [vmem:[%s14186_s23 + $0xa0] sm:$0xf]  ;;  %v12352_v32 = vld [vmem:[%s14186_s23 + $0xac] sm:$0xf0]  ;;  %v9666_v33 = vor.u32 %v12452_v30, %v9665_v28  ;;  %7430 = vmatpush.bf16.msra.mxu1 %v9410_v25 }
 0x1ac   : > { %v9393_v34 = vld [vmem:[%s14186_s23 + $0x1a0] sm:$0xf]  ;;  %v12384_v35 = vld [vmem:[%s14186_s23 + $0x1ac] sm:$0xf0]  ;;  %v9266_v37 = vor.u32 %v12352_v32, %v9265_v31  ;;  %7443 = vmatpush.bf16.msra.mxu2 %v9538_v29 }
 0x1ad   : > { %v9521_v36 = vld [vmem:[%s14186_s23 + $0x2a0] sm:$0xf]  ;;  %v12416_v38 = vld [vmem:[%s14186_s23 + $0x2ac] sm:$0xf0]  ;;  %v9394_v41 = vor.u32 %v12384_v35, %v9393_v34  ;;  %7456 = vmatpush.bf16.msra.mxu3 %v9666_v33 }
 0x1ae   : > { %v9649_v39 = vld [vmem:[%s14186_s23 + $0x3a0] sm:$0xf]  ;;  %v12448_v40 = vld [vmem:[%s14186_s23 + $0x3ac] sm:$0xf0]  ;;  %v9522_v42 = vor.u32 %v12416_v38, %v9521_v36  ;;  %7418 = vmatpush.bf16.msra.mxu0 %v9266_v37 }
 0x1af   : > { %v9249_v43 = vld [vmem:[%s14186_s23 + $0x80] sm:$0xf]  ;;  %v12348_v44 = vld [vmem:[%s14186_s23 + $0x8c] sm:$0xf0]  ;;  %v9650_v46 = vor.u32 %v12448_v40, %v9649_v39  ;;  %7431 = vmatpush.bf16.msra.mxu1 %v9394_v41 }
 0x1b0   : > { %v9377_v45 = vld [vmem:[%s14186_s23 + $0x180] sm:$0xf]  ;;  %v12380_v47 = vld [vmem:[%s14186_s23 + $0x18c] sm:$0xf0]  ;;  %v9250_v52 = vor.u32 %v12348_v44, %v9249_v43  ;;  %7444 = vmatpush.bf16.msra.mxu2 %v9522_v42 }
 0x1b1   : > { %v9505_v48 = vld [vmem:[%s14186_s23 + $0x280] sm:$0xf]  ;;  %v12412_v49 = vld [vmem:[%s14186_s23 + $0x28c] sm:$0xf0]  ;;  %v9378_v53 = vor.u32 %v12380_v47, %v9377_v45  ;;  %7457 = vmatpush.bf16.msra.mxu3 %v9650_v46 }
 0x1b2   : > { %v9633_v50 = vld [vmem:[%s14186_s23 + $0x380] sm:$0xf]  ;;  %v12444_v51 = vld [vmem:[%s14186_s23 + $0x38c] sm:$0xf0]  ;;  %v9506_v54 = vor.u32 %v12412_v49, %v9505_v48  ;;  %7419 = vmatpush.bf16.msra.mxu0 %v9250_v52 }
 0x1b3   : > { %v9233_v55 = vld [vmem:[%s14186_s23 + $0x60] sm:$0xf]  ;;  %v12344_v56 = vld [vmem:[%s14186_s23 + $0x6c] sm:$0xf0]  ;;  %v9634_v58 = vor.u32 %v12444_v51, %v9633_v50  ;;  %7432 = vmatpush.bf16.msra.mxu1 %v9378_v53 }
 0x1b4   : > { %v9361_v57 = vld [vmem:[%s14186_s23 + $0x160] sm:$0xf]  ;;  %v12376_v59 = vld [vmem:[%s14186_s23 + $0x16c] sm:$0xf0]  ;;  %v9234_v0 = vor.u32 %v12344_v56, %v9233_v55  ;;  %7445 = vmatpush.bf16.msra.mxu2 %v9506_v54 }
 0x1b5   : > { %v9489_v60 = vld [vmem:[%s14186_s23 + $0x260] sm:$0xf]  ;;  %v12408_v61 = vld [vmem:[%s14186_s23 + $0x26c] sm:$0xf0]  ;;  %v9362_v1 = vor.u32 %v12376_v59, %v9361_v57  ;;  %7458 = vmatpush.bf16.msra.mxu3 %v9634_v58 }
 0x1b6   : > { %v9617_v62 = vld [vmem:[%s14186_s23 + $0x360] sm:$0xf]  ;;  %v12440_v63 = vld [vmem:[%s14186_s23 + $0x36c] sm:$0xf0]  ;;  %v9490_v2 = vor.u32 %v12408_v61, %v9489_v60  ;;  %7420 = vmatpush.bf16.msra.mxu0 %v9234_v0 }
 0x1b7   : > { %v9217_v3 = vld [vmem:[%s14186_s23 + $0x40] sm:$0xf]  ;;  %v12340_v4 = vld [vmem:[%s14186_s23 + $0x4c] sm:$0xf0]  ;;  %v9618_v6 = vor.u32 %v12440_v63, %v9617_v62  ;;  %7433 = vmatpush.bf16.msra.mxu1 %v9362_v1 }
 0x1b8   : > { %v9345_v5 = vld [vmem:[%s14186_s23 + $0x140] sm:$0xf]  ;;  %v12372_v7 = vld [vmem:[%s14186_s23 + $0x14c] sm:$0xf0]  ;;  %v9218_v12 = vor.u32 %v12340_v4, %v9217_v3  ;;  %7446 = vmatpush.bf16.msra.mxu2 %v9490_v2  ;;  %v2638_v3 = vld [vmem:[%s16414_s0] sm:$0xff] }
 0x1b9   : > { %v9473_v8 = vld [vmem:[%s14186_s23 + $0x240] sm:$0xf]  ;;  %v12404_v9 = vld [vmem:[%s14186_s23 + $0x24c] sm:$0xf0]  ;;  %v9346_v13 = vor.u32 %v12372_v7, %v9345_v5  ;;  %7459 = vmatpush.bf16.msra.mxu3 %v9618_v6  ;;  %3437 = vst [vmem:[#allocation1] ss:$9 sm:$0xff] %v2638_v3 }
 0x1ba   : > { %v9601_v10 = vld [vmem:[%s14186_s23 + $0x340] sm:$0xf]  ;;  %v12436_v11 = vld [vmem:[%s14186_s23 + $0x34c] sm:$0xf0]  ;;  %v9474_v14 = vor.u32 %v12404_v9, %v9473_v8  ;;  %7421 = vmatpush.bf16.msra.mxu0 %v9218_v12 }
 0x1bb   : > { %v9201_v15 = vld [vmem:[%s14186_s23 + $0x20] sm:$0xf]  ;;  %v12336_v16 = vld [vmem:[%s14186_s23 + $0x2c] sm:$0xf0]  ;;  %v9602_v18 = vor.u32 %v12436_v11, %v9601_v10  ;;  %7434 = vmatpush.bf16.msra.mxu1 %v9346_v13 }
 0x1bc   : > { %v9329_v17 = vld [vmem:[%s14186_s23 + $0x120] sm:$0xf]  ;;  %v12368_v19 = vld [vmem:[%s14186_s23 + $0x12c] sm:$0xf0]  ;;  %v9202_v24 = vor.u32 %v12336_v16, %v9201_v15  ;;  %7447 = vmatpush.bf16.msra.mxu2 %v9474_v14 }
 0x1bd   : > { %v9457_v20 = vld [vmem:[%s14186_s23 + $0x220] sm:$0xf]  ;;  %v12400_v21 = vld [vmem:[%s14186_s23 + $0x22c] sm:$0xf0]  ;;  %v9330_v27 = vor.u32 %v12368_v19, %v9329_v17  ;;  %7460 = vmatpush.bf16.msra.mxu3 %v9602_v18 }
 0x1be   : > { %v9585_v22 = vld [vmem:[%s14186_s23 + $0x320] sm:$0xf]  ;;  %v12432_v23 = vld [vmem:[%s14186_s23 + $0x32c] sm:$0xf0]  ;;  %v9458_v28 = vor.u32 %v12400_v21, %v9457_v20  ;;  %7422 = vmatpush.bf16.msra.mxu0 %v9202_v24 }
 0x1bf   : > { %v9185_v25 = vld [vmem:[%s14186_s23] sm:$0xf]  ;;  %v12332_v26 = vld [vmem:[%s14186_s23 + $0xc] sm:$0xf0]  ;;  %v9586_v32 = vor.u32 %v12432_v23, %v9585_v22  ;;  %7435 = vmatpush.bf16.msra.mxu1 %v9330_v27 }
 0x1c0   : > { %v9313_v29 = vld [vmem:[%s14186_s23 + $0x100] sm:$0xf]  ;;  %v12364_v30 = vld [vmem:[%s14186_s23 + $0x10c] sm:$0xf0]  ;;  %v9186_v39 = vor.u32 %v12332_v26, %v9185_v25  ;;  %7448 = vmatpush.bf16.msra.mxu2 %v9458_v28 }
 0x1c1   : > { %v9441_v31 = vld [vmem:[%s14186_s23 + $0x200] sm:$0xf]  ;;  %v12396_v33 = vld [vmem:[%s14186_s23 + $0x20c] sm:$0xf0]  ;;  %v9314_v43 = vor.u32 %v12364_v30, %v9313_v29  ;;  %7461 = vmatpush.bf16.msra.mxu3 %v9586_v32  ;;  %v14293_v29 = vld [vmem:[#allocation1] sm:$0xff] }
 0x1c2   : > { %v9569_v34 = vld [vmem:[%s14186_s23 + $0x300] sm:$0xf]  ;;  %v12428_v35 = vld [vmem:[%s14186_s23 + $0x30c] sm:$0xf0]  ;;  %v9442_v44 = vor.u32 %v12396_v33, %v9441_v31  ;;  %7423 = vmatpush.bf16.msra.mxu0 %v9186_v39 }
 0x1c3   : > { %v9809_v36 = vld [vmem:[%s14186_s23 + $0x4e0] sm:$0xf]  ;;  %v12488_v37 = vld [vmem:[%s14186_s23 + $0x4ec] sm:$0xf0]  ;;  %v9570_v47 = vor.u32 %v12428_v35, %v9569_v34  ;;  %7436 = vmatpush.bf16.msra.mxu1 %v9314_v43 }
 0x1c4   : > { %v9937_v38 = vld [vmem:[%s14186_s23 + $0x5e0] sm:$0xf]  ;;  %v12520_v40 = vld [vmem:[%s14186_s23 + $0x5ec] sm:$0xf0]  ;;  %v9810_v48 = vor.u32 %v12488_v37, %v9809_v36  ;;  %7449 = vmatpush.bf16.msra.mxu2 %v9442_v44 }
 0x1c5   : > { %v10065_v41 = vld [vmem:[%s14186_s23 + $0x6e0] sm:$0xf]  ;;  %v12552_v42 = vld [vmem:[%s14186_s23 + $0x6ec] sm:$0xf0]  ;;  %v9938_v49 = vor.u32 %v12520_v40, %v9937_v38  ;;  %7462 = vmatpush.bf16.msra.mxu3 %v9570_v47  ;;  %7424 = vmatmul.bf16.vlgmr.msra.gmra.mxu0 %v14293_v29 }
 0x1c6   : > { %v10193_v45 = vld [vmem:[%s14186_s23 + $0x7e0] sm:$0xf]  ;;  %v12584_v46 = vld [vmem:[%s14186_s23 + $0x7ec] sm:$0xf0]  ;;  %v10066_v50 = vor.u32 %v12552_v42, %v10065_v41  ;;  %7468 = vmatpush.bf16.msrb.mxu0 %v9810_v48 }
 0x1c7   : > { %v9793_v51 = vld [vmem:[%s14186_s23 + $0x4c0] sm:$0xf]  ;;  %v12484_v52 = vld [vmem:[%s14186_s23 + $0x4cc] sm:$0xf0]  ;;  %v10194_v54 = vor.u32 %v12584_v46, %v10193_v45  ;;  %7481 = vmatpush.bf16.msrb.mxu1 %v9938_v49 }
 0x1c8   : > { %v9921_v53 = vld [vmem:[%s14186_s23 + $0x5c0] sm:$0xf]  ;;  %v12516_v55 = vld [vmem:[%s14186_s23 + $0x5cc] sm:$0xf0]  ;;  %v9794_v60 = vor.u32 %v12484_v52, %v9793_v51  ;;  %7494 = vmatpush.bf16.msrb.mxu2 %v10066_v50 }
 0x1c9   : > { %v10049_v56 = vld [vmem:[%s14186_s23 + $0x6c0] sm:$0xf]  ;;  %v12548_v57 = vld [vmem:[%s14186_s23 + $0x6cc] sm:$0xf0]  ;;  %v9922_v63 = vor.u32 %v12516_v55, %v9921_v53  ;;  %7507 = vmatpush.bf16.msrb.mxu3 %v10194_v54 }
 0x1ca   : > { %v10177_v58 = vld [vmem:[%s14186_s23 + $0x7c0] sm:$0xf]  ;;  %v12580_v59 = vld [vmem:[%s14186_s23 + $0x7cc] sm:$0xf0]  ;;  %v10050_v0 = vor.u32 %v12548_v57, %v10049_v56  ;;  %7469 = vmatpush.bf16.msrb.mxu0 %v9794_v60 }
 0x1cb   : > { %v9777_v61 = vld [vmem:[%s14186_s23 + $0x4a0] sm:$0xf]  ;;  %v12480_v62 = vld [vmem:[%s14186_s23 + $0x4ac] sm:$0xf0]  ;;  %v10178_v4 = vor.u32 %v12580_v59, %v10177_v58  ;;  %7482 = vmatpush.bf16.msrb.mxu1 %v9922_v63 }
 0x1cc   : > { %v9905_v1 = vld [vmem:[%s14186_s23 + $0x5a0] sm:$0xf]  ;;  %v12512_v2 = vld [vmem:[%s14186_s23 + $0x5ac] sm:$0xf0]  ;;  %v9778_v9 = vor.u32 %v12480_v62, %v9777_v61  ;;  %7495 = vmatpush.bf16.msrb.mxu2 %v10050_v0 }
 0x1cd   : > { %v10033_v5 = vld [vmem:[%s14186_s23 + $0x6a0] sm:$0xf]  ;;  %v12544_v6 = vld [vmem:[%s14186_s23 + $0x6ac] sm:$0xf0]  ;;  %v9906_v10 = vor.u32 %v12512_v2, %v9905_v1  ;;  %7508 = vmatpush.bf16.msrb.mxu3 %v10178_v4 }
 0x1ce   : > { %v10161_v7 = vld [vmem:[%s14186_s23 + $0x7a0] sm:$0xf]  ;;  %v12576_v8 = vld [vmem:[%s14186_s23 + $0x7ac] sm:$0xf0]  ;;  %v10034_v11 = vor.u32 %v12544_v6, %v10033_v5  ;;  %7470 = vmatpush.bf16.msrb.mxu0 %v9778_v9  ;;  %v14336_v9 = vld [vmem:[#allocation1 + $0x3f] sm:$0xff] }
 0x1cf   : > { %v9761_v12 = vld [vmem:[%s14186_s23 + $0x480] sm:$0xf]  ;;  %v12476_v13 = vld [vmem:[%s14186_s23 + $0x48c] sm:$0xf0]  ;;  %v10162_v15 = vor.u32 %v12576_v8, %v10161_v7  ;;  %7483 = vmatpush.bf16.msrb.mxu1 %v9906_v10  ;;  %v14338_v10 = vld [vmem:[#allocation1 + $0x2d] sm:$0xff] }
 0x1d0   : > { %v9889_v14 = vld [vmem:[%s14186_s23 + $0x580] sm:$0xf]  ;;  %v12508_v16 = vld [vmem:[%s14186_s23 + $0x58c] sm:$0xf0]  ;;  %v9762_v22 = vor.u32 %v12476_v13, %v9761_v12  ;;  %7496 = vmatpush.bf16.msrb.mxu2 %v10034_v11 }
 0x1d1   : > { %v10017_v17 = vld [vmem:[%s14186_s23 + $0x680] sm:$0xf]  ;;  %v12540_v18 = vld [vmem:[%s14186_s23 + $0x68c] sm:$0xf0]  ;;  %v9890_v26 = vor.u32 %v12508_v16, %v9889_v14  ;;  %7509 = vmatpush.bf16.msrb.mxu3 %v10162_v15 }
 0x1d2   : > { %v10145_v19 = vld [vmem:[%s14186_s23 + $0x780] sm:$0xf]  ;;  %v12572_v20 = vld [vmem:[%s14186_s23 + $0x78c] sm:$0xf0]  ;;  %v10018_v27 = vor.u32 %v12540_v18, %v10017_v17  ;;  %7471 = vmatpush.bf16.msrb.mxu0 %v9762_v22 }
 0x1d3   : > { %v9745_v21 = vld [vmem:[%s14186_s23 + $0x460] sm:$0xf]  ;;  %v12472_v23 = vld [vmem:[%s14186_s23 + $0x46c] sm:$0xf0]  ;;  %v10146_v31 = vor.u32 %v12572_v20, %v10145_v19  ;;  %7484 = vmatpush.bf16.msrb.mxu1 %v9890_v26 }
 0x1d4   : > { %v9873_v24 = vld [vmem:[%s14186_s23 + $0x560] sm:$0xf]  ;;  %v12504_v25 = vld [vmem:[%s14186_s23 + $0x56c] sm:$0xf0]  ;;  %v9746_v37 = vor.u32 %v12472_v23, %v9745_v21  ;;  %7497 = vmatpush.bf16.msrb.mxu2 %v10018_v27 }
 0x1d5   : > { %v14291_v28 = vld [vmem:[#allocation1 + $0x12] sm:$0xff]  ;;  %v14295_v30 = vld [vmem:[#allocation1 + $0x1b] sm:$0xff]  ;;  %v12536_v33 = vld [vmem:[%s14186_s23 + $0x66c] sm:$0xf0]  ;;  %v9874_v38 = vor.u32 %v12504_v25, %v9873_v24  ;;  %7510 = vmatpush.bf16.msrb.mxu3 %v10146_v31 }
 0x1d6   : > { %v10001_v32 = vld [vmem:[%s14186_s23 + $0x660] sm:$0xf]  ;;  %7450 = vmatmul.bf16.vlgmr.msra.gmra.mxu2 %v14291_v28  ;;  %v14300_v34 = vld [vmem:[#allocation1 + $0x9] sm:$0xff]  ;;  %7463 = vmatmul.bf16.vlgmr.msra.gmra.mxu3 %v14295_v30 }
 0x1d7   : > { %v10129_v35 = vld [vmem:[%s14186_s23 + $0x760] sm:$0xf]  ;;  %v12568_v36 = vld [vmem:[%s14186_s23 + $0x76c] sm:$0xf0]  ;;  %7437 = vmatmul.bf16.vlgmr.msra.gmra.mxu1 %v14300_v34  ;;  %v10002_v39 = vor.u32 %v12536_v33, %v10001_v32  ;;  %7472 = vmatpush.bf16.msrb.mxu0 %v9746_v37 }
 0x1d8   : > { %v9729_v40 = vld [vmem:[%s14186_s23 + $0x440] sm:$0xf]  ;;  %v12468_v41 = vld [vmem:[%s14186_s23 + $0x44c] sm:$0xf0]  ;;  %v10130_v43 = vor.u32 %v12568_v36, %v10129_v35  ;;  %7485 = vmatpush.bf16.msrb.mxu1 %v9874_v38 }
 0x1d9   : > { %v9857_v42 = vld [vmem:[%s14186_s23 + $0x540] sm:$0xf]  ;;  %v12500_v44 = vld [vmem:[%s14186_s23 + $0x54c] sm:$0xf0]  ;;  %v9730_v49 = vor.u32 %v12468_v41, %v9729_v40  ;;  %7498 = vmatpush.bf16.msrb.mxu2 %v10002_v39 }
 0x1da   : > { %v9985_v45 = vld [vmem:[%s14186_s23 + $0x640] sm:$0xf]  ;;  %v12532_v46 = vld [vmem:[%s14186_s23 + $0x64c] sm:$0xf0]  ;;  %v9858_v51 = vor.u32 %v12500_v44, %v9857_v42  ;;  %7511 = vmatpush.bf16.msrb.mxu3 %v10130_v43 }
 0x1db   : > { %v10113_v47 = vld [vmem:[%s14186_s23 + $0x740] sm:$0xf]  ;;  %v12564_v48 = vld [vmem:[%s14186_s23 + $0x74c] sm:$0xf0]  ;;  %v9986_v52 = vor.u32 %v12532_v46, %v9985_v45  ;;  %7473 = vmatpush.bf16.msrb.mxu0 %v9730_v49 }
 0x1dc   : > { %v9713_v50 = vld [vmem:[%s14186_s23 + $0x420] sm:$0xf]  ;;  %v12464_v53 = vld [vmem:[%s14186_s23 + $0x42c] sm:$0xf0]  ;;  %v10114_v56 = vor.u32 %v12564_v48, %v10113_v47  ;;  %7486 = vmatpush.bf16.msrb.mxu1 %v9858_v51 }
 0x1dd   : > { %v9841_v54 = vld [vmem:[%s14186_s23 + $0x520] sm:$0xf]  ;;  %v12496_v55 = vld [vmem:[%s14186_s23 + $0x52c] sm:$0xf0]  ;;  %v9714_v63 = vor.u32 %v12464_v53, %v9713_v50  ;;  %7499 = vmatpush.bf16.msrb.mxu2 %v9986_v52 }
 0x1de   : > { %v9969_v57 = vld [vmem:[%s14186_s23 + $0x620] sm:$0xf]  ;;  %v12528_v58 = vld [vmem:[%s14186_s23 + $0x62c] sm:$0xf0]  ;;  %v9842_v6 = vor.u32 %v12496_v55, %v9841_v54  ;;  %7512 = vmatpush.bf16.msrb.mxu3 %v10114_v56 }
 0x1df   : > { %v10097_v59 = vld [vmem:[%s14186_s23 + $0x720] sm:$0xf]  ;;  %v12560_v60 = vld [vmem:[%s14186_s23 + $0x72c] sm:$0xf0]  ;;  %v9970_v7 = vor.u32 %v12528_v58, %v9969_v57  ;;  %7474 = vmatpush.bf16.msrb.mxu0 %v9714_v63 }
 0x1e0   : > { %v9697_v61 = vld [vmem:[%s14186_s23 + $0x400] sm:$0xf]  ;;  %v12460_v62 = vld [vmem:[%s14186_s23 + $0x40c] sm:$0xf0]  ;;  %v10098_v11 = vor.u32 %v12560_v60, %v10097_v59  ;;  %7487 = vmatpush.bf16.msrb.mxu1 %v9842_v6 }
 0x1e1   : > { %v9825_v0 = vld [vmem:[%s14186_s23 + $0x500] sm:$0xf]  ;;  %v12492_v1 = vld [vmem:[%s14186_s23 + $0x50c] sm:$0xf0]  ;;  %v9698_v17 = vor.u32 %v12460_v62, %v9697_v61  ;;  %7500 = vmatpush.bf16.msrb.mxu2 %v9970_v7 }
 0x1e2   : > { %v9953_v2 = vld [vmem:[%s14186_s23 + $0x600] sm:$0xf]  ;;  %v12524_v3 = vld [vmem:[%s14186_s23 + $0x60c] sm:$0xf0]  ;;  %v9826_v21 = vor.u32 %v12492_v1, %v9825_v0  ;;  %7513 = vmatpush.bf16.msrb.mxu3 %v10098_v11 }
 0x1e3   : > { %v14329_v4 = vld [vmem:[#allocation1 + $0x36] sm:$0xff]  ;;  %v2639_v5 = vld [vmem:[%s16414_s0 + $0x8] sm:$0xff]  ;;  %v9954_v22 = vor.u32 %v12524_v3, %v9953_v2  ;;  %7475 = vmatpush.bf16.msrb.mxu0 %v9698_v17 }
 0x1e4   : > { %v14334_v8 = vld [vmem:[#allocation1 + $0x24] sm:$0xff]  ;;  %v10081_v12 = vld [vmem:[%s14186_s23 + $0x700] sm:$0xf]  ;;  %7488 = vmatpush.bf16.msrb.mxu1 %v9826_v21 }
 0x1e5   : > { %v12556_v13 = vld [vmem:[%s14186_s23 + $0x70c] sm:$0xf0]  ;;  %3447 = vst [vmem:[#allocation1] ss:$9 sm:$0xff] %v2639_v5  ;;  %v10321_v14 = vld [vmem:[%s14186_s23 + $0x8e0] sm:$0xf]  ;;  %7501 = vmatpush.bf16.msrb.mxu2 %v9954_v22 }
 0x1e6   : > { %v12616_v15 = vld [vmem:[%s14186_s23 + $0x8ec] sm:$0xf0]  ;;  %v10449_v16 = vld [vmem:[%s14186_s23 + $0x9e0] sm:$0xf]  ;;  %v10082_v25 = vor.u32 %v12556_v13, %v10081_v12  ;;  %7476 = vmatmul.bf16.vlgmr.msrb.gmra.mxu0 %v14334_v8 }
 0x1e7   : > { %v12648_v18 = vld [vmem:[%s14186_s23 + $0x9ec] sm:$0xf0]  ;;  %v10577_v19 = vld [vmem:[%s14186_s23 + $0xae0] sm:$0xf]  ;;  %v10322_v26 = vor.u32 %v12616_v15, %v10321_v14  ;;  %7489 = vmatmul.bf16.vlgmr.msrb.gmra.mxu1 %v14338_v10 }
 0x1e8   : > { %v12680_v20 = vld [vmem:[%s14186_s23 + $0xaec] sm:$0xf0]  ;;  %v10705_v23 = vld [vmem:[%s14186_s23 + $0xbe0] sm:$0xf]  ;;  %v10450_v27 = vor.u32 %v12648_v18, %v10449_v16  ;;  %7514 = vmatpush.bf16.msrb.mxu3 %v10082_v25  ;;  %7502 = vmatmul.bf16.vlgmr.msrb.gmra.mxu2 %v14329_v4 }
 0x1e9   : > { %v12712_v24 = vld [vmem:[%s14186_s23 + $0xbec] sm:$0xf0]  ;;  %v10578_v31 = vor.u32 %v12680_v20, %v10577_v19  ;;  %v10305_v32 = vld [vmem:[%s14186_s23 + $0x8c0] sm:$0xf]  ;;  %7520 = vmatpush.bf16.msra.mxu0 %v10322_v26 }
 0x1ea   : > { %v12612_v33 = vld [vmem:[%s14186_s23 + $0x8cc] sm:$0xf0]  ;;  %v10433_v35 = vld [vmem:[%s14186_s23 + $0x9c0] sm:$0xf]  ;;  %v10706_v36 = vor.u32 %v12712_v24, %v10705_v23  ;;  %7533 = vmatpush.bf16.msra.mxu1 %v10450_v27 }
 0x1eb   : > { %v12644_v37 = vld [vmem:[%s14186_s23 + $0x9cc] sm:$0xf0]  ;;  %v10561_v38 = vld [vmem:[%s14186_s23 + $0xac0] sm:$0xf]  ;;  %v10306_v42 = vor.u32 %v12612_v33, %v10305_v32  ;;  %7546 = vmatpush.bf16.msra.mxu2 %v10578_v31  ;;  %7515 = vmatmul.bf16.vlgmr.msrb.gmra.mxu3 %v14336_v9 }
 0x1ec   : > { %v12676_v39 = vld [vmem:[%s14186_s23 + $0xacc] sm:$0xf0]  ;;  %v10689_v40 = vld [vmem:[%s14186_s23 + $0xbc0] sm:$0xf]  ;;  %v10434_v43 = vor.u32 %v12644_v37, %v10433_v35  ;;  %7559 = vmatpush.bf16.msra.mxu3 %v10706_v36 }
 0x1ed   : > { %v12708_v41 = vld [vmem:[%s14186_s23 + $0xbcc] sm:$0xf0]  ;;  %v10562_v44 = vor.u32 %v12676_v39, %v10561_v38  ;;  %v10289_v45 = vld [vmem:[%s14186_s23 + $0x8a0] sm:$0xf]  ;;  %7521 = vmatpush.bf16.msra.mxu0 %v10306_v42 }
 0x1ee   : > { %v12608_v46 = vld [vmem:[%s14186_s23 + $0x8ac] sm:$0xf0]  ;;  %v10417_v47 = vld [vmem:[%s14186_s23 + $0x9a0] sm:$0xf]  ;;  %v10690_v48 = vor.u32 %v12708_v41, %v10689_v40  ;;  %7534 = vmatpush.bf16.msra.mxu1 %v10434_v43 }
 0x1ef   : > { %v12640_v49 = vld [vmem:[%s14186_s23 + $0x9ac] sm:$0xf0]  ;;  %v10545_v50 = vld [vmem:[%s14186_s23 + $0xaa0] sm:$0xf]  ;;  %v10290_v54 = vor.u32 %v12608_v46, %v10289_v45  ;;  %7547 = vmatpush.bf16.msra.mxu2 %v10562_v44 }
 0x1f0   : > { %v12672_v51 = vld [vmem:[%s14186_s23 + $0xaac] sm:$0xf0]  ;;  %v10673_v52 = vld [vmem:[%s14186_s23 + $0xba0] sm:$0xf]  ;;  %v10418_v55 = vor.u32 %v12640_v49, %v10417_v47  ;;  %7560 = vmatpush.bf16.msra.mxu3 %v10690_v48 }
 0x1f1   : > { %v12704_v53 = vld [vmem:[%s14186_s23 + $0xbac] sm:$0xf0]  ;;  %v10546_v56 = vor.u32 %v12672_v51, %v10545_v50  ;;  %v10273_v57 = vld [vmem:[%s14186_s23 + $0x880] sm:$0xf]  ;;  %7522 = vmatpush.bf16.msra.mxu0 %v10290_v54 }
 0x1f2   : > { %v12604_v58 = vld [vmem:[%s14186_s23 + $0x88c] sm:$0xf0]  ;;  %v10401_v59 = vld [vmem:[%s14186_s23 + $0x980] sm:$0xf]  ;;  %v10674_v60 = vor.u32 %v12704_v53, %v10673_v52  ;;  %7535 = vmatpush.bf16.msra.mxu1 %v10418_v55 }
 0x1f3   : > { %v12636_v61 = vld [vmem:[%s14186_s23 + $0x98c] sm:$0xf0]  ;;  %v10529_v62 = vld [vmem:[%s14186_s23 + $0xa80] sm:$0xf]  ;;  %v10274_v2 = vor.u32 %v12604_v58, %v10273_v57  ;;  %7548 = vmatpush.bf16.msra.mxu2 %v10546_v56 }
 0x1f4   : > { %v12668_v63 = vld [vmem:[%s14186_s23 + $0xa8c] sm:$0xf0]  ;;  %v10657_v0 = vld [vmem:[%s14186_s23 + $0xb80] sm:$0xf]  ;;  %v10402_v3 = vor.u32 %v12636_v61, %v10401_v59  ;;  %7561 = vmatpush.bf16.msra.mxu3 %v10674_v60 }
 0x1f5   : > { %v12700_v1 = vld [vmem:[%s14186_s23 + $0xb8c] sm:$0xf0]  ;;  %v10530_v5 = vor.u32 %v12668_v63, %v10529_v62  ;;  %v10257_v6 = vld [vmem:[%s14186_s23 + $0x860] sm:$0xf]  ;;  %7523 = vmatpush.bf16.msra.mxu0 %v10274_v2 }
 0x1f6   : > { %v12600_v7 = vld [vmem:[%s14186_s23 + $0x86c] sm:$0xf0]  ;;  %v10385_v11 = vld [vmem:[%s14186_s23 + $0x960] sm:$0xf]  ;;  %v10658_v12 = vor.u32 %v12700_v1, %v10657_v0  ;;  %7536 = vmatpush.bf16.msra.mxu1 %v10402_v3 }
 0x1f7   : > { %v12632_v13 = vld [vmem:[%s14186_s23 + $0x96c] sm:$0xf0]  ;;  %v10513_v14 = vld [vmem:[%s14186_s23 + $0xa60] sm:$0xf]  ;;  %v10258_v18 = vor.u32 %v12600_v7, %v10257_v6  ;;  %7549 = vmatpush.bf16.msra.mxu2 %v10530_v5 }
 0x1f8   : > { %v12664_v15 = vld [vmem:[%s14186_s23 + $0xa6c] sm:$0xf0]  ;;  %v10641_v16 = vld [vmem:[%s14186_s23 + $0xb60] sm:$0xf]  ;;  %v10386_v19 = vor.u32 %v12632_v13, %v10385_v11  ;;  %7562 = vmatpush.bf16.msra.mxu3 %v10658_v12 }
 0x1f9   : > { %v12696_v17 = vld [vmem:[%s14186_s23 + $0xb6c] sm:$0xf0]  ;;  %v10514_v20 = vor.u32 %v12664_v15, %v10513_v14  ;;  %v10241_v21 = vld [vmem:[%s14186_s23 + $0x840] sm:$0xf]  ;;  %7524 = vmatpush.bf16.msra.mxu0 %v10258_v18 }
 0x1fa   : > { %v12596_v22 = vld [vmem:[%s14186_s23 + $0x84c] sm:$0xf0]  ;;  %v10369_v23 = vld [vmem:[%s14186_s23 + $0x940] sm:$0xf]  ;;  %v10642_v24 = vor.u32 %v12696_v17, %v10641_v16  ;;  %7537 = vmatpush.bf16.msra.mxu1 %v10386_v19 }
 0x1fb   : > { %v12628_v25 = vld [vmem:[%s14186_s23 + $0x94c] sm:$0xf0]  ;;  %v10497_v26 = vld [vmem:[%s14186_s23 + $0xa40] sm:$0xf]  ;;  %v10242_v33 = vor.u32 %v12596_v22, %v10241_v21  ;;  %7550 = vmatpush.bf16.msra.mxu2 %v10514_v20  ;;  %v14424_v20 = vld [vmem:[#allocation1] sm:$0xff] }
 0x1fc   : > { %v12660_v27 = vld [vmem:[%s14186_s23 + $0xa4c] sm:$0xf0]  ;;  %v10625_v31 = vld [vmem:[%s14186_s23 + $0xb40] sm:$0xf]  ;;  %v10370_v35 = vor.u32 %v12628_v25, %v10369_v23  ;;  %7563 = vmatpush.bf16.msra.mxu3 %v10642_v24 }
 0x1fd   : > { %v12692_v32 = vld [vmem:[%s14186_s23 + $0xb4c] sm:$0xf0]  ;;  %v10498_v36 = vor.u32 %v12660_v27, %v10497_v26  ;;  %v10225_v37 = vld [vmem:[%s14186_s23 + $0x820] sm:$0xf]  ;;  %7525 = vmatpush.bf16.msra.mxu0 %v10242_v33 }
 0x1fe   : > { %v12592_v38 = vld [vmem:[%s14186_s23 + $0x82c] sm:$0xf0]  ;;  %v10353_v39 = vld [vmem:[%s14186_s23 + $0x920] sm:$0xf]  ;;  %v10626_v40 = vor.u32 %v12692_v32, %v10625_v31  ;;  %7538 = vmatpush.bf16.msra.mxu1 %v10370_v35 }
 0x1ff   : > { %v12624_v41 = vld [vmem:[%s14186_s23 + $0x92c] sm:$0xf0]  ;;  %v10481_v42 = vld [vmem:[%s14186_s23 + $0xa20] sm:$0xf]  ;;  %v10226_v46 = vor.u32 %v12592_v38, %v10225_v37  ;;  %7551 = vmatpush.bf16.msra.mxu2 %v10498_v36 }
 0x200   : > { %v12656_v43 = vld [vmem:[%s14186_s23 + $0xa2c] sm:$0xf0]  ;;  %v10609_v44 = vld [vmem:[%s14186_s23 + $0xb20] sm:$0xf]  ;;  %v10354_v49 = vor.u32 %v12624_v41, %v10353_v39  ;;  %7564 = vmatpush.bf16.msra.mxu3 %v10626_v40 }
 0x201   : > { %v12688_v45 = vld [vmem:[%s14186_s23 + $0xb2c] sm:$0xf0]  ;;  %v10209_v47 = vld [vmem:[%s14186_s23 + $0x800] sm:$0xf]  ;;  %v10482_v50 = vor.u32 %v12656_v43, %v10481_v42  ;;  %7526 = vmatpush.bf16.msra.mxu0 %v10226_v46 }
 0x202   : > { %v12588_v48 = vld [vmem:[%s14186_s23 + $0x80c] sm:$0xf0]  ;;  %v10337_v51 = vld [vmem:[%s14186_s23 + $0x900] sm:$0xf]  ;;  %v10610_v54 = vor.u32 %v12688_v45, %v10609_v44  ;;  %7539 = vmatpush.bf16.msra.mxu1 %v10354_v49 }
 0x203   : > { %v12620_v52 = vld [vmem:[%s14186_s23 + $0x90c] sm:$0xf0]  ;;  %v10465_v53 = vld [vmem:[%s14186_s23 + $0xa00] sm:$0xf]  ;;  %v10210_v61 = vor.u32 %v12588_v48, %v10209_v47  ;;  %7552 = vmatpush.bf16.msra.mxu2 %v10482_v50 }
 0x204   : > { %v12652_v55 = vld [vmem:[%s14186_s23 + $0xa0c] sm:$0xf0]  ;;  %v10593_v56 = vld [vmem:[%s14186_s23 + $0xb00] sm:$0xf]  ;;  %v10338_v1 = vor.u32 %v12620_v52, %v10337_v51  ;;  %7565 = vmatpush.bf16.msra.mxu3 %v10610_v54 }
 0x205   : > { %v12684_v57 = vld [vmem:[%s14186_s23 + $0xb0c] sm:$0xf0]  ;;  %v10833_v58 = vld [vmem:[%s14186_s23 + $0xce0] sm:$0xf]  ;;  %v10466_v2 = vor.u32 %v12652_v55, %v10465_v53  ;;  %7527 = vmatpush.bf16.msra.mxu0 %v10210_v61 }
 0x206   : > { %v12744_v59 = vld [vmem:[%s14186_s23 + $0xcec] sm:$0xf0]  ;;  %v10961_v60 = vld [vmem:[%s14186_s23 + $0xde0] sm:$0xf]  ;;  %v10594_v6 = vor.u32 %v12684_v57, %v10593_v56  ;;  %7540 = vmatpush.bf16.msra.mxu1 %v10338_v1 }
 0x207   : > { %v12776_v62 = vld [vmem:[%s14186_s23 + $0xdec] sm:$0xf0]  ;;  %v11089_v63 = vld [vmem:[%s14186_s23 + $0xee0] sm:$0xf]  ;;  %v10834_v7 = vor.u32 %v12744_v59, %v10833_v58  ;;  %7553 = vmatpush.bf16.msra.mxu2 %v10466_v2 }
 0x208   : > { %v12808_v0 = vld [vmem:[%s14186_s23 + $0xeec] sm:$0xf0]  ;;  %v11217_v3 = vld [vmem:[%s14186_s23 + $0xfe0] sm:$0xf]  ;;  %v10962_v11 = vor.u32 %v12776_v62, %v10961_v60  ;;  %7566 = vmatpush.bf16.msra.mxu3 %v10594_v6  ;;  %7528 = vmatmul.bf16.vlgmr.msra.gmra.mxu0 %v14424_v20 }
 0x209   : > { %v12840_v5 = vld [vmem:[%s14186_s23 + $0xfec] sm:$0xf0]  ;;  %v11090_v12 = vor.u32 %v12808_v0, %v11089_v63  ;;  %v10817_v13 = vld [vmem:[%s14186_s23 + $0xcc0] sm:$0xf]  ;;  %7572 = vmatpush.bf16.msrb.mxu0 %v10834_v7 }
 0x20a   : > { %v12740_v14 = vld [vmem:[%s14186_s23 + $0xccc] sm:$0xf0]  ;;  %v10945_v15 = vld [vmem:[%s14186_s23 + $0xdc0] sm:$0xf]  ;;  %v11218_v16 = vor.u32 %v12840_v5, %v11217_v3  ;;  %7585 = vmatpush.bf16.msrb.mxu1 %v10962_v11 }
 0x20b   : > { %v12772_v17 = vld [vmem:[%s14186_s23 + $0xdcc] sm:$0xf0]  ;;  %v11073_v18 = vld [vmem:[%s14186_s23 + $0xec0] sm:$0xf]  ;;  %v10818_v26 = vor.u32 %v12740_v14, %v10817_v13  ;;  %7598 = vmatpush.bf16.msrb.mxu2 %v11090_v12 }
 0x20c   : > { %v12804_v19 = vld [vmem:[%s14186_s23 + $0xecc] sm:$0xf0]  ;;  %v11201_v21 = vld [vmem:[%s14186_s23 + $0xfc0] sm:$0xf]  ;;  %v10946_v27 = vor.u32 %v12772_v17, %v10945_v15  ;;  %7611 = vmatpush.bf16.msrb.mxu3 %v11218_v16 }
 0x20d   : > { %v12836_v22 = vld [vmem:[%s14186_s23 + $0xfcc] sm:$0xf0]  ;;  %v14428_v23 = vld [vmem:[#allocation1 + $0x12] sm:$0xff]  ;;  %v14432_v25 = vld [vmem:[#allocation1 + $0x1b] sm:$0xff]  ;;  %v11074_v31 = vor.u32 %v12804_v19, %v11073_v18  ;;  %7573 = vmatpush.bf16.msrb.mxu0 %v10818_v26 }
 0x20e   : > { %v14430_v24 = vld [vmem:[#allocation1 + $0x9] sm:$0xff]  ;;  %v10801_v32 = vld [vmem:[%s14186_s23 + $0xca0] sm:$0xf]  ;;  %v11202_v36 = vor.u32 %v12836_v22, %v11201_v21  ;;  %7554 = vmatmul.bf16.vlgmr.msra.gmra.mxu2 %v14428_v23  ;;  %7567 = vmatmul.bf16.vlgmr.msra.gmra.mxu3 %v14432_v25 }
 0x20f   : > { %v12736_v33 = vld [vmem:[%s14186_s23 + $0xcac] sm:$0xf0]  ;;  %v10929_v35 = vld [vmem:[%s14186_s23 + $0xda0] sm:$0xf]  ;;  %7541 = vmatmul.bf16.vlgmr.msra.gmra.mxu1 %v14430_v24  ;;  %7599 = vmatpush.bf16.msrb.mxu2 %v11074_v31 }
 0x210   : > { %v12768_v37 = vld [vmem:[%s14186_s23 + $0xdac] sm:$0xf0]  ;;  %v11057_v38 = vld [vmem:[%s14186_s23 + $0xea0] sm:$0xf]  ;;  %v10802_v42 = vor.u32 %v12736_v33, %v10801_v32  ;;  %7586 = vmatpush.bf16.msrb.mxu1 %v10946_v27  ;;  %7612 = vmatpush.bf16.msrb.mxu3 %v11202_v36 }
 0x211   : > { %v12800_v39 = vld [vmem:[%s14186_s23 + $0xeac] sm:$0xf0]  ;;  %v11185_v40 = vld [vmem:[%s14186_s23 + $0xfa0] sm:$0xf]  ;;  %v10930_v43 = vor.u32 %v12768_v37, %v10929_v35 }
 0x212   : > { %v12832_v41 = vld [vmem:[%s14186_s23 + $0xfac] sm:$0xf0]  ;;  %v11058_v44 = vor.u32 %v12800_v39, %v11057_v38  ;;  %v10785_v45 = vld [vmem:[%s14186_s23 + $0xc80] sm:$0xf]  ;;  %7574 = vmatpush.bf16.msrb.mxu0 %v10802_v42 }
 0x213   : > { %v12732_v46 = vld [vmem:[%s14186_s23 + $0xc8c] sm:$0xf0]  ;;  %v10913_v47 = vld [vmem:[%s14186_s23 + $0xd80] sm:$0xf]  ;;  %v11186_v48 = vor.u32 %v12832_v41, %v11185_v40 }
 0x214   : > { %v12764_v49 = vld [vmem:[%s14186_s23 + $0xd8c] sm:$0xf0]  ;;  %v11041_v50 = vld [vmem:[%s14186_s23 + $0xe80] sm:$0xf]  ;;  %v10786_v54 = vor.u32 %v12732_v46, %v10785_v45  ;;  %7587 = vmatpush.bf16.msrb.mxu1 %v10930_v43  ;;  %7600 = vmatpush.bf16.msrb.mxu2 %v11058_v44 }
 0x215   : > { %v12796_v51 = vld [vmem:[%s14186_s23 + $0xe8c] sm:$0xf0]  ;;  %v11169_v52 = vld [vmem:[%s14186_s23 + $0xf80] sm:$0xf]  ;;  %v10914_v55 = vor.u32 %v12764_v49, %v10913_v47  ;;  %7613 = vmatpush.bf16.msrb.mxu3 %v11186_v48 }
 0x216   : > { %v12828_v53 = vld [vmem:[%s14186_s23 + $0xf8c] sm:$0xf0]  ;;  %v11042_v56 = vor.u32 %v12796_v51, %v11041_v50  ;;  %v10769_v57 = vld [vmem:[%s14186_s23 + $0xc60] sm:$0xf]  ;;  %7575 = vmatpush.bf16.msrb.mxu0 %v10786_v54 }
 0x217   : > { %v12728_v58 = vld [vmem:[%s14186_s23 + $0xc6c] sm:$0xf0]  ;;  %v10897_v59 = vld [vmem:[%s14186_s23 + $0xd60] sm:$0xf]  ;;  %v11170_v60 = vor.u32 %v12828_v53, %v11169_v52 }
 0x218   : > { %v12760_v61 = vld [vmem:[%s14186_s23 + $0xd6c] sm:$0xf0]  ;;  %v11025_v62 = vld [vmem:[%s14186_s23 + $0xe60] sm:$0xf]  ;;  %v10770_v2 = vor.u32 %v12728_v58, %v10769_v57  ;;  %7588 = vmatpush.bf16.msrb.mxu1 %v10914_v55  ;;  %7601 = vmatpush.bf16.msrb.mxu2 %v11042_v56  ;;  %v14494_v56 = vld [vmem:[#allocation1 + $0x2d] sm:$0xff] }
 0x219   : > { %v12792_v63 = vld [vmem:[%s14186_s23 + $0xe6c] sm:$0xf0]  ;;  %v11153_v0 = vld [vmem:[%s14186_s23 + $0xf60] sm:$0xf]  ;;  %v10898_v3 = vor.u32 %v12760_v61, %v10897_v59  ;;  %7614 = vmatpush.bf16.msrb.mxu3 %v11170_v60  ;;  %v14496_v57 = vld [vmem:[#allocation1 + $0x3f] sm:$0xff] }
 0x21a   : > { %v12824_v1 = vld [vmem:[%s14186_s23 + $0xf6c] sm:$0xf0]  ;;  %v11026_v5 = vor.u32 %v12792_v63, %v11025_v62  ;;  %v10753_v6 = vld [vmem:[%s14186_s23 + $0xc40] sm:$0xf]  ;;  %7576 = vmatpush.bf16.msrb.mxu0 %v10770_v2  ;;  %v2640_v58 = vld [vmem:[%s16414_s0 + $0x10] sm:$0xff] }
 0x21b   : > { %v12724_v7 = vld [vmem:[%s14186_s23 + $0xc4c] sm:$0xf0]  ;;  %v10881_v11 = vld [vmem:[%s14186_s23 + $0xd40] sm:$0xf]  ;;  %v11154_v12 = vor.u32 %v12824_v1, %v11153_v0 }
 0x21c   : > { %v12756_v13 = vld [vmem:[%s14186_s23 + $0xd4c] sm:$0xf0]  ;;  %v11009_v14 = vld [vmem:[%s14186_s23 + $0xe40] sm:$0xf]  ;;  %v10754_v18 = vor.u32 %v12724_v7, %v10753_v6  ;;  %7589 = vmatpush.bf16.msrb.mxu1 %v10898_v3  ;;  %7602 = vmatpush.bf16.msrb.mxu2 %v11026_v5 }
 0x21d   : > { %v12788_v15 = vld [vmem:[%s14186_s23 + $0xe4c] sm:$0xf0]  ;;  %v11137_v16 = vld [vmem:[%s14186_s23 + $0xf40] sm:$0xf]  ;;  %v10882_v21 = vor.u32 %v12756_v13, %v10881_v11  ;;  %7615 = vmatpush.bf16.msrb.mxu3 %v11154_v12 }
 0x21e   : > { %v12820_v17 = vld [vmem:[%s14186_s23 + $0xf4c] sm:$0xf0]  ;;  %v10737_v19 = vld [vmem:[%s14186_s23 + $0xc20] sm:$0xf]  ;;  %v11010_v22 = vor.u32 %v12788_v15, %v11009_v14  ;;  %7577 = vmatpush.bf16.msrb.mxu0 %v10754_v18 }
 0x21f   : > { %v12720_v26 = vld [vmem:[%s14186_s23 + $0xc2c] sm:$0xf0]  ;;  %v10865_v27 = vld [vmem:[%s14186_s23 + $0xd20] sm:$0xf]  ;;  %v11138_v32 = vor.u32 %v12820_v17, %v11137_v16 }
 0x220   : > { %v12752_v31 = vld [vmem:[%s14186_s23 + $0xd2c] sm:$0xf0]  ;;  %v10993_v33 = vld [vmem:[%s14186_s23 + $0xe20] sm:$0xf]  ;;  %v10738_v40 = vor.u32 %v12720_v26, %v10737_v19  ;;  %7590 = vmatpush.bf16.msrb.mxu1 %v10882_v21  ;;  %7603 = vmatpush.bf16.msrb.mxu2 %v11010_v22 }
 0x221   : > { %v12784_v35 = vld [vmem:[%s14186_s23 + $0xe2c] sm:$0xf0]  ;;  %v11121_v36 = vld [vmem:[%s14186_s23 + $0xf20] sm:$0xf]  ;;  %v10866_v45 = vor.u32 %v12752_v31, %v10865_v27  ;;  %7616 = vmatpush.bf16.msrb.mxu3 %v11138_v32 }
 0x222   : > { %v12816_v37 = vld [vmem:[%s14186_s23 + $0xf2c] sm:$0xf0]  ;;  %v10721_v38 = vld [vmem:[%s14186_s23 + $0xc00] sm:$0xf]  ;;  %v10994_v46 = vor.u32 %v12784_v35, %v10993_v33  ;;  %7578 = vmatpush.bf16.msrb.mxu0 %v10738_v40 }
 0x223   : > { %v12716_v39 = vld [vmem:[%s14186_s23 + $0xc0c] sm:$0xf0]  ;;  %v10849_v41 = vld [vmem:[%s14186_s23 + $0xd00] sm:$0xf]  ;;  %v11122_v51 = vor.u32 %v12816_v37, %v11121_v36 }
 0x224   : > { %v12748_v42 = vld [vmem:[%s14186_s23 + $0xd0c] sm:$0xf0]  ;;  %v10977_v43 = vld [vmem:[%s14186_s23 + $0xe00] sm:$0xf]  ;;  %v10722_v59 = vor.u32 %v12716_v39, %v10721_v38  ;;  %7591 = vmatpush.bf16.msrb.mxu1 %v10866_v45  ;;  %7604 = vmatpush.bf16.msrb.mxu2 %v10994_v46 }
 0x225   : > { %v12780_v44 = vld [vmem:[%s14186_s23 + $0xe0c] sm:$0xf0]  ;;  %v11105_v47 = vld [vmem:[%s14186_s23 + $0xf00] sm:$0xf]  ;;  %v10850_v62 = vor.u32 %v12748_v42, %v10849_v41  ;;  %7617 = vmatpush.bf16.msrb.mxu3 %v11122_v51 }
 0x226   : > { %v12812_v48 = vld [vmem:[%s14186_s23 + $0xf0c] sm:$0xf0]  ;;  %v11345_v49 = vld [vmem:[%s14186_s23 + $0x10e0] sm:$0xf]  ;;  %v10978_v63 = vor.u32 %v12780_v44, %v10977_v43  ;;  %7579 = vmatpush.bf16.msrb.mxu0 %v10722_v59 }
 0x227   : > { %v12872_v50 = vld [vmem:[%s14186_s23 + $0x10ec] sm:$0xf0]  ;;  %v11473_v52 = vld [vmem:[%s14186_s23 + $0x11e0] sm:$0xf]  ;;  %v11106_v2 = vor.u32 %v12812_v48, %v11105_v47 }
 0x228   : > { %v12904_v53 = vld [vmem:[%s14186_s23 + $0x11ec] sm:$0xf0]  ;;  %v14492_v55 = vld [vmem:[#allocation1 + $0x36] sm:$0xff]  ;;  %v11346_v3 = vor.u32 %v12872_v50, %v11345_v49  ;;  %7592 = vmatpush.bf16.msrb.mxu1 %v10850_v62  ;;  %7605 = vmatpush.bf16.msrb.mxu2 %v10978_v63 }
 0x229   : > { %v14490_v54 = vld [vmem:[#allocation1 + $0x24] sm:$0xff]  ;;  %v11601_v60 = vld [vmem:[%s14186_s23 + $0x12e0] sm:$0xf]  ;;  %v11474_v5 = vor.u32 %v12904_v53, %v11473_v52  ;;  %7618 = vmatpush.bf16.msrb.mxu3 %v11106_v2 }
 0x22a   : > { %v12936_v61 = vld [vmem:[%s14186_s23 + $0x12ec] sm:$0xf0]  ;;  %3457 = vst [vmem:[#allocation1] ss:$9 sm:$0xff] %v2640_v58  ;;  %v11729_v0 = vld [vmem:[%s14186_s23 + $0x13e0] sm:$0xf]  ;;  %7624 = vmatpush.bf16.msra.mxu0 %v11346_v3 }
 0x22b   : > { %v12968_v1 = vld [vmem:[%s14186_s23 + $0x13ec] sm:$0xf0]  ;;  %v11602_v6 = vor.u32 %v12936_v61, %v11601_v60  ;;  %v11329_v7 = vld [vmem:[%s14186_s23 + $0x10c0] sm:$0xf]  ;;  %7580 = vmatmul.bf16.vlgmr.msrb.gmra.mxu0 %v14490_v54  ;;  %7606 = vmatmul.bf16.vlgmr.msrb.gmra.mxu2 %v14492_v55 }
 0x22c   : > { %v12868_v11 = vld [vmem:[%s14186_s23 + $0x10cc] sm:$0xf0]  ;;  %v11457_v12 = vld [vmem:[%s14186_s23 + $0x11c0] sm:$0xf]  ;;  %v11730_v13 = vor.u32 %v12968_v1, %v11729_v0  ;;  %7637 = vmatpush.bf16.msra.mxu1 %v11474_v5  ;;  %7619 = vmatmul.bf16.vlgmr.msrb.gmra.mxu3 %v14496_v57 }
 0x22d   : > { %v12900_v14 = vld [vmem:[%s14186_s23 + $0x11cc] sm:$0xf0]  ;;  %v11585_v15 = vld [vmem:[%s14186_s23 + $0x12c0] sm:$0xf]  ;;  %v11330_v19 = vor.u32 %v12868_v11, %v11329_v7  ;;  %7650 = vmatpush.bf16.msra.mxu2 %v11602_v6  ;;  %7593 = vmatmul.bf16.vlgmr.msrb.gmra.mxu1 %v14494_v56 }
 0x22e   : > { %v12932_v16 = vld [vmem:[%s14186_s23 + $0x12cc] sm:$0xf0]  ;;  %v11713_v17 = vld [vmem:[%s14186_s23 + $0x13c0] sm:$0xf]  ;;  %v11458_v21 = vor.u32 %v12900_v14, %v11457_v12  ;;  %7663 = vmatpush.bf16.msra.mxu3 %v11730_v13 }
 0x22f   : > { %v12964_v18 = vld [vmem:[%s14186_s23 + $0x13cc] sm:$0xf0]  ;;  %v11586_v22 = vor.u32 %v12932_v16, %v11585_v15  ;;  %v11313_v26 = vld [vmem:[%s14186_s23 + $0x10a0] sm:$0xf]  ;;  %7625 = vmatpush.bf16.msra.mxu0 %v11330_v19 }
 0x230   : > { %v12864_v27 = vld [vmem:[%s14186_s23 + $0x10ac] sm:$0xf0]  ;;  %v11441_v31 = vld [vmem:[%s14186_s23 + $0x11a0] sm:$0xf]  ;;  %v11714_v32 = vor.u32 %v12964_v18, %v11713_v17  ;;  %7638 = vmatpush.bf16.msra.mxu1 %v11458_v21 }
 0x231   : > { %v12896_v33 = vld [vmem:[%s14186_s23 + $0x11ac] sm:$0xf0]  ;;  %v11569_v35 = vld [vmem:[%s14186_s23 + $0x12a0] sm:$0xf]  ;;  %v11314_v39 = vor.u32 %v12864_v27, %v11313_v26  ;;  %7651 = vmatpush.bf16.msra.mxu2 %v11586_v22 }
 0x232   : > { %v12928_v36 = vld [vmem:[%s14186_s23 + $0x12ac] sm:$0xf0]  ;;  %v11697_v37 = vld [vmem:[%s14186_s23 + $0x13a0] sm:$0xf]  ;;  %v11442_v40 = vor.u32 %v12896_v33, %v11441_v31  ;;  %7664 = vmatpush.bf16.msra.mxu3 %v11714_v32 }
 0x233   : > { %v12960_v38 = vld [vmem:[%s14186_s23 + $0x13ac] sm:$0xf0]  ;;  %v11570_v41 = vor.u32 %v12928_v36, %v11569_v35  ;;  %v11297_v42 = vld [vmem:[%s14186_s23 + $0x1080] sm:$0xf]  ;;  %7626 = vmatpush.bf16.msra.mxu0 %v11314_v39 }
 0x234   : > { %v12860_v43 = vld [vmem:[%s14186_s23 + $0x108c] sm:$0xf0]  ;;  %v11425_v44 = vld [vmem:[%s14186_s23 + $0x1180] sm:$0xf]  ;;  %v11698_v45 = vor.u32 %v12960_v38, %v11697_v37  ;;  %7639 = vmatpush.bf16.msra.mxu1 %v11442_v40 }
 0x235   : > { %v12892_v46 = vld [vmem:[%s14186_s23 + $0x118c] sm:$0xf0]  ;;  %v11553_v47 = vld [vmem:[%s14186_s23 + $0x1280] sm:$0xf]  ;;  %v11298_v51 = vor.u32 %v12860_v43, %v11297_v42  ;;  %7652 = vmatpush.bf16.msra.mxu2 %v11570_v41 }
 0x236   : > { %v12924_v48 = vld [vmem:[%s14186_s23 + $0x128c] sm:$0xf0]  ;;  %v11681_v49 = vld [vmem:[%s14186_s23 + $0x1380] sm:$0xf]  ;;  %v11426_v52 = vor.u32 %v12892_v46, %v11425_v44  ;;  %7665 = vmatpush.bf16.msra.mxu3 %v11698_v45 }
 0x237   : > { %v12956_v50 = vld [vmem:[%s14186_s23 + $0x138c] sm:$0xf0]  ;;  %v11554_v53 = vor.u32 %v12924_v48, %v11553_v47  ;;  %v11281_v58 = vld [vmem:[%s14186_s23 + $0x1060] sm:$0xf]  ;;  %7627 = vmatpush.bf16.msra.mxu0 %v11298_v51 }
 0x238   : > { %v12856_v59 = vld [vmem:[%s14186_s23 + $0x106c] sm:$0xf0]  ;;  %v11409_v60 = vld [vmem:[%s14186_s23 + $0x1160] sm:$0xf]  ;;  %v11682_v61 = vor.u32 %v12956_v50, %v11681_v49  ;;  %7640 = vmatpush.bf16.msra.mxu1 %v11426_v52 }
 0x239   : > { %v12888_v62 = vld [vmem:[%s14186_s23 + $0x116c] sm:$0xf0]  ;;  %v11537_v63 = vld [vmem:[%s14186_s23 + $0x1260] sm:$0xf]  ;;  %v11282_v3 = vor.u32 %v12856_v59, %v11281_v58  ;;  %7653 = vmatpush.bf16.msra.mxu2 %v11554_v53 }
 0x23a   : > { %v12920_v0 = vld [vmem:[%s14186_s23 + $0x126c] sm:$0xf0]  ;;  %v11665_v1 = vld [vmem:[%s14186_s23 + $0x1360] sm:$0xf]  ;;  %v11410_v5 = vor.u32 %v12888_v62, %v11409_v60  ;;  %7666 = vmatpush.bf16.msra.mxu3 %v11682_v61 }
 0x23b   : > { %v12952_v2 = vld [vmem:[%s14186_s23 + $0x136c] sm:$0xf0]  ;;  %v11538_v6 = vor.u32 %v12920_v0, %v11537_v63  ;;  %v11265_v7 = vld [vmem:[%s14186_s23 + $0x1040] sm:$0xf]  ;;  %7628 = vmatpush.bf16.msra.mxu0 %v11282_v3 }
 0x23c   : > { %v12852_v11 = vld [vmem:[%s14186_s23 + $0x104c] sm:$0xf0]  ;;  %v11393_v12 = vld [vmem:[%s14186_s23 + $0x1140] sm:$0xf]  ;;  %v11666_v13 = vor.u32 %v12952_v2, %v11665_v1  ;;  %7641 = vmatpush.bf16.msra.mxu1 %v11410_v5 }
 0x23d   : > { %v12884_v14 = vld [vmem:[%s14186_s23 + $0x114c] sm:$0xf0]  ;;  %v11521_v15 = vld [vmem:[%s14186_s23 + $0x1240] sm:$0xf]  ;;  %v11266_v19 = vor.u32 %v12852_v11, %v11265_v7  ;;  %7654 = vmatpush.bf16.msra.mxu2 %v11538_v6 }
 0x23e   : > { %v12916_v16 = vld [vmem:[%s14186_s23 + $0x124c] sm:$0xf0]  ;;  %v11649_v17 = vld [vmem:[%s14186_s23 + $0x1340] sm:$0xf]  ;;  %v11394_v21 = vor.u32 %v12884_v14, %v11393_v12  ;;  %7667 = vmatpush.bf16.msra.mxu3 %v11666_v13 }
 0x23f   : > { %v12948_v18 = vld [vmem:[%s14186_s23 + $0x134c] sm:$0xf0]  ;;  %v11522_v22 = vor.u32 %v12916_v16, %v11521_v15  ;;  %v11249_v26 = vld [vmem:[%s14186_s23 + $0x1020] sm:$0xf]  ;;  %7629 = vmatpush.bf16.msra.mxu0 %v11266_v19 }
 0x240   : > { %v12848_v27 = vld [vmem:[%s14186_s23 + $0x102c] sm:$0xf0]  ;;  %v11377_v31 = vld [vmem:[%s14186_s23 + $0x1120] sm:$0xf]  ;;  %v11650_v32 = vor.u32 %v12948_v18, %v11649_v17  ;;  %7642 = vmatpush.bf16.msra.mxu1 %v11394_v21  ;;  %v14580_v17 = vld [vmem:[#allocation1] sm:$0xff] }
 0x241   : > { %v12880_v33 = vld [vmem:[%s14186_s23 + $0x112c] sm:$0xf0]  ;;  %v11505_v35 = vld [vmem:[%s14186_s23 + $0x1220] sm:$0xf]  ;;  %v11250_v39 = vor.u32 %v12848_v27, %v11249_v26  ;;  %7655 = vmatpush.bf16.msra.mxu2 %v11522_v22 }
 0x242   : > { %v12912_v36 = vld [vmem:[%s14186_s23 + $0x122c] sm:$0xf0]  ;;  %v11633_v37 = vld [vmem:[%s14186_s23 + $0x1320] sm:$0xf]  ;;  %v11378_v42 = vor.u32 %v12880_v33, %v11377_v31  ;;  %7668 = vmatpush.bf16.msra.mxu3 %v11650_v32 }
 0x243   : > { %v12944_v38 = vld [vmem:[%s14186_s23 + $0x132c] sm:$0xf0]  ;;  %v11233_v40 = vld [vmem:[%s14186_s23 + $0x1000] sm:$0xf]  ;;  %v11506_v43 = vor.u32 %v12912_v36, %v11505_v35  ;;  %7630 = vmatpush.bf16.msra.mxu0 %v11250_v39 }
 0x244   : > { %v12844_v41 = vld [vmem:[%s14186_s23 + $0x100c] sm:$0xf0]  ;;  %v11361_v44 = vld [vmem:[%s14186_s23 + $0x1100] sm:$0xf]  ;;  %v11634_v47 = vor.u32 %v12944_v38, %v11633_v37  ;;  %7643 = vmatpush.bf16.msra.mxu1 %v11378_v42 }
 0x245   : > { %v12876_v45 = vld [vmem:[%s14186_s23 + $0x110c] sm:$0xf0]  ;;  %v11489_v46 = vld [vmem:[%s14186_s23 + $0x1200] sm:$0xf]  ;;  %v11234_v58 = vor.u32 %v12844_v41, %v11233_v40  ;;  %7656 = vmatpush.bf16.msra.mxu2 %v11506_v43 }
 0x246   : > { %v12908_v48 = vld [vmem:[%s14186_s23 + $0x120c] sm:$0xf0]  ;;  %v11617_v49 = vld [vmem:[%s14186_s23 + $0x1300] sm:$0xf]  ;;  %v11362_v62 = vor.u32 %v12876_v45, %v11361_v44  ;;  %7669 = vmatpush.bf16.msra.mxu3 %v11634_v47 }
 0x247   : > { %v12940_v50 = vld [vmem:[%s14186_s23 + $0x130c] sm:$0xf0]  ;;  %v11857_v51 = vld [vmem:[%s14186_s23 + $0x14e0] sm:$0xf]  ;;  %v11490_v63 = vor.u32 %v12908_v48, %v11489_v46  ;;  %7631 = vmatpush.bf16.msra.mxu0 %v11234_v58 }
 0x248   : > { %v13000_v52 = vld [vmem:[%s14186_s23 + $0x14ec] sm:$0xf0]  ;;  %v11985_v53 = vld [vmem:[%s14186_s23 + $0x15e0] sm:$0xf]  ;;  %v11618_v2 = vor.u32 %v12940_v50, %v11617_v49  ;;  %7644 = vmatpush.bf16.msra.mxu1 %v11362_v62 }
 0x249   : > { %v13032_v59 = vld [vmem:[%s14186_s23 + $0x15ec] sm:$0xf0]  ;;  %v12113_v60 = vld [vmem:[%s14186_s23 + $0x16e0] sm:$0xf]  ;;  %v11858_v3 = vor.u32 %v13000_v52, %v11857_v51  ;;  %7657 = vmatpush.bf16.msra.mxu2 %v11490_v63 }
 0x24a   : > { %v13064_v61 = vld [vmem:[%s14186_s23 + $0x16ec] sm:$0xf0]  ;;  %v12241_v0 = vld [vmem:[%s14186_s23 + $0x17e0] sm:$0xf]  ;;  %v11986_v5 = vor.u32 %v13032_v59, %v11985_v53  ;;  %7670 = vmatpush.bf16.msra.mxu3 %v11618_v2  ;;  %7632 = vmatmul.bf16.vlgmr.msra.gmra.mxu0 %v14580_v17 }
 0x24b   : > { %v13096_v1 = vld [vmem:[%s14186_s23 + $0x17ec] sm:$0xf0]  ;;  %v12114_v6 = vor.u32 %v13064_v61, %v12113_v60  ;;  %v11841_v7 = vld [vmem:[%s14186_s23 + $0x14c0] sm:$0xf]  ;;  %7676 = vmatpush.bf16.msrb.mxu0 %v11858_v3 }
 0x24c   : > { %v12996_v11 = vld [vmem:[%s14186_s23 + $0x14cc] sm:$0xf0]  ;;  %v11969_v12 = vld [vmem:[%s14186_s23 + $0x15c0] sm:$0xf]  ;;  %v12242_v13 = vor.u32 %v13096_v1, %v12241_v0  ;;  %7689 = vmatpush.bf16.msrb.mxu1 %v11986_v5 }
 0x24d   : > { %v13028_v14 = vld [vmem:[%s14186_s23 + $0x15cc] sm:$0xf0]  ;;  %v12097_v15 = vld [vmem:[%s14186_s23 + $0x16c0] sm:$0xf]  ;;  %v11842_v27 = vor.u32 %v12996_v11, %v11841_v7  ;;  %7702 = vmatpush.bf16.msrb.mxu2 %v12114_v6  ;;  %v3426_v11 = vld [vmem:[%s14625_s8] sm:$0xf] }
 0x24e   : > { %v13060_v16 = vld [vmem:[%s14186_s23 + $0x16cc] sm:$0xf0]  ;;  %v12225_v18 = vld [vmem:[%s14186_s23 + $0x17c0] sm:$0xf]  ;;  %v11970_v31 = vor.u32 %v13028_v14, %v11969_v12  ;;  %7715 = vmatpush.bf16.msrb.mxu3 %v12242_v13  ;;  %v14638_v14 = vld [vmem:[#allocation1 + $0x2d] sm:$0xff] }
 0x24f   : > { %v13092_v19 = vld [vmem:[%s14186_s23 + $0x17cc] sm:$0xf0]  ;;  %v14590_v21 = vld [vmem:[#allocation1 + $0x12] sm:$0xff]  ;;  %v14594_v26 = vld [vmem:[#allocation1 + $0x1b] sm:$0xff]  ;;  %v12098_v32 = vor.u32 %v13060_v16, %v12097_v15  ;;  %7677 = vmatpush.bf16.msrb.mxu0 %v11842_v27 }
 0x250   : > { %v14592_v22 = vld [vmem:[#allocation1 + $0x9] sm:$0xff]  ;;  %v11825_v33 = vld [vmem:[%s14186_s23 + $0x14a0] sm:$0xf]  ;;  %v12226_v37 = vor.u32 %v13092_v19, %v12225_v18  ;;  %7658 = vmatmul.bf16.vlgmr.msra.gmra.mxu2 %v14590_v21  ;;  %7671 = vmatmul.bf16.vlgmr.msra.gmra.mxu3 %v14594_v26  ;;  %v14640_v15 = vld [vmem:[#allocation1 + $0x3f] sm:$0xff] }
 0x251   : > { %v12992_v35 = vld [vmem:[%s14186_s23 + $0x14ac] sm:$0xf0]  ;;  %v11953_v36 = vld [vmem:[%s14186_s23 + $0x15a0] sm:$0xf]  ;;  %7645 = vmatmul.bf16.vlgmr.msra.gmra.mxu1 %v14592_v22  ;;  %7703 = vmatpush.bf16.msrb.mxu2 %v12098_v32 }
 0x252   : > { %v13024_v38 = vld [vmem:[%s14186_s23 + $0x15ac] sm:$0xf0]  ;;  %v12081_v39 = vld [vmem:[%s14186_s23 + $0x16a0] sm:$0xf]  ;;  %v11826_v43 = vor.u32 %v12992_v35, %v11825_v33  ;;  %7690 = vmatpush.bf16.msrb.mxu1 %v11970_v31  ;;  %7716 = vmatpush.bf16.msrb.mxu3 %v12226_v37  ;;  %v3428_v35 = vperm.slane %v3426_v11, 0 }
 0x253   : > { %v13056_v40 = vld [vmem:[%s14186_s23 + $0x16ac] sm:$0xf0]  ;;  %v12209_v41 = vld [vmem:[%s14186_s23 + $0x17a0] sm:$0xf]  ;;  %v11954_v45 = vor.u32 %v13024_v38, %v11953_v36 }
 0x254   : > { %v13088_v42 = vld [vmem:[%s14186_s23 + $0x17ac] sm:$0xf0]  ;;  %v11809_v44 = vld [vmem:[%s14186_s23 + $0x1480] sm:$0xf]  ;;  %v12082_v46 = vor.u32 %v13056_v40, %v12081_v39  ;;  %7678 = vmatpush.bf16.msrb.mxu0 %v11826_v43  ;;  %v7425_v43 = vpop.f32.mrf.mxu0 }
 0x255   : > { %v12988_v47 = vld [vmem:[%s14186_s23 + $0x148c] sm:$0xf0]  ;;  %v11937_v48 = vld [vmem:[%s14186_s23 + $0x1580] sm:$0xf]  ;;  %v12210_v50 = vor.u32 %v13088_v42, %v12209_v41 }
 0x256   : > { %v13020_v49 = vld [vmem:[%s14186_s23 + $0x158c] sm:$0xf0]  ;;  %v12065_v51 = vld [vmem:[%s14186_s23 + $0x1680] sm:$0xf]  ;;  %v11810_v61 = vor.u32 %v12988_v47, %v11809_v44  ;;  %7691 = vmatpush.bf16.msrb.mxu1 %v11954_v45  ;;  %7704 = vmatpush.bf16.msrb.mxu2 %v12082_v46 }
 0x257   : > { %v13052_v52 = vld [vmem:[%s14186_s23 + $0x168c] sm:$0xf0]  ;;  %v12193_v53 = vld [vmem:[%s14186_s23 + $0x1780] sm:$0xf]  ;;  %v11938_v1 = vor.u32 %v13020_v49, %v11937_v48  ;;  %7717 = vmatpush.bf16.msrb.mxu3 %v12210_v50  ;;  %v7426_v49 = vadd.f32 %v7425_v43, %v3428_v35  ;;  %v7438_v50 = vpop.f32.mrf.mxu1  ;;  %v12358_v35 = vld [vmem:[%s14186_s23 + $0xe4] sm:$0xf] }
 0x258   : > { %v13084_v58 = vld [vmem:[%s14186_s23 + $0x178c] sm:$0xf0]  ;;  %v11793_v59 = vld [vmem:[%s14186_s23 + $0x1460] sm:$0xf]  ;;  %v12066_v2 = vor.u32 %v13052_v52, %v12065_v51  ;;  %7679 = vmatpush.bf16.msrb.mxu0 %v11810_v61 }
 0x259   : > { %v12984_v60 = vld [vmem:[%s14186_s23 + $0x146c] sm:$0xf0]  ;;  %v11921_v62 = vld [vmem:[%s14186_s23 + $0x1560] sm:$0xf]  ;;  %v12194_v7 = vor.u32 %v13084_v58, %v12193_v53  ;;  %v7439_v61 = vadd.f32 %v7438_v50, %v7426_v49 }
 0x25a   : > { %v13016_v63 = vld [vmem:[%s14186_s23 + $0x156c] sm:$0xf0]  ;;  %v12049_v0 = vld [vmem:[%s14186_s23 + $0x1660] sm:$0xf]  ;;  %v11794_v18 = vor.u32 %v12984_v60, %v11793_v59  ;;  %7692 = vmatpush.bf16.msrb.mxu1 %v11938_v1  ;;  %7705 = vmatpush.bf16.msrb.mxu2 %v12066_v2 }
 0x25b   : > { %v13048_v3 = vld [vmem:[%s14186_s23 + $0x166c] sm:$0xf0]  ;;  %v12177_v5 = vld [vmem:[%s14186_s23 + $0x1760] sm:$0xf]  ;;  %v11922_v27 = vor.u32 %v13016_v63, %v11921_v62  ;;  %7718 = vmatpush.bf16.msrb.mxu3 %v12194_v7  ;;  %v7451_v7 = vpop.f32.mrf.mxu2 }
 0x25c   : > { %v13080_v6 = vld [vmem:[%s14186_s23 + $0x176c] sm:$0xf0]  ;;  %v14636_v13 = vld [vmem:[#allocation1 + $0x36] sm:$0xff]  ;;  %v12050_v31 = vor.u32 %v13048_v3, %v12049_v0  ;;  %7680 = vmatpush.bf16.msrb.mxu0 %v11794_v18 }
 0x25d   : > { %v14634_v12 = vld [vmem:[#allocation1 + $0x24] sm:$0xff]  ;;  %v2641_v16 = vld [vmem:[%s16414_s0 + $0x18] sm:$0x1]  ;;  %v12178_v36 = vor.u32 %v13080_v6, %v12177_v5 }
 0x25e   : > { %v11777_v19 = vld [vmem:[%s14186_s23 + $0x1440] sm:$0xf]  ;;  %3467 = vst [vmem:[#allocation1] ss:$9 sm:$0xff] %v2641_v16  ;;  %v12980_v32 = vld [vmem:[%s14186_s23 + $0x144c] sm:$0xf0]  ;;  %7693 = vmatpush.bf16.msrb.mxu1 %v11922_v27  ;;  %7706 = vmatpush.bf16.msrb.mxu2 %v12050_v31  ;;  %v7452_v27 = vadd.f32 %v7451_v7, %v7439_v61  ;;  %v7464_v31 = vpop.f32.mrf.mxu3 }
 0x25f   : > { %v11905_v33 = vld [vmem:[%s14186_s23 + $0x1540] sm:$0xf]  ;;  %v13012_v37 = vld [vmem:[%s14186_s23 + $0x154c] sm:$0xf0]  ;;  %v11778_v42 = vor.u32 %v12980_v32, %v11777_v19  ;;  %7719 = vmatpush.bf16.msrb.mxu3 %v12178_v36  ;;  %v9411_v61 = vld [vmem:[%s14186_s23 + $0x1d0] sm:$0xf0] }
 0x260   : > { %v12033_v38 = vld [vmem:[%s14186_s23 + $0x1640] sm:$0xf]  ;;  %v13044_v39 = vld [vmem:[%s14186_s23 + $0x164c] sm:$0xf0]  ;;  %v11906_v44 = vor.u32 %v13012_v37, %v11905_v33  ;;  %v9299_v37 = vld [vmem:[%s14186_s23 + $0xf0] sm:$0xf0] }
 0x261   : > { %v12161_v40 = vld [vmem:[%s14186_s23 + $0x1740] sm:$0xf]  ;;  %v13076_v41 = vld [vmem:[%s14186_s23 + $0x174c] sm:$0xf0]  ;;  %v12034_v45 = vor.u32 %v13044_v39, %v12033_v38  ;;  %7681 = vmatpush.bf16.msrb.mxu0 %v11778_v42  ;;  %v12390_v38 = vld [vmem:[%s14186_s23 + $0x1e4] sm:$0xf]  ;;  %v9302_v49 = vor.u32 %v12358_v35, %v9299_v37 }
 0x262   : > { %v11761_v46 = vld [vmem:[%s14186_s23 + $0x1420] sm:$0xf]  ;;  %v12976_v47 = vld [vmem:[%s14186_s23 + $0x142c] sm:$0xf0]  ;;  %v12162_v51 = vor.u32 %v13076_v41, %v12161_v40  ;;  %7694 = vmatpush.bf16.msrb.mxu1 %v11906_v44  ;;  %v9427_v39 = vld [vmem:[%s14186_s23 + $0x1f0] sm:$0xf0]  ;;  %v14675_v40 = vadd.f32 %v7464_v31, %v7452_v27  ;;  %v7427_v41 = vpop.f32.mrf.mxu0 }
 0x263   : > { %v11889_v48 = vld [vmem:[%s14186_s23 + $0x1520] sm:$0xf]  ;;  %v13008_v52 = vld [vmem:[%s14186_s23 + $0x152c] sm:$0xf0]  ;;  %v11762_v62 = vor.u32 %v12976_v47, %v11761_v46  ;;  %7707 = vmatpush.bf16.msrb.mxu2 %v12034_v45  ;;  %v12422_v44 = vld [vmem:[%s14186_s23 + $0x2e4] sm:$0xf]  ;;  %v7440_v46 = vpop.f32.mrf.mxu1  ;;  %v9430_v50 = vor.u32 %v12390_v38, %v9427_v39 }
 0x264   : > { %v12017_v53 = vld [vmem:[%s14186_s23 + $0x1620] sm:$0xf]  ;;  %v13040_v58 = vld [vmem:[%s14186_s23 + $0x162c] sm:$0xf0]  ;;  %v11890_v1 = vor.u32 %v13008_v52, %v11889_v48  ;;  %7720 = vmatpush.bf16.msrb.mxu3 %v12162_v51  ;;  %v9555_v45 = vld [vmem:[%s14186_s23 + $0x2f0] sm:$0xf0] }
 0x265   : > { %v12145_v59 = vld [vmem:[%s14186_s23 + $0x1720] sm:$0xf]  ;;  %v13072_v60 = vld [vmem:[%s14186_s23 + $0x172c] sm:$0xf0]  ;;  %v12018_v2 = vor.u32 %v13040_v58, %v12017_v53  ;;  %7682 = vmatpush.bf16.msrb.mxu0 %v11762_v62  ;;  %v12354_v53 = vld [vmem:[%s14186_s23 + $0xc4] sm:$0xf]  ;;  %v9558_v58 = vor.u32 %v12422_v44, %v9555_v45 }
 0x266   : > { %v11745_v63 = vld [vmem:[%s14186_s23 + $0x1400] sm:$0xf]  ;;  %v12972_v0 = vld [vmem:[%s14186_s23 + $0x140c] sm:$0xf0]  ;;  %v12146_v11 = vor.u32 %v13072_v60, %v12145_v59  ;;  %7695 = vmatpush.bf16.msrb.mxu1 %v11890_v1  ;;  %v9283_v59 = vld [vmem:[%s14186_s23 + $0xd0] sm:$0xf0] }
 0x267   : > { %v11873_v3 = vld [vmem:[%s14186_s23 + $0x1500] sm:$0xf]  ;;  %v13004_v5 = vld [vmem:[%s14186_s23 + $0x150c] sm:$0xf0]  ;;  %v11746_v36 = vor.u32 %v12972_v0, %v11745_v63  ;;  %7708 = vmatpush.bf16.msrb.mxu2 %v12018_v2  ;;  %v12386_v60 = vld [vmem:[%s14186_s23 + $0x1c4] sm:$0xf]  ;;  %v7453_v0 = vpop.f32.mrf.mxu2  ;;  %v7466_v2 = vpop.f32.mrf.mxu3 }
 0x268   : > { %v12001_v6 = vld [vmem:[%s14186_s23 + $0x1600] sm:$0xf]  ;;  %v13036_v16 = vld [vmem:[%s14186_s23 + $0x160c] sm:$0xf0]  ;;  %v11874_v42 = vor.u32 %v13004_v5, %v11873_v3  ;;  %7721 = vmatpush.bf16.msrb.mxu3 %v12146_v11  ;;  %v12418_v62 = vld [vmem:[%s14186_s23 + $0x2c4] sm:$0xf]  ;;  %v9286_v3 = vor.u32 %v12354_v53, %v9283_v59  ;;  %v9414_v5 = vor.u32 %v12386_v60, %v9411_v61 }
 0x269   : > { %v12129_v18 = vld [vmem:[%s14186_s23 + $0x1700] sm:$0xf]  ;;  %v13068_v19 = vld [vmem:[%s14186_s23 + $0x170c] sm:$0xf0]  ;;  %v12002_v43 = vor.u32 %v13036_v16, %v12001_v6  ;;  %7683 = vmatpush.bf16.msrb.mxu0 %v11746_v36  ;;  %v9539_v63 = vld [vmem:[%s14186_s23 + $0x2d0] sm:$0xf0] }
 0x26a   : > { %v12305_v32 = vld [vmem:[%s14186_s23 + $0x1860] sm:$0xf]  ;;  %v13112_v33 = vld [vmem:[%s14186_s23 + $0x186c] sm:$0xf0]  ;;  %v12130_v47 = vor.u32 %v13068_v19, %v12129_v18  ;;  %7696 = vmatpush.bf16.msrb.mxu1 %v11874_v42  ;;  %v12350_v11 = vld [vmem:[%s14186_s23 + $0xa4] sm:$0xf]  ;;  %v9542_v16 = vor.u32 %v12418_v62, %v9539_v63 }
 0x26b   : > { %v12306_v48 = vor.u32 %v13112_v33, %v12305_v32  ;;  %v12289_v51 = vld [vmem:[%s14186_s23 + $0x1840] sm:$0xf]  ;;  %v13108_v52 = vld [vmem:[%s14186_s23 + $0x184c] sm:$0xf0]  ;;  %7709 = vmatpush.bf16.msrb.mxu2 %v12002_v43  ;;  %v9267_v18 = vld [vmem:[%s14186_s23 + $0xb0] sm:$0xf0]  ;;  %v7490_v60 = vpop.f32.mrf.mxu1 }
 0x26c   : > { %7722 = vmatpush.bf16.msrb.mxu3 %v12130_v47  ;;  %v12290_v1 = vor.u32 %v13108_v52, %v12289_v51  ;;  %v12273_v6 = vld [vmem:[%s14186_s23 + $0x1820] sm:$0xf]  ;;  %v13104_v7 = vld [vmem:[%s14186_s23 + $0x182c] sm:$0xf0]  ;;  %7684 = vmatmul.bf16.vlgmr.msrb.gmra.mxu0 %v14634_v12  ;;  %v12382_v19 = vld [vmem:[%s14186_s23 + $0x1a4] sm:$0xf]  ;;  %v9270_v36 = vor.u32 %v12350_v11, %v9267_v18 }
 0x26d   : > { %7732 = vmatpush.bf16.msra.mxu0 %v12306_v48  ;;  %v9395_v27 = vld [vmem:[%s14186_s23 + $0x1b0] sm:$0xf0]  ;;  %7697 = vmatmul.bf16.vlgmr.msrb.gmra.mxu1 %v14638_v14  ;;  %v12414_v31 = vld [vmem:[%s14186_s23 + $0x2a4] sm:$0xf]  ;;  %v12274_v33 = vor.u32 %v13104_v7, %v12273_v6  ;;  %v12257_v35 = vld [vmem:[%s14186_s23 + $0x1800] sm:$0xf] }
 0x26e   : > { %7741 = vmatpush.bf16.msra.mxu1 %v9302_v49  ;;  %7710 = vmatmul.bf16.vlgmr.msrb.gmra.mxu2 %v14636_v13  ;;  %v9523_v32 = vld [vmem:[%s14186_s23 + $0x2b0] sm:$0xf0]  ;;  %v9398_v37 = vor.u32 %v12382_v19, %v9395_v27  ;;  %v13100_v38 = vld [vmem:[%s14186_s23 + $0x180c] sm:$0xf0]  ;;  %v12346_v39 = vld [vmem:[%s14186_s23 + $0x84] sm:$0xf] }
 0x26f   : > { %7754 = vmatpush.bf16.msra.mxu2 %v9430_v50  ;;  %7723 = vmatmul.bf16.vlgmr.msrb.gmra.mxu3 %v14640_v15  ;;  %v9251_v41 = vld [vmem:[%s14186_s23 + $0x90] sm:$0xf0]  ;;  %v9526_v42 = vor.u32 %v12414_v31, %v9523_v32  ;;  %v12378_v43 = vld [vmem:[%s14186_s23 + $0x184] sm:$0xf]  ;;  %v12258_v49 = vor.u32 %v13100_v38, %v12257_v35  ;;  %v7477_v50 = vpop.f32.mrf.mxu0  ;;  %v7503_v18 = vpop.f32.mrf.mxu2 }
 0x270   : > { %7767 = vmatpush.bf16.msra.mxu3 %v9558_v58  ;;  %v9379_v44 = vld [vmem:[%s14186_s23 + $0x190] sm:$0xf0]  ;;  %v12410_v45 = vld [vmem:[%s14186_s23 + $0x284] sm:$0xf]  ;;  %v9254_v51 = vor.u32 %v12346_v39, %v9251_v41  ;;  %v7478_v59 = vadd.f32 %v7477_v50, %v14675_v40  ;;  %v3468_v41 = vld [vmem:[#allocation1] sm:$0xff] }
 0x271   : > { %7733 = vmatpush.bf16.msra.mxu0 %v12290_v1  ;;  %v9507_v46 = vld [vmem:[%s14186_s23 + $0x290] sm:$0xf0]  ;;  %v12454_v47 = vld [vmem:[%s14186_s23 + $0x3e4] sm:$0xf]  ;;  %v9382_v52 = vor.u32 %v12378_v43, %v9379_v44 }
 0x272   : > { %7742 = vmatpush.bf16.msra.mxu1 %v9286_v3  ;;  %v9683_v48 = vld [vmem:[%s14186_s23 + $0x3f0] sm:$0xf0]  ;;  %v12342_v53 = vld [vmem:[%s14186_s23 + $0x64] sm:$0xf]  ;;  %v9510_v61 = vor.u32 %v12410_v45, %v9507_v46  ;;  %v7491_v6 = vadd.f32 %v7490_v60, %v7478_v59 }
 0x273   : > { %7755 = vmatpush.bf16.msra.mxu2 %v9414_v5  ;;  %v9235_v58 = vld [vmem:[%s14186_s23 + $0x70] sm:$0xf0]  ;;  %v9686_v62 = vor.u32 %v12454_v47, %v9683_v48  ;;  %v12374_v63 = vld [vmem:[%s14186_s23 + $0x164] sm:$0xf]  ;;  %v7492_v48 = vpop.f32.mrf.mxu1 }
 0x274   : > { %7768 = vmatpush.bf16.msra.mxu3 %v9542_v16  ;;  %v9363_v0 = vld [vmem:[%s14186_s23 + $0x170] sm:$0xf0]  ;;  %v12406_v1 = vld [vmem:[%s14186_s23 + $0x264] sm:$0xf]  ;;  %v9238_v40 = vor.u32 %v12342_v53, %v9235_v58  ;;  %v7504_v35 = vadd.f32 %v7503_v18, %v7491_v6 }
 0x275   : > { %7734 = vmatpush.bf16.msra.mxu0 %v12274_v33  ;;  %v9491_v2 = vld [vmem:[%s14186_s23 + $0x270] sm:$0xf0]  ;;  %v12450_v3 = vld [vmem:[%s14186_s23 + $0x3c4] sm:$0xf]  ;;  %v9366_v7 = vor.u32 %v12374_v63, %v9363_v0 }
 0x276   : > { %7743 = vmatpush.bf16.msra.mxu1 %v9270_v36  ;;  %v9667_v5 = vld [vmem:[%s14186_s23 + $0x3d0] sm:$0xf0]  ;;  %v12338_v11 = vld [vmem:[%s14186_s23 + $0x44] sm:$0xf]  ;;  %v9494_v19 = vor.u32 %v12406_v1, %v9491_v2  ;;  %v7516_v36 = vpop.f32.mrf.mxu3 }
 0x277   : > { %7756 = vmatpush.bf16.msra.mxu2 %v9398_v37  ;;  %v9219_v16 = vld [vmem:[%s14186_s23 + $0x50] sm:$0xf0]  ;;  %v9670_v27 = vor.u32 %v12450_v3, %v9667_v5  ;;  %v12370_v31 = vld [vmem:[%s14186_s23 + $0x144] sm:$0xf]  ;;  %v7479_v43 = vpop.f32.mrf.mxu0  ;;  %v7505_v2 = vpop.f32.mrf.mxu2 }
 0x278   : > { %7769 = vmatpush.bf16.msra.mxu3 %v9526_v42  ;;  %v9347_v32 = vld [vmem:[%s14186_s23 + $0x150] sm:$0xf0]  ;;  %v12402_v33 = vld [vmem:[%s14186_s23 + $0x244] sm:$0xf]  ;;  %v14726_v42 = vadd.f32 %v7516_v36, %v7504_v35  ;;  %v9222_v44 = vor.u32 %v12338_v11, %v9219_v16 }
 0x279   : > { %7735 = vmatpush.bf16.msra.mxu0 %v12258_v49  ;;  %v9475_v37 = vld [vmem:[%s14186_s23 + $0x250] sm:$0xf0]  ;;  %v12446_v38 = vld [vmem:[%s14186_s23 + $0x3a4] sm:$0xf]  ;;  %v9350_v45 = vor.u32 %v12370_v31, %v9347_v32 }
 0x27a   : > { %7744 = vmatpush.bf16.msra.mxu1 %v9254_v51  ;;  %v9651_v39 = vld [vmem:[%s14186_s23 + $0x3b0] sm:$0xf0]  ;;  %v12334_v46 = vld [vmem:[%s14186_s23 + $0x24] sm:$0xf]  ;;  %v9478_v49 = vor.u32 %v12402_v33, %v9475_v37 }
 0x27b   : > { %7757 = vmatpush.bf16.msra.mxu2 %v9382_v52  ;;  %v9203_v47 = vld [vmem:[%s14186_s23 + $0x30] sm:$0xf0]  ;;  %v9654_v50 = vor.u32 %v12446_v38, %v9651_v39  ;;  %v12366_v51 = vld [vmem:[%s14186_s23 + $0x124] sm:$0xf] }
 0x27c   : > { %7770 = vmatpush.bf16.msra.mxu3 %v9510_v61  ;;  %v9331_v52 = vld [vmem:[%s14186_s23 + $0x130] sm:$0xf0]  ;;  %v12398_v53 = vld [vmem:[%s14186_s23 + $0x224] sm:$0xf]  ;;  %12319 = vmatmul.msk.bf16.vlgmr.msra.gmra.mxu0 %vm7413_vm0, %v3468_v41  ;;  %v9206_v61 = vor.u32 %v12334_v46, %v9203_v47 }
 0x27d   : > { %7780 = vmatpush.bf16.msrb.mxu0 %v9686_v62  ;;  %v9459_v58 = vld [vmem:[%s14186_s23 + $0x230] sm:$0xf0]  ;;  %v12442_v59 = vld [vmem:[%s14186_s23 + $0x384] sm:$0xf]  ;;  %v9334_v62 = vor.u32 %v12366_v51, %v9331_v52 }
 0x27e   : > { %7745 = vmatpush.bf16.msra.mxu1 %v9238_v40  ;;  %v9635_v60 = vld [vmem:[%s14186_s23 + $0x390] sm:$0xf0]  ;;  %v12330_v63 = vld [vmem:[%s14186_s23 + $0x4] sm:$0xf]  ;;  %v9462_v3 = vor.u32 %v12398_v53, %v9459_v58  ;;  %v7518_v11 = vpop.f32.mrf.mxu3 }
 0x27f   : > { %7758 = vmatpush.bf16.msra.mxu2 %v9366_v7  ;;  %v9187_v0 = vld [vmem:[%s14186_s23 + $0x10] sm:$0xf0]  ;;  %v12362_v1 = vld [vmem:[%s14186_s23 + $0x104] sm:$0xf]  ;;  %v9638_v5 = vor.u32 %v12442_v59, %v9635_v60 }
 0x280   : > { %7771 = vmatpush.bf16.msra.mxu3 %v9494_v19  ;;  %v9315_v6 = vld [vmem:[%s14186_s23 + $0x110] sm:$0xf0]  ;;  %v12394_v40 = vld [vmem:[%s14186_s23 + $0x204] sm:$0xf]  ;;  %v9190_v33 = vor.u32 %v12330_v63, %v9187_v0 }
 0x281   : > { %7781 = vmatpush.bf16.msrb.mxu0 %v9670_v27  ;;  %v9443_v7 = vld [vmem:[%s14186_s23 + $0x210] sm:$0xf0]  ;;  %v12438_v16 = vld [vmem:[%s14186_s23 + $0x364] sm:$0xf]  ;;  %v9318_v35 = vor.u32 %v12362_v1, %v9315_v6 }
 0x282   : > { %7746 = vmatpush.bf16.msra.mxu1 %v9222_v44  ;;  %v9619_v18 = vld [vmem:[%s14186_s23 + $0x370] sm:$0xf0]  ;;  %v12486_v19 = vld [vmem:[%s14186_s23 + $0x4e4] sm:$0xf]  ;;  %v9446_v38 = vor.u32 %v12394_v40, %v9443_v7 }
 0x283   : > { %7759 = vmatpush.bf16.msra.mxu2 %v9350_v45  ;;  %v9811_v27 = vld [vmem:[%s14186_s23 + $0x4f0] sm:$0xf0]  ;;  %v12518_v31 = vld [vmem:[%s14186_s23 + $0x5e4] sm:$0xf]  ;;  %v9622_v39 = vor.u32 %v12438_v16, %v9619_v18 }
 0x284   : > { %7772 = vmatpush.bf16.msra.mxu3 %v9478_v49  ;;  %v9939_v32 = vld [vmem:[%s14186_s23 + $0x5f0] sm:$0xf0]  ;;  %v12550_v36 = vld [vmem:[%s14186_s23 + $0x6e4] sm:$0xf]  ;;  %v9814_v41 = vor.u32 %v12486_v19, %v9811_v27 }
 0x285   : > { %7782 = vmatpush.bf16.msrb.mxu0 %v9654_v50  ;;  %v10067_v37 = vld [vmem:[%s14186_s23 + $0x6f0] sm:$0xf0]  ;;  %v9942_v43 = vor.u32 %v12518_v31, %v9939_v32  ;;  %v12434_v44 = vld [vmem:[%s14186_s23 + $0x344] sm:$0xf] }
 0x286   : > { %7747 = vmatpush.bf16.msra.mxu1 %v9206_v61  ;;  %v9603_v45 = vld [vmem:[%s14186_s23 + $0x350] sm:$0xf0]  ;;  %v12482_v46 = vld [vmem:[%s14186_s23 + $0x4c4] sm:$0xf]  ;;  %v10070_v47 = vor.u32 %v12550_v36, %v10067_v37 }
 0x287   : > { %7760 = vmatpush.bf16.msra.mxu2 %v9334_v62  ;;  %v9795_v48 = vld [vmem:[%s14186_s23 + $0x4d0] sm:$0xf0]  ;;  %v12514_v49 = vld [vmem:[%s14186_s23 + $0x5c4] sm:$0xf]  ;;  %v9606_v53 = vor.u32 %v12434_v44, %v9603_v45 }
 0x288   : > { %7773 = vmatpush.bf16.msra.mxu3 %v9462_v3  ;;  %v9923_v50 = vld [vmem:[%s14186_s23 + $0x5d0] sm:$0xf0]  ;;  %v12546_v51 = vld [vmem:[%s14186_s23 + $0x6c4] sm:$0xf]  ;;  %v9798_v58 = vor.u32 %v12482_v46, %v9795_v48 }
 0x289   : > { %7783 = vmatpush.bf16.msrb.mxu0 %v9638_v5  ;;  %v10051_v52 = vld [vmem:[%s14186_s23 + $0x6d0] sm:$0xf0]  ;;  %v9926_v59 = vor.u32 %v12514_v49, %v9923_v50  ;;  %v12430_v60 = vld [vmem:[%s14186_s23 + $0x324] sm:$0xf] }
 0x28a   : > { %7748 = vmatpush.bf16.msra.mxu1 %v9190_v33  ;;  %v9587_v61 = vld [vmem:[%s14186_s23 + $0x330] sm:$0xf0]  ;;  %v12478_v62 = vld [vmem:[%s14186_s23 + $0x4a4] sm:$0xf]  ;;  %v10054_v63 = vor.u32 %v12546_v51, %v10051_v52 }
 0x28b   : > { %7761 = vmatpush.bf16.msra.mxu2 %v9318_v35  ;;  %v9779_v0 = vld [vmem:[%s14186_s23 + $0x4b0] sm:$0xf0]  ;;  %v12510_v1 = vld [vmem:[%s14186_s23 + $0x5a4] sm:$0xf]  ;;  %v9590_v6 = vor.u32 %v12430_v60, %v9587_v61  ;;  %v7529_v35 = vpop.f32.mrf.mxu0 }
 0x28c   : > { %7774 = vmatpush.bf16.msra.mxu3 %v9446_v38  ;;  %v9907_v2 = vld [vmem:[%s14186_s23 + $0x5b0] sm:$0xf0]  ;;  %v12542_v3 = vld [vmem:[%s14186_s23 + $0x6a4] sm:$0xf]  ;;  %v9782_v7 = vor.u32 %v12478_v62, %v9779_v0 }
 0x28d   : > { %7784 = vmatpush.bf16.msrb.mxu0 %v9622_v39  ;;  %v10035_v5 = vld [vmem:[%s14186_s23 + $0x6b0] sm:$0xf0]  ;;  %7749 = vmatmul.bf16.vlgmr.msra.gmra.mxu1 %v14293_v29  ;;  %v12426_v40 = vld [vmem:[%s14186_s23 + $0x304] sm:$0xf]  ;;  %v9910_v11 = vor.u32 %v12510_v1, %v9907_v2  ;;  %v7530_v39 = vadd.f32 %v7529_v35, %v14726_v42 }
 0x28e   : > { %7793 = vmatpush.bf16.msrb.mxu1 %v9814_v41  ;;  %7762 = vmatmul.bf16.vlgmr.msra.gmra.mxu2 %v14300_v34  ;;  %v9571_v16 = vld [vmem:[%s14186_s23 + $0x310] sm:$0xf0]  ;;  %v12474_v18 = vld [vmem:[%s14186_s23 + $0x484] sm:$0xf]  ;;  %v10038_v27 = vor.u32 %v12542_v3, %v10035_v5 }
 0x28f   : > { %7806 = vmatpush.bf16.msrb.mxu2 %v9942_v43  ;;  %7775 = vmatmul.bf16.vlgmr.msra.gmra.mxu3 %v14291_v28  ;;  %v9763_v19 = vld [vmem:[%s14186_s23 + $0x490] sm:$0xf0]  ;;  %v12506_v31 = vld [vmem:[%s14186_s23 + $0x584] sm:$0xf]  ;;  %v9574_v41 = vor.u32 %v12426_v40, %v9571_v16  ;;  %v7542_v43 = vpop.f32.mrf.mxu1 }
 0x290   : > { %7819 = vmatpush.bf16.msrb.mxu3 %v10070_v47  ;;  %v9891_v32 = vld [vmem:[%s14186_s23 + $0x590] sm:$0xf0]  ;;  %v12538_v33 = vld [vmem:[%s14186_s23 + $0x684] sm:$0xf]  ;;  %v9766_v44 = vor.u32 %v12474_v18, %v9763_v19  ;;  %v7543_v49 = vadd.f32 %v7542_v43, %v7530_v39 }
 0x291   : > { %7785 = vmatpush.bf16.msrb.mxu0 %v9606_v53  ;;  %v10019_v36 = vld [vmem:[%s14186_s23 + $0x690] sm:$0xf0]  ;;  %v12582_v37 = vld [vmem:[%s14186_s23 + $0x7e4] sm:$0xf]  ;;  %v9894_v45 = vor.u32 %v12506_v31, %v9891_v32  ;;  %v7555_v1 = vpop.f32.mrf.mxu2 }
 0x292   : > { %7794 = vmatpush.bf16.msrb.mxu1 %v9798_v58  ;;  %v10195_v38 = vld [vmem:[%s14186_s23 + $0x7f0] sm:$0xf0]  ;;  %v12470_v46 = vld [vmem:[%s14186_s23 + $0x464] sm:$0xf]  ;;  %v10022_v48 = vor.u32 %v12538_v33, %v10019_v36  ;;  %v7556_v40 = vadd.f32 %v7555_v1, %v7543_v49 }
 0x293   : > { %7807 = vmatpush.bf16.msrb.mxu2 %v9926_v59  ;;  %v9747_v47 = vld [vmem:[%s14186_s23 + $0x470] sm:$0xf0]  ;;  %v10198_v50 = vor.u32 %v12582_v37, %v10195_v38  ;;  %v12502_v51 = vld [vmem:[%s14186_s23 + $0x564] sm:$0xf]  ;;  %v7531_v19 = vpop.f32.mrf.mxu0 }
 0x294   : > { %7820 = vmatpush.bf16.msrb.mxu3 %v10054_v63  ;;  %v9875_v52 = vld [vmem:[%s14186_s23 + $0x570] sm:$0xf0]  ;;  %v12534_v42 = vld [vmem:[%s14186_s23 + $0x664] sm:$0xf]  ;;  %v9750_v60 = vor.u32 %v12470_v46, %v9747_v47 }
 0x295   : > { %7786 = vmatpush.bf16.msrb.mxu0 %v9590_v6  ;;  %v10003_v53 = vld [vmem:[%s14186_s23 + $0x670] sm:$0xf0]  ;;  %v12578_v58 = vld [vmem:[%s14186_s23 + $0x7c4] sm:$0xf]  ;;  %v9878_v61 = vor.u32 %v12502_v51, %v9875_v52 }
 0x296   : > { %7795 = vmatpush.bf16.msrb.mxu1 %v9782_v7  ;;  %v10179_v59 = vld [vmem:[%s14186_s23 + $0x7d0] sm:$0xf0]  ;;  %v12466_v62 = vld [vmem:[%s14186_s23 + $0x444] sm:$0xf]  ;;  %v10006_v0 = vor.u32 %v12534_v42, %v10003_v53  ;;  %v7568_v7 = vpop.f32.mrf.mxu3 }
 0x297   : > { %7808 = vmatpush.bf16.msrb.mxu2 %v9910_v11  ;;  %v9731_v63 = vld [vmem:[%s14186_s23 + $0x450] sm:$0xf0]  ;;  %v10182_v2 = vor.u32 %v12578_v58, %v10179_v59  ;;  %v12498_v3 = vld [vmem:[%s14186_s23 + $0x544] sm:$0xf]  ;;  %v14798_v31 = vadd.f32 %v7568_v7, %v7556_v40 }
 0x298   : > { %7821 = vmatpush.bf16.msrb.mxu3 %v10038_v27  ;;  %v9859_v5 = vld [vmem:[%s14186_s23 + $0x550] sm:$0xf0]  ;;  %v12530_v6 = vld [vmem:[%s14186_s23 + $0x644] sm:$0xf]  ;;  %v7544_v27 = vpop.f32.mrf.mxu1  ;;  %v9734_v32 = vor.u32 %v12466_v62, %v9731_v63 }
 0x299   : > { %7787 = vmatpush.bf16.msrb.mxu0 %v9574_v41  ;;  %v9987_v11 = vld [vmem:[%s14186_s23 + $0x650] sm:$0xf0]  ;;  %v12574_v16 = vld [vmem:[%s14186_s23 + $0x7a4] sm:$0xf]  ;;  %v9862_v33 = vor.u32 %v12498_v3, %v9859_v5 }
 0x29a   : > { %7796 = vmatpush.bf16.msrb.mxu1 %v9766_v44  ;;  %v10163_v18 = vld [vmem:[%s14186_s23 + $0x7b0] sm:$0xf0]  ;;  %v12462_v35 = vld [vmem:[%s14186_s23 + $0x424] sm:$0xf]  ;;  %v9990_v37 = vor.u32 %v12530_v6, %v9987_v11 }
 0x29b   : > { %7809 = vmatpush.bf16.msrb.mxu2 %v9894_v45  ;;  %v9715_v36 = vld [vmem:[%s14186_s23 + $0x430] sm:$0xf0]  ;;  %v10166_v38 = vor.u32 %v12574_v16, %v10163_v18  ;;  %v12494_v39 = vld [vmem:[%s14186_s23 + $0x524] sm:$0xf] }
 0x29c   : > { %7822 = vmatpush.bf16.msrb.mxu3 %v10022_v48  ;;  %7788 = vmatmul.bf16.vlgmr.msrb.gmra.mxu0 %v14295_v30  ;;  %v9843_v41 = vld [vmem:[%s14186_s23 + $0x530] sm:$0xf0]  ;;  %v12526_v43 = vld [vmem:[%s14186_s23 + $0x624] sm:$0xf]  ;;  %v9718_v47 = vor.u32 %v12462_v35, %v9715_v36 }
 0x29d   : > { %7832 = vmatpush.bf16.msra.mxu0 %v10198_v50  ;;  %v9971_v44 = vld [vmem:[%s14186_s23 + $0x630] sm:$0xf0]  ;;  %v12570_v45 = vld [vmem:[%s14186_s23 + $0x784] sm:$0xf]  ;;  %v9846_v48 = vor.u32 %v12494_v39, %v9843_v41 }
 0x29e   : > { %7797 = vmatpush.bf16.msrb.mxu1 %v9750_v60  ;;  %v10147_v46 = vld [vmem:[%s14186_s23 + $0x790] sm:$0xf0]  ;;  %v12458_v49 = vld [vmem:[%s14186_s23 + $0x404] sm:$0xf]  ;;  %v9974_v52 = vor.u32 %v12526_v43, %v9971_v44  ;;  %v7557_v60 = vpop.f32.mrf.mxu2 }
 0x29f   : > { %7810 = vmatpush.bf16.msrb.mxu2 %v9878_v61  ;;  %v9699_v50 = vld [vmem:[%s14186_s23 + $0x410] sm:$0xf0]  ;;  %v12490_v51 = vld [vmem:[%s14186_s23 + $0x504] sm:$0xf]  ;;  %v10150_v42 = vor.u32 %v12570_v45, %v10147_v46 }
 0x2a0   : > { %7823 = vmatpush.bf16.msrb.mxu3 %v10006_v0  ;;  %v9827_v53 = vld [vmem:[%s14186_s23 + $0x510] sm:$0xf0]  ;;  %v12522_v58 = vld [vmem:[%s14186_s23 + $0x604] sm:$0xf]  ;;  %v7570_v0 = vpop.f32.mrf.mxu3  ;;  %v9702_v5 = vor.u32 %v12458_v49, %v9699_v50 }
 0x2a1   : > { %7833 = vmatpush.bf16.msra.mxu0 %v10182_v2  ;;  %v9955_v59 = vld [vmem:[%s14186_s23 + $0x610] sm:$0xf0]  ;;  %v12566_v61 = vld [vmem:[%s14186_s23 + $0x764] sm:$0xf]  ;;  %v9830_v6 = vor.u32 %v12490_v51, %v9827_v53 }
 0x2a2   : > { %7798 = vmatpush.bf16.msrb.mxu1 %v9734_v32  ;;  %v10131_v62 = vld [vmem:[%s14186_s23 + $0x770] sm:$0xf0]  ;;  %v12614_v63 = vld [vmem:[%s14186_s23 + $0x8e4] sm:$0xf]  ;;  %v9958_v11 = vor.u32 %v12522_v58, %v9955_v59 }
 0x2a3   : > { %7811 = vmatpush.bf16.msrb.mxu2 %v9862_v33  ;;  %v10323_v1 = vld [vmem:[%s14186_s23 + $0x8f0] sm:$0xf0]  ;;  %v12646_v2 = vld [vmem:[%s14186_s23 + $0x9e4] sm:$0xf]  ;;  %v10134_v16 = vor.u32 %v12566_v61, %v10131_v62 }
 0x2a4   : > { %7824 = vmatpush.bf16.msrb.mxu3 %v9990_v37  ;;  %v10451_v3 = vld [vmem:[%s14186_s23 + $0x9f0] sm:$0xf0]  ;;  %v12678_v40 = vld [vmem:[%s14186_s23 + $0xae4] sm:$0xf]  ;;  %v10326_v18 = vor.u32 %v12614_v63, %v10323_v1 }
 0x2a5   : > { %7834 = vmatpush.bf16.msra.mxu0 %v10166_v38  ;;  %v10579_v7 = vld [vmem:[%s14186_s23 + $0xaf0] sm:$0xf0]  ;;  %v10454_v19 = vor.u32 %v12646_v2, %v10451_v3  ;;  %v12562_v27 = vld [vmem:[%s14186_s23 + $0x744] sm:$0xf] }
 0x2a6   : > { %7799 = vmatpush.bf16.msrb.mxu1 %v9718_v47  ;;  %v10115_v32 = vld [vmem:[%s14186_s23 + $0x750] sm:$0xf0]  ;;  %v12610_v33 = vld [vmem:[%s14186_s23 + $0x8c4] sm:$0xf]  ;;  %v10582_v35 = vor.u32 %v12678_v40, %v10579_v7 }
 0x2a7   : > { %7812 = vmatpush.bf16.msrb.mxu2 %v9846_v48  ;;  %v10307_v36 = vld [vmem:[%s14186_s23 + $0x8d0] sm:$0xf0]  ;;  %v12642_v37 = vld [vmem:[%s14186_s23 + $0x9c4] sm:$0xf]  ;;  %v10118_v43 = vor.u32 %v12562_v27, %v10115_v32 }
 0x2a8   : > { %7825 = vmatpush.bf16.msrb.mxu3 %v9974_v52  ;;  %v10435_v38 = vld [vmem:[%s14186_s23 + $0x9d0] sm:$0xf0]  ;;  %v12674_v39 = vld [vmem:[%s14186_s23 + $0xac4] sm:$0xf]  ;;  %v10310_v44 = vor.u32 %v12610_v33, %v10307_v36 }
 0x2a9   : > { %7835 = vmatpush.bf16.msra.mxu0 %v10150_v42  ;;  %v10563_v41 = vld [vmem:[%s14186_s23 + $0xad0] sm:$0xf0]  ;;  %v10438_v45 = vor.u32 %v12642_v37, %v10435_v38  ;;  %v12558_v46 = vld [vmem:[%s14186_s23 + $0x724] sm:$0xf] }
 0x2aa   : > { %7800 = vmatpush.bf16.msrb.mxu1 %v9702_v5  ;;  %v10099_v47 = vld [vmem:[%s14186_s23 + $0x730] sm:$0xf0]  ;;  %v12606_v48 = vld [vmem:[%s14186_s23 + $0x8a4] sm:$0xf]  ;;  %v10566_v49 = vor.u32 %v12674_v39, %v10563_v41 }
 0x2ab   : > { %7813 = vmatpush.bf16.msrb.mxu2 %v9830_v6  ;;  %v10291_v50 = vld [vmem:[%s14186_s23 + $0x8b0] sm:$0xf0]  ;;  %v12638_v51 = vld [vmem:[%s14186_s23 + $0x9a4] sm:$0xf]  ;;  %v10102_v58 = vor.u32 %v12558_v46, %v10099_v47  ;;  %v7581_v6 = vpop.f32.mrf.mxu0 }
 0x2ac   : > { %7826 = vmatpush.bf16.msrb.mxu3 %v9958_v11  ;;  %v10419_v52 = vld [vmem:[%s14186_s23 + $0x9b0] sm:$0xf0]  ;;  %v12670_v42 = vld [vmem:[%s14186_s23 + $0xaa4] sm:$0xf]  ;;  %v10294_v60 = vor.u32 %v12606_v48, %v10291_v50 }
 0x2ad   : > { %7836 = vmatpush.bf16.msra.mxu0 %v10134_v16  ;;  %v10547_v53 = vld [vmem:[%s14186_s23 + $0xab0] sm:$0xf0]  ;;  %7801 = vmatmul.bf16.vlgmr.msrb.gmra.mxu1 %v14334_v8  ;;  %v12554_v59 = vld [vmem:[%s14186_s23 + $0x704] sm:$0xf]  ;;  %v10422_v61 = vor.u32 %v12638_v51, %v10419_v52  ;;  %v7582_v16 = vadd.f32 %v7581_v6, %v14798_v31 }
 0x2ae   : > { %7845 = vmatpush.bf16.msra.mxu1 %v10326_v18  ;;  %7814 = vmatmul.bf16.vlgmr.msrb.gmra.mxu2 %v14338_v10  ;;  %v10083_v62 = vld [vmem:[%s14186_s23 + $0x710] sm:$0xf0]  ;;  %v12602_v63 = vld [vmem:[%s14186_s23 + $0x884] sm:$0xf]  ;;  %v10550_v1 = vor.u32 %v12670_v42, %v10547_v53  ;;  %v7607_v51 = vpop.f32.mrf.mxu2 }
 0x2af   : > { %7858 = vmatpush.bf16.msra.mxu2 %v10454_v19  ;;  %7827 = vmatmul.bf16.vlgmr.msrb.gmra.mxu3 %v14329_v4  ;;  %v10275_v0 = vld [vmem:[%s14186_s23 + $0x890] sm:$0xf0]  ;;  %v12634_v2 = vld [vmem:[%s14186_s23 + $0x984] sm:$0xf]  ;;  %v10086_v18 = vor.u32 %v12554_v59, %v10083_v62  ;;  %v7594_v19 = vpop.f32.mrf.mxu1 }
 0x2b0   : > { %7871 = vmatpush.bf16.msra.mxu3 %v10582_v35  ;;  %v10403_v3 = vld [vmem:[%s14186_s23 + $0x990] sm:$0xf0]  ;;  %v12666_v5 = vld [vmem:[%s14186_s23 + $0xa84] sm:$0xf]  ;;  %v10278_v27 = vor.u32 %v12602_v63, %v10275_v0  ;;  %v7595_v37 = vadd.f32 %v7594_v19, %v7582_v16 }
 0x2b1   : > { %7837 = vmatpush.bf16.msra.mxu0 %v10118_v43  ;;  %v10531_v40 = vld [vmem:[%s14186_s23 + $0xa90] sm:$0xf0]  ;;  %v12710_v7 = vld [vmem:[%s14186_s23 + $0xbe4] sm:$0xf]  ;;  %v10406_v32 = vor.u32 %v12634_v2, %v10403_v3 }
 0x2b2   : > { %7846 = vmatpush.bf16.msra.mxu1 %v10310_v44  ;;  %v10707_v11 = vld [vmem:[%s14186_s23 + $0xbf0] sm:$0xf0]  ;;  %v12598_v33 = vld [vmem:[%s14186_s23 + $0x864] sm:$0xf]  ;;  %v10534_v36 = vor.u32 %v12666_v5, %v10531_v40  ;;  %v7608_v59 = vadd.f32 %v7607_v51, %v7595_v37 }
 0x2b3   : > { %7859 = vmatpush.bf16.msra.mxu2 %v10438_v45  ;;  %v10259_v35 = vld [vmem:[%s14186_s23 + $0x870] sm:$0xf0]  ;;  %v10710_v38 = vor.u32 %v12710_v7, %v10707_v11  ;;  %v12630_v39 = vld [vmem:[%s14186_s23 + $0x964] sm:$0xf]  ;;  %v7583_v0 = vpop.f32.mrf.mxu0 }
 0x2b4   : > { %7872 = vmatpush.bf16.msra.mxu3 %v10566_v49  ;;  %v10387_v41 = vld [vmem:[%s14186_s23 + $0x970] sm:$0xf0]  ;;  %v12662_v31 = vld [vmem:[%s14186_s23 + $0xa64] sm:$0xf]  ;;  %v10262_v46 = vor.u32 %v12598_v33, %v10259_v35 }
 0x2b5   : > { %7838 = vmatpush.bf16.msra.mxu0 %v10102_v58  ;;  %v10515_v43 = vld [vmem:[%s14186_s23 + $0xa70] sm:$0xf0]  ;;  %v12706_v44 = vld [vmem:[%s14186_s23 + $0xbc4] sm:$0xf]  ;;  %v10390_v47 = vor.u32 %v12630_v39, %v10387_v41 }
 0x2b6   : > { %7847 = vmatpush.bf16.msra.mxu1 %v10294_v60  ;;  %v10691_v45 = vld [vmem:[%s14186_s23 + $0xbd0] sm:$0xf0]  ;;  %v12594_v48 = vld [vmem:[%s14186_s23 + $0x844] sm:$0xf]  ;;  %v10518_v50 = vor.u32 %v12662_v31, %v10515_v43  ;;  %v7620_v60 = vpop.f32.mrf.mxu3 }
 0x2b7   : > { %7860 = vmatpush.bf16.msra.mxu2 %v10422_v61  ;;  %v10243_v49 = vld [vmem:[%s14186_s23 + $0x850] sm:$0xf0]  ;;  %v10694_v52 = vor.u32 %v12706_v44, %v10691_v45  ;;  %v12626_v42 = vld [vmem:[%s14186_s23 + $0x944] sm:$0xf]  ;;  %v14869_v2 = vadd.f32 %v7620_v60, %v7608_v59 }
 0x2b8   : > { %7873 = vmatpush.bf16.msra.mxu3 %v10550_v1  ;;  %v10371_v53 = vld [vmem:[%s14186_s23 + $0x950] sm:$0xf0]  ;;  %v12658_v58 = vld [vmem:[%s14186_s23 + $0xa44] sm:$0xf]  ;;  %v7596_v1 = vpop.f32.mrf.mxu1  ;;  %v10246_v3 = vor.u32 %v12594_v48, %v10243_v49 }
 0x2b9   : > { %7839 = vmatpush.bf16.msra.mxu0 %v10086_v18  ;;  %v10499_v61 = vld [vmem:[%s14186_s23 + $0xa50] sm:$0xf0]  ;;  %v12702_v62 = vld [vmem:[%s14186_s23 + $0xba4] sm:$0xf]  ;;  %v10374_v5 = vor.u32 %v12626_v42, %v10371_v53 }
 0x2ba   : > { %7848 = vmatpush.bf16.msra.mxu1 %v10278_v27  ;;  %v10675_v63 = vld [vmem:[%s14186_s23 + $0xbb0] sm:$0xf0]  ;;  %v12590_v6 = vld [vmem:[%s14186_s23 + $0x824] sm:$0xf]  ;;  %v10502_v7 = vor.u32 %v12658_v58, %v10499_v61 }
 0x2bb   : > { %7861 = vmatpush.bf16.msra.mxu2 %v10406_v32  ;;  %v10227_v40 = vld [vmem:[%s14186_s23 + $0x830] sm:$0xf0]  ;;  %v10678_v11 = vor.u32 %v12702_v62, %v10675_v63  ;;  %v12622_v16 = vld [vmem:[%s14186_s23 + $0x924] sm:$0xf] }
 0x2bc   : > { %7874 = vmatpush.bf16.msra.mxu3 %v10534_v36  ;;  %7840 = vmatmul.bf16.vlgmr.msra.gmra.mxu0 %v14336_v9  ;;  %v10355_v18 = vld [vmem:[%s14186_s23 + $0x930] sm:$0xf0]  ;;  %v12654_v19 = vld [vmem:[%s14186_s23 + $0xa24] sm:$0xf]  ;;  %v10230_v35 = vor.u32 %v12590_v6, %v10227_v40 }
 0x2bd   : > { %7884 = vmatpush.bf16.msrb.mxu0 %v10710_v38  ;;  %v10483_v27 = vld [vmem:[%s14186_s23 + $0xa30] sm:$0xf0]  ;;  %v12698_v32 = vld [vmem:[%s14186_s23 + $0xb84] sm:$0xf]  ;;  %v10358_v36 = vor.u32 %v12622_v16, %v10355_v18 }
 0x2be   : > { %7849 = vmatpush.bf16.msra.mxu1 %v10262_v46  ;;  %v10659_v33 = vld [vmem:[%s14186_s23 + $0xb90] sm:$0xf0]  ;;  %v12586_v37 = vld [vmem:[%s14186_s23 + $0x804] sm:$0xf]  ;;  %v10486_v41 = vor.u32 %v12654_v19, %v10483_v27  ;;  %v7609_v46 = vpop.f32.mrf.mxu2 }
 0x2bf   : > { %7862 = vmatpush.bf16.msra.mxu2 %v10390_v47  ;;  %v10211_v38 = vld [vmem:[%s14186_s23 + $0x810] sm:$0xf0]  ;;  %v12618_v39 = vld [vmem:[%s14186_s23 + $0x904] sm:$0xf]  ;;  %v10662_v31 = vor.u32 %v12698_v32, %v10659_v33 }
 0x2c0   : > { %7875 = vmatpush.bf16.msra.mxu3 %v10518_v50  ;;  %v10339_v43 = vld [vmem:[%s14186_s23 + $0x910] sm:$0xf0]  ;;  %v12650_v44 = vld [vmem:[%s14186_s23 + $0xa04] sm:$0xf]  ;;  %v7622_v50 = vpop.f32.mrf.mxu3  ;;  %v10214_v53 = vor.u32 %v12586_v37, %v10211_v38 }
 0x2c1   : > { %7885 = vmatpush.bf16.msrb.mxu0 %v10694_v52  ;;  %v10467_v45 = vld [vmem:[%s14186_s23 + $0xa10] sm:$0xf0]  ;;  %v12694_v47 = vld [vmem:[%s14186_s23 + $0xb64] sm:$0xf]  ;;  %v10342_v58 = vor.u32 %v12618_v39, %v10339_v43 }
 0x2c2   : > { %7850 = vmatpush.bf16.msra.mxu1 %v10246_v3  ;;  %v10643_v48 = vld [vmem:[%s14186_s23 + $0xb70] sm:$0xf0]  ;;  %v12742_v49 = vld [vmem:[%s14186_s23 + $0xce4] sm:$0xf]  ;;  %v10470_v61 = vor.u32 %v12650_v44, %v10467_v45 }
 0x2c3   : > { %7863 = vmatpush.bf16.msra.mxu2 %v10374_v5  ;;  %v10835_v51 = vld [vmem:[%s14186_s23 + $0xcf0] sm:$0xf0]  ;;  %v12774_v52 = vld [vmem:[%s14186_s23 + $0xde4] sm:$0xf]  ;;  %v10646_v62 = vor.u32 %v12694_v47, %v10643_v48 }
 0x2c4   : > { %7876 = vmatpush.bf16.msra.mxu3 %v10502_v7  ;;  %v10963_v42 = vld [vmem:[%s14186_s23 + $0xdf0] sm:$0xf0]  ;;  %v12806_v59 = vld [vmem:[%s14186_s23 + $0xee4] sm:$0xf]  ;;  %v10838_v63 = vor.u32 %v12742_v49, %v10835_v51 }
 0x2c5   : > { %7886 = vmatpush.bf16.msrb.mxu0 %v10678_v11  ;;  %v11091_v60 = vld [vmem:[%s14186_s23 + $0xef0] sm:$0xf0]  ;;  %v10966_v0 = vor.u32 %v12774_v52, %v10963_v42  ;;  %v12690_v1 = vld [vmem:[%s14186_s23 + $0xb44] sm:$0xf] }
 0x2c6   : > { %7851 = vmatpush.bf16.msra.mxu1 %v10230_v35  ;;  %v10627_v3 = vld [vmem:[%s14186_s23 + $0xb50] sm:$0xf0]  ;;  %v12738_v5 = vld [vmem:[%s14186_s23 + $0xcc4] sm:$0xf]  ;;  %v11094_v6 = vor.u32 %v12806_v59, %v11091_v60 }
 0x2c7   : > { %7864 = vmatpush.bf16.msra.mxu2 %v10358_v36  ;;  %v10819_v40 = vld [vmem:[%s14186_s23 + $0xcd0] sm:$0xf0]  ;;  %v12770_v7 = vld [vmem:[%s14186_s23 + $0xdc4] sm:$0xf]  ;;  %v10630_v19 = vor.u32 %v12690_v1, %v10627_v3 }
 0x2c8   : > { %7877 = vmatpush.bf16.msra.mxu3 %v10486_v41  ;;  %v10947_v11 = vld [vmem:[%s14186_s23 + $0xdd0] sm:$0xf0]  ;;  %v12802_v16 = vld [vmem:[%s14186_s23 + $0xec4] sm:$0xf]  ;;  %v10822_v27 = vor.u32 %v12738_v5, %v10819_v40 }
 0x2c9   : > { %7887 = vmatpush.bf16.msrb.mxu0 %v10662_v31  ;;  %v11075_v18 = vld [vmem:[%s14186_s23 + $0xed0] sm:$0xf0]  ;;  %v10950_v32 = vor.u32 %v12770_v7, %v10947_v11  ;;  %v12686_v33 = vld [vmem:[%s14186_s23 + $0xb24] sm:$0xf] }
 0x2ca   : > { %7852 = vmatpush.bf16.msra.mxu1 %v10214_v53  ;;  %v10611_v35 = vld [vmem:[%s14186_s23 + $0xb30] sm:$0xf0]  ;;  %v12734_v36 = vld [vmem:[%s14186_s23 + $0xca4] sm:$0xf]  ;;  %v11078_v37 = vor.u32 %v12802_v16, %v11075_v18 }
 0x2cb   : > { %7865 = vmatpush.bf16.msra.mxu2 %v10342_v58  ;;  %v10803_v38 = vld [vmem:[%s14186_s23 + $0xcb0] sm:$0xf0]  ;;  %v12766_v39 = vld [vmem:[%s14186_s23 + $0xda4] sm:$0xf]  ;;  %v10614_v44 = vor.u32 %v12686_v33, %v10611_v35  ;;  %v7633_v58 = vpop.f32.mrf.mxu0 }
 0x2cc   : > { %7878 = vmatpush.bf16.msra.mxu3 %v10470_v61  ;;  %v10931_v41 = vld [vmem:[%s14186_s23 + $0xdb0] sm:$0xf0]  ;;  %v12798_v31 = vld [vmem:[%s14186_s23 + $0xea4] sm:$0xf]  ;;  %v10806_v46 = vor.u32 %v12734_v36, %v10803_v38 }
 0x2cd   : > { %7888 = vmatpush.bf16.msrb.mxu0 %v10646_v62  ;;  %7853 = vmatmul.bf16.vlgmr.msra.gmra.mxu1 %v14424_v20  ;;  %v11059_v43 = vld [vmem:[%s14186_s23 + $0xeb0] sm:$0xf0]  ;;  %v12682_v45 = vld [vmem:[%s14186_s23 + $0xb04] sm:$0xf]  ;;  %v10934_v47 = vor.u32 %v12766_v39, %v10931_v41  ;;  %v7634_v62 = vadd.f32 %v7633_v58, %v14869_v2 }
 0x2ce   : > { %7897 = vmatpush.bf16.msrb.mxu1 %v10838_v63  ;;  %7866 = vmatmul.bf16.vlgmr.msra.gmra.mxu2 %v14430_v24  ;;  %v10595_v48 = vld [vmem:[%s14186_s23 + $0xb10] sm:$0xf0]  ;;  %v12730_v49 = vld [vmem:[%s14186_s23 + $0xc84] sm:$0xf]  ;;  %v11062_v51 = vor.u32 %v12798_v31, %v11059_v43 }
 0x2cf   : > { %7910 = vmatpush.bf16.msrb.mxu2 %v10966_v0  ;;  %7879 = vmatmul.bf16.vlgmr.msra.gmra.mxu3 %v14428_v23  ;;  %v10787_v50 = vld [vmem:[%s14186_s23 + $0xc90] sm:$0xf0]  ;;  %v12762_v52 = vld [vmem:[%s14186_s23 + $0xd84] sm:$0xf]  ;;  %v10598_v63 = vor.u32 %v12682_v45, %v10595_v48  ;;  %v7646_v0 = vpop.f32.mrf.mxu1 }
 0x2d0   : > { %7923 = vmatpush.bf16.msrb.mxu3 %v11094_v6  ;;  %v10915_v42 = vld [vmem:[%s14186_s23 + $0xd90] sm:$0xf0]  ;;  %v12794_v53 = vld [vmem:[%s14186_s23 + $0xe84] sm:$0xf]  ;;  %v10790_v1 = vor.u32 %v12730_v49, %v10787_v50  ;;  %v7647_v7 = vadd.f32 %v7646_v0, %v7634_v62 }
 0x2d1   : > { %7889 = vmatpush.bf16.msrb.mxu0 %v10630_v19  ;;  %v11043_v59 = vld [vmem:[%s14186_s23 + $0xe90] sm:$0xf0]  ;;  %v12838_v60 = vld [vmem:[%s14186_s23 + $0xfe4] sm:$0xf]  ;;  %v10918_v3 = vor.u32 %v12762_v52, %v10915_v42 }
 0x2d2   : > { %7898 = vmatpush.bf16.msrb.mxu1 %v10822_v27  ;;  %v11219_v61 = vld [vmem:[%s14186_s23 + $0xff0] sm:$0xf0]  ;;  %v12726_v5 = vld [vmem:[%s14186_s23 + $0xc64] sm:$0xf]  ;;  %v11046_v40 = vor.u32 %v12794_v53, %v11043_v59 }
 0x2d3   : > { %7911 = vmatpush.bf16.msrb.mxu2 %v10950_v32  ;;  %v10771_v6 = vld [vmem:[%s14186_s23 + $0xc70] sm:$0xf0]  ;;  %v11222_v11 = vor.u32 %v12838_v60, %v11219_v61  ;;  %v12758_v16 = vld [vmem:[%s14186_s23 + $0xd64] sm:$0xf]  ;;  %v7659_v39 = vpop.f32.mrf.mxu2  ;;  %v7635_v50 = vpop.f32.mrf.mxu0 }
 0x2d4   : > { %7924 = vmatpush.bf16.msrb.mxu3 %v11078_v37  ;;  %v10899_v18 = vld [vmem:[%s14186_s23 + $0xd70] sm:$0xf0]  ;;  %v12790_v2 = vld [vmem:[%s14186_s23 + $0xe64] sm:$0xf]  ;;  %v10774_v33 = vor.u32 %v12726_v5, %v10771_v6  ;;  %v7660_v45 = vadd.f32 %v7659_v39, %v7647_v7 }
 0x2d5   : > { %7890 = vmatpush.bf16.msrb.mxu0 %v10614_v44  ;;  %v11027_v19 = vld [vmem:[%s14186_s23 + $0xe70] sm:$0xf0]  ;;  %v12834_v27 = vld [vmem:[%s14186_s23 + $0xfc4] sm:$0xf]  ;;  %v10902_v35 = vor.u32 %v12758_v16, %v10899_v18 }
 0x2d6   : > { %7899 = vmatpush.bf16.msrb.mxu1 %v10806_v46  ;;  %v11203_v32 = vld [vmem:[%s14186_s23 + $0xfd0] sm:$0xf0]  ;;  %v12722_v36 = vld [vmem:[%s14186_s23 + $0xc44] sm:$0xf]  ;;  %v11030_v38 = vor.u32 %v12790_v2, %v11027_v19  ;;  %v7672_v46 = vpop.f32.mrf.mxu3 }
 0x2d7   : > { %7912 = vmatpush.bf16.msrb.mxu2 %v10934_v47  ;;  %v10755_v37 = vld [vmem:[%s14186_s23 + $0xc50] sm:$0xf0]  ;;  %v11206_v41 = vor.u32 %v12834_v27, %v11203_v32  ;;  %v12754_v31 = vld [vmem:[%s14186_s23 + $0xd44] sm:$0xf]  ;;  %v14940_v52 = vadd.f32 %v7672_v46, %v7660_v45 }
 0x2d8   : > { %7925 = vmatpush.bf16.msrb.mxu3 %v11062_v51  ;;  %v10883_v43 = vld [vmem:[%s14186_s23 + $0xd50] sm:$0xf0]  ;;  %v12786_v44 = vld [vmem:[%s14186_s23 + $0xe44] sm:$0xf]  ;;  %v7648_v51 = vpop.f32.mrf.mxu1  ;;  %v10758_v42 = vor.u32 %v12722_v36, %v10755_v37 }
 0x2d9   : > { %7891 = vmatpush.bf16.msrb.mxu0 %v10598_v63  ;;  %v11011_v47 = vld [vmem:[%s14186_s23 + $0xe50] sm:$0xf0]  ;;  %v12830_v48 = vld [vmem:[%s14186_s23 + $0xfa4] sm:$0xf]  ;;  %v10886_v53 = vor.u32 %v12754_v31, %v10883_v43 }
 0x2da   : > { %7900 = vmatpush.bf16.msrb.mxu1 %v10790_v1  ;;  %v11187_v49 = vld [vmem:[%s14186_s23 + $0xfb0] sm:$0xf0]  ;;  %v12718_v58 = vld [vmem:[%s14186_s23 + $0xc24] sm:$0xf]  ;;  %v11014_v60 = vor.u32 %v12786_v44, %v11011_v47 }
 0x2db   : > { %7913 = vmatpush.bf16.msrb.mxu2 %v10918_v3  ;;  %v10739_v59 = vld [vmem:[%s14186_s23 + $0xc30] sm:$0xf0]  ;;  %v11190_v61 = vor.u32 %v12830_v48, %v11187_v49  ;;  %v12750_v62 = vld [vmem:[%s14186_s23 + $0xd24] sm:$0xf] }
 0x2dc   : > { %7926 = vmatpush.bf16.msrb.mxu3 %v11046_v40  ;;  %7892 = vmatmul.bf16.vlgmr.msrb.gmra.mxu0 %v14432_v25  ;;  %v10867_v63 = vld [vmem:[%s14186_s23 + $0xd30] sm:$0xf0]  ;;  %v12782_v0 = vld [vmem:[%s14186_s23 + $0xe24] sm:$0xf]  ;;  %v10742_v6 = vor.u32 %v12718_v58, %v10739_v59 }
 0x2dd   : > { %7936 = vmatpush.bf16.msra.mxu0 %v11222_v11  ;;  %v10995_v1 = vld [vmem:[%s14186_s23 + $0xe30] sm:$0xf0]  ;;  %v12826_v3 = vld [vmem:[%s14186_s23 + $0xf84] sm:$0xf]  ;;  %v10870_v40 = vor.u32 %v12750_v62, %v10867_v63 }
 0x2de   : > { %7901 = vmatpush.bf16.msrb.mxu1 %v10774_v33  ;;  %v11171_v5 = vld [vmem:[%s14186_s23 + $0xf90] sm:$0xf0]  ;;  %v12714_v7 = vld [vmem:[%s14186_s23 + $0xc04] sm:$0xf]  ;;  %v10998_v18 = vor.u32 %v12782_v0, %v10995_v1  ;;  %v7661_v33 = vpop.f32.mrf.mxu2 }
 0x2df   : > { %7914 = vmatpush.bf16.msrb.mxu2 %v10902_v35  ;;  %v10723_v11 = vld [vmem:[%s14186_s23 + $0xc10] sm:$0xf0]  ;;  %v12746_v16 = vld [vmem:[%s14186_s23 + $0xd04] sm:$0xf]  ;;  %v11174_v2 = vor.u32 %v12826_v3, %v11171_v5 }
 0x2e0   : > { %7927 = vmatpush.bf16.msrb.mxu3 %v11030_v38  ;;  %v10851_v19 = vld [vmem:[%s14186_s23 + $0xd10] sm:$0xf0]  ;;  %v12778_v27 = vld [vmem:[%s14186_s23 + $0xe04] sm:$0xf]  ;;  %v7674_v38 = vpop.f32.mrf.mxu3  ;;  %v10726_v43 = vor.u32 %v12714_v7, %v10723_v11 }
 0x2e1   : > { %7937 = vmatpush.bf16.msra.mxu0 %v11206_v41  ;;  %v10979_v32 = vld [vmem:[%s14186_s23 + $0xe10] sm:$0xf0]  ;;  %v12822_v35 = vld [vmem:[%s14186_s23 + $0xf64] sm:$0xf]  ;;  %v10854_v44 = vor.u32 %v12746_v16, %v10851_v19 }
 0x2e2   : > { %7902 = vmatpush.bf16.msrb.mxu1 %v10758_v42  ;;  %v11155_v36 = vld [vmem:[%s14186_s23 + $0xf70] sm:$0xf0]  ;;  %v12870_v37 = vld [vmem:[%s14186_s23 + $0x10e4] sm:$0xf]  ;;  %v10982_v47 = vor.u32 %v12778_v27, %v10979_v32 }
 0x2e3   : > { %7915 = vmatpush.bf16.msrb.mxu2 %v10886_v53  ;;  %v11347_v39 = vld [vmem:[%s14186_s23 + $0x10f0] sm:$0xf0]  ;;  %v12902_v41 = vld [vmem:[%s14186_s23 + $0x11e4] sm:$0xf]  ;;  %v11158_v48 = vor.u32 %v12822_v35, %v11155_v36 }
 0x2e4   : > { %7928 = vmatpush.bf16.msrb.mxu3 %v11014_v60  ;;  %v11475_v31 = vld [vmem:[%s14186_s23 + $0x11f0] sm:$0xf0]  ;;  %v12934_v45 = vld [vmem:[%s14186_s23 + $0x12e4] sm:$0xf]  ;;  %v11350_v49 = vor.u32 %v12870_v37, %v11347_v39 }
 0x2e5   : > { %7938 = vmatpush.bf16.msra.mxu0 %v11190_v61  ;;  %v11603_v46 = vld [vmem:[%s14186_s23 + $0x12f0] sm:$0xf0]  ;;  %v11478_v50 = vor.u32 %v12902_v41, %v11475_v31  ;;  %v12818_v51 = vld [vmem:[%s14186_s23 + $0xf44] sm:$0xf] }
 0x2e6   : > { %7903 = vmatpush.bf16.msrb.mxu1 %v10742_v6  ;;  %v11139_v42 = vld [vmem:[%s14186_s23 + $0xf50] sm:$0xf0]  ;;  %v12866_v53 = vld [vmem:[%s14186_s23 + $0x10c4] sm:$0xf]  ;;  %v11606_v58 = vor.u32 %v12934_v45, %v11603_v46 }
 0x2e7   : > { %7916 = vmatpush.bf16.msrb.mxu2 %v10870_v40  ;;  %v11331_v59 = vld [vmem:[%s14186_s23 + $0x10d0] sm:$0xf0]  ;;  %v12898_v60 = vld [vmem:[%s14186_s23 + $0x11c4] sm:$0xf]  ;;  %v11142_v0 = vor.u32 %v12818_v51, %v11139_v42 }
 0x2e8   : > { %7929 = vmatpush.bf16.msrb.mxu3 %v10998_v18  ;;  %v11459_v61 = vld [vmem:[%s14186_s23 + $0x11d0] sm:$0xf0]  ;;  %v12930_v62 = vld [vmem:[%s14186_s23 + $0x12c4] sm:$0xf]  ;;  %v11334_v1 = vor.u32 %v12866_v53, %v11331_v59 }
 0x2e9   : > { %7939 = vmatpush.bf16.msra.mxu0 %v11174_v2  ;;  %v11587_v63 = vld [vmem:[%s14186_s23 + $0x12d0] sm:$0xf0]  ;;  %v11462_v3 = vor.u32 %v12898_v60, %v11459_v61  ;;  %v12814_v5 = vld [vmem:[%s14186_s23 + $0xf24] sm:$0xf] }
 0x2ea   : > { %7904 = vmatpush.bf16.msrb.mxu1 %v10726_v43  ;;  %v11123_v6 = vld [vmem:[%s14186_s23 + $0xf30] sm:$0xf0]  ;;  %v12862_v40 = vld [vmem:[%s14186_s23 + $0x10a4] sm:$0xf]  ;;  %v11590_v7 = vor.u32 %v12930_v62, %v11587_v63 }
 0x2eb   : > { %7917 = vmatpush.bf16.msrb.mxu2 %v10854_v44  ;;  %v11315_v11 = vld [vmem:[%s14186_s23 + $0x10b0] sm:$0xf0]  ;;  %v12894_v16 = vld [vmem:[%s14186_s23 + $0x11a4] sm:$0xf]  ;;  %v11126_v27 = vor.u32 %v12814_v5, %v11123_v6  ;;  %v7685_v44 = vpop.f32.mrf.mxu0 }
 0x2ec   : > { %7930 = vmatpush.bf16.msrb.mxu3 %v10982_v47  ;;  %v11443_v18 = vld [vmem:[%s14186_s23 + $0x11b0] sm:$0xf0]  ;;  %v12926_v2 = vld [vmem:[%s14186_s23 + $0x12a4] sm:$0xf]  ;;  %v11318_v33 = vor.u32 %v12862_v40, %v11315_v11 }
 0x2ed   : > { %7940 = vmatpush.bf16.msra.mxu0 %v11158_v48  ;;  %7905 = vmatmul.bf16.vlgmr.msrb.gmra.mxu1 %v14490_v54  ;;  %v11571_v19 = vld [vmem:[%s14186_s23 + $0x12b0] sm:$0xf0]  ;;  %v12810_v32 = vld [vmem:[%s14186_s23 + $0xf04] sm:$0xf]  ;;  %v11446_v35 = vor.u32 %v12894_v16, %v11443_v18  ;;  %v7686_v48 = vadd.f32 %v7685_v44, %v14940_v52 }
 0x2ee   : > { %7949 = vmatpush.bf16.msra.mxu1 %v11350_v49  ;;  %7918 = vmatmul.bf16.vlgmr.msrb.gmra.mxu2 %v14494_v56  ;;  %v11107_v36 = vld [vmem:[%s14186_s23 + $0xf10] sm:$0xf0]  ;;  %v12858_v37 = vld [vmem:[%s14186_s23 + $0x1084] sm:$0xf]  ;;  %v11574_v39 = vor.u32 %v12926_v2, %v11571_v19 }
 0x2ef   : > { %7962 = vmatpush.bf16.msra.mxu2 %v11478_v50  ;;  %7931 = vmatmul.bf16.vlgmr.msrb.gmra.mxu3 %v14492_v55  ;;  %v11299_v38 = vld [vmem:[%s14186_s23 + $0x1090] sm:$0xf0]  ;;  %v12890_v41 = vld [vmem:[%s14186_s23 + $0x1184] sm:$0xf]  ;;  %v11110_v49 = vor.u32 %v12810_v32, %v11107_v36  ;;  %v7698_v50 = vpop.f32.mrf.mxu1 }
 0x2f0   : > { %7975 = vmatpush.bf16.msra.mxu3 %v11606_v58  ;;  %v11427_v31 = vld [vmem:[%s14186_s23 + $0x1190] sm:$0xf0]  ;;  %v12922_v43 = vld [vmem:[%s14186_s23 + $0x1284] sm:$0xf]  ;;  %v11302_v51 = vor.u32 %v12858_v37, %v11299_v38  ;;  %v7699_v60 = vadd.f32 %v7698_v50, %v7686_v48 }
 0x2f1   : > { %7941 = vmatpush.bf16.msra.mxu0 %v11142_v0  ;;  %v11555_v45 = vld [vmem:[%s14186_s23 + $0x1290] sm:$0xf0]  ;;  %v12966_v46 = vld [vmem:[%s14186_s23 + $0x13e4] sm:$0xf]  ;;  %v11430_v42 = vor.u32 %v12890_v41, %v11427_v31  ;;  %v7711_v16 = vpop.f32.mrf.mxu2 }
 0x2f2   : > { %7950 = vmatpush.bf16.msra.mxu1 %v11334_v1  ;;  %v11731_v47 = vld [vmem:[%s14186_s23 + $0x13f0] sm:$0xf0]  ;;  %v12854_v53 = vld [vmem:[%s14186_s23 + $0x1064] sm:$0xf]  ;;  %v11558_v59 = vor.u32 %v12922_v43, %v11555_v45  ;;  %v7712_v32 = vadd.f32 %v7711_v16, %v7699_v60 }
 0x2f3   : > { %7963 = vmatpush.bf16.msra.mxu2 %v11462_v3  ;;  %v11283_v58 = vld [vmem:[%s14186_s23 + $0x1070] sm:$0xf0]  ;;  %v11734_v61 = vor.u32 %v12966_v46, %v11731_v47  ;;  %v12886_v62 = vld [vmem:[%s14186_s23 + $0x1164] sm:$0xf] }
 0x2f4   : > { %7976 = vmatpush.bf16.msra.mxu3 %v11590_v7  ;;  %v11411_v63 = vld [vmem:[%s14186_s23 + $0x1170] sm:$0xf0]  ;;  %v12918_v52 = vld [vmem:[%s14186_s23 + $0x1264] sm:$0xf]  ;;  %v11286_v5 = vor.u32 %v12854_v53, %v11283_v58 }
 0x2f5   : > { %7942 = vmatpush.bf16.msra.mxu0 %v11126_v27  ;;  %v11539_v0 = vld [vmem:[%s14186_s23 + $0x1270] sm:$0xf0]  ;;  %v12962_v1 = vld [vmem:[%s14186_s23 + $0x13c4] sm:$0xf]  ;;  %v11414_v6 = vor.u32 %v12886_v62, %v11411_v63 }
 0x2f6   : > { %7951 = vmatpush.bf16.msra.mxu1 %v11318_v33  ;;  %v11715_v3 = vld [vmem:[%s14186_s23 + $0x13d0] sm:$0xf0]  ;;  %v12850_v40 = vld [vmem:[%s14186_s23 + $0x1044] sm:$0xf]  ;;  %v11542_v11 = vor.u32 %v12918_v52, %v11539_v0  ;;  %v7687_v33 = vpop.f32.mrf.mxu0 }
 0x2f7   : > { %7964 = vmatpush.bf16.msra.mxu2 %v11446_v35  ;;  %v11267_v7 = vld [vmem:[%s14186_s23 + $0x1050] sm:$0xf0]  ;;  %v11718_v18 = vor.u32 %v12962_v1, %v11715_v3  ;;  %v12882_v2 = vld [vmem:[%s14186_s23 + $0x1144] sm:$0xf]  ;;  %v7724_v35 = vpop.f32.mrf.mxu3 }
 0x2f8   : > { %7977 = vmatpush.bf16.msra.mxu3 %v11574_v39  ;;  %v11395_v19 = vld [vmem:[%s14186_s23 + $0x1150] sm:$0xf0]  ;;  %v12914_v27 = vld [vmem:[%s14186_s23 + $0x1244] sm:$0xf]  ;;  %v7700_v39 = vpop.f32.mrf.mxu1  ;;  %v7725_v41 = vadd.f32 %v7724_v35, %v7712_v32  ;;  %v11270_v31 = vor.u32 %v12850_v40, %v11267_v7 }
 0x2f9   : > { %7943 = vmatpush.bf16.msra.mxu0 %v11110_v49  ;;  %v11523_v36 = vld [vmem:[%s14186_s23 + $0x1250] sm:$0xf0]  ;;  %v12958_v37 = vld [vmem:[%s14186_s23 + $0x13a4] sm:$0xf]  ;;  %v11398_v43 = vor.u32 %v12882_v2, %v11395_v19 }
 0x2fa   : > { %7952 = vmatpush.bf16.msra.mxu1 %v11302_v51  ;;  %v11699_v38 = vld [vmem:[%s14186_s23 + $0x13b0] sm:$0xf0]  ;;  %v12846_v44 = vld [vmem:[%s14186_s23 + $0x1024] sm:$0xf]  ;;  %v11526_v46 = vor.u32 %v12914_v27, %v11523_v36 }
 0x2fb   : > { %7965 = vmatpush.bf16.msra.mxu2 %v11430_v42  ;;  %v11251_v45 = vld [vmem:[%s14186_s23 + $0x1030] sm:$0xf0]  ;;  %v11702_v47 = vor.u32 %v12958_v37, %v11699_v38  ;;  %v12878_v48 = vld [vmem:[%s14186_s23 + $0x1124] sm:$0xf] }
 0x2fc   : > { %7978 = vmatpush.bf16.msra.mxu3 %v11558_v59  ;;  %7944 = vmatmul.bf16.vlgmr.msra.gmra.mxu0 %v14496_v57  ;;  %v11379_v49 = vld [vmem:[%s14186_s23 + $0x1130] sm:$0xf0]  ;;  %v12910_v50 = vld [vmem:[%s14186_s23 + $0x1224] sm:$0xf]  ;;  %v11254_v58 = vor.u32 %v12846_v44, %v11251_v45 }
 0x2fd   : > { %7988 = vmatpush.bf16.msrb.mxu0 %v11734_v61  ;;  %v11507_v51 = vld [vmem:[%s14186_s23 + $0x1230] sm:$0xf0]  ;;  %v12954_v42 = vld [vmem:[%s14186_s23 + $0x1384] sm:$0xf]  ;;  %v11382_v59 = vor.u32 %v12878_v48, %v11379_v49 }
 0x2fe   : > { %7953 = vmatpush.bf16.msra.mxu1 %v11286_v5  ;;  %v11683_v53 = vld [vmem:[%s14186_s23 + $0x1390] sm:$0xf0]  ;;  %v12842_v60 = vld [vmem:[%s14186_s23 + $0x1004] sm:$0xf]  ;;  %v11510_v63 = vor.u32 %v12910_v50, %v11507_v51  ;;  %v7713_v5 = vpop.f32.mrf.mxu2  ;;  %v7737_v16 = vpop.f32.mrf.mxu0 }
 0x2ff   : > { %7966 = vmatpush.bf16.msra.mxu2 %v11414_v6  ;;  %v11235_v61 = vld [vmem:[%s14186_s23 + $0x1010] sm:$0xf0]  ;;  %v12874_v62 = vld [vmem:[%s14186_s23 + $0x1104] sm:$0xf]  ;;  %v11686_v52 = vor.u32 %v12954_v42, %v11683_v53  ;;  %v15031_v27 = vadd.f32 %v7737_v16, %v7725_v41 }
 0x300   : > { %7979 = vmatpush.bf16.msra.mxu3 %v11542_v11  ;;  %v11363_v0 = vld [vmem:[%s14186_s23 + $0x1110] sm:$0xf0]  ;;  %v12906_v1 = vld [vmem:[%s14186_s23 + $0x1204] sm:$0xf]  ;;  %v7726_v11 = vpop.f32.mrf.mxu3  ;;  %v11238_v32 = vor.u32 %v12842_v60, %v11235_v61 }
 0x301   : > { %7989 = vmatpush.bf16.msrb.mxu0 %v11718_v18  ;;  %v11491_v3 = vld [vmem:[%s14186_s23 + $0x1210] sm:$0xf0]  ;;  %v12950_v6 = vld [vmem:[%s14186_s23 + $0x1364] sm:$0xf]  ;;  %v11366_v33 = vor.u32 %v12874_v62, %v11363_v0 }
 0x302   : > { %7954 = vmatpush.bf16.msra.mxu1 %v11270_v31  ;;  %v11667_v40 = vld [vmem:[%s14186_s23 + $0x1370] sm:$0xf0]  ;;  %v12998_v7 = vld [vmem:[%s14186_s23 + $0x14e4] sm:$0xf]  ;;  %v11494_v37 = vor.u32 %v12906_v1, %v11491_v3  ;;  %v8716_v31 = vmax.f32 %v15031_v27, 0.0 }
 0x303   : > { %7967 = vmatpush.bf16.msra.mxu2 %v11398_v43  ;;  %v11859_v18 = vld [vmem:[%s14186_s23 + $0x14f0] sm:$0xf0]  ;;  %v13030_v2 = vld [vmem:[%s14186_s23 + $0x15e4] sm:$0xf]  ;;  %v11670_v38 = vor.u32 %v12950_v6, %v11667_v40 }
 0x304   : > { %7980 = vmatpush.bf16.msra.mxu3 %v11526_v46  ;;  %v11987_v19 = vld [vmem:[%s14186_s23 + $0x15f0] sm:$0xf0]  ;;  %v13062_v35 = vld [vmem:[%s14186_s23 + $0x16e4] sm:$0xf]  ;;  %v11862_v43 = vor.u32 %v12998_v7, %v11859_v18 }
 0x305   : > { %7990 = vmatpush.bf16.msrb.mxu0 %v11702_v47  ;;  %v12115_v36 = vld [vmem:[%s14186_s23 + $0x16f0] sm:$0xf0]  ;;  %v12946_v39 = vld [vmem:[%s14186_s23 + $0x1344] sm:$0xf]  ;;  %v11990_v44 = vor.u32 %v13030_v2, %v11987_v19 }
 0x306   : > { %7955 = vmatpush.bf16.msra.mxu1 %v11254_v58  ;;  %v11651_v41 = vld [vmem:[%s14186_s23 + $0x1350] sm:$0xf0]  ;;  %v12994_v45 = vld [vmem:[%s14186_s23 + $0x14c4] sm:$0xf]  ;;  %v12118_v46 = vor.u32 %v13062_v35, %v12115_v36  ;;  %v7739_v1 = vpop.f32.mrf.mxu0  ;;  %v13181_v36 = vld [vmem:[%s14625_s8] sm:$0xf] }
 0x307   : > { %7968 = vmatpush.bf16.msra.mxu2 %v11382_v59  ;;  %v11843_v47 = vld [vmem:[%s14186_s23 + $0x14d0] sm:$0xf0]  ;;  %v13026_v48 = vld [vmem:[%s14186_s23 + $0x15c4] sm:$0xf]  ;;  %v11654_v42 = vor.u32 %v12946_v39, %v11651_v41 }
 0x308   : > { %7981 = vmatpush.bf16.msra.mxu3 %v11510_v63  ;;  %v11971_v49 = vld [vmem:[%s14186_s23 + $0x15d0] sm:$0xf0]  ;;  %v13058_v50 = vld [vmem:[%s14186_s23 + $0x16c4] sm:$0xf]  ;;  %v11846_v53 = vor.u32 %v12994_v45, %v11843_v47 }
 0x309   : > { %7991 = vmatpush.bf16.msrb.mxu0 %v11686_v52  ;;  %v12099_v51 = vld [vmem:[%s14186_s23 + $0x16d0] sm:$0xf0]  ;;  %v11974_v58 = vor.u32 %v13026_v48, %v11971_v49  ;;  %v12942_v59 = vld [vmem:[%s14186_s23 + $0x1324] sm:$0xf] }
 0x30a   : > { %7956 = vmatpush.bf16.msra.mxu1 %v11238_v32  ;;  %v11635_v60 = vld [vmem:[%s14186_s23 + $0x1330] sm:$0xf0]  ;;  %v12990_v61 = vld [vmem:[%s14186_s23 + $0x14a4] sm:$0xf]  ;;  %v12102_v62 = vor.u32 %v13058_v50, %v12099_v51  ;;  %v7750_v41 = vpop.f32.mrf.mxu1 }
 0x30b   : > { %7969 = vmatpush.bf16.msra.mxu2 %v11366_v33  ;;  %v11827_v63 = vld [vmem:[%s14186_s23 + $0x14b0] sm:$0xf0]  ;;  %v13022_v52 = vld [vmem:[%s14186_s23 + $0x15a4] sm:$0xf]  ;;  %v11638_v6 = vor.u32 %v12942_v59, %v11635_v60 }
 0x30c   : > { %7982 = vmatpush.bf16.msra.mxu3 %v11494_v37  ;;  %v11955_v0 = vld [vmem:[%s14186_s23 + $0x15b0] sm:$0xf0]  ;;  %v13054_v3 = vld [vmem:[%s14186_s23 + $0x16a4] sm:$0xf]  ;;  %v11830_v11 = vor.u32 %v12990_v61, %v11827_v63  ;;  %v3429_v37 = vperm.slane %v13181_v36, 1 }
 0x30d   : > { %7992 = vmatpush.bf16.msrb.mxu0 %v11670_v38  ;;  %7957 = vmatmul.bf16.vlgmr.msra.gmra.mxu1 %v14580_v17  ;;  %v12083_v5 = vld [vmem:[%s14186_s23 + $0x16b0] sm:$0xf0]  ;;  %v12938_v40 = vld [vmem:[%s14186_s23 + $0x1304] sm:$0xf]  ;;  %v11958_v16 = vor.u32 %v13022_v52, %v11955_v0 }
 0x30e   : > { %8001 = vmatpush.bf16.msrb.mxu1 %v11862_v43  ;;  %7970 = vmatmul.bf16.vlgmr.msra.gmra.mxu2 %v14592_v22  ;;  %v11619_v7 = vld [vmem:[%s14186_s23 + $0x1310] sm:$0xf0]  ;;  %v12986_v18 = vld [vmem:[%s14186_s23 + $0x1484] sm:$0xf]  ;;  %v12086_v32 = vor.u32 %v13054_v3, %v12083_v5 }
 0x30f   : > { %8014 = vmatpush.bf16.msrb.mxu2 %v11990_v44  ;;  %7983 = vmatmul.bf16.vlgmr.msra.gmra.mxu3 %v14590_v21  ;;  %v11811_v2 = vld [vmem:[%s14186_s23 + $0x1490] sm:$0xf0]  ;;  %v13018_v19 = vld [vmem:[%s14186_s23 + $0x1584] sm:$0xf]  ;;  %v11622_v44 = vor.u32 %v12938_v40, %v11619_v7 }
 0x310   : > { %8027 = vmatpush.bf16.msrb.mxu3 %v12118_v46  ;;  %v11939_v33 = vld [vmem:[%s14186_s23 + $0x1590] sm:$0xf0]  ;;  %v13050_v35 = vld [vmem:[%s14186_s23 + $0x1684] sm:$0xf]  ;;  %v11814_v45 = vor.u32 %v12986_v18, %v11811_v2 }
 0x311   : > { %7993 = vmatpush.bf16.msrb.mxu0 %v11654_v42  ;;  %v12067_v38 = vld [vmem:[%s14186_s23 + $0x1690] sm:$0xf0]  ;;  %v13094_v39 = vld [vmem:[%s14186_s23 + $0x17e4] sm:$0xf]  ;;  %v11942_v46 = vor.u32 %v13018_v19, %v11939_v33  ;;  %v7763_v1 = vpop.f32.mrf.mxu2 }
 0x312   : > { %8002 = vmatpush.bf16.msrb.mxu1 %v11846_v53  ;;  %v12243_v43 = vld [vmem:[%s14186_s23 + $0x17f0] sm:$0xf0]  ;;  %v12982_v47 = vld [vmem:[%s14186_s23 + $0x1464] sm:$0xf]  ;;  %v12070_v49 = vor.u32 %v13050_v35, %v12067_v38  ;;  %v7752_v33 = vpop.f32.mrf.mxu1 }
 0x313   : > { %8015 = vmatpush.bf16.msrb.mxu2 %v11974_v58  ;;  %v11795_v48 = vld [vmem:[%s14186_s23 + $0x1470] sm:$0xf0]  ;;  %v12246_v50 = vor.u32 %v13094_v39, %v12243_v43  ;;  %v13014_v51 = vld [vmem:[%s14186_s23 + $0x1564] sm:$0xf]  ;;  %v7751_v58 = vadd.f32 %v7750_v41, %v3429_v37 }
 0x314   : > { %8028 = vmatpush.bf16.msrb.mxu3 %v12102_v62  ;;  %v11923_v42 = vld [vmem:[%s14186_s23 + $0x1570] sm:$0xf0]  ;;  %v13046_v53 = vld [vmem:[%s14186_s23 + $0x1664] sm:$0xf]  ;;  %v11798_v62 = vor.u32 %v12982_v47, %v11795_v48 }
 0x315   : > { %7994 = vmatpush.bf16.msrb.mxu0 %v11638_v6  ;;  %v12051_v59 = vld [vmem:[%s14186_s23 + $0x1670] sm:$0xf0]  ;;  %v13090_v60 = vld [vmem:[%s14186_s23 + $0x17c4] sm:$0xf]  ;;  %v11926_v63 = vor.u32 %v13014_v51, %v11923_v42 }
 0x316   : > { %8003 = vmatpush.bf16.msrb.mxu1 %v11830_v11  ;;  %v12227_v61 = vld [vmem:[%s14186_s23 + $0x17d0] sm:$0xf0]  ;;  %v12978_v52 = vld [vmem:[%s14186_s23 + $0x1444] sm:$0xf]  ;;  %v12054_v3 = vor.u32 %v13046_v53, %v12051_v59  ;;  %v7764_v11 = vadd.f32 %v7763_v1, %v7751_v58 }
 0x317   : > { %8016 = vmatpush.bf16.msrb.mxu2 %v11958_v16  ;;  %v11779_v0 = vld [vmem:[%s14186_s23 + $0x1450] sm:$0xf0]  ;;  %v12230_v5 = vor.u32 %v13090_v60, %v12227_v61  ;;  %v13010_v6 = vld [vmem:[%s14186_s23 + $0x1544] sm:$0xf]  ;;  %v7776_v16 = vpop.f32.mrf.mxu3 }
 0x318   : > { %8029 = vmatpush.bf16.msrb.mxu3 %v12086_v32  ;;  %v11907_v40 = vld [vmem:[%s14186_s23 + $0x1550] sm:$0xf0]  ;;  %v13042_v7 = vld [vmem:[%s14186_s23 + $0x1644] sm:$0xf]  ;;  %v7777_v32 = vadd.f32 %v7776_v16, %v7764_v11  ;;  %v11782_v35 = vor.u32 %v12978_v52, %v11779_v0  ;;  %v12393_v11 = vld [vmem:[%s14186_s23 + $0x1f4] sm:$0xf0] }
 0x319   : > { %7995 = vmatpush.bf16.msrb.mxu0 %v11622_v44  ;;  %v12035_v18 = vld [vmem:[%s14186_s23 + $0x1650] sm:$0xf0]  ;;  %v13086_v2 = vld [vmem:[%s14186_s23 + $0x17a4] sm:$0xf]  ;;  %v11910_v36 = vor.u32 %v13010_v6, %v11907_v40  ;;  %v7765_v60 = vpop.f32.mrf.mxu2  ;;  %v9305_v6 = vld [vmem:[%s14186_s23 + $0xe8] sm:$0xf] }
 0x31a   : > { %8004 = vmatpush.bf16.msrb.mxu1 %v11814_v45  ;;  %v12211_v19 = vld [vmem:[%s14186_s23 + $0x17b0] sm:$0xf0]  ;;  %v12974_v37 = vld [vmem:[%s14186_s23 + $0x1424] sm:$0xf]  ;;  %v12038_v39 = vor.u32 %v13042_v7, %v12035_v18  ;;  %v12361_v40 = vld [vmem:[%s14186_s23 + $0xf4] sm:$0xf0] }
 0x31b   : > { %8017 = vmatpush.bf16.msrb.mxu2 %v11942_v46  ;;  %v11763_v38 = vld [vmem:[%s14186_s23 + $0x1430] sm:$0xf0]  ;;  %v12214_v43 = vor.u32 %v13086_v2, %v12211_v19  ;;  %v13006_v44 = vld [vmem:[%s14186_s23 + $0x1524] sm:$0xf]  ;;  %v9433_v7 = vld [vmem:[%s14186_s23 + $0x1e8] sm:$0xf] }
 0x31c   : > { %8030 = vmatpush.bf16.msrb.mxu3 %v12070_v49  ;;  %7996 = vmatmul.bf16.vlgmr.msrb.gmra.mxu0 %v14594_v26  ;;  %v11891_v41 = vld [vmem:[%s14186_s23 + $0x1530] sm:$0xf0]  ;;  %v13038_v45 = vld [vmem:[%s14186_s23 + $0x1624] sm:$0xf]  ;;  %v7789_v49 = vpop.f32.mrf.mxu0 }
 0x31d   : > { %8040 = vmatpush.bf16.msra.mxu0 %v12246_v50  ;;  %v12019_v46 = vld [vmem:[%s14186_s23 + $0x1630] sm:$0xf0]  ;;  %v13082_v47 = vld [vmem:[%s14186_s23 + $0x1784] sm:$0xf]  ;;  %v11766_v50 = vor.u32 %v12974_v37, %v11763_v38  ;;  %v11894_v51 = vor.u32 %v13006_v44, %v11891_v41  ;;  %v15094_v59 = vadd.f32 %v7789_v49, %v7777_v32  ;;  %v12357_v44 = vld [vmem:[%s14186_s23 + $0xd4] sm:$0xf0] }
 0x31e   : > { %8005 = vmatpush.bf16.msrb.mxu1 %v11798_v62  ;;  %v12195_v48 = vld [vmem:[%s14186_s23 + $0x1790] sm:$0xf0]  ;;  %v12970_v42 = vld [vmem:[%s14186_s23 + $0x1404] sm:$0xf]  ;;  %v12022_v61 = vor.u32 %v13038_v45, %v12019_v46  ;;  %v9417_v41 = vld [vmem:[%s14186_s23 + $0x1c8] sm:$0xf] }
 0x31f   : > { %8018 = vmatpush.bf16.msrb.mxu2 %v11926_v63  ;;  %v11747_v53 = vld [vmem:[%s14186_s23 + $0x1410] sm:$0xf0]  ;;  %v13002_v58 = vld [vmem:[%s14186_s23 + $0x1504] sm:$0xf]  ;;  %v12198_v62 = vor.u32 %v13082_v47, %v12195_v48  ;;  %v7778_v1 = vpop.f32.mrf.mxu3  ;;  %v12389_v45 = vld [vmem:[%s14186_s23 + $0x1d4] sm:$0xf0] }
 0x320   : > { %8031 = vmatpush.bf16.msrb.mxu3 %v12054_v3  ;;  %v11875_v63 = vld [vmem:[%s14186_s23 + $0x1510] sm:$0xf0]  ;;  %v13034_v52 = vld [vmem:[%s14186_s23 + $0x1604] sm:$0xf]  ;;  %v11750_v16 = vor.u32 %v12970_v42, %v11747_v53 }
 0x321   : > { %8041 = vmatpush.bf16.msra.mxu0 %v12230_v5  ;;  %v12003_v0 = vld [vmem:[%s14186_s23 + $0x1610] sm:$0xf0]  ;;  %v13078_v3 = vld [vmem:[%s14186_s23 + $0x1764] sm:$0xf]  ;;  %v11878_v18 = vor.u32 %v13002_v58, %v11875_v63  ;;  %v9273_v58 = vld [vmem:[%s14186_s23 + $0xa8] sm:$0xf] }
 0x322   : > { %8006 = vmatpush.bf16.msrb.mxu1 %v11782_v35  ;;  %v12179_v5 = vld [vmem:[%s14186_s23 + $0x1770] sm:$0xf0]  ;;  %v13110_v2 = vld [vmem:[%s14186_s23 + $0x1864] sm:$0xf]  ;;  %v12006_v32 = vor.u32 %v13034_v52, %v12003_v0  ;;  %v9306_v35 = vor.u32 %v12361_v40, %v9305_v6  ;;  %v12385_v63 = vld [vmem:[%s14186_s23 + $0x1b4] sm:$0xf0] }
 0x323   : > { %8019 = vmatpush.bf16.msrb.mxu2 %v11910_v36  ;;  %v12307_v19 = vld [vmem:[%s14186_s23 + $0x1870] sm:$0xf0]  ;;  %v12182_v33 = vor.u32 %v13078_v3, %v12179_v5  ;;  %v9434_v36 = vor.u32 %v12393_v11, %v9433_v7  ;;  %v13074_v37 = vld [vmem:[%s14186_s23 + $0x1744] sm:$0xf]  ;;  %v9257_v7 = vld [vmem:[%s14186_s23 + $0x88] sm:$0xf] }
 0x324   : > { %8032 = vmatpush.bf16.msrb.mxu3 %v12038_v39  ;;  %v12163_v38 = vld [vmem:[%s14186_s23 + $0x1750] sm:$0xf0]  ;;  %v9289_v39 = vld [vmem:[%s14186_s23 + $0xc8] sm:$0xf]  ;;  %v7791_v46 = vpop.f32.mrf.mxu0  ;;  %v13106_v47 = vld [vmem:[%s14186_s23 + $0x1844] sm:$0xf] }
 0x325   : > { %8042 = vmatpush.bf16.msra.mxu0 %v12214_v43  ;;  %v12310_v43 = vor.u32 %v13110_v2, %v12307_v19  ;;  %v12291_v48 = vld [vmem:[%s14186_s23 + $0x1850] sm:$0xf0]  ;;  %v12166_v49 = vor.u32 %v13074_v37, %v12163_v38  ;;  %v13070_v42 = vld [vmem:[%s14186_s23 + $0x1724] sm:$0xf]  ;;  %v12349_v11 = vld [vmem:[%s14186_s23 + $0x94] sm:$0xf0] }
 0x326   : > { %8007 = vmatpush.bf16.msrb.mxu1 %v11766_v50  ;;  %v9290_v50 = vor.u32 %v12357_v44, %v9289_v39  ;;  %v12147_v53 = vld [vmem:[%s14186_s23 + $0x1730] sm:$0xf0]  ;;  %v12294_v60 = vor.u32 %v13106_v47, %v12291_v48  ;;  %v13102_v52 = vld [vmem:[%s14186_s23 + $0x1824] sm:$0xf]  ;;  %v12381_v2 = vld [vmem:[%s14186_s23 + $0x194] sm:$0xf0] }
 0x327   : > { %8020 = vmatpush.bf16.msrb.mxu2 %v11894_v51  ;;  %v9418_v51 = vor.u32 %v12389_v45, %v9417_v41  ;;  %v12275_v0 = vld [vmem:[%s14186_s23 + $0x1830] sm:$0xf0]  ;;  %v12150_v1 = vor.u32 %v13070_v42, %v12147_v53  ;;  %v13066_v3 = vld [vmem:[%s14186_s23 + $0x1704] sm:$0xf]  ;;  %v9689_v37 = vld [vmem:[%s14186_s23 + $0x3e8] sm:$0xf] }
 0x328   : > { %8033 = vmatpush.bf16.msrb.mxu3 %v12022_v61  ;;  %v12353_v61 = vld [vmem:[%s14186_s23 + $0xb4] sm:$0xf0]  ;;  %v12131_v40 = vld [vmem:[%s14186_s23 + $0x1710] sm:$0xf0]  ;;  %v13098_v19 = vld [vmem:[%s14186_s23 + $0x1804] sm:$0xf] }
 0x329   : > { %8043 = vmatpush.bf16.msra.mxu0 %v12198_v62  ;;  %v9401_v62 = vld [vmem:[%s14186_s23 + $0x1a8] sm:$0xf]  ;;  %v9274_v5 = vor.u32 %v12353_v61, %v9273_v58  ;;  %v12457_v38 = vld [vmem:[%s14186_s23 + $0x3f4] sm:$0xf0] }
 0x32a   : > { %8008 = vmatpush.bf16.msrb.mxu1 %v11750_v16  ;;  %v9402_v6 = vor.u32 %v12385_v63, %v9401_v62  ;;  %v12278_v16 = vor.u32 %v13102_v52, %v12275_v0  ;;  %v7802_v39 = vpop.f32.mrf.mxu1  ;;  %v9241_v41 = vld [vmem:[%s14186_s23 + $0x68] sm:$0xf]  ;;  %v12345_v48 = vld [vmem:[%s14186_s23 + $0x74] sm:$0xf0] }
 0x32b   : > { %8021 = vmatpush.bf16.msrb.mxu2 %v11878_v18  ;;  %v9385_v18 = vld [vmem:[%s14186_s23 + $0x188] sm:$0xf]  ;;  %v7803_v45 = vadd.f32 %v7802_v39, %v15094_v59  ;;  %v12421_v53 = vld [vmem:[%s14186_s23 + $0x2d4] sm:$0xf0]  ;;  %v9242_v58 = vor.u32 %v12345_v48, %v9241_v41 }
 0x32c   : > { %8034 = vmatpush.bf16.msrb.mxu3 %v12006_v32  ;;  %v12259_v32 = vld [vmem:[%s14186_s23 + $0x1810] sm:$0xf0]  ;;  %v9386_v44 = vor.u32 %v12381_v2, %v9385_v18  ;;  %v9545_v42 = vld [vmem:[%s14186_s23 + $0x2c8] sm:$0xf]  ;;  %v12453_v61 = vld [vmem:[%s14186_s23 + $0x3d4] sm:$0xf0] }
 0x32d   : > { %8044 = vmatpush.bf16.msra.mxu0 %v12182_v33  ;;  %8009 = vmatmul.bf16.vlgmr.msrb.gmra.mxu1 %v14634_v12  ;;  %v9561_v33 = vld [vmem:[%s14186_s23 + $0x2e8] sm:$0xf]  ;;  %v12262_v46 = vor.u32 %v13098_v19, %v12259_v32  ;;  %v9546_v52 = vor.u32 %v12421_v53, %v9545_v42  ;;  %v12341_v0 = vld [vmem:[%s14186_s23 + $0x54] sm:$0xf0] }
 0x32e   : > { %8057 = vmatpush.bf16.msra.mxu1 %v12310_v43  ;;  %8022 = vmatmul.bf16.vlgmr.msrb.gmra.mxu2 %v14638_v14  ;;  %v9258_v43 = vor.u32 %v12349_v11, %v9257_v7  ;;  %v9225_v62 = vld [vmem:[%s14186_s23 + $0x48] sm:$0xf]  ;;  %v12417_v7 = vld [vmem:[%s14186_s23 + $0x2b4] sm:$0xf0] }
 0x32f   : > { %8066 = vmatpush.bf16.msra.mxu2 %v9306_v35  ;;  %8035 = vmatmul.bf16.vlgmr.msrb.gmra.mxu3 %v14636_v13  ;;  %v12425_v35 = vld [vmem:[%s14186_s23 + $0x2f4] sm:$0xf0]  ;;  %v9226_v2 = vor.u32 %v12341_v0, %v9225_v62  ;;  %v9657_v32 = vld [vmem:[%s14186_s23 + $0x3a8] sm:$0xf] }
 0x330   : > { %8079 = vmatpush.bf16.msra.mxu3 %v9434_v36  ;;  %v12134_v36 = vor.u32 %v13066_v3, %v12131_v40  ;;  %v9562_v47 = vor.u32 %v12425_v35, %v9561_v33  ;;  %v12373_v3 = vld [vmem:[%s14186_s23 + $0x154] sm:$0xf0]  ;;  %v9529_v40 = vld [vmem:[%s14186_s23 + $0x2a8] sm:$0xf] }
 0x331   : > { %8045 = vmatpush.bf16.msra.mxu0 %v12166_v49  ;;  %v9369_v49 = vld [vmem:[%s14186_s23 + $0x168] sm:$0xf]  ;;  %v7815_v63 = vpop.f32.mrf.mxu2  ;;  %v12449_v33 = vld [vmem:[%s14186_s23 + $0x3b4] sm:$0xf0] }
 0x332   : > { %8058 = vmatpush.bf16.msra.mxu1 %v12294_v60  ;;  %v9673_v60 = vld [vmem:[%s14186_s23 + $0x3c8] sm:$0xf]  ;;  %v7804_v18 = vpop.f32.mrf.mxu1  ;;  %v12369_v39 = vld [vmem:[%s14186_s23 + $0x134] sm:$0xf0] }
 0x333   : > { %8067 = vmatpush.bf16.msra.mxu2 %v9290_v50  ;;  %v12377_v50 = vld [vmem:[%s14186_s23 + $0x174] sm:$0xf0]  ;;  %v9674_v11 = vor.u32 %v12453_v61, %v9673_v60  ;;  %v9209_v35 = vld [vmem:[%s14186_s23 + $0x28] sm:$0xf] }
 0x334   : > { %8080 = vmatpush.bf16.msra.mxu3 %v9418_v51  ;;  %v9690_v51 = vor.u32 %v12457_v38, %v9689_v37  ;;  %v9370_v59 = vor.u32 %v12377_v50, %v9369_v49  ;;  %v12337_v37 = vld [vmem:[%s14186_s23 + $0x34] sm:$0xf0]  ;;  %v9337_v38 = vld [vmem:[%s14186_s23 + $0x128] sm:$0xf] }
 0x335   : > { %8046 = vmatpush.bf16.msra.mxu0 %v12150_v1  ;;  %v9353_v1 = vld [vmem:[%s14186_s23 + $0x148] sm:$0xf]  ;;  %v12413_v41 = vld [vmem:[%s14186_s23 + $0x294] sm:$0xf0]  ;;  %v9210_v48 = vor.u32 %v12337_v37, %v9209_v35  ;;  %v9338_v49 = vor.u32 %v12369_v39, %v9337_v38 }
 0x336   : > { %8059 = vmatpush.bf16.msra.mxu1 %v12278_v16  ;;  %v9354_v19 = vor.u32 %v12373_v3, %v9353_v1  ;;  %v9193_v42 = vld [vmem:[%s14186_s23 + $0x8] sm:$0xf]  ;;  %v12333_v53 = vld [vmem:[%s14186_s23 + $0x14] sm:$0xf0] }
 0x337   : > { %8068 = vmatpush.bf16.msra.mxu2 %v9274_v5  ;;  %v7816_v5 = vadd.f32 %v7815_v63, %v7803_v45  ;;  %v9658_v45 = vor.u32 %v12449_v33, %v9657_v32  ;;  %v9321_v60 = vld [vmem:[%s14186_s23 + $0x108] sm:$0xf]  ;;  %v12365_v61 = vld [vmem:[%s14186_s23 + $0x114] sm:$0xf0] }
 0x338   : > { %8081 = vmatpush.bf16.msra.mxu3 %v9402_v6  ;;  %v7828_v6 = vpop.f32.mrf.mxu3  ;;  %v9497_v62 = vld [vmem:[%s14186_s23 + $0x268] sm:$0xf]  ;;  %v12489_v1 = vld [vmem:[%s14186_s23 + $0x4f4] sm:$0xf0] }
 0x339   : > { %8047 = vmatpush.bf16.msra.mxu0 %v12134_v36  ;;  %v7829_v16 = vadd.f32 %v7828_v6, %v7816_v5  ;;  %v9530_v36 = vor.u32 %v12417_v7, %v9529_v40  ;;  %v9817_v0 = vld [vmem:[%s14186_s23 + $0x4e8] sm:$0xf]  ;;  %v12521_v6 = vld [vmem:[%s14186_s23 + $0x5f4] sm:$0xf0]  ;;  %v9194_v40 = vor.u32 %v12333_v53, %v9193_v42  ;;  %v9322_v7 = vor.u32 %v12365_v61, %v9321_v60 }
 0x33a   : > { %8060 = vmatpush.bf16.msra.mxu1 %v12262_v46  ;;  %v7841_v46 = vpop.f32.mrf.mxu0  ;;  %v9945_v5 = vld [vmem:[%s14186_s23 + $0x5e8] sm:$0xf]  ;;  %v12405_v33 = vld [vmem:[%s14186_s23 + $0x254] sm:$0xf0] }
 0x33b   : > { %8069 = vmatpush.bf16.msra.mxu2 %v9258_v43  ;;  %v13182_v43 = vld [vmem:[#allocation1] sm:$0xff]  ;;  %v15164_v50 = vadd.f32 %v7841_v46, %v7829_v16  ;;  %v12441_v16 = vld [vmem:[%s14186_s23 + $0x374] sm:$0xf0]  ;;  %v9946_v32 = vor.u32 %v12521_v6, %v9945_v5 }
 0x33c   : > { %8082 = vmatpush.bf16.msra.mxu3 %v9386_v44  ;;  %8048 = vmatmul.bf16.vlgmr.msra.gmra.mxu0 %v14640_v15  ;;  %v9513_v44 = vld [vmem:[%s14186_s23 + $0x288] sm:$0xf]  ;;  %v12517_v39 = vld [vmem:[%s14186_s23 + $0x5d4] sm:$0xf0] }
 0x33d   : > { %8092 = vmatpush.bf16.msrb.mxu0 %v9562_v47  ;;  %12320 = vmatmul.msk.bf16.vlgmr.msra.gmra.mxu1 %vm7413_vm0, %v13182_v43  ;;  %v9641_v47 = vld [vmem:[%s14186_s23 + $0x388] sm:$0xf]  ;;  %v12481_v42 = vld [vmem:[%s14186_s23 + $0x4b4] sm:$0xf0] }
 0x33e   : > { %8105 = vmatpush.bf16.msrb.mxu1 %v9690_v51  ;;  %v12445_v51 = vld [vmem:[%s14186_s23 + $0x394] sm:$0xf0]  ;;  %v9801_v35 = vld [vmem:[%s14186_s23 + $0x4c8] sm:$0xf] }
 0x33f   : > { %8070 = vmatpush.bf16.msra.mxu2 %v9242_v58  ;;  %v7817_v58 = vpop.f32.mrf.mxu2  ;;  %v9642_v3 = vor.u32 %v12445_v51, %v9641_v47  ;;  %v9929_v38 = vld [vmem:[%s14186_s23 + $0x5c8] sm:$0xf]  ;;  %v12433_v61 = vld [vmem:[%s14186_s23 + $0x334] sm:$0xf0] }
 0x340   : > { %8083 = vmatpush.bf16.msra.mxu3 %v9370_v59  ;;  %v9514_v59 = vor.u32 %v12413_v41, %v9513_v44  ;;  %v7830_v63 = vpop.f32.mrf.mxu3  ;;  %v9609_v44 = vld [vmem:[%s14186_s23 + $0x348] sm:$0xf]  ;;  %v12437_v41 = vld [vmem:[%s14186_s23 + $0x354] sm:$0xf0] }
 0x341   : > { %8093 = vmatpush.bf16.msrb.mxu0 %v9546_v52  ;;  %v12409_v52 = vld [vmem:[%s14186_s23 + $0x274] sm:$0xf0]  ;;  %v9465_v47 = vld [vmem:[%s14186_s23 + $0x228] sm:$0xf]  ;;  %v9610_v53 = vor.u32 %v12437_v41, %v9609_v44 }
 0x342   : > { %8106 = vmatpush.bf16.msrb.mxu1 %v9674_v11  ;;  %v9625_v11 = vld [vmem:[%s14186_s23 + $0x368] sm:$0xf]  ;;  %v9498_v18 = vor.u32 %v12409_v52, %v9497_v62  ;;  %v7843_v43 = vpop.f32.mrf.mxu0  ;;  %v12477_v5 = vld [vmem:[%s14186_s23 + $0x494] sm:$0xf0] }
 0x343   : > { %8071 = vmatpush.bf16.msra.mxu2 %v9226_v2  ;;  %v9818_v2 = vor.u32 %v12489_v1, %v9817_v0  ;;  %v9626_v37 = vor.u32 %v12441_v16, %v9625_v11  ;;  %v9785_v51 = vld [vmem:[%s14186_s23 + $0x4a8] sm:$0xf]  ;;  %v12397_v0 = vld [vmem:[%s14186_s23 + $0x214] sm:$0xf0] }
 0x344   : > { %8084 = vmatpush.bf16.msra.mxu3 %v9354_v19  ;;  %v9481_v19 = vld [vmem:[%s14186_s23 + $0x248] sm:$0xf]  ;;  %v9786_v63 = vor.u32 %v12481_v42, %v9785_v51  ;;  %v12553_v16 = vld [vmem:[%s14186_s23 + $0x6f4] sm:$0xf0] }
 0x345   : > { %8094 = vmatpush.bf16.msrb.mxu0 %v9530_v36  ;;  %v12485_v36 = vld [vmem:[%s14186_s23 + $0x4d4] sm:$0xf0]  ;;  %v9913_v58 = vld [vmem:[%s14186_s23 + $0x5a8] sm:$0xf] }
 0x346   : > { %8107 = vmatpush.bf16.msrb.mxu1 %v9658_v45  ;;  %v9482_v45 = vor.u32 %v12405_v33, %v9481_v19  ;;  %v9802_v46 = vor.u32 %v12485_v36, %v9801_v35  ;;  %v9593_v60 = vld [vmem:[%s14186_s23 + $0x328] sm:$0xf]  ;;  %v12429_v19 = vld [vmem:[%s14186_s23 + $0x314] sm:$0xf0] }
 0x347   : > { %8072 = vmatpush.bf16.msra.mxu2 %v9210_v48  ;;  %v9930_v48 = vor.u32 %v12517_v39, %v9929_v38  ;;  %v9449_v52 = vld [vmem:[%s14186_s23 + $0x208] sm:$0xf]  ;;  %v12473_v44 = vld [vmem:[%s14186_s23 + $0x474] sm:$0xf0] }
 0x348   : > { %8085 = vmatpush.bf16.msra.mxu3 %v9338_v49  ;;  %v12401_v49 = vld [vmem:[%s14186_s23 + $0x234] sm:$0xf0]  ;;  %v9897_v6 = vld [vmem:[%s14186_s23 + $0x588] sm:$0xf]  ;;  %v9450_v33 = vor.u32 %v12397_v0, %v9449_v52 }
 0x349   : > { %8095 = vmatpush.bf16.msrb.mxu0 %v9514_v59  ;;  %v12513_v59 = vld [vmem:[%s14186_s23 + $0x5b4] sm:$0xf0]  ;;  %v9466_v62 = vor.u32 %v12401_v49, %v9465_v47  ;;  %v10073_v11 = vld [vmem:[%s14186_s23 + $0x6e8] sm:$0xf] }
 0x34a   : > { %8108 = vmatpush.bf16.msrb.mxu1 %v9642_v3  ;;  %v9914_v1 = vor.u32 %v12513_v59, %v9913_v58  ;;  %v9769_v3 = vld [vmem:[%s14186_s23 + $0x488] sm:$0xf]  ;;  %v10074_v39 = vor.u32 %v12553_v16, %v10073_v11  ;;  %v12581_v42 = vld [vmem:[%s14186_s23 + $0x7d4] sm:$0xf0] }
 0x34b   : > { %8073 = vmatpush.bf16.msra.mxu2 %v9194_v40  ;;  %v9594_v40 = vor.u32 %v12433_v61, %v9593_v60  ;;  %v9770_v35 = vor.u32 %v12477_v5, %v9769_v3  ;;  %v10201_v36 = vld [vmem:[%s14186_s23 + $0x7e8] sm:$0xf]  ;;  %v12469_v60 = vld [vmem:[%s14186_s23 + $0x454] sm:$0xf0] }
 0x34c   : > { %8086 = vmatpush.bf16.msra.mxu3 %v9322_v7  ;;  %v12509_v7 = vld [vmem:[%s14186_s23 + $0x594] sm:$0xf0]  ;;  %v9753_v43 = vld [vmem:[%s14186_s23 + $0x468] sm:$0xf] }
 0x34d   : > { %8096 = vmatpush.bf16.msrb.mxu0 %v9498_v18  ;;  %v7854_v18 = vpop.f32.mrf.mxu1  ;;  %v9898_v38 = vor.u32 %v12509_v7, %v9897_v6  ;;  %v9881_v41 = vld [vmem:[%s14186_s23 + $0x568] sm:$0xf]  ;;  %v9754_v49 = vor.u32 %v12473_v44, %v9753_v43  ;;  %v12501_v52 = vld [vmem:[%s14186_s23 + $0x554] sm:$0xf0] }
 0x34e   : > { %8109 = vmatpush.bf16.msrb.mxu1 %v9626_v37  ;;  %8074 = vmatmul.bf16.vlgmr.msra.gmra.mxu2 %v14293_v29  ;;  %v12585_v37 = vld [vmem:[%s14186_s23 + $0x7f4] sm:$0xf0]  ;;  %v10057_v47 = vld [vmem:[%s14186_s23 + $0x6c8] sm:$0xf] }
 0x34f   : > { %8118 = vmatpush.bf16.msrb.mxu2 %v9818_v2  ;;  %8087 = vmatmul.bf16.vlgmr.msra.gmra.mxu3 %v14300_v34  ;;  %v9577_v2 = vld [vmem:[%s14186_s23 + $0x308] sm:$0xf]  ;;  %v12577_v11 = vld [vmem:[%s14186_s23 + $0x7b4] sm:$0xf0] }
 0x350   : > { %8131 = vmatpush.bf16.msrb.mxu3 %v9946_v32  ;;  %v7855_v32 = vadd.f32 %v7854_v18, %v15164_v50  ;;  %v12549_v50 = vld [vmem:[%s14186_s23 + $0x6d4] sm:$0xf0]  ;;  %v10185_v51 = vld [vmem:[%s14186_s23 + $0x7c8] sm:$0xf] }
 0x351   : > { %8097 = vmatpush.bf16.msrb.mxu0 %v9482_v45  ;;  %v9578_v45 = vor.u32 %v12429_v19, %v9577_v2  ;;  %v10058_v58 = vor.u32 %v12549_v50, %v10057_v47  ;;  %v9737_v59 = vld [vmem:[%s14186_s23 + $0x448] sm:$0xf]  ;;  %v10186_v5 = vor.u32 %v12581_v42, %v10185_v51  ;;  %v12493_v51 = vld [vmem:[%s14186_s23 + $0x514] sm:$0xf0] }
 0x352   : > { %8110 = vmatpush.bf16.msrb.mxu1 %v9610_v53  ;;  %v9865_v61 = vld [vmem:[%s14186_s23 + $0x548] sm:$0xf] }
 0x353   : > { %8119 = vmatpush.bf16.msrb.mxu2 %v9802_v46  ;;  %v12505_v46 = vld [vmem:[%s14186_s23 + $0x574] sm:$0xf0]  ;;  %v10041_v0 = vld [vmem:[%s14186_s23 + $0x6a8] sm:$0xf]  ;;  %v9866_v18 = vor.u32 %v12501_v52, %v9865_v61 }
 0x354   : > { %8132 = vmatpush.bf16.msrb.mxu3 %v9930_v48  ;;  %v10202_v48 = vor.u32 %v12585_v37, %v10201_v36  ;;  %v9882_v53 = vor.u32 %v12505_v46, %v9881_v41  ;;  %v10169_v7 = vld [vmem:[%s14186_s23 + $0x7a8] sm:$0xf]  ;;  %v12541_v37 = vld [vmem:[%s14186_s23 + $0x694] sm:$0xf0] }
 0x355   : > { %8098 = vmatpush.bf16.msrb.mxu0 %v9466_v62  ;;  %v7867_v62 = vpop.f32.mrf.mxu2  ;;  %v7856_v6 = vpop.f32.mrf.mxu1  ;;  %v9721_v19 = vld [vmem:[%s14186_s23 + $0x428] sm:$0xf]  ;;  %v12573_v41 = vld [vmem:[%s14186_s23 + $0x794] sm:$0xf0] }
 0x356   : > { %8111 = vmatpush.bf16.msrb.mxu1 %v9594_v40  ;;  %v7868_v3 = vadd.f32 %v7867_v62, %v7855_v32  ;;  %v9738_v40 = vor.u32 %v12469_v60, %v9737_v59  ;;  %v12465_v32 = vld [vmem:[%s14186_s23 + $0x434] sm:$0xf0]  ;;  %v10025_v36 = vld [vmem:[%s14186_s23 + $0x688] sm:$0xf] }
 0x357   : > { %8120 = vmatpush.bf16.msrb.mxu2 %v9786_v63  ;;  %v7880_v63 = vpop.f32.mrf.mxu3  ;;  %v9722_v43 = vor.u32 %v12465_v32, %v9721_v19  ;;  %v10153_v44 = vld [vmem:[%s14186_s23 + $0x788] sm:$0xf]  ;;  %v10026_v50 = vor.u32 %v12541_v37, %v10025_v36  ;;  %v12617_v62 = vld [vmem:[%s14186_s23 + $0x8f4] sm:$0xf0] }
 0x358   : > { %8133 = vmatpush.bf16.msrb.mxu3 %v9914_v1  ;;  %v12545_v1 = vld [vmem:[%s14186_s23 + $0x6b4] sm:$0xf0]  ;;  %v7881_v16 = vadd.f32 %v7880_v63, %v7868_v3  ;;  %v10009_v42 = vld [vmem:[%s14186_s23 + $0x668] sm:$0xf]  ;;  %v10154_v61 = vor.u32 %v12573_v41, %v10153_v44 }
 0x359   : > { %8099 = vmatpush.bf16.msrb.mxu0 %v9450_v33  ;;  %v10042_v2 = vor.u32 %v12545_v1, %v10041_v0  ;;  %v9849_v33 = vld [vmem:[%s14186_s23 + $0x528] sm:$0xf]  ;;  %v12649_v52 = vld [vmem:[%s14186_s23 + $0x9f4] sm:$0xf0] }
 0x35a   : > { %8112 = vmatpush.bf16.msrb.mxu1 %v9578_v45  ;;  %v9705_v45 = vld [vmem:[%s14186_s23 + $0x408] sm:$0xf]  ;;  %v12569_v3 = vld [vmem:[%s14186_s23 + $0x774] sm:$0xf0] }
 0x35b   : > { %8121 = vmatpush.bf16.msrb.mxu2 %v9770_v35  ;;  %v12497_v35 = vld [vmem:[%s14186_s23 + $0x534] sm:$0xf0]  ;;  %v10457_v63 = vld [vmem:[%s14186_s23 + $0x9e8] sm:$0xf] }
 0x35c   : > { %8134 = vmatpush.bf16.msrb.mxu3 %v9898_v38  ;;  %8100 = vmatmul.bf16.vlgmr.msrb.gmra.mxu0 %v14291_v28  ;;  %v10170_v38 = vor.u32 %v12577_v11, %v10169_v7  ;;  %v9850_v47 = vor.u32 %v12497_v35, %v9849_v33  ;;  %v10137_v1 = vld [vmem:[%s14186_s23 + $0x768] sm:$0xf]  ;;  %v10458_v7 = vor.u32 %v12649_v52, %v10457_v63  ;;  %v12613_v19 = vld [vmem:[%s14186_s23 + $0x8d4] sm:$0xf0] }
 0x35d   : > { %8144 = vmatpush.bf16.msra.mxu0 %v10074_v39  ;;  %8113 = vmatmul.bf16.vlgmr.msrb.gmra.mxu1 %v14295_v30  ;;  %v7893_v39 = vpop.f32.mrf.mxu0  ;;  %v7869_v59 = vpop.f32.mrf.mxu2  ;;  %v9993_v11 = vld [vmem:[%s14186_s23 + $0x648] sm:$0xf]  ;;  %v12645_v33 = vld [vmem:[%s14186_s23 + $0x9d4] sm:$0xf0] }
 0x35e   : > { %8157 = vmatpush.bf16.msra.mxu1 %v10202_v48  ;;  %v15237_v46 = vadd.f32 %v7893_v39, %v7881_v16  ;;  %v12461_v48 = vld [vmem:[%s14186_s23 + $0x414] sm:$0xf0]  ;;  %v10441_v32 = vld [vmem:[%s14186_s23 + $0x9c8] sm:$0xf] }
 0x35f   : > { %8122 = vmatpush.bf16.msrb.mxu2 %v9754_v49  ;;  %v9833_v49 = vld [vmem:[%s14186_s23 + $0x508] sm:$0xf]  ;;  %v7882_v60 = vpop.f32.mrf.mxu3  ;;  %v9706_v0 = vor.u32 %v12461_v48, %v9705_v45  ;;  %v12533_v16 = vld [vmem:[%s14186_s23 + $0x654] sm:$0xf0] }
 0x360   : > { %8135 = vmatpush.bf16.msrb.mxu3 %v9882_v53  ;;  %v12537_v53 = vld [vmem:[%s14186_s23 + $0x674] sm:$0xf0]  ;;  %v10121_v35 = vld [vmem:[%s14186_s23 + $0x748] sm:$0xf] }
 0x361   : > { %8145 = vmatpush.bf16.msra.mxu0 %v10058_v58  ;;  %v10329_v58 = vld [vmem:[%s14186_s23 + $0x8e8] sm:$0xf]  ;;  %v10010_v6 = vor.u32 %v12537_v53, %v10009_v42  ;;  %v12565_v36 = vld [vmem:[%s14186_s23 + $0x754] sm:$0xf0] }
 0x362   : > { %8158 = vmatpush.bf16.msra.mxu1 %v10186_v5  ;;  %v9834_v5 = vor.u32 %v12493_v51, %v9833_v49  ;;  %v9977_v44 = vld [vmem:[%s14186_s23 + $0x628] sm:$0xf]  ;;  %v12529_v41 = vld [vmem:[%s14186_s23 + $0x634] sm:$0xf0] }
 0x363   : > { %8123 = vmatpush.bf16.msrb.mxu2 %v9738_v40  ;;  %v10330_v40 = vor.u32 %v12617_v62, %v10329_v58  ;;  %v10297_v45 = vld [vmem:[%s14186_s23 + $0x8a8] sm:$0xf]  ;;  %v12641_v49 = vld [vmem:[%s14186_s23 + $0x9b4] sm:$0xf0]  ;;  %v9978_v53 = vor.u32 %v12529_v41, %v9977_v44 }
 0x364   : > { %8136 = vmatpush.bf16.msrb.mxu3 %v9866_v18  ;;  %v10313_v18 = vld [vmem:[%s14186_s23 + $0x8c8] sm:$0xf]  ;;  %v12561_v42 = vld [vmem:[%s14186_s23 + $0x734] sm:$0xf0] }
 0x365   : > { %8146 = vmatpush.bf16.msra.mxu0 %v10042_v2  ;;  %v10138_v2 = vor.u32 %v12569_v3, %v10137_v1  ;;  %v7895_v37 = vpop.f32.mrf.mxu0  ;;  %v10314_v39 = vor.u32 %v12613_v19, %v10313_v18  ;;  %v10425_v48 = vld [vmem:[%s14186_s23 + $0x9a8] sm:$0xf]  ;;  %v12605_v63 = vld [vmem:[%s14186_s23 + $0x894] sm:$0xf0] }
 0x366   : > { %8159 = vmatpush.bf16.msra.mxu1 %v10170_v38  ;;  %v9994_v38 = vor.u32 %v12533_v16, %v9993_v11  ;;  %v10105_v51 = vld [vmem:[%s14186_s23 + $0x728] sm:$0xf]  ;;  %v10426_v60 = vor.u32 %v12641_v49, %v10425_v48  ;;  %v12637_v1 = vld [vmem:[%s14186_s23 + $0x994] sm:$0xf0] }
 0x367   : > { %8124 = vmatpush.bf16.msrb.mxu2 %v9722_v43  ;;  %v10442_v43 = vor.u32 %v12645_v33, %v10441_v32  ;;  %v9961_v58 = vld [vmem:[%s14186_s23 + $0x608] sm:$0xf]  ;;  %v10106_v52 = vor.u32 %v12561_v42, %v10105_v51  ;;  %v12713_v18 = vld [vmem:[%s14186_s23 + $0xbf4] sm:$0xf0] }
 0x368   : > { %8137 = vmatpush.bf16.msrb.mxu3 %v9850_v47  ;;  %v10122_v47 = vor.u32 %v12565_v36, %v10121_v35  ;;  %v10281_v62 = vld [vmem:[%s14186_s23 + $0x888] sm:$0xf]  ;;  %v12601_v37 = vld [vmem:[%s14186_s23 + $0x874] sm:$0xf0] }
 0x369   : > { %8147 = vmatpush.bf16.msra.mxu0 %v10026_v50  ;;  %v12609_v50 = vld [vmem:[%s14186_s23 + $0x8b4] sm:$0xf0]  ;;  %v10089_v3 = vld [vmem:[%s14186_s23 + $0x708] sm:$0xf]  ;;  %v10282_v19 = vor.u32 %v12605_v63, %v10281_v62 }
 0x36a   : > { %8160 = vmatpush.bf16.msra.mxu1 %v10154_v61  ;;  %v10298_v59 = vor.u32 %v12609_v50, %v10297_v45  ;;  %v12525_v61 = vld [vmem:[%s14186_s23 + $0x614] sm:$0xf0]  ;;  %v10713_v16 = vld [vmem:[%s14186_s23 + $0xbe8] sm:$0xf] }
 0x36b   : > { %8125 = vmatpush.bf16.msrb.mxu2 %v9706_v0  ;;  %v10409_v0 = vld [vmem:[%s14186_s23 + $0x988] sm:$0xf]  ;;  %v9962_v11 = vor.u32 %v12525_v61, %v9961_v58  ;;  %v12677_v41 = vld [vmem:[%s14186_s23 + $0xad4] sm:$0xf0] }
 0x36c   : > { %8138 = vmatpush.bf16.msrb.mxu3 %v9834_v5  ;;  %v12557_v5 = vld [vmem:[%s14186_s23 + $0x714] sm:$0xf0]  ;;  %v10410_v32 = vor.u32 %v12637_v1, %v10409_v0  ;;  %v10265_v33 = vld [vmem:[%s14186_s23 + $0x868] sm:$0xf] }
 0x36d   : > { %8148 = vmatpush.bf16.msra.mxu0 %v10010_v6  ;;  %v10585_v6 = vld [vmem:[%s14186_s23 + $0xae8] sm:$0xf]  ;;  %v10090_v35 = vor.u32 %v12557_v5, %v10089_v3  ;;  %v12597_v51 = vld [vmem:[%s14186_s23 + $0x854] sm:$0xf0] }
 0x36e   : > { %8161 = vmatpush.bf16.msra.mxu1 %v10138_v2  ;;  %8126 = vmatmul.bf16.vlgmr.msrb.gmra.mxu2 %v14334_v8  ;;  %v10569_v44 = vld [vmem:[%s14186_s23 + $0xac8] sm:$0xf]  ;;  %v12673_v62 = vld [vmem:[%s14186_s23 + $0xab4] sm:$0xf0] }
 0x36f   : > { %8170 = vmatpush.bf16.msra.mxu2 %v10330_v40  ;;  %8139 = vmatmul.bf16.vlgmr.msrb.gmra.mxu3 %v14338_v10  ;;  %v12681_v40 = vld [vmem:[%s14186_s23 + $0xaf4] sm:$0xf0]  ;;  %v10697_v45 = vld [vmem:[%s14186_s23 + $0xbc8] sm:$0xf]  ;;  %v10570_v49 = vor.u32 %v12677_v41, %v10569_v44 }
 0x370   : > { %8183 = vmatpush.bf16.msra.mxu3 %v10458_v7  ;;  %v7906_v7 = vpop.f32.mrf.mxu1  ;;  %v10586_v36 = vor.u32 %v12681_v40, %v10585_v6  ;;  %v10249_v48 = vld [vmem:[%s14186_s23 + $0x848] sm:$0xf]  ;;  %v12705_v0 = vld [vmem:[%s14186_s23 + $0xbb4] sm:$0xf0] }
 0x371   : > { %8149 = vmatpush.bf16.msra.mxu0 %v9994_v38  ;;  %v7907_v2 = vadd.f32 %v7906_v7, %v15237_v46  ;;  %v10393_v38 = vld [vmem:[%s14186_s23 + $0x968] sm:$0xf]  ;;  %v10266_v46 = vor.u32 %v12601_v37, %v10265_v33  ;;  %v7919_v58 = vpop.f32.mrf.mxu2  ;;  %v10250_v3 = vor.u32 %v12597_v51, %v10249_v48  ;;  %v12745_v51 = vld [vmem:[%s14186_s23 + $0xcf4] sm:$0xf0] }
 0x372   : > { %8162 = vmatpush.bf16.msra.mxu1 %v10122_v47  ;;  %v12709_v47 = vld [vmem:[%s14186_s23 + $0xbd4] sm:$0xf0]  ;;  %v10377_v42 = vld [vmem:[%s14186_s23 + $0x948] sm:$0xf] }
 0x373   : > { %8171 = vmatpush.bf16.msra.mxu2 %v10314_v39  ;;  %v12633_v39 = vld [vmem:[%s14186_s23 + $0x974] sm:$0xf0]  ;;  %v10553_v61 = vld [vmem:[%s14186_s23 + $0xaa8] sm:$0xf]  ;;  %v7920_v63 = vadd.f32 %v7919_v58, %v7907_v2 }
 0x374   : > { %8184 = vmatpush.bf16.msra.mxu3 %v10442_v43  ;;  %v10714_v43 = vor.u32 %v12713_v18, %v10713_v16  ;;  %v10394_v50 = vor.u32 %v12633_v39, %v10393_v38  ;;  %v10233_v6 = vld [vmem:[%s14186_s23 + $0x828] sm:$0xf]  ;;  %v10554_v7 = vor.u32 %v12673_v62, %v10553_v61  ;;  %v12625_v18 = vld [vmem:[%s14186_s23 + $0x934] sm:$0xf0] }
 0x375   : > { %8150 = vmatpush.bf16.msra.mxu0 %v9978_v53  ;;  %v12629_v53 = vld [vmem:[%s14186_s23 + $0x954] sm:$0xf0]  ;;  %v10361_v16 = vld [vmem:[%s14186_s23 + $0x928] sm:$0xf] }
 0x376   : > { %8163 = vmatpush.bf16.msra.mxu1 %v10106_v52  ;;  %v10681_v52 = vld [vmem:[%s14186_s23 + $0xba8] sm:$0xf]  ;;  %v10378_v5 = vor.u32 %v12629_v53, %v10377_v42  ;;  %v10362_v38 = vor.u32 %v12625_v18, %v10361_v16  ;;  %v12697_v61 = vld [vmem:[%s14186_s23 + $0xb74] sm:$0xf0] }
 0x377   : > { %8172 = vmatpush.bf16.msra.mxu2 %v10298_v59  ;;  %v10698_v59 = vor.u32 %v12709_v47, %v10697_v45  ;;  %v10682_v2 = vor.u32 %v12705_v0, %v10681_v52  ;;  %v10665_v33 = vld [vmem:[%s14186_s23 + $0xb88] sm:$0xf]  ;;  %v12621_v47 = vld [vmem:[%s14186_s23 + $0x914] sm:$0xf0] }
 0x378   : > { %8185 = vmatpush.bf16.msra.mxu3 %v10426_v60  ;;  %v7932_v60 = vpop.f32.mrf.mxu3  ;;  %v7908_v1 = vpop.f32.mrf.mxu1  ;;  %v10217_v39 = vld [vmem:[%s14186_s23 + $0x808] sm:$0xf]  ;;  %v12773_v16 = vld [vmem:[%s14186_s23 + $0xdd4] sm:$0xf0] }
 0x379   : > { %8151 = vmatpush.bf16.msra.mxu0 %v9962_v11  ;;  %v7933_v40 = vadd.f32 %v7932_v60, %v7920_v63  ;;  %v12593_v11 = vld [vmem:[%s14186_s23 + $0x834] sm:$0xf0]  ;;  %v10345_v44 = vld [vmem:[%s14186_s23 + $0x908] sm:$0xf]  ;;  %v7921_v53 = vpop.f32.mrf.mxu2 }
 0x37a   : > { %8164 = vmatpush.bf16.msra.mxu1 %v10090_v35  ;;  %v12701_v35 = vld [vmem:[%s14186_s23 + $0xb94] sm:$0xf0]  ;;  %v10234_v37 = vor.u32 %v12593_v11, %v10233_v6  ;;  %v10969_v42 = vld [vmem:[%s14186_s23 + $0xde8] sm:$0xf]  ;;  %v10346_v63 = vor.u32 %v12621_v47, %v10345_v44 }
 0x37b   : > { %8173 = vmatpush.bf16.msra.mxu2 %v10282_v19  ;;  %v10537_v19 = vld [vmem:[%s14186_s23 + $0xa88] sm:$0xf]  ;;  %v10666_v48 = vor.u32 %v12701_v35, %v10665_v33 }
 0x37c   : > { %8186 = vmatpush.bf16.msra.mxu3 %v10410_v32  ;;  %8152 = vmatmul.bf16.vlgmr.msra.gmra.mxu0 %v14329_v4  ;;  %v12669_v32 = vld [vmem:[%s14186_s23 + $0xa94] sm:$0xf0]  ;;  %v10649_v60 = vld [vmem:[%s14186_s23 + $0xb68] sm:$0xf] }
 0x37d   : > { %8196 = vmatpush.bf16.msrb.mxu0 %v10586_v36  ;;  %8165 = vmatmul.bf16.vlgmr.msra.gmra.mxu1 %v14336_v9  ;;  %v7945_v36 = vpop.f32.mrf.mxu0  ;;  %v10538_v45 = vor.u32 %v12669_v32, %v10537_v19  ;;  %v10505_v1 = vld [vmem:[%s14186_s23 + $0xa48] sm:$0xf]  ;;  %v10650_v6 = vor.u32 %v12697_v61, %v10649_v60  ;;  %v12765_v61 = vld [vmem:[%s14186_s23 + $0xd94] sm:$0xf0] }
 0x37e   : > { %8209 = vmatpush.bf16.msrb.mxu1 %v10714_v43  ;;  %v12589_v43 = vld [vmem:[%s14186_s23 + $0x814] sm:$0xf0]  ;;  %v15310_v41 = vadd.f32 %v7945_v36, %v7933_v40  ;;  %v10825_v40 = vld [vmem:[%s14186_s23 + $0xcc8] sm:$0xf] }
 0x37f   : > { %8174 = vmatpush.bf16.msra.mxu2 %v10266_v46  ;;  %v10521_v46 = vld [vmem:[%s14186_s23 + $0xa68] sm:$0xf]  ;;  %v10218_v62 = vor.u32 %v12589_v43, %v10217_v39  ;;  %v12657_v36 = vld [vmem:[%s14186_s23 + $0xa34] sm:$0xf0] }
 0x380   : > { %8187 = vmatpush.bf16.msra.mxu3 %v10394_v50  ;;  %v12665_v50 = vld [vmem:[%s14186_s23 + $0xa74] sm:$0xf0]  ;;  %v7934_v58 = vpop.f32.mrf.mxu3  ;;  %v10953_v11 = vld [vmem:[%s14186_s23 + $0xdc8] sm:$0xf] }
 0x381   : > { %8197 = vmatpush.bf16.msrb.mxu0 %v10570_v49  ;;  %v10841_v49 = vld [vmem:[%s14186_s23 + $0xce8] sm:$0xf]  ;;  %v10522_v52 = vor.u32 %v12665_v50, %v10521_v46  ;;  %v12737_v43 = vld [vmem:[%s14186_s23 + $0xcb4] sm:$0xf0] }
 0x382   : > { %8210 = vmatpush.bf16.msrb.mxu1 %v10698_v59  ;;  %v12777_v59 = vld [vmem:[%s14186_s23 + $0xdf4] sm:$0xf0]  ;;  %v10842_v0 = vor.u32 %v12745_v51, %v10841_v49  ;;  %v10633_v18 = vld [vmem:[%s14186_s23 + $0xb48] sm:$0xf] }
 0x383   : > { %8175 = vmatpush.bf16.msra.mxu2 %v10250_v3  ;;  %v12661_v3 = vld [vmem:[%s14186_s23 + $0xa54] sm:$0xf0]  ;;  %v10489_v35 = vld [vmem:[%s14186_s23 + $0xa28] sm:$0xf] }
 0x384   : > { %8188 = vmatpush.bf16.msra.mxu3 %v10378_v5  ;;  %v10970_v5 = vor.u32 %v12777_v59, %v10969_v42  ;;  %v10506_v32 = vor.u32 %v12661_v3, %v10505_v1  ;;  %v10809_v39 = vld [vmem:[%s14186_s23 + $0xca8] sm:$0xf]  ;;  %v12689_v46 = vld [vmem:[%s14186_s23 + $0xb34] sm:$0xf0]  ;;  %v10490_v50 = vor.u32 %v12657_v36, %v10489_v35 }
 0x385   : > { %8198 = vmatpush.bf16.msrb.mxu0 %v10554_v7  ;;  %v12741_v7 = vld [vmem:[%s14186_s23 + $0xcd4] sm:$0xf0]  ;;  %v7947_v19 = vpop.f32.mrf.mxu0  ;;  %v10937_v44 = vld [vmem:[%s14186_s23 + $0xda8] sm:$0xf] }
 0x386   : > { %8211 = vmatpush.bf16.msrb.mxu1 %v10682_v2  ;;  %v12693_v2 = vld [vmem:[%s14186_s23 + $0xb54] sm:$0xf0]  ;;  %v10826_v33 = vor.u32 %v12741_v7, %v10825_v40  ;;  %v10617_v47 = vld [vmem:[%s14186_s23 + $0xb28] sm:$0xf] }
 0x387   : > { %8176 = vmatpush.bf16.msra.mxu2 %v10234_v37  ;;  %v10954_v37 = vor.u32 %v12773_v16, %v10953_v11  ;;  %v10473_v49 = vld [vmem:[%s14186_s23 + $0xa08] sm:$0xf]  ;;  %v12653_v51 = vld [vmem:[%s14186_s23 + $0xa14] sm:$0xf0]  ;;  %v10618_v58 = vor.u32 %v12689_v46, %v10617_v47 }
 0x388   : > { %8189 = vmatpush.bf16.msra.mxu3 %v10362_v38  ;;  %v10634_v38 = vor.u32 %v12693_v2, %v10633_v18  ;;  %v10793_v42 = vld [vmem:[%s14186_s23 + $0xc88] sm:$0xf]  ;;  %v12733_v59 = vld [vmem:[%s14186_s23 + $0xc94] sm:$0xf0] }
 0x389   : > { %8199 = vmatpush.bf16.msrb.mxu0 %v10538_v45  ;;  %v12769_v45 = vld [vmem:[%s14186_s23 + $0xdb4] sm:$0xf0]  ;;  %v10921_v60 = vld [vmem:[%s14186_s23 + $0xd88] sm:$0xf]  ;;  %v10794_v40 = vor.u32 %v12733_v59, %v10793_v42 }
 0x38a   : > { %8212 = vmatpush.bf16.msrb.mxu1 %v10666_v48  ;;  %v10810_v48 = vor.u32 %v12737_v43, %v10809_v39  ;;  %v10938_v53 = vor.u32 %v12769_v45, %v10937_v44  ;;  %v11225_v1 = vld [vmem:[%s14186_s23 + $0xfe8] sm:$0xf]  ;;  %v12841_v3 = vld [vmem:[%s14186_s23 + $0xff4] sm:$0xf0]  ;;  %v10922_v11 = vor.u32 %v12765_v61, %v10921_v60 }
 0x38b   : > { %8177 = vmatpush.bf16.msra.mxu2 %v10218_v62  ;;  %v10601_v62 = vld [vmem:[%s14186_s23 + $0xb08] sm:$0xf]  ;;  %v12729_v2 = vld [vmem:[%s14186_s23 + $0xc74] sm:$0xf0] }
 0x38c   : > { %8190 = vmatpush.bf16.msra.mxu3 %v10346_v63  ;;  %v12685_v63 = vld [vmem:[%s14186_s23 + $0xb14] sm:$0xf0]  ;;  %v10777_v18 = vld [vmem:[%s14186_s23 + $0xc68] sm:$0xf] }
 0x38d   : > { %8200 = vmatpush.bf16.msrb.mxu0 %v10522_v52  ;;  %v11097_v52 = vld [vmem:[%s14186_s23 + $0xee8] sm:$0xf]  ;;  %v10602_v16 = vor.u32 %v12685_v63, %v10601_v62  ;;  %v12761_v35 = vld [vmem:[%s14186_s23 + $0xd74] sm:$0xf0] }
 0x38e   : > { %8213 = vmatpush.bf16.msrb.mxu1 %v10650_v6  ;;  %8178 = vmatmul.bf16.vlgmr.msra.gmra.mxu2 %v14424_v20  ;;  %v10474_v6 = vor.u32 %v12653_v51, %v10473_v49  ;;  %v11081_v36 = vld [vmem:[%s14186_s23 + $0xec8] sm:$0xf]  ;;  %v12837_v39 = vld [vmem:[%s14186_s23 + $0xfd4] sm:$0xf0] }
 0x38f   : > { %8222 = vmatpush.bf16.msrb.mxu2 %v10842_v0  ;;  %8191 = vmatmul.bf16.vlgmr.msra.gmra.mxu3 %v14430_v24  ;;  %v12809_v0 = vld [vmem:[%s14186_s23 + $0xef4] sm:$0xf0]  ;;  %v10761_v44 = vld [vmem:[%s14186_s23 + $0xc48] sm:$0xf] }
 0x390   : > { %8235 = vmatpush.bf16.msrb.mxu3 %v10970_v5  ;;  %v7958_v5 = vpop.f32.mrf.mxu1  ;;  %v11098_v19 = vor.u32 %v12809_v0, %v11097_v52  ;;  %v12725_v45 = vld [vmem:[%s14186_s23 + $0xc54] sm:$0xf0]  ;;  %v11065_v49 = vld [vmem:[%s14186_s23 + $0xea8] sm:$0xf] }
 0x391   : > { %8201 = vmatpush.bf16.msrb.mxu0 %v10506_v32  ;;  %v7959_v7 = vadd.f32 %v7958_v5, %v15310_v41  ;;  %v11226_v32 = vor.u32 %v12841_v3, %v11225_v1  ;;  %v10778_v41 = vor.u32 %v12729_v2, %v10777_v18  ;;  %v7971_v51 = vpop.f32.mrf.mxu2  ;;  %v12833_v59 = vld [vmem:[%s14186_s23 + $0xfb4] sm:$0xf0]  ;;  %v10762_v61 = vor.u32 %v12725_v45, %v10761_v44  ;;  %v10745_v52 = vld [vmem:[%s14186_s23 + $0xc28] sm:$0xf] }
 0x392   : > { %8214 = vmatpush.bf16.msrb.mxu1 %v10634_v38  ;;  %v11209_v38 = vld [vmem:[%s14186_s23 + $0xfc8] sm:$0xf]  ;;  %v7984_v42 = vpop.f32.mrf.mxu3  ;;  %v12721_v0 = vld [vmem:[%s14186_s23 + $0xc34] sm:$0xf0] }
 0x393   : > { %8223 = vmatpush.bf16.msrb.mxu2 %v10826_v33  ;;  %v10905_v33 = vld [vmem:[%s14186_s23 + $0xd68] sm:$0xf]  ;;  %v11210_v46 = vor.u32 %v12837_v39, %v11209_v38  ;;  %v7972_v60 = vadd.f32 %v7971_v51, %v7959_v7  ;;  %v12829_v18 = vld [vmem:[%s14186_s23 + $0xf94] sm:$0xf0]  ;;  %v10746_v2 = vor.u32 %v12721_v0, %v10745_v52 }
 0x394   : > { %8236 = vmatpush.bf16.msrb.mxu3 %v10954_v37  ;;  %v12805_v37 = vld [vmem:[%s14186_s23 + $0xed4] sm:$0xf0]  ;;  %v10906_v43 = vor.u32 %v12761_v35, %v10905_v33  ;;  %v11049_v7 = vld [vmem:[%s14186_s23 + $0xe88] sm:$0xf] }
 0x395   : > { %8202 = vmatpush.bf16.msrb.mxu0 %v10490_v50  ;;  %v11082_v47 = vor.u32 %v12805_v37, %v11081_v36  ;;  %v10889_v50 = vld [vmem:[%s14186_s23 + $0xd48] sm:$0xf]  ;;  %v7985_v1 = vadd.f32 %v7984_v42, %v7972_v60  ;;  %v12717_v35 = vld [vmem:[%s14186_s23 + $0xc14] sm:$0xf0] }
 0x396   : > { %8215 = vmatpush.bf16.msrb.mxu1 %v10618_v58  ;;  %v11193_v58 = vld [vmem:[%s14186_s23 + $0xfa8] sm:$0xf]  ;;  %v12749_v37 = vld [vmem:[%s14186_s23 + $0xd14] sm:$0xf0] }
 0x397   : > { %8224 = vmatpush.bf16.msrb.mxu2 %v10810_v48  ;;  %v12757_v48 = vld [vmem:[%s14186_s23 + $0xd54] sm:$0xf0]  ;;  %v11194_v5 = vor.u32 %v12833_v59, %v11193_v58  ;;  %v10857_v36 = vld [vmem:[%s14186_s23 + $0xd08] sm:$0xf] }
 0x398   : > { %8237 = vmatpush.bf16.msrb.mxu3 %v10938_v53  ;;  %v12801_v53 = vld [vmem:[%s14186_s23 + $0xeb4] sm:$0xf0]  ;;  %v7960_v62 = vpop.f32.mrf.mxu1  ;;  %v10890_v63 = vor.u32 %v12757_v48, %v10889_v50  ;;  %v11353_v44 = vld [vmem:[%s14186_s23 + $0x10e8] sm:$0xf]  ;;  %v10858_v58 = vor.u32 %v12749_v37, %v10857_v36 }
 0x399   : > { %8203 = vmatpush.bf16.msrb.mxu0 %v10474_v6  ;;  %v11066_v3 = vor.u32 %v12801_v53, %v11065_v49  ;;  %v10873_v6 = vld [vmem:[%s14186_s23 + $0xd28] sm:$0xf]  ;;  %v12873_v45 = vld [vmem:[%s14186_s23 + $0x10f4] sm:$0xf0]  ;;  %v7973_v48 = vpop.f32.mrf.mxu2 }
 0x39a   : > { %8216 = vmatpush.bf16.msrb.mxu1 %v10602_v16  ;;  %v11177_v16 = vld [vmem:[%s14186_s23 + $0xf88] sm:$0xf]  ;;  %v12905_v50 = vld [vmem:[%s14186_s23 + $0x11f4] sm:$0xf0]  ;;  %v7986_v49 = vpop.f32.mrf.mxu3  ;;  %v11354_v59 = vor.u32 %v12873_v45, %v11353_v44 }
 0x39b   : > { %8225 = vmatpush.bf16.msrb.mxu2 %v10794_v40  ;;  %v12753_v40 = vld [vmem:[%s14186_s23 + $0xd34] sm:$0xf0]  ;;  %v11161_v42 = vld [vmem:[%s14186_s23 + $0xf68] sm:$0xf] }
 0x39c   : > { %8238 = vmatpush.bf16.msrb.mxu3 %v10922_v11  ;;  %8204 = vmatmul.bf16.vlgmr.msrb.gmra.mxu0 %v14428_v23  ;;  %v12797_v11 = vld [vmem:[%s14186_s23 + $0xe94] sm:$0xf0]  ;;  %v10874_v33 = vor.u32 %v12753_v40, %v10873_v6  ;;  %v11017_v62 = vld [vmem:[%s14186_s23 + $0xe48] sm:$0xf] }
 0x39d   : > { %8248 = vmatpush.bf16.msra.mxu0 %v11098_v19  ;;  %8217 = vmatmul.bf16.vlgmr.msrb.gmra.mxu1 %v14432_v25  ;;  %v10729_v19 = vld [vmem:[%s14186_s23 + $0xc08] sm:$0xf]  ;;  %v11050_v39 = vor.u32 %v12797_v11, %v11049_v7  ;;  %v12825_v53 = vld [vmem:[%s14186_s23 + $0xf74] sm:$0xf0] }
 0x39e   : > { %8261 = vmatpush.bf16.msra.mxu1 %v11226_v32  ;;  %v7997_v32 = vpop.f32.mrf.mxu0  ;;  %v10730_v51 = vor.u32 %v12717_v35, %v10729_v19  ;;  %v12869_v52 = vld [vmem:[%s14186_s23 + $0x10d4] sm:$0xf0]  ;;  %v11162_v0 = vor.u32 %v12825_v53, %v11161_v42  ;;  %v11145_v6 = vld [vmem:[%s14186_s23 + $0xf48] sm:$0xf] }
 0x39f   : > { %8226 = vmatpush.bf16.msrb.mxu2 %v10778_v41  ;;  %v15382_v38 = vadd.f32 %v7997_v32, %v7985_v1  ;;  %v11178_v41 = vor.u32 %v12829_v18, %v11177_v16  ;;  %v12789_v1 = vld [vmem:[%s14186_s23 + $0xe54] sm:$0xf0]  ;;  %v11321_v19 = vld [vmem:[%s14186_s23 + $0x10a8] sm:$0xf] }
 0x3a0   : > { %8239 = vmatpush.bf16.msrb.mxu3 %v10906_v43  ;;  %v11033_v43 = vld [vmem:[%s14186_s23 + $0xe68] sm:$0xf]  ;;  %v12821_v40 = vld [vmem:[%s14186_s23 + $0xf54] sm:$0xf0]  ;;  %v11018_v16 = vor.u32 %v12789_v1, %v11017_v62 }
 0x3a1   : > { %8249 = vmatpush.bf16.msra.mxu0 %v11082_v47  ;;  %v12793_v47 = vld [vmem:[%s14186_s23 + $0xe74] sm:$0xf0]  ;;  %v11449_v36 = vld [vmem:[%s14186_s23 + $0x11a8] sm:$0xf] }
 0x3a2   : > { %8262 = vmatpush.bf16.msra.mxu1 %v11210_v46  ;;  %v11481_v46 = vld [vmem:[%s14186_s23 + $0x11e8] sm:$0xf]  ;;  %v11034_v60 = vor.u32 %v12793_v47, %v11033_v43  ;;  %v12865_v32 = vld [vmem:[%s14186_s23 + $0x10b4] sm:$0xf0] }
 0x3a3   : > { %8227 = vmatpush.bf16.msrb.mxu2 %v10762_v61  ;;  %v11482_v61 = vor.u32 %v12905_v50, %v11481_v46  ;;  %v12785_v35 = vld [vmem:[%s14186_s23 + $0xe34] sm:$0xf0]  ;;  %v11322_v43 = vor.u32 %v12865_v32, %v11321_v19  ;;  %v10985_v44 = vld [vmem:[%s14186_s23 + $0xe08] sm:$0xf] }
 0x3a4   : > { %8240 = vmatpush.bf16.msrb.mxu3 %v10890_v63  ;;  %v11337_v63 = vld [vmem:[%s14186_s23 + $0x10c8] sm:$0xf]  ;;  %v12897_v37 = vld [vmem:[%s14186_s23 + $0x11b4] sm:$0xf0] }
 0x3a5   : > { %8250 = vmatpush.bf16.msra.mxu0 %v11066_v3  ;;  %v11465_v3 = vld [vmem:[%s14186_s23 + $0x11c8] sm:$0xf]  ;;  %v11338_v7 = vor.u32 %v12869_v52, %v11337_v63  ;;  %v11450_v47 = vor.u32 %v12897_v37, %v11449_v36  ;;  %v12781_v46 = vld [vmem:[%s14186_s23 + $0xe14] sm:$0xf0] }
 0x3a6   : > { %8263 = vmatpush.bf16.msra.mxu1 %v11194_v5  ;;  %v12901_v5 = vld [vmem:[%s14186_s23 + $0x11d4] sm:$0xf0]  ;;  %v7999_v11 = vpop.f32.mrf.mxu0  ;;  %v11305_v50 = vld [vmem:[%s14186_s23 + $0x1088] sm:$0xf]  ;;  %v10986_v52 = vor.u32 %v12781_v46, %v10985_v44 }
 0x3a7   : > { %8228 = vmatpush.bf16.msrb.mxu2 %v10746_v2  ;;  %v11466_v18 = vor.u32 %v12901_v5, %v11465_v3  ;;  %v11001_v2 = vld [vmem:[%s14186_s23 + $0xe28] sm:$0xf]  ;;  %v12861_v48 = vld [vmem:[%s14186_s23 + $0x1094] sm:$0xf0] }
 0x3a8   : > { %8241 = vmatpush.bf16.msrb.mxu3 %v10874_v33  ;;  %v11146_v33 = vor.u32 %v12821_v40, %v11145_v6  ;;  %v11002_v45 = vor.u32 %v12785_v35, %v11001_v2  ;;  %v12893_v42 = vld [vmem:[%s14186_s23 + $0x1194] sm:$0xf0]  ;;  %v11113_v53 = vld [vmem:[%s14186_s23 + $0xf08] sm:$0xf] }
 0x3a9   : > { %8251 = vmatpush.bf16.msra.mxu0 %v11050_v39  ;;  %v11129_v39 = vld [vmem:[%s14186_s23 + $0xf28] sm:$0xf]  ;;  %v12969_v63 = vld [vmem:[%s14186_s23 + $0x13f4] sm:$0xf0] }
 0x3aa   : > { %8264 = vmatpush.bf16.msra.mxu1 %v11178_v41  ;;  %v12817_v41 = vld [vmem:[%s14186_s23 + $0xf34] sm:$0xf0]  ;;  %v11737_v62 = vld [vmem:[%s14186_s23 + $0x13e8] sm:$0xf]  ;;  %v8010_v5 = vpop.f32.mrf.mxu1 }
 0x3ab   : > { %8229 = vmatpush.bf16.msrb.mxu2 %v10730_v51  ;;  %v11130_v49 = vor.u32 %v12817_v41, %v11129_v39  ;;  %v11433_v51 = vld [vmem:[%s14186_s23 + $0x1188] sm:$0xf]  ;;  %v12857_v3 = vld [vmem:[%s14186_s23 + $0x1074] sm:$0xf0] }
 0x3ac   : > { %8242 = vmatpush.bf16.msrb.mxu3 %v10858_v58  ;;  %v12813_v58 = vld [vmem:[%s14186_s23 + $0xf14] sm:$0xf0]  ;;  %v11289_v1 = vld [vmem:[%s14186_s23 + $0x1068] sm:$0xf] }
 0x3ad   : > { %8252 = vmatpush.bf16.msra.mxu0 %v11034_v60  ;;  %v12937_v60 = vld [vmem:[%s14186_s23 + $0x12f4] sm:$0xf0]  ;;  %v11114_v6 = vor.u32 %v12813_v58, %v11113_v53  ;;  %v11593_v2 = vld [vmem:[%s14186_s23 + $0x12c8] sm:$0xf]  ;;  %v11290_v32 = vor.u32 %v12857_v3, %v11289_v1 }
 0x3ae   : > { %8265 = vmatpush.bf16.msra.mxu1 %v11162_v0  ;;  %8230 = vmatmul.bf16.vlgmr.msrb.gmra.mxu2 %v14490_v54  ;;  %v11434_v0 = vor.u32 %v12893_v42, %v11433_v51  ;;  %v12889_v11 = vld [vmem:[%s14186_s23 + $0x1174] sm:$0xf0]  ;;  %v11273_v37 = vld [vmem:[%s14186_s23 + $0x1048] sm:$0xf] }
 0x3af   : > { %8274 = vmatpush.bf16.msra.mxu2 %v11354_v59  ;;  %8243 = vmatmul.bf16.vlgmr.msrb.gmra.mxu3 %v14494_v56  ;;  %v11609_v59 = vld [vmem:[%s14186_s23 + $0x12e8] sm:$0xf]  ;;  %v12933_v19 = vld [vmem:[%s14186_s23 + $0x12d4] sm:$0xf0] }
 0x3b0   : > { %8287 = vmatpush.bf16.msra.mxu3 %v11482_v61  ;;  %v11306_v61 = vor.u32 %v12861_v48, %v11305_v50  ;;  %v11610_v40 = vor.u32 %v12937_v60, %v11609_v59  ;;  %v12965_v35 = vld [vmem:[%s14186_s23 + $0x13d4] sm:$0xf0]  ;;  %v11401_v41 = vld [vmem:[%s14186_s23 + $0x1148] sm:$0xf] }
 0x3b1   : > { %8253 = vmatpush.bf16.msra.mxu0 %v11018_v16  ;;  %v8011_v16 = vadd.f32 %v8010_v5, %v15382_v38  ;;  %v12853_v39 = vld [vmem:[%s14186_s23 + $0x1054] sm:$0xf0]  ;;  %v11594_v38 = vor.u32 %v12933_v19, %v11593_v2  ;;  %v8023_v44 = vpop.f32.mrf.mxu2  ;;  %v11705_v51 = vld [vmem:[%s14186_s23 + $0x13a8] sm:$0xf] }
 0x3b2   : > { %8266 = vmatpush.bf16.msra.mxu1 %v11146_v33  ;;  %v11721_v33 = vld [vmem:[%s14186_s23 + $0x13c8] sm:$0xf]  ;;  %v12929_v46 = vld [vmem:[%s14186_s23 + $0x12b4] sm:$0xf0]  ;;  %v8036_v48 = vpop.f32.mrf.mxu3  ;;  %v8012_v60 = vpop.f32.mrf.mxu1 }
 0x3b3   : > { %8275 = vmatpush.bf16.msra.mxu2 %v11338_v7  ;;  %v11417_v7 = vld [vmem:[%s14186_s23 + $0x1168] sm:$0xf]  ;;  %v8024_v50 = vadd.f32 %v8023_v44, %v8011_v16  ;;  %v12961_v42 = vld [vmem:[%s14186_s23 + $0x13b4] sm:$0xf0] }
 0x3b4   : > { %8288 = vmatpush.bf16.msra.mxu3 %v11466_v18  ;;  %v11738_v18 = vor.u32 %v12969_v63, %v11737_v62  ;;  %v11418_v36 = vor.u32 %v12889_v11, %v11417_v7  ;;  %v11257_v58 = vld [vmem:[%s14186_s23 + $0x1028] sm:$0xf]  ;;  %v12849_v59 = vld [vmem:[%s14186_s23 + $0x1034] sm:$0xf0] }
 0x3b5   : > { %8254 = vmatpush.bf16.msra.mxu0 %v11002_v45  ;;  %v11722_v45 = vor.u32 %v12965_v35, %v11721_v33  ;;  %v11385_v63 = vld [vmem:[%s14186_s23 + $0x1128] sm:$0xf]  ;;  %v12925_v3 = vld [vmem:[%s14186_s23 + $0x1294] sm:$0xf0]  ;;  %v11258_v5 = vor.u32 %v12849_v59, %v11257_v58 }
 0x3b6   : > { %8267 = vmatpush.bf16.msra.mxu1 %v11130_v49  ;;  %v11274_v49 = vor.u32 %v12853_v39, %v11273_v37  ;;  %v11561_v1 = vld [vmem:[%s14186_s23 + $0x1288] sm:$0xf]  ;;  %v12845_v16 = vld [vmem:[%s14186_s23 + $0x1014] sm:$0xf0] }
 0x3b7   : > { %8276 = vmatpush.bf16.msra.mxu2 %v11322_v43  ;;  %v12885_v43 = vld [vmem:[%s14186_s23 + $0x1154] sm:$0xf0]  ;;  %v11241_v7 = vld [vmem:[%s14186_s23 + $0x1008] sm:$0xf] }
 0x3b8   : > { %8289 = vmatpush.bf16.msra.mxu3 %v11450_v47  ;;  %v11577_v47 = vld [vmem:[%s14186_s23 + $0x12a8] sm:$0xf]  ;;  %v11402_v53 = vor.u32 %v12885_v43, %v11401_v41  ;;  %v12877_v2 = vld [vmem:[%s14186_s23 + $0x1114] sm:$0xf0] }
 0x3b9   : > { %8255 = vmatpush.bf16.msra.mxu0 %v10986_v52  ;;  %v11578_v62 = vor.u32 %v12929_v46, %v11577_v47  ;;  %v12881_v52 = vld [vmem:[%s14186_s23 + $0x1134] sm:$0xf0]  ;;  %v8049_v19 = vpop.f32.mrf.mxu0  ;;  %v11545_v33 = vld [vmem:[%s14186_s23 + $0x1268] sm:$0xf]  ;;  %v8025_v44 = vpop.f32.mrf.mxu2 }
 0x3ba   : > { %8268 = vmatpush.bf16.msra.mxu1 %v11114_v6  ;;  %v11689_v6 = vld [vmem:[%s14186_s23 + $0x1388] sm:$0xf]  ;;  %v11386_v11 = vor.u32 %v12881_v52, %v11385_v63  ;;  %v13033_v43 = vld [vmem:[%s14186_s23 + $0x15f4] sm:$0xf0] }
 0x3bb   : > { %8277 = vmatpush.bf16.msra.mxu2 %v11306_v61  ;;  %v8037_v61 = vadd.f32 %v8036_v48, %v8024_v50  ;;  %v11865_v35 = vld [vmem:[%s14186_s23 + $0x14e8] sm:$0xf]  ;;  %v12953_v46 = vld [vmem:[%s14186_s23 + $0x1374] sm:$0xf0]  ;;  %v8038_v50 = vpop.f32.mrf.mxu3 }
 0x3bc   : > { %8290 = vmatpush.bf16.msra.mxu3 %v11434_v0  ;;  %8256 = vmatmul.bf16.vlgmr.msra.gmra.mxu0 %v14492_v55  ;;  %v11706_v0 = vor.u32 %v12961_v42, %v11705_v51  ;;  %v11993_v41 = vld [vmem:[%s14186_s23 + $0x15e8] sm:$0xf]  ;;  %v8062_v51 = vpop.f32.mrf.mxu1  ;;  %v12997_v60 = vld [vmem:[%s14186_s23 + $0x14d4] sm:$0xf0] }
 0x3bd   : > { %8300 = vmatpush.bf16.msrb.mxu0 %v11610_v40  ;;  %8269 = vmatmul.bf16.vlgmr.msra.gmra.mxu1 %v14496_v57  ;;  %v12957_v40 = vld [vmem:[%s14186_s23 + $0x1394] sm:$0xf0]  ;;  %v8050_v37 = vadd.f32 %v8049_v19, %v8037_v61  ;;  %v11673_v47 = vld [vmem:[%s14186_s23 + $0x1368] sm:$0xf] }
 0x3be   : > { %8313 = vmatpush.bf16.msrb.mxu1 %v11738_v18  ;;  %v11369_v18 = vld [vmem:[%s14186_s23 + $0x1108] sm:$0xf]  ;;  %v11690_v39 = vor.u32 %v12957_v40, %v11689_v6  ;;  %v12917_v63 = vld [vmem:[%s14186_s23 + $0x1254] sm:$0xf0] }
 0x3bf   : > { %8278 = vmatpush.bf16.msra.mxu2 %v11290_v32  ;;  %v11562_v32 = vor.u32 %v12925_v3, %v11561_v1  ;;  %v11370_v48 = vor.u32 %v12877_v2, %v11369_v18  ;;  %v11529_v58 = vld [vmem:[%s14186_s23 + $0x1248] sm:$0xf]  ;;  %v15464_v61 = vadd.f32 %v8062_v51, %v8050_v37  ;;  %v12949_v3 = vld [vmem:[%s14186_s23 + $0x1354] sm:$0xf0] }
 0x3c0   : > { %8291 = vmatpush.bf16.msra.mxu3 %v11418_v36  ;;  %v13001_v36 = vld [vmem:[%s14186_s23 + $0x14f4] sm:$0xf0]  ;;  %v11849_v59 = vld [vmem:[%s14186_s23 + $0x14c8] sm:$0xf]  ;;  %v11530_v40 = vor.u32 %v12917_v63, %v11529_v58 }
 0x3c1   : > { %8301 = vmatpush.bf16.msrb.mxu0 %v11594_v38  ;;  %v12921_v38 = vld [vmem:[%s14186_s23 + $0x1274] sm:$0xf0]  ;;  %v11977_v52 = vld [vmem:[%s14186_s23 + $0x15c8] sm:$0xf]  ;;  %v11850_v6 = vor.u32 %v12997_v60, %v11849_v59  ;;  %v8051_v2 = vpop.f32.mrf.mxu0 }
 0x3c2   : > { %8314 = vmatpush.bf16.msrb.mxu1 %v11722_v45  ;;  %v11242_v45 = vor.u32 %v12845_v16, %v11241_v7  ;;  %v11546_v42 = vor.u32 %v12921_v38, %v11545_v33  ;;  %v11657_v1 = vld [vmem:[%s14186_s23 + $0x1348] sm:$0xf]  ;;  %v12993_v18 = vld [vmem:[%s14186_s23 + $0x14b4] sm:$0xf0] }
 0x3c3   : > { %8279 = vmatpush.bf16.msra.mxu2 %v11274_v49  ;;  %v11866_v49 = vor.u32 %v13001_v36, %v11865_v35  ;;  %v11833_v16 = vld [vmem:[%s14186_s23 + $0x14a8] sm:$0xf]  ;;  %v11658_v19 = vor.u32 %v12949_v3, %v11657_v1  ;;  %v13025_v35 = vld [vmem:[%s14186_s23 + $0x15b4] sm:$0xf0] }
 0x3c4   : > { %8292 = vmatpush.bf16.msra.mxu3 %v11402_v53  ;;  %v11994_v53 = vor.u32 %v13033_v43, %v11993_v41  ;;  %v11961_v33 = vld [vmem:[%s14186_s23 + $0x15a8] sm:$0xf]  ;;  %v12945_v37 = vld [vmem:[%s14186_s23 + $0x1334] sm:$0xf0] }
 0x3c5   : > { %8302 = vmatpush.bf16.msrb.mxu0 %v11578_v62  ;;  %v11674_v62 = vor.u32 %v12953_v46, %v11673_v47  ;;  %v11641_v36 = vld [vmem:[%s14186_s23 + $0x1328] sm:$0xf]  ;;  %v11962_v43 = vor.u32 %v13025_v35, %v11961_v33  ;;  %v12909_v44 = vld [vmem:[%s14186_s23 + $0x1214] sm:$0xf0]  ;;  %v8064_v46 = vpop.f32.mrf.mxu1 }
 0x3c6   : > { %8315 = vmatpush.bf16.msrb.mxu1 %v11706_v0  ;;  %v13029_v0 = vld [vmem:[%s14186_s23 + $0x15d4] sm:$0xf0]  ;;  %v11497_v38 = vld [vmem:[%s14186_s23 + $0x1208] sm:$0xf]  ;;  %v11642_v50 = vor.u32 %v12945_v37, %v11641_v36 }
 0x3c7   : > { %8280 = vmatpush.bf16.msra.mxu2 %v11258_v5  ;;  %v8717_v5 = vmax.f32 %v15464_v61, 0.0  ;;  %v11978_v7 = vor.u32 %v13029_v0, %v11977_v52  ;;  %v12989_v47 = vld [vmem:[%s14186_s23 + $0x1494] sm:$0xf0]  ;;  %v11625_v51 = vld [vmem:[%s14186_s23 + $0x1308] sm:$0xf]  ;;  %v11498_v63 = vor.u32 %v12909_v44, %v11497_v38 }
 0x3c8   : > { %8293 = vmatpush.bf16.msra.mxu3 %v11386_v11  ;;  %v11513_v11 = vld [vmem:[%s14186_s23 + $0x1228] sm:$0xf]  ;;  %v13065_v58 = vld [vmem:[%s14186_s23 + $0x16f4] sm:$0xf0] }
 0x3c9   : > { %8303 = vmatpush.bf16.msrb.mxu0 %v11562_v32  ;;  %v12913_v32 = vld [vmem:[%s14186_s23 + $0x1234] sm:$0xf0]  ;;  %v12249_v60 = vld [vmem:[%s14186_s23 + $0x17e8] sm:$0xf] }
 0x3ca   : > { %8316 = vmatpush.bf16.msrb.mxu1 %v11690_v39  ;;  %v11834_v39 = vor.u32 %v12993_v18, %v11833_v16  ;;  %v11514_v41 = vor.u32 %v12913_v32, %v11513_v11  ;;  %v11801_v0 = vld [vmem:[%s14186_s23 + $0x1468] sm:$0xf]  ;;  %v12985_v1 = vld [vmem:[%s14186_s23 + $0x1474] sm:$0xf0] }
 0x3cb   : > { %8281 = vmatpush.bf16.msra.mxu2 %v11242_v45  ;;  %v11817_v45 = vld [vmem:[%s14186_s23 + $0x1488] sm:$0xf]  ;;  %v13061_v18 = vld [vmem:[%s14186_s23 + $0x16d4] sm:$0xf0]  ;;  %v11802_v2 = vor.u32 %v12985_v1, %v11801_v0 }
 0x3cc   : > { %8294 = vmatpush.bf16.msra.mxu3 %v11370_v48  ;;  %v11945_v48 = vld [vmem:[%s14186_s23 + $0x1588] sm:$0xf]  ;;  %v11818_v59 = vor.u32 %v12989_v47, %v11817_v45  ;;  %v13093_v32 = vld [vmem:[%s14186_s23 + $0x17d4] sm:$0xf0] }
 0x3cd   : > { %8304 = vmatpush.bf16.msrb.mxu0 %v11546_v42  ;;  %v12941_v42 = vld [vmem:[%s14186_s23 + $0x1314] sm:$0xf0]  ;;  %v12105_v16 = vld [vmem:[%s14186_s23 + $0x16c8] sm:$0xf] }
 0x3ce   : > { %8317 = vmatpush.bf16.msrb.mxu1 %v11674_v62  ;;  %8282 = vmatmul.bf16.vlgmr.msra.gmra.mxu2 %v14580_v17  ;;  %v13097_v62 = vld [vmem:[%s14186_s23 + $0x17f4] sm:$0xf0]  ;;  %v11626_v3 = vor.u32 %v12941_v42, %v11625_v51  ;;  %v11785_v35 = vld [vmem:[%s14186_s23 + $0x1448] sm:$0xf]  ;;  %v12106_v38 = vor.u32 %v13061_v18, %v12105_v16 }
 0x3cf   : > { %8326 = vmatpush.bf16.msrb.mxu2 %v11866_v49  ;;  %8295 = vmatmul.bf16.vlgmr.msra.gmra.mxu3 %v14592_v22  ;;  %v13021_v49 = vld [vmem:[%s14186_s23 + $0x1594] sm:$0xf0]  ;;  %v12250_v11 = vor.u32 %v13097_v62, %v12249_v60  ;;  %v13183_v37 = vld [vmem:[%s14625_s8] sm:$0xf] }
 0x3d0   : > { %8339 = vmatpush.bf16.msrb.mxu3 %v11994_v53  ;;  %v12121_v53 = vld [vmem:[%s14186_s23 + $0x16e8] sm:$0xf]  ;;  %v11946_v52 = vor.u32 %v13021_v49, %v11945_v48  ;;  %v12981_v36 = vld [vmem:[%s14186_s23 + $0x1454] sm:$0xf0] }
 0x3d1   : > { %8305 = vmatpush.bf16.msrb.mxu0 %v11530_v40  ;;  %v11929_v40 = vld [vmem:[%s14186_s23 + $0x1568] sm:$0xf]  ;;  %v13057_v47 = vld [vmem:[%s14186_s23 + $0x16b4] sm:$0xf0]  ;;  %v11786_v46 = vor.u32 %v12981_v36, %v11785_v35  ;;  %v8075_v49 = vpop.f32.mrf.mxu2 }
 0x3d2   : > { %8318 = vmatpush.bf16.msrb.mxu1 %v11658_v19  ;;  %v12233_v19 = vld [vmem:[%s14186_s23 + $0x17c8] sm:$0xf]  ;;  %v13089_v48 = vld [vmem:[%s14186_s23 + $0x17b4] sm:$0xf0] }
 0x3d3   : > { %8327 = vmatpush.bf16.msrb.mxu2 %v11850_v6  ;;  %v12122_v6 = vor.u32 %v13065_v58, %v12121_v53  ;;  %v12234_v44 = vor.u32 %v13093_v32, %v12233_v19  ;;  %v12089_v45 = vld [vmem:[%s14186_s23 + $0x16a8] sm:$0xf]  ;;  %v12977_v53 = vld [vmem:[%s14186_s23 + $0x1434] sm:$0xf0] }
 0x3d4   : > { %8340 = vmatpush.bf16.msrb.mxu3 %v11978_v7  ;;  %v13017_v7 = vld [vmem:[%s14186_s23 + $0x1574] sm:$0xf0]  ;;  %v11769_v42 = vld [vmem:[%s14186_s23 + $0x1428] sm:$0xf]  ;;  %v12090_v60 = vor.u32 %v13057_v47, %v12089_v45 }
 0x3d5   : > { %8306 = vmatpush.bf16.msrb.mxu0 %v11514_v41  ;;  %v11930_v33 = vor.u32 %v13017_v7, %v11929_v40  ;;  %v11913_v41 = vld [vmem:[%s14186_s23 + $0x1548] sm:$0xf]  ;;  %v13053_v1 = vld [vmem:[%s14186_s23 + $0x1694] sm:$0xf0] }
 0x3d6   : > { %8319 = vmatpush.bf16.msrb.mxu1 %v11642_v50  ;;  %v12217_v50 = vld [vmem:[%s14186_s23 + $0x17a8] sm:$0xf]  ;;  %v13085_v7 = vld [vmem:[%s14186_s23 + $0x1794] sm:$0xf0] }
 0x3d7   : > { %8328 = vmatpush.bf16.msrb.mxu2 %v11834_v39  ;;  %v3430_v39 = vperm.slane %v13183_v37, 2  ;;  %v11897_v62 = vld [vmem:[%s14186_s23 + $0x1528] sm:$0xf]  ;;  %v12973_v18 = vld [vmem:[%s14186_s23 + $0x1414] sm:$0xf0] }
 0x3d8   : > { %8341 = vmatpush.bf16.msrb.mxu3 %v11962_v43  ;;  %v13013_v43 = vld [vmem:[%s14186_s23 + $0x1554] sm:$0xf0]  ;;  %v12073_v0 = vld [vmem:[%s14186_s23 + $0x1688] sm:$0xf] }
 0x3d9   : > { %8307 = vmatpush.bf16.msrb.mxu0 %v11498_v63  ;;  %v11914_v51 = vor.u32 %v13013_v43, %v11913_v41  ;;  %v8076_v58 = vadd.f32 %v8075_v49, %v3430_v39  ;;  %v13009_v63 = vld [vmem:[%s14186_s23 + $0x1534] sm:$0xf0]  ;;  %v12201_v40 = vld [vmem:[%s14186_s23 + $0x1788] sm:$0xf]  ;;  %v12074_v32 = vor.u32 %v13053_v1, %v12073_v0  ;;  %v9307_v41 = vld [vmem:[%s14186_s23 + $0xf8] sm:$0xf0]  ;;  %v8101_v43 = vpop.f32.mrf.mxu0 }
 0x3da   : > { %8320 = vmatpush.bf16.msrb.mxu1 %v11626_v3  ;;  %v11898_v16 = vor.u32 %v13009_v63, %v11897_v62  ;;  %v13005_v19 = vld [vmem:[%s14186_s23 + $0x1514] sm:$0xf0]  ;;  %v12313_v35 = vld [vmem:[%s14186_s23 + $0x1868] sm:$0xf]  ;;  %v12202_v37 = vor.u32 %v13085_v7, %v12201_v40  ;;  %v8114_v62 = vpop.f32.mrf.mxu1  ;;  %v12355_v0 = vld [vmem:[%s14186_s23 + $0xcc] sm:$0xf] }
 0x3db   : > { %8329 = vmatpush.bf16.msrb.mxu2 %v11818_v59  ;;  %v8088_v59 = vpop.f32.mrf.mxu3  ;;  %v13113_v36 = vld [vmem:[%s14186_s23 + $0x1874] sm:$0xf0]  ;;  %v12185_v45 = vld [vmem:[%s14186_s23 + $0x1768] sm:$0xf]  ;;  %v9291_v1 = vld [vmem:[%s14186_s23 + $0xd8] sm:$0xf0] }
 0x3dc   : > { %8342 = vmatpush.bf16.msrb.mxu3 %v11946_v52  ;;  %8308 = vmatmul.bf16.vlgmr.msrb.gmra.mxu0 %v14590_v21  ;;  %v12218_v52 = vor.u32 %v13089_v48, %v12217_v50  ;;  %v8089_v3 = vadd.f32 %v8088_v59, %v8076_v58  ;;  %v13049_v39 = vld [vmem:[%s14186_s23 + $0x1674] sm:$0xf0]  ;;  %v8077_v50 = vpop.f32.mrf.mxu2  ;;  %v12314_v49 = vor.u32 %v13113_v36, %v12313_v35  ;;  %v12041_v58 = vld [vmem:[%s14186_s23 + $0x1648] sm:$0xf]  ;;  %v12351_v35 = vld [vmem:[%s14186_s23 + $0xac] sm:$0xf] }
 0x3dd   : > { %8352 = vmatpush.bf16.msra.mxu0 %v12122_v6  ;;  %8321 = vmatmul.bf16.vlgmr.msrb.gmra.mxu1 %v14594_v26  ;;  %v11770_v6 = vor.u32 %v12977_v53, %v11769_v42  ;;  %v13081_v47 = vld [vmem:[%s14186_s23 + $0x1774] sm:$0xf0]  ;;  %v12297_v59 = vld [vmem:[%s14186_s23 + $0x1848] sm:$0xf]  ;;  %v9275_v36 = vld [vmem:[%s14186_s23 + $0xb8] sm:$0xf0] }
 0x3de   : > { %8365 = vmatpush.bf16.msra.mxu1 %v12250_v11  ;;  %v11753_v11 = vld [vmem:[%s14186_s23 + $0x1408] sm:$0xf]  ;;  %v12186_v63 = vor.u32 %v13081_v47, %v12185_v45  ;;  %v13077_v40 = vld [vmem:[%s14186_s23 + $0x1754] sm:$0xf0]  ;;  %v9278_v47 = vor.u32 %v12351_v35, %v9275_v36  ;;  %v12451_v35 = vld [vmem:[%s14186_s23 + $0x3cc] sm:$0xf] }
 0x3df   : > { %8330 = vmatpush.bf16.msrb.mxu2 %v11802_v2  ;;  %v11881_v2 = vld [vmem:[%s14186_s23 + $0x1508] sm:$0xf]  ;;  %v13101_v50 = vld [vmem:[%s14186_s23 + $0x1814] sm:$0xf0]  ;;  %v9675_v36 = vld [vmem:[%s14186_s23 + $0x3d8] sm:$0xf0] }
 0x3e0   : > { %8343 = vmatpush.bf16.msrb.mxu3 %v11930_v33  ;;  %v12057_v33 = vld [vmem:[%s14186_s23 + $0x1668] sm:$0xf]  ;;  %v11882_v48 = vor.u32 %v13005_v19, %v11881_v2  ;;  %v13105_v19 = vld [vmem:[%s14186_s23 + $0x1834] sm:$0xf0] }
 0x3e1   : > { %8353 = vmatpush.bf16.msra.mxu0 %v12106_v38  ;;  %v12359_v38 = vld [vmem:[%s14186_s23 + $0xec] sm:$0xf]  ;;  %v12058_v42 = vor.u32 %v13049_v39, %v12057_v33  ;;  %v12281_v2 = vld [vmem:[%s14186_s23 + $0x1828] sm:$0xf]  ;;  %v13041_v33 = vld [vmem:[%s14186_s23 + $0x1634] sm:$0xf0] }
 0x3e2   : > { %8366 = vmatpush.bf16.msra.mxu1 %v12234_v44  ;;  %v11754_v44 = vor.u32 %v12973_v18, %v11753_v11  ;;  %v9310_v53 = vor.u32 %v12359_v38, %v9307_v41  ;;  %v12025_v18 = vld [vmem:[%s14186_s23 + $0x1628] sm:$0xf]  ;;  %v13073_v38 = vld [vmem:[%s14186_s23 + $0x1734] sm:$0xf0]  ;;  %v12282_v41 = vor.u32 %v13105_v19, %v12281_v2 }
 0x3e3   : > { %8331 = vmatpush.bf16.msrb.mxu2 %v11786_v46  ;;  %v8102_v46 = vadd.f32 %v8101_v43, %v8089_v3  ;;  %v12153_v39 = vld [vmem:[%s14186_s23 + $0x1728] sm:$0xf]  ;;  %v12026_v45 = vor.u32 %v13041_v33, %v12025_v18  ;;  %v9243_v18 = vld [vmem:[%s14186_s23 + $0x78] sm:$0xf0] }
 0x3e4   : > { %8344 = vmatpush.bf16.msrb.mxu3 %v11914_v51  ;;  %v8090_v51 = vpop.f32.mrf.mxu3  ;;  %v12009_v43 = vld [vmem:[%s14186_s23 + $0x1608] sm:$0xf]  ;;  %v9419_v33 = vld [vmem:[%s14186_s23 + $0x1d8] sm:$0xf0] }
 0x3e5   : > { %8354 = vmatpush.bf16.msra.mxu0 %v12090_v60  ;;  %v13109_v60 = vld [vmem:[%s14186_s23 + $0x1854] sm:$0xf0]  ;;  %v15539_v3 = vadd.f32 %v8114_v62, %v8102_v46  ;;  %v12265_v46 = vld [vmem:[%s14186_s23 + $0x1808] sm:$0xf]  ;;  %v12154_v51 = vor.u32 %v13073_v38, %v12153_v39  ;;  %v12455_v62 = vld [vmem:[%s14186_s23 + $0x3ec] sm:$0xf] }
 0x3e6   : > { %8367 = vmatpush.bf16.msra.mxu1 %v12218_v52  ;;  %v13045_v52 = vld [vmem:[%s14186_s23 + $0x1654] sm:$0xf0]  ;;  %v12298_v7 = vor.u32 %v13109_v60, %v12297_v59  ;;  %v12391_v59 = vld [vmem:[%s14186_s23 + $0x1ec] sm:$0xf]  ;;  %v9435_v60 = vld [vmem:[%s14186_s23 + $0x1f8] sm:$0xf0] }
 0x3e7   : > { %8332 = vmatpush.bf16.msrb.mxu2 %v11770_v6  ;;  %v12169_v6 = vld [vmem:[%s14186_s23 + $0x1748] sm:$0xf]  ;;  %v12042_v11 = vor.u32 %v13045_v52, %v12041_v58  ;;  %v13069_v58 = vld [vmem:[%s14186_s23 + $0x1714] sm:$0xf0]  ;;  %v9691_v52 = vld [vmem:[%s14186_s23 + $0x3f8] sm:$0xf0] }
 0x3e8   : > { %8345 = vmatpush.bf16.msrb.mxu3 %v11898_v16  ;;  %v9294_v16 = vor.u32 %v12355_v0, %v9291_v1  ;;  %v12423_v0 = vld [vmem:[%s14186_s23 + $0x2ec] sm:$0xf]  ;;  %v9563_v1 = vld [vmem:[%s14186_s23 + $0x2f8] sm:$0xf0]  ;;  %v9694_v2 = vor.u32 %v12455_v62, %v9691_v52 }
 0x3e9   : > { %8355 = vmatpush.bf16.msra.mxu0 %v12074_v32  ;;  %v12170_v32 = vor.u32 %v13077_v40, %v12169_v6  ;;  %v9566_v19 = vor.u32 %v12423_v0, %v9563_v1  ;;  %v9547_v39 = vld [vmem:[%s14186_s23 + $0x2d8] sm:$0xf0]  ;;  %v13184_v62 = vld [vmem:[#allocation1] sm:$0xff] }
 0x3ea   : > { %8368 = vmatpush.bf16.msra.mxu1 %v12202_v37  ;;  %v8103_v37 = vpop.f32.mrf.mxu0  ;;  %v12335_v52 = vld [vmem:[%s14186_s23 + $0x2c] sm:$0xf]  ;;  %v9211_v0 = vld [vmem:[%s14186_s23 + $0x38] sm:$0xf0] }
 0x3eb   : > { %8333 = vmatpush.bf16.msrb.mxu2 %v11754_v44  ;;  %v13037_v44 = vld [vmem:[%s14186_s23 + $0x1614] sm:$0xf0]  ;;  %v12419_v37 = vld [vmem:[%s14186_s23 + $0x2cc] sm:$0xf] }
 0x3ec   : > { %8346 = vmatpush.bf16.msrb.mxu3 %v11882_v48  ;;  %v12347_v48 = vld [vmem:[%s14186_s23 + $0x8c] sm:$0xf]  ;;  %v12010_v6 = vor.u32 %v13037_v44, %v12009_v43  ;;  %v9227_v44 = vld [vmem:[%s14186_s23 + $0x58] sm:$0xf0] }
 0x3ed   : > { %8356 = vmatpush.bf16.msra.mxu0 %v12058_v42  ;;  %v9259_v42 = vld [vmem:[%s14186_s23 + $0x98] sm:$0xf0]  ;;  %v12339_v43 = vld [vmem:[%s14186_s23 + $0x4c] sm:$0xf] }
 0x3ee   : > { %8369 = vmatpush.bf16.msra.mxu1 %v12186_v63  ;;  %8334 = vmatmul.bf16.vlgmr.msrb.gmra.mxu2 %v14634_v12  ;;  %v12266_v63 = vor.u32 %v13101_v50, %v12265_v46  ;;  %v9262_v40 = vor.u32 %v12347_v48, %v9259_v42  ;;  %v12383_v46 = vld [vmem:[%s14186_s23 + $0x1ac] sm:$0xf]  ;;  %v9403_v50 = vld [vmem:[%s14186_s23 + $0x1b8] sm:$0xf0] }
 0x3ef   : > { %8382 = vmatpush.bf16.msra.mxu2 %v12314_v49  ;;  %8347 = vmatmul.bf16.vlgmr.msrb.gmra.mxu3 %v14638_v14  ;;  %v8116_v49 = vpop.f32.mrf.mxu1  ;;  %v12447_v48 = vld [vmem:[%s14186_s23 + $0x3ac] sm:$0xf] }
 0x3f0   : > { %8391 = vmatpush.bf16.msra.mxu3 %v9310_v53  ;;  %v12137_v53 = vld [vmem:[%s14186_s23 + $0x1708] sm:$0xf]  ;;  %v12415_v42 = vld [vmem:[%s14186_s23 + $0x2ac] sm:$0xf] }
 0x3f1   : > { %8357 = vmatpush.bf16.msra.mxu0 %v12042_v11  ;;  %v9438_v11 = vor.u32 %v12391_v59, %v9435_v60  ;;  %v8127_v49 = vpop.f32.mrf.mxu2 }
 0x3f2   : > { %8370 = vmatpush.bf16.msra.mxu1 %v12170_v32  ;;  %v12387_v32 = vld [vmem:[%s14186_s23 + $0x1cc] sm:$0xf]  ;;  %v8128_v59 = vadd.f32 %v8127_v49, %v15539_v3  ;;  %v8140_v60 = vpop.f32.mrf.mxu3 }
 0x3f3   : > { %8383 = vmatpush.bf16.msra.mxu2 %v12298_v7  ;;  %v12138_v7 = vor.u32 %v13069_v58, %v12137_v53  ;;  %v9531_v53 = vld [vmem:[%s14186_s23 + $0x2b8] sm:$0xf0]  ;;  %v9230_v58 = vor.u32 %v12339_v43, %v9227_v44  ;;  %v12439_v43 = vld [vmem:[%s14186_s23 + $0x36c] sm:$0xf] }
 0x3f4   : > { %8392 = vmatpush.bf16.msra.mxu3 %v9294_v16  ;;  %v12343_v16 = vld [vmem:[%s14186_s23 + $0x6c] sm:$0xf]  ;;  %v8141_v3 = vadd.f32 %v8140_v60, %v8128_v59 }
 0x3f5   : > { %8358 = vmatpush.bf16.msra.mxu0 %v12026_v45  ;;  %v9246_v38 = vor.u32 %v12343_v16, %v9243_v18  ;;  %v9678_v45 = vor.u32 %v12451_v35, %v9675_v36  ;;  %v9643_v16 = vld [vmem:[%s14186_s23 + $0x398] sm:$0xf0]  ;;  %v12411_v18 = vld [vmem:[%s14186_s23 + $0x28c] sm:$0xf] }
 0x3f6   : > { %8371 = vmatpush.bf16.msra.mxu1 %v12154_v51  ;;  %v9659_v51 = vld [vmem:[%s14186_s23 + $0x3b8] sm:$0xf0]  ;;  %v12375_v36 = vld [vmem:[%s14186_s23 + $0x16c] sm:$0xf] }
 0x3f7   : > { %8384 = vmatpush.bf16.msra.mxu2 %v12282_v41  ;;  %v9422_v41 = vor.u32 %v12387_v32, %v9419_v33  ;;  %v9662_v1 = vor.u32 %v12447_v48, %v9659_v51  ;;  %v12331_v32 = vld [vmem:[%s14186_s23 + $0xc] sm:$0xf]  ;;  %v9195_v35 = vld [vmem:[%s14186_s23 + $0x18] sm:$0xf0] }
 0x3f8   : > { %8393 = vmatpush.bf16.msra.mxu3 %v9278_v47  ;;  %v9550_v47 = vor.u32 %v12419_v37, %v9547_v39  ;;  %v9371_v37 = vld [vmem:[%s14186_s23 + $0x178] sm:$0xf0]  ;;  %v12487_v44 = vld [vmem:[%s14186_s23 + $0x4ec] sm:$0xf]  ;;  %v9198_v51 = vor.u32 %v12331_v32, %v9195_v35 }
 0x3f9   : > { %8359 = vmatpush.bf16.msra.mxu0 %v12010_v6  ;;  %v9534_v6 = vor.u32 %v12415_v42, %v9531_v53  ;;  %v8153_v39 = vpop.f32.mrf.mxu0  ;;  %v9499_v48 = vld [vmem:[%s14186_s23 + $0x278] sm:$0xf0]  ;;  %v8129_v49 = vpop.f32.mrf.mxu2  ;;  %v12371_v60 = vld [vmem:[%s14186_s23 + $0x14c] sm:$0xf] }
 0x3fa   : > { %8372 = vmatpush.bf16.msra.mxu1 %v12138_v7  ;;  %v9387_v7 = vld [vmem:[%s14186_s23 + $0x198] sm:$0xf0]  ;;  %v8142_v42 = vpop.f32.mrf.mxu3  ;;  %v8166_v53 = vpop.f32.mrf.mxu1  ;;  %v12431_v35 = vld [vmem:[%s14186_s23 + $0x32c] sm:$0xf] }
 0x3fb   : > { %8385 = vmatpush.bf16.msra.mxu2 %v12266_v63  ;;  %v9406_v63 = vor.u32 %v12383_v46, %v9403_v50  ;;  %v9627_v46 = vld [vmem:[%s14186_s23 + $0x378] sm:$0xf0]  ;;  %v12407_v50 = vld [vmem:[%s14186_s23 + $0x26c] sm:$0xf] }
 0x3fc   : > { %8394 = vmatpush.bf16.msra.mxu3 %v9262_v40  ;;  %8360 = vmatmul.bf16.vlgmr.msra.gmra.mxu0 %v14636_v13  ;;  %v12379_v40 = vld [vmem:[%s14186_s23 + $0x18c] sm:$0xf] }
 0x3fd   : > { %8404 = vmatpush.bf16.msrb.mxu0 %v9438_v11  ;;  %8373 = vmatmul.bf16.vlgmr.msra.gmra.mxu1 %v14640_v15  ;;  %v12443_v11 = vld [vmem:[%s14186_s23 + $0x38c] sm:$0xf]  ;;  %v9390_v33 = vor.u32 %v12379_v40, %v9387_v7  ;;  %v9611_v40 = vld [vmem:[%s14186_s23 + $0x358] sm:$0xf0] }
 0x3fe   : > { %8417 = vmatpush.bf16.msrb.mxu1 %v9566_v19  ;;  %12321 = vmatmul.msk.bf16.vlgmr.msra.gmra.mxu2 %vm7413_vm0, %v13184_v62  ;;  %v9214_v19 = vor.u32 %v12335_v52, %v9211_v0  ;;  %v9355_v62 = vld [vmem:[%s14186_s23 + $0x158] sm:$0xf0]  ;;  %v9630_v52 = vor.u32 %v12439_v43, %v9627_v46  ;;  %v9502_v0 = vor.u32 %v12407_v50, %v9499_v48  ;;  %v12403_v7 = vld [vmem:[%s14186_s23 + $0x24c] sm:$0xf] }
 0x3ff   : > { %8430 = vmatpush.bf16.msrb.mxu2 %v9694_v2  ;;  %v9515_v2 = vld [vmem:[%s14186_s23 + $0x298] sm:$0xf0]  ;;  %v12427_v50 = vld [vmem:[%s14186_s23 + $0x30c] sm:$0xf] }
 0x400   : > { %8395 = vmatpush.bf16.msra.mxu3 %v9246_v38  ;;  %v9646_v38 = vor.u32 %v12443_v11, %v9643_v16  ;;  %v9483_v11 = vld [vmem:[%s14186_s23 + $0x258] sm:$0xf0]  ;;  %v9358_v16 = vor.u32 %v12371_v60, %v9355_v62  ;;  %v12475_v42 = vld [vmem:[%s14186_s23 + $0x48c] sm:$0xf] }
 0x401   : > { %8405 = vmatpush.bf16.msrb.mxu0 %v9422_v41  ;;  %v9518_v41 = vor.u32 %v12411_v18, %v9515_v2  ;;  %v12367_v2 = vld [vmem:[%s14186_s23 + $0x12c] sm:$0xf]  ;;  %v9467_v43 = vld [vmem:[%s14186_s23 + $0x238] sm:$0xf0] }
 0x402   : > { %8418 = vmatpush.bf16.msrb.mxu1 %v9550_v47  ;;  %v8154_v47 = vadd.f32 %v8153_v39, %v8141_v3  ;;  %v9803_v3 = vld [vmem:[%s14186_s23 + $0x4d8] sm:$0xf0]  ;;  %v8155_v39 = vpop.f32.mrf.mxu0  ;;  %v8168_v48 = vpop.f32.mrf.mxu1  ;;  %v12519_v60 = vld [vmem:[%s14186_s23 + $0x5ec] sm:$0xf] }
 0x403   : > { %8431 = vmatpush.bf16.msrb.mxu2 %v9678_v45  ;;  %v9819_v45 = vld [vmem:[%s14186_s23 + $0x4f8] sm:$0xf0] }
 0x404   : > { %8396 = vmatpush.bf16.msra.mxu3 %v9230_v58  ;;  %v9374_v58 = vor.u32 %v12375_v36, %v9371_v37  ;;  %v9822_v59 = vor.u32 %v12487_v44, %v9819_v45  ;;  %v12479_v36 = vld [vmem:[%s14186_s23 + $0x4ac] sm:$0xf]  ;;  %v9787_v37 = vld [vmem:[%s14186_s23 + $0x4b8] sm:$0xf0] }
 0x405   : > { %8406 = vmatpush.bf16.msrb.mxu0 %v9406_v63  ;;  %v15607_v63 = vadd.f32 %v8166_v53, %v8154_v47  ;;  %v9790_v45 = vor.u32 %v12479_v36, %v9787_v37  ;;  %v12363_v47 = vld [vmem:[%s14186_s23 + $0x10c] sm:$0xf]  ;;  %v9323_v46 = vld [vmem:[%s14186_s23 + $0x118] sm:$0xf0] }
 0x406   : > { %8419 = vmatpush.bf16.msrb.mxu1 %v9534_v6  ;;  %v12483_v6 = vld [vmem:[%s14186_s23 + $0x4cc] sm:$0xf]  ;;  %v9771_v53 = vld [vmem:[%s14186_s23 + $0x498] sm:$0xf0] }
 0x407   : > { %8432 = vmatpush.bf16.msrb.mxu2 %v9662_v1  ;;  %v12435_v1 = vld [vmem:[%s14186_s23 + $0x34c] sm:$0xf]  ;;  %v9806_v18 = vor.u32 %v12483_v6, %v9803_v3  ;;  %v9947_v62 = vld [vmem:[%s14186_s23 + $0x5f8] sm:$0xf0]  ;;  %v9774_v6 = vor.u32 %v12475_v42, %v9771_v53 }
 0x408   : > { %8397 = vmatpush.bf16.msra.mxu3 %v9214_v19  ;;  %v9339_v19 = vld [vmem:[%s14186_s23 + $0x138] sm:$0xf0]  ;;  %v9614_v32 = vor.u32 %v12435_v1, %v9611_v40  ;;  %v9326_v1 = vor.u32 %v12363_v47, %v9323_v46  ;;  %v12551_v3 = vld [vmem:[%s14186_s23 + $0x6ec] sm:$0xf] }
 0x409   : > { %8407 = vmatpush.bf16.msrb.mxu0 %v9390_v33  ;;  %v9486_v33 = vor.u32 %v12403_v7, %v9483_v11  ;;  %v9342_v44 = vor.u32 %v12367_v2, %v9339_v19  ;;  %v10075_v40 = vld [vmem:[%s14186_s23 + $0x6f8] sm:$0xf0]  ;;  %v9950_v2 = vor.u32 %v12519_v60, %v9947_v62  ;;  %v12579_v36 = vld [vmem:[%s14186_s23 + $0x7cc] sm:$0xf] }
 0x40a   : > { %8420 = vmatpush.bf16.msrb.mxu1 %v9518_v41  ;;  %v12399_v41 = vld [vmem:[%s14186_s23 + $0x22c] sm:$0xf]  ;;  %v10187_v37 = vld [vmem:[%s14186_s23 + $0x7d8] sm:$0xf0] }
 0x40b   : > { %8433 = vmatpush.bf16.msrb.mxu2 %v9646_v38  ;;  %v9595_v38 = vld [vmem:[%s14186_s23 + $0x338] sm:$0xf0]  ;;  %v10190_v47 = vor.u32 %v12579_v36, %v10187_v37  ;;  %v12511_v46 = vld [vmem:[%s14186_s23 + $0x5ac] sm:$0xf] }
 0x40c   : > { %8398 = vmatpush.bf16.msra.mxu3 %v9198_v51  ;;  %v9598_v49 = vor.u32 %v12431_v35, %v9595_v38  ;;  %v9579_v51 = vld [vmem:[%s14186_s23 + $0x318] sm:$0xf0]  ;;  %v12547_v38 = vld [vmem:[%s14186_s23 + $0x6cc] sm:$0xf] }
 0x40d   : > { %8408 = vmatpush.bf16.msrb.mxu0 %v9374_v58  ;;  %v12395_v58 = vld [vmem:[%s14186_s23 + $0x20c] sm:$0xf]  ;;  %v9582_v7 = vor.u32 %v12427_v50, %v9579_v51  ;;  %v9931_v35 = vld [vmem:[%s14186_s23 + $0x5d8] sm:$0xf0] }
 0x40e   : > { %8421 = vmatpush.bf16.msrb.mxu1 %v9502_v0  ;;  %v10203_v0 = vld [vmem:[%s14186_s23 + $0x7f8] sm:$0xf0]  ;;  %v12463_v62 = vld [vmem:[%s14186_s23 + $0x42c] sm:$0xf] }
 0x40f   : > { %8434 = vmatpush.bf16.msrb.mxu2 %v9630_v52  ;;  %8399 = vmatmul.bf16.vlgmr.msra.gmra.mxu3 %v14293_v29  ;;  %v9470_v29 = vor.u32 %v12399_v41, %v9467_v43  ;;  %v12583_v52 = vld [vmem:[%s14186_s23 + $0x7ec] sm:$0xf]  ;;  %v10059_v41 = vld [vmem:[%s14186_s23 + $0x6d8] sm:$0xf0] }
 0x410   : > { %8443 = vmatpush.bf16.msrb.mxu3 %v9822_v59  ;;  %v9451_v59 = vld [vmem:[%s14186_s23 + $0x218] sm:$0xf0]  ;;  %v10206_v19 = vor.u32 %v12583_v52, %v10203_v0  ;;  %v12467_v43 = vld [vmem:[%s14186_s23 + $0x44c] sm:$0xf]  ;;  %v10062_v50 = vor.u32 %v12547_v38, %v10059_v41 }
 0x411   : > { %8409 = vmatpush.bf16.msrb.mxu0 %v9358_v16  ;;  %v9454_v11 = vor.u32 %v12395_v58, %v9451_v59  ;;  %v12471_v16 = vld [vmem:[%s14186_s23 + $0x46c] sm:$0xf]  ;;  %v9915_v48 = vld [vmem:[%s14186_s23 + $0x5b8] sm:$0xf0]  ;;  %v8179_v51 = vpop.f32.mrf.mxu2 }
 0x412   : > { %8422 = vmatpush.bf16.msrb.mxu1 %v9486_v33  ;;  %v10078_v33 = vor.u32 %v12551_v3, %v10075_v40  ;;  %v8192_v42 = vpop.f32.mrf.mxu3  ;;  %v12543_v58 = vld [vmem:[%s14186_s23 + $0x6ac] sm:$0xf]  ;;  %v10043_v59 = vld [vmem:[%s14186_s23 + $0x6b8] sm:$0xf0]  ;;  %v8180_v60 = vadd.f32 %v8179_v51, %v15607_v63 }
 0x413   : > { %8435 = vmatpush.bf16.msrb.mxu2 %v9614_v32  ;;  %v12515_v32 = vld [vmem:[%s14186_s23 + $0x5cc] sm:$0xf]  ;;  %v9723_v52 = vld [vmem:[%s14186_s23 + $0x438] sm:$0xf0] }
 0x414   : > { %8444 = vmatpush.bf16.msrb.mxu3 %v9806_v18  ;;  %v9755_v18 = vld [vmem:[%s14186_s23 + $0x478] sm:$0xf0]  ;;  %v12571_v3 = vld [vmem:[%s14186_s23 + $0x78c] sm:$0xf] }
 0x415   : > { %8410 = vmatpush.bf16.msrb.mxu0 %v9342_v44  ;;  %v9758_v39 = vor.u32 %v12471_v16, %v9755_v18  ;;  %v9739_v44 = vld [vmem:[%s14186_s23 + $0x458] sm:$0xf0]  ;;  %v12459_v16 = vld [vmem:[%s14186_s23 + $0x40c] sm:$0xf] }
 0x416   : > { %8423 = vmatpush.bf16.msrb.mxu1 %v9470_v29  ;;  %v10171_v29 = vld [vmem:[%s14186_s23 + $0x7b8] sm:$0xf0]  ;;  %v9742_v53 = vor.u32 %v12467_v43, %v9739_v44  ;;  %v12567_v38 = vld [vmem:[%s14186_s23 + $0x76c] sm:$0xf] }
 0x417   : > { %8436 = vmatpush.bf16.msrb.mxu2 %v9598_v49  ;;  %v12575_v49 = vld [vmem:[%s14186_s23 + $0x7ac] sm:$0xf]  ;;  %v9899_v63 = vld [vmem:[%s14186_s23 + $0x598] sm:$0xf0] }
 0x418   : > { %8445 = vmatpush.bf16.msrb.mxu3 %v9790_v45  ;;  %v9934_v45 = vor.u32 %v12515_v32, %v9931_v35  ;;  %v10174_v0 = vor.u32 %v12575_v49, %v10171_v29  ;;  %v10155_v40 = vld [vmem:[%s14186_s23 + $0x798] sm:$0xf0]  ;;  %v12503_v32 = vld [vmem:[%s14186_s23 + $0x56c] sm:$0xf] }
 0x419   : > { %8411 = vmatpush.bf16.msrb.mxu0 %v9326_v1  ;;  %v12507_v1 = vld [vmem:[%s14186_s23 + $0x58c] sm:$0xf]  ;;  %v9707_v18 = vld [vmem:[%s14186_s23 + $0x418] sm:$0xf0]  ;;  %v8205_v36 = vpop.f32.mrf.mxu0 }
 0x41a   : > { %8424 = vmatpush.bf16.msrb.mxu1 %v9454_v11  ;;  %v10027_v11 = vld [vmem:[%s14186_s23 + $0x698] sm:$0xf0]  ;;  %v8218_v44 = vpop.f32.mrf.mxu1  ;;  %v8194_v49 = vpop.f32.mrf.mxu3 }
 0x41b   : > { %8437 = vmatpush.bf16.msrb.mxu2 %v9582_v7  ;;  %v9726_v7 = vor.u32 %v12463_v62, %v9723_v52  ;;  %v10331_v35 = vld [vmem:[%s14186_s23 + $0x8f8] sm:$0xf0]  ;;  %v12563_v52 = vld [vmem:[%s14186_s23 + $0x74c] sm:$0xf] }
 0x41c   : > { %8446 = vmatpush.bf16.msrb.mxu3 %v9774_v6  ;;  %8412 = vmatmul.bf16.vlgmr.msrb.gmra.mxu0 %v14300_v34  ;;  %v9918_v34 = vor.u32 %v12511_v46, %v9915_v48  ;;  %v8193_v6 = vadd.f32 %v8192_v42, %v8180_v60  ;;  %v10139_v41 = vld [vmem:[%s14186_s23 + $0x778] sm:$0xf0]  ;;  %v12711_v49 = vld [vmem:[%s14186_s23 + $0xbec] sm:$0xf] }
 0x41d   : > { %8456 = vmatpush.bf16.msra.mxu0 %v9950_v2  ;;  %8425 = vmatmul.bf16.vlgmr.msrb.gmra.mxu1 %v14291_v28  ;;  %v12539_v28 = vld [vmem:[%s14186_s23 + $0x68c] sm:$0xf]  ;;  %v9902_v2 = vor.u32 %v12507_v1, %v9899_v63  ;;  %v10011_v46 = vld [vmem:[%s14186_s23 + $0x678] sm:$0xf0]  ;;  %v10142_v42 = vor.u32 %v12567_v38, %v10139_v41 }
 0x41e   : > { %8469 = vmatpush.bf16.msra.mxu1 %v10078_v33  ;;  %8438 = vmatmul.bf16.vlgmr.msrb.gmra.mxu2 %v14295_v30  ;;  %v10046_v30 = vor.u32 %v12543_v58, %v10043_v59  ;;  %v12615_v33 = vld [vmem:[%s14186_s23 + $0x8ec] sm:$0xf]  ;;  %v10030_v37 = vor.u32 %v12539_v28, %v10027_v11  ;;  %v8206_v43 = vadd.f32 %v8205_v36, %v8193_v6  ;;  %v10315_v59 = vld [vmem:[%s14186_s23 + $0x8d8] sm:$0xf0] }
 0x41f   : > { %8482 = vmatpush.bf16.msra.mxu2 %v10206_v19  ;;  %v10158_v19 = vor.u32 %v12571_v3, %v10155_v40  ;;  %v10334_v48 = vor.u32 %v12615_v33, %v10331_v35  ;;  %v12611_v58 = vld [vmem:[%s14186_s23 + $0x8cc] sm:$0xf]  ;;  %v9867_v62 = vld [vmem:[%s14186_s23 + $0x558] sm:$0xf0] }
 0x420   : > { %8447 = vmatpush.bf16.msrb.mxu3 %v9758_v39  ;;  %v9883_v39 = vld [vmem:[%s14186_s23 + $0x578] sm:$0xf0]  ;;  %v15676_v29 = vadd.f32 %v8218_v44, %v8206_v43  ;;  %v10318_v6 = vor.u32 %v12611_v58, %v10315_v59  ;;  %v12495_v3 = vld [vmem:[%s14186_s23 + $0x52c] sm:$0xf] }
 0x421   : > { %8457 = vmatpush.bf16.msra.mxu0 %v9934_v45  ;;  %v9710_v45 = vor.u32 %v12459_v16, %v9707_v18  ;;  %v9886_v51 = vor.u32 %v12503_v32, %v9883_v39  ;;  %v9995_v1 = vld [vmem:[%s14186_s23 + $0x658] sm:$0xf0]  ;;  %v12607_v40 = vld [vmem:[%s14186_s23 + $0x8ac] sm:$0xf] }
 0x422   : > { %8470 = vmatpush.bf16.msra.mxu1 %v10062_v50  ;;  %v8181_v50 = vpop.f32.mrf.mxu2  ;;  %v9851_v11 = vld [vmem:[%s14186_s23 + $0x538] sm:$0xf0]  ;;  %v12559_v16 = vld [vmem:[%s14186_s23 + $0x72c] sm:$0xf]  ;;  %v8220_v33 = vpop.f32.mrf.mxu1 }
 0x423   : > { %8483 = vmatpush.bf16.msra.mxu2 %v10190_v47  ;;  %v12535_v47 = vld [vmem:[%s14186_s23 + $0x66c] sm:$0xf]  ;;  %v10107_v18 = vld [vmem:[%s14186_s23 + $0x738] sm:$0xf0] }
 0x424   : > { %8448 = vmatpush.bf16.msrb.mxu3 %v9742_v53  ;;  %v12499_v53 = vld [vmem:[%s14186_s23 + $0x54c] sm:$0xf]  ;;  %v10014_v60 = vor.u32 %v12535_v47, %v10011_v46  ;;  %v9979_v32 = vld [vmem:[%s14186_s23 + $0x638] sm:$0xf0]  ;;  %v10110_v39 = vor.u32 %v12559_v16, %v10107_v18 }
 0x425   : > { %8458 = vmatpush.bf16.msra.mxu0 %v9918_v34  ;;  %v10123_v34 = vld [vmem:[%s14186_s23 + $0x758] sm:$0xf0]  ;;  %v12491_v36 = vld [vmem:[%s14186_s23 + $0x50c] sm:$0xf] }
 0x426   : > { %8471 = vmatpush.bf16.msra.mxu1 %v10046_v30  ;;  %v9870_v30 = vor.u32 %v12499_v53, %v9867_v62  ;;  %v10126_v63 = vor.u32 %v12563_v52, %v10123_v34  ;;  %v12555_v38 = vld [vmem:[%s14186_s23 + $0x70c] sm:$0xf]  ;;  %v10283_v43 = vld [vmem:[%s14186_s23 + $0x898] sm:$0xf0] }
 0x427   : > { %8484 = vmatpush.bf16.msra.mxu2 %v10174_v0  ;;  %v12531_v0 = vld [vmem:[%s14186_s23 + $0x64c] sm:$0xf]  ;;  %v9963_v46 = vld [vmem:[%s14186_s23 + $0x618] sm:$0xf0] }
 0x428   : > { %8449 = vmatpush.bf16.msrb.mxu3 %v9726_v7  ;;  %v10299_v7 = vld [vmem:[%s14186_s23 + $0x8b8] sm:$0xf0]  ;;  %v9998_v28 = vor.u32 %v12531_v0, %v9995_v1  ;;  %v12603_v41 = vld [vmem:[%s14186_s23 + $0x88c] sm:$0xf] }
 0x429   : > { %8459 = vmatpush.bf16.msra.mxu0 %v9902_v2  ;;  %v8207_v2 = vpop.f32.mrf.mxu0  ;;  %v10302_v35 = vor.u32 %v12607_v40, %v10299_v7  ;;  %v12523_v47 = vld [vmem:[%s14186_s23 + $0x60c] sm:$0xf]  ;;  %v10587_v58 = vld [vmem:[%s14186_s23 + $0xaf8] sm:$0xf0] }
 0x42a   : > { %8472 = vmatpush.bf16.msra.mxu1 %v10030_v37  ;;  %v9854_v37 = vor.u32 %v12495_v3, %v9851_v11  ;;  %v12647_v50 = vld [vmem:[%s14186_s23 + $0x9ec] sm:$0xf]  ;;  %v9966_v62 = vor.u32 %v12523_v47, %v9963_v46  ;;  %v10267_v0 = vld [vmem:[%s14186_s23 + $0x878] sm:$0xf0] }
 0x42b   : > { %8485 = vmatpush.bf16.msra.mxu2 %v10158_v19  ;;  %v12527_v19 = vld [vmem:[%s14186_s23 + $0x62c] sm:$0xf]  ;;  %v10699_v40 = vld [vmem:[%s14186_s23 + $0xbd8] sm:$0xf0] }
 0x42c   : > { %8450 = vmatpush.bf16.msrb.mxu3 %v9710_v45  ;;  %v9982_v44 = vor.u32 %v12527_v19, %v9979_v32  ;;  %v10091_v45 = vld [vmem:[%s14186_s23 + $0x718] sm:$0xf0]  ;;  %v12679_v53 = vld [vmem:[%s14186_s23 + $0xaec] sm:$0xf] }
 0x42d   : > { %8460 = vmatpush.bf16.msra.mxu0 %v9886_v51  ;;  %v10286_v51 = vor.u32 %v12603_v41, %v10283_v43  ;;  %v12599_v34 = vld [vmem:[%s14186_s23 + $0x86c] sm:$0xf]  ;;  %v10251_v2 = vld [vmem:[%s14186_s23 + $0x858] sm:$0xf0] }
 0x42e   : > { %8473 = vmatpush.bf16.msra.mxu1 %v10014_v60  ;;  %v10094_v60 = vor.u32 %v12555_v38, %v10091_v45  ;;  %v12707_v3 = vld [vmem:[%s14186_s23 + $0xbcc] sm:$0xf]  ;;  %v10270_v11 = vor.u32 %v12599_v34, %v10267_v0  ;;  %v10555_v38 = vld [vmem:[%s14186_s23 + $0xab8] sm:$0xf0] }
 0x42f   : > { %8486 = vmatpush.bf16.msra.mxu2 %v10142_v42  ;;  %8451 = vmatmul.bf16.vlgmr.msrb.gmra.mxu3 %v14334_v8  ;;  %v9835_v8 = vld [vmem:[%s14186_s23 + $0x518] sm:$0xf0]  ;;  %v12675_v7 = vld [vmem:[%s14186_s23 + $0xacc] sm:$0xf]  ;;  %v10702_v19 = vor.u32 %v12707_v3, %v10699_v40 }
 0x430   : > { %8495 = vmatpush.bf16.msra.mxu3 %v10334_v48  ;;  %v10459_v48 = vld [vmem:[%s14186_s23 + $0x9f8] sm:$0xf0]  ;;  %v9838_v59 = vor.u32 %v12491_v36, %v9835_v8  ;;  %v12595_v18 = vld [vmem:[%s14186_s23 + $0x84c] sm:$0xf] }
 0x431   : > { %8461 = vmatpush.bf16.msra.mxu0 %v9870_v30  ;;  %v10715_v42 = vld [vmem:[%s14186_s23 + $0xbf8] sm:$0xf0]  ;;  %v10462_v52 = vor.u32 %v12647_v50, %v10459_v48  ;;  %v12643_v30 = vld [vmem:[%s14186_s23 + $0x9cc] sm:$0xf]  ;;  %v8231_v8 = vpop.f32.mrf.mxu2 }
 0x432   : > { %8474 = vmatpush.bf16.msra.mxu1 %v9998_v28  ;;  %v10718_v1 = vor.u32 %v12711_v49, %v10715_v42  ;;  %v10571_v28 = vld [vmem:[%s14186_s23 + $0xad8] sm:$0xf0]  ;;  %v12639_v33 = vld [vmem:[%s14186_s23 + $0x9ac] sm:$0xf]  ;;  %v8232_v41 = vadd.f32 %v8231_v8, %v15676_v29  ;;  %v8244_v43 = vpop.f32.mrf.mxu3 }
 0x433   : > { %8487 = vmatpush.bf16.msra.mxu2 %v10126_v63  ;;  %v10443_v63 = vld [vmem:[%s14186_s23 + $0x9d8] sm:$0xf0]  ;;  %v10574_v32 = vor.u32 %v12675_v7, %v10571_v28  ;;  %v12703_v36 = vld [vmem:[%s14186_s23 + $0xbac] sm:$0xf] }
 0x434   : > { %8496 = vmatpush.bf16.msra.mxu3 %v10318_v6  ;;  %v10590_v6 = vor.u32 %v12679_v53, %v10587_v58  ;;  %v10446_v16 = vor.u32 %v12643_v30, %v10443_v63  ;;  %v10235_v45 = vld [vmem:[%s14186_s23 + $0x838] sm:$0xf0]  ;;  %v8245_v47 = vadd.f32 %v8244_v43, %v8232_v41  ;;  %v12635_v50 = vld [vmem:[%s14186_s23 + $0x98c] sm:$0xf] }
 0x435   : > { %8462 = vmatpush.bf16.msra.mxu0 %v9854_v37  ;;  %v10683_v37 = vld [vmem:[%s14186_s23 + $0xbb8] sm:$0xf0]  ;;  %v12587_v58 = vld [vmem:[%s14186_s23 + $0x80c] sm:$0xf] }
 0x436   : > { %8475 = vmatpush.bf16.msra.mxu1 %v9982_v44  ;;  %v10254_v44 = vor.u32 %v12595_v18, %v10251_v2  ;;  %v10686_v46 = vor.u32 %v12703_v36, %v10683_v37  ;;  %v10411_v48 = vld [vmem:[%s14186_s23 + $0x998] sm:$0xf0]  ;;  %v12663_v40 = vld [vmem:[%s14186_s23 + $0xa6c] sm:$0xf] }
 0x437   : > { %8488 = vmatpush.bf16.msra.mxu2 %v10110_v39  ;;  %v12671_v39 = vld [vmem:[%s14186_s23 + $0xaac] sm:$0xf]  ;;  %v10667_v49 = vld [vmem:[%s14186_s23 + $0xb98] sm:$0xf0] }
 0x438   : > { %8497 = vmatpush.bf16.msra.mxu3 %v10302_v35  ;;  %v10427_v35 = vld [vmem:[%s14186_s23 + $0x9b8] sm:$0xf0]  ;;  %v10558_v29 = vor.u32 %v12671_v39, %v10555_v38  ;;  %v12691_v39 = vld [vmem:[%s14186_s23 + $0xb4c] sm:$0xf] }
 0x439   : > { %8463 = vmatpush.bf16.msra.mxu0 %v9838_v59  ;;  %v10539_v42 = vld [vmem:[%s14186_s23 + $0xa98] sm:$0xf0]  ;;  %v10414_v59 = vor.u32 %v12635_v50, %v10411_v48  ;;  %v8257_v63 = vpop.f32.mrf.mxu0  ;;  %v8233_v28 = vpop.f32.mrf.mxu2  ;;  %v12739_v38 = vld [vmem:[%s14186_s23 + $0xccc] sm:$0xf] }
 0x43a   : > { %8476 = vmatpush.bf16.msra.mxu1 %v9966_v62  ;;  %v12631_v62 = vld [vmem:[%s14186_s23 + $0x96c] sm:$0xf]  ;;  %v10843_v30 = vld [vmem:[%s14186_s23 + $0xcf8] sm:$0xf0]  ;;  %v8246_v2 = vpop.f32.mrf.mxu3 }
 0x43b   : > { %8489 = vmatpush.bf16.msra.mxu2 %v10094_v60  ;;  %v10219_v60 = vld [vmem:[%s14186_s23 + $0x818] sm:$0xf0]  ;;  %v12687_v48 = vld [vmem:[%s14186_s23 + $0xb2c] sm:$0xf] }
 0x43c   : > { %8498 = vmatpush.bf16.msra.mxu3 %v10286_v51  ;;  %8464 = vmatmul.bf16.vlgmr.msra.gmra.mxu0 %v14338_v10  ;;  %v12591_v10 = vld [vmem:[%s14186_s23 + $0x82c] sm:$0xf]  ;;  %v10651_v3 = vld [vmem:[%s14186_s23 + $0xb78] sm:$0xf0]  ;;  %v10222_v18 = vor.u32 %v12587_v58, %v10219_v60 }
 0x43d   : > { %8508 = vmatpush.bf16.msrb.mxu0 %v10462_v52  ;;  %8477 = vmatmul.bf16.vlgmr.msra.gmra.mxu1 %v14329_v4  ;;  %v12699_v4 = vld [vmem:[%s14186_s23 + $0xb8c] sm:$0xf]  ;;  %v10238_v53 = vor.u32 %v12591_v10, %v10235_v45  ;;  %v10395_v52 = vld [vmem:[%s14186_s23 + $0x978] sm:$0xf0] }
 0x43e   : > { %8521 = vmatpush.bf16.msrb.mxu1 %v10590_v6  ;;  %8490 = vmatmul.bf16.vlgmr.msra.gmra.mxu2 %v14336_v9  ;;  %v10430_v9 = vor.u32 %v12639_v33, %v10427_v35  ;;  %v12667_v51 = vld [vmem:[%s14186_s23 + $0xa8c] sm:$0xf]  ;;  %v10670_v34 = vor.u32 %v12699_v4, %v10667_v49  ;;  %v10523_v7 = vld [vmem:[%s14186_s23 + $0xa78] sm:$0xf0] }
 0x43f   : > { %8534 = vmatpush.bf16.msrb.mxu2 %v10718_v1  ;;  %v10542_v0 = vor.u32 %v12667_v51, %v10539_v42  ;;  %v12695_v1 = vld [vmem:[%s14186_s23 + $0xb6c] sm:$0xf]  ;;  %v10379_v35 = vld [vmem:[%s14186_s23 + $0x958] sm:$0xf0]  ;;  %v10526_v37 = vor.u32 %v12663_v40, %v10523_v7 }
 0x440   : > { %8499 = vmatpush.bf16.msra.mxu3 %v10270_v11  ;;  %v12743_v6 = vld [vmem:[%s14186_s23 + $0xcec] sm:$0xf]  ;;  %v8258_v11 = vadd.f32 %v8257_v63, %v8245_v47  ;;  %v10654_v8 = vor.u32 %v12695_v1, %v10651_v3  ;;  %v10827_v41 = vld [vmem:[%s14186_s23 + $0xcd8] sm:$0xf0] }
 0x441   : > { %8509 = vmatpush.bf16.msrb.mxu0 %v10446_v16  ;;  %v8270_v16 = vpop.f32.mrf.mxu1  ;;  %v12627_v33 = vld [vmem:[%s14186_s23 + $0x94c] sm:$0xf]  ;;  %v10635_v43 = vld [vmem:[%s14186_s23 + $0xb58] sm:$0xf0]  ;;  %v10830_v45 = vor.u32 %v12739_v38, %v10827_v41  ;;  %v8259_v58 = vpop.f32.mrf.mxu0 }
 0x442   : > { %8522 = vmatpush.bf16.msrb.mxu1 %v10574_v32  ;;  %v10846_v32 = vor.u32 %v12743_v6, %v10843_v30  ;;  %v15749_v36 = vadd.f32 %v8270_v16, %v8258_v11  ;;  %v10382_v10 = vor.u32 %v12627_v33, %v10379_v35  ;;  %v12623_v47 = vld [vmem:[%s14186_s23 + $0x92c] sm:$0xf]  ;;  %v10811_v49 = vld [vmem:[%s14186_s23 + $0xcb8] sm:$0xf0] }
 0x443   : > { %8535 = vmatpush.bf16.msrb.mxu2 %v10702_v19  ;;  %v10398_v19 = vor.u32 %v12631_v62, %v10395_v52  ;;  %v12735_v4 = vld [vmem:[%s14186_s23 + $0xcac] sm:$0xf]  ;;  %v10619_v51 = vld [vmem:[%s14186_s23 + $0xb38] sm:$0xf0] }
 0x444   : > { %8500 = vmatpush.bf16.msra.mxu3 %v10254_v44  ;;  %v12659_v44 = vld [vmem:[%s14186_s23 + $0xa4c] sm:$0xf]  ;;  %v10814_v62 = vor.u32 %v12735_v4, %v10811_v49  ;;  %v10603_v6 = vld [vmem:[%s14186_s23 + $0xb18] sm:$0xf0] }
 0x445   : > { %8510 = vmatpush.bf16.msrb.mxu0 %v10430_v9  ;;  %v10507_v9 = vld [vmem:[%s14186_s23 + $0xa58] sm:$0xf0]  ;;  %v12655_v42 = vld [vmem:[%s14186_s23 + $0xa2c] sm:$0xf] }
 0x446   : > { %8523 = vmatpush.bf16.msrb.mxu1 %v10558_v29  ;;  %v10638_v29 = vor.u32 %v12691_v39, %v10635_v43  ;;  %v10510_v50 = vor.u32 %v12659_v44, %v10507_v9  ;;  %v12619_v52 = vld [vmem:[%s14186_s23 + $0x90c] sm:$0xf]  ;;  %v10795_v63 = vld [vmem:[%s14186_s23 + $0xc98] sm:$0xf0] }
 0x447   : > { %8536 = vmatpush.bf16.msrb.mxu2 %v10686_v46  ;;  %v10363_v46 = vld [vmem:[%s14186_s23 + $0x938] sm:$0xf0]  ;;  %v12731_v30 = vld [vmem:[%s14186_s23 + $0xc8c] sm:$0xf] }
 0x448   : > { %8501 = vmatpush.bf16.msra.mxu3 %v10238_v53  ;;  %v10491_v53 = vld [vmem:[%s14186_s23 + $0xa38] sm:$0xf0]  ;;  %v10366_v60 = vor.u32 %v12623_v47, %v10363_v46  ;;  %v12651_v3 = vld [vmem:[%s14186_s23 + $0xa0c] sm:$0xf]  ;;  %v10798_v2 = vor.u32 %v12731_v30, %v10795_v63 }
 0x449   : > { %8511 = vmatpush.bf16.msrb.mxu0 %v10414_v59  ;;  %v8272_v59 = vpop.f32.mrf.mxu1  ;;  %v10494_v1 = vor.u32 %v12655_v42, %v10491_v53  ;;  %v10475_v40 = vld [vmem:[%s14186_s23 + $0xa18] sm:$0xf0]  ;;  %v12775_v7 = vld [vmem:[%s14186_s23 + $0xdec] sm:$0xf] }
 0x44a   : > { %8524 = vmatpush.bf16.msrb.mxu1 %v10542_v0  ;;  %v10622_v0 = vor.u32 %v12687_v48, %v10619_v51  ;;  %v10971_v28 = vld [vmem:[%s14186_s23 + $0xdf8] sm:$0xf0]  ;;  %v12839_v11 = vld [vmem:[%s14186_s23 + $0xfec] sm:$0xf]  ;;  %v10478_v35 = vor.u32 %v12651_v3, %v10475_v40 }
 0x44b   : > { %8537 = vmatpush.bf16.msrb.mxu2 %v10670_v34  ;;  %v12683_v34 = vld [vmem:[%s14186_s23 + $0xb0c] sm:$0xf]  ;;  %v11227_v16 = vld [vmem:[%s14186_s23 + $0xff8] sm:$0xf0]  ;;  %v10974_v39 = vor.u32 %v12775_v7, %v10971_v28 }
 0x44c   : > { %8502 = vmatpush.bf16.msra.mxu3 %v10222_v18  ;;  %v10606_v33 = vor.u32 %v12683_v34, %v10603_v6  ;;  %v11230_v38 = vor.u32 %v12839_v11, %v11227_v16  ;;  %v12771_v41 = vld [vmem:[%s14186_s23 + $0xdcc] sm:$0xf]  ;;  %v10955_v44 = vld [vmem:[%s14186_s23 + $0xdd8] sm:$0xf0] }
 0x44d   : > { %8512 = vmatpush.bf16.msrb.mxu0 %v10398_v19  ;;  %v12807_v19 = vld [vmem:[%s14186_s23 + $0xeec] sm:$0xf]  ;;  %v11083_v46 = vld [vmem:[%s14186_s23 + $0xed8] sm:$0xf0]  ;;  %v10958_v48 = vor.u32 %v12771_v41, %v10955_v44 }
 0x44e   : > { %8525 = vmatpush.bf16.msrb.mxu1 %v10526_v37  ;;  %v10779_v37 = vld [vmem:[%s14186_s23 + $0xc78] sm:$0xf0]  ;;  %v12835_v9 = vld [vmem:[%s14186_s23 + $0xfcc] sm:$0xf] }
 0x44f   : > { %8538 = vmatpush.bf16.msrb.mxu2 %v10654_v8  ;;  %8503 = vmatmul.bf16.vlgmr.msra.gmra.mxu3 %v14424_v20  ;;  %v10347_v20 = vld [vmem:[%s14186_s23 + $0x918] sm:$0xf0]  ;;  %v12727_v8 = vld [vmem:[%s14186_s23 + $0xc6c] sm:$0xf] }
 0x450   : > { %8547 = vmatpush.bf16.msrb.mxu3 %v10846_v32  ;;  %v10350_v18 = vor.u32 %v12619_v52, %v10347_v20  ;;  %v11099_v32 = vld [vmem:[%s14186_s23 + $0xef8] sm:$0xf0]  ;;  %v12803_v47 = vld [vmem:[%s14186_s23 + $0xecc] sm:$0xf] }
 0x451   : > { %8513 = vmatpush.bf16.msrb.mxu0 %v10382_v10  ;;  %v11102_v43 = vor.u32 %v12807_v19, %v11099_v32  ;;  %v11211_v10 = vld [vmem:[%s14186_s23 + $0xfd8] sm:$0xf0]  ;;  %v12767_v49 = vld [vmem:[%s14186_s23 + $0xdac] sm:$0xf]  ;;  %v8283_v51 = vpop.f32.mrf.mxu2  ;;  %v11086_v42 = vor.u32 %v12803_v47, %v11083_v46 }
 0x452   : > { %8526 = vmatpush.bf16.msrb.mxu1 %v10510_v50  ;;  %v10763_v50 = vld [vmem:[%s14186_s23 + $0xc58] sm:$0xf0]  ;;  %v11214_v4 = vor.u32 %v12835_v9, %v11211_v10  ;;  %v12831_v58 = vld [vmem:[%s14186_s23 + $0xfac] sm:$0xf] }
 0x453   : > { %8539 = vmatpush.bf16.msrb.mxu2 %v10638_v29  ;;  %v12723_v29 = vld [vmem:[%s14186_s23 + $0xc4c] sm:$0xf]  ;;  %v10939_v53 = vld [vmem:[%s14186_s23 + $0xdb8] sm:$0xf0] }
 0x454   : > { %8548 = vmatpush.bf16.msrb.mxu3 %v10830_v45  ;;  %v10782_v45 = vor.u32 %v12727_v8, %v10779_v37  ;;  %v11195_v59 = vld [vmem:[%s14186_s23 + $0xfb8] sm:$0xf0]  ;;  %v10766_v52 = vor.u32 %v12723_v29, %v10763_v50  ;;  %v12799_v20 = vld [vmem:[%s14186_s23 + $0xeac] sm:$0xf] }
 0x455   : > { %8514 = vmatpush.bf16.msrb.mxu0 %v10366_v60  ;;  %v8284_v60 = vadd.f32 %v8283_v51, %v15749_v36  ;;  %v11067_v34 = vld [vmem:[%s14186_s23 + $0xeb8] sm:$0xf0]  ;;  %v11198_v36 = vor.u32 %v12831_v58, %v11195_v59  ;;  %v12763_v6 = vld [vmem:[%s14186_s23 + $0xd8c] sm:$0xf] }
 0x456   : > { %8527 = vmatpush.bf16.msrb.mxu1 %v10494_v1  ;;  %v10942_v1 = vor.u32 %v12767_v49, %v10939_v53  ;;  %v11070_v30 = vor.u32 %v12799_v20, %v11067_v34  ;;  %v10923_v63 = vld [vmem:[%s14186_s23 + $0xd98] sm:$0xf0]  ;;  %v12827_v3 = vld [vmem:[%s14186_s23 + $0xf8c] sm:$0xf] }
 0x457   : > { %8540 = vmatpush.bf16.msrb.mxu2 %v10622_v0  ;;  %v10747_v0 = vld [vmem:[%s14186_s23 + $0xc38] sm:$0xf0]  ;;  %v12795_v7 = vld [vmem:[%s14186_s23 + $0xe8c] sm:$0xf] }
 0x458   : > { %8549 = vmatpush.bf16.msrb.mxu3 %v10814_v62  ;;  %v8296_v62 = vpop.f32.mrf.mxu3  ;;  %v11051_v28 = vld [vmem:[%s14186_s23 + $0xe98] sm:$0xf0]  ;;  %v12715_v11 = vld [vmem:[%s14186_s23 + $0xc0c] sm:$0xf] }
 0x459   : > { %8515 = vmatpush.bf16.msrb.mxu0 %v10350_v18  ;;  %v10731_v16 = vld [vmem:[%s14186_s23 + $0xc18] sm:$0xf0]  ;;  %v10926_v18 = vor.u32 %v12763_v6, %v10923_v63  ;;  %v12759_v19 = vld [vmem:[%s14186_s23 + $0xd6c] sm:$0xf]  ;;  %v11054_v8 = vor.u32 %v12795_v7, %v11051_v28  ;;  %v8285_v41 = vpop.f32.mrf.mxu2 }
 0x45a   : > { %8528 = vmatpush.bf16.msrb.mxu1 %v10478_v35  ;;  %v12871_v32 = vld [vmem:[%s14186_s23 + $0x10ec] sm:$0xf]  ;;  %v8309_v35 = vpop.f32.mrf.mxu0  ;;  %v10907_v37 = vld [vmem:[%s14186_s23 + $0xd78] sm:$0xf0]  ;;  %v8322_v44 = vpop.f32.mrf.mxu1  ;;  %v10734_v9 = vor.u32 %v12715_v11, %v10731_v16 }
 0x45b   : > { %8541 = vmatpush.bf16.msrb.mxu2 %v10606_v33  ;;  %v11355_v33 = vld [vmem:[%s14186_s23 + $0x10f8] sm:$0xf0]  ;;  %v12791_v10 = vld [vmem:[%s14186_s23 + $0xe6c] sm:$0xf]  ;;  %v10910_v50 = vor.u32 %v12759_v19, %v10907_v37 }
 0x45c   : > { %8550 = vmatpush.bf16.msrb.mxu3 %v10798_v2  ;;  %8516 = vmatmul.bf16.vlgmr.msrb.gmra.mxu0 %v14430_v24  ;;  %v12719_v24 = vld [vmem:[%s14186_s23 + $0xc2c] sm:$0xf]  ;;  %v11358_v46 = vor.u32 %v12871_v32, %v11355_v33  ;;  %v11339_v51 = vld [vmem:[%s14186_s23 + $0x10d8] sm:$0xf0] }
 0x45d   : > { %8560 = vmatpush.bf16.msra.mxu0 %v10974_v39  ;;  %8529 = vmatmul.bf16.vlgmr.msrb.gmra.mxu1 %v14428_v23  ;;  %v11179_v23 = vld [vmem:[%s14186_s23 + $0xf98] sm:$0xf0]  ;;  %v10750_v40 = vor.u32 %v12719_v24, %v10747_v0  ;;  %v12823_v39 = vld [vmem:[%s14186_s23 + $0xf6c] sm:$0xf] }
 0x45e   : > { %8573 = vmatpush.bf16.msra.mxu1 %v11102_v43  ;;  %8542 = vmatmul.bf16.vlgmr.msrb.gmra.mxu2 %v14432_v25  ;;  %v8297_v25 = vadd.f32 %v8296_v62, %v8284_v60  ;;  %v11182_v2 = vor.u32 %v12827_v3, %v11179_v23  ;;  %v12867_v49 = vld [vmem:[%s14186_s23 + $0x10cc] sm:$0xf]  ;;  %v10891_v53 = vld [vmem:[%s14186_s23 + $0xd58] sm:$0xf0] }
 0x45f   : > { %8586 = vmatpush.bf16.msra.mxu2 %v11230_v38  ;;  %v11163_v38 = vld [vmem:[%s14186_s23 + $0xf78] sm:$0xf0]  ;;  %v12819_v58 = vld [vmem:[%s14186_s23 + $0xf4c] sm:$0xf] }
 0x460   : > { %8551 = vmatpush.bf16.msrb.mxu3 %v10782_v45  ;;  %v8310_v43 = vadd.f32 %v8309_v35, %v8297_v25  ;;  %v11035_v45 = vld [vmem:[%s14186_s23 + $0xe78] sm:$0xf0]  ;;  %v8298_v47 = vpop.f32.mrf.mxu3  ;;  %v12787_v60 = vld [vmem:[%s14186_s23 + $0xe4c] sm:$0xf] }
 0x461   : > { %8561 = vmatpush.bf16.msra.mxu0 %v10958_v48  ;;  %v11166_v48 = vor.u32 %v12823_v39, %v11163_v38  ;;  %v11147_v59 = vld [vmem:[%s14186_s23 + $0xf58] sm:$0xf0]  ;;  %v12751_v24 = vld [vmem:[%s14186_s23 + $0xd2c] sm:$0xf] }
 0x462   : > { %8574 = vmatpush.bf16.msra.mxu1 %v11086_v42  ;;  %v15818_v29 = vadd.f32 %v8322_v44, %v8310_v43  ;;  %v11038_v42 = vor.u32 %v12791_v10, %v11035_v45  ;;  %v11019_v62 = vld [vmem:[%s14186_s23 + $0xe58] sm:$0xf0]  ;;  %v11150_v34 = vor.u32 %v12819_v58, %v11147_v59  ;;  %v12863_v0 = vld [vmem:[%s14186_s23 + $0x10ac] sm:$0xf]  ;;  %v8311_v63 = vpop.f32.mrf.mxu0 }
 0x463   : > { %8587 = vmatpush.bf16.msra.mxu2 %v11214_v4  ;;  %v12755_v4 = vld [vmem:[%s14186_s23 + $0xd4c] sm:$0xf]  ;;  %v11323_v25 = vld [vmem:[%s14186_s23 + $0x10b8] sm:$0xf0] }
 0x464   : > { %8552 = vmatpush.bf16.msrb.mxu3 %v10766_v52  ;;  %v11342_v52 = vor.u32 %v12867_v49, %v11339_v51  ;;  %v10894_v20 = vor.u32 %v12755_v4, %v10891_v53  ;;  %v12815_v6 = vld [vmem:[%s14186_s23 + $0xf2c] sm:$0xf]  ;;  %v11003_v23 = vld [vmem:[%s14186_s23 + $0xe38] sm:$0xf0]  ;;  %v11326_v7 = vor.u32 %v12863_v0, %v11323_v25 }
 0x465   : > { %8562 = vmatpush.bf16.msra.mxu0 %v10942_v1  ;;  %v11022_v1 = vor.u32 %v12787_v60, %v11019_v62  ;;  %v12783_v3 = vld [vmem:[%s14186_s23 + $0xe2c] sm:$0xf]  ;;  %v11307_v19 = vld [vmem:[%s14186_s23 + $0x1098] sm:$0xf0] }
 0x466   : > { %8575 = vmatpush.bf16.msra.mxu1 %v11070_v30  ;;  %v11131_v30 = vld [vmem:[%s14186_s23 + $0xf38] sm:$0xf0]  ;;  %v12747_v28 = vld [vmem:[%s14186_s23 + $0xd0c] sm:$0xf]  ;;  %v11006_v32 = vor.u32 %v12783_v3, %v11003_v23 }
 0x467   : > { %8588 = vmatpush.bf16.msra.mxu2 %v11198_v36  ;;  %v10875_v36 = vld [vmem:[%s14186_s23 + $0xd38] sm:$0xf0]  ;;  %v11134_v16 = vor.u32 %v12815_v6, %v11131_v30  ;;  %v12779_v35 = vld [vmem:[%s14186_s23 + $0xe0c] sm:$0xf] }
 0x468   : > { %8553 = vmatpush.bf16.msrb.mxu3 %v10750_v40  ;;  %v8324_v40 = vpop.f32.mrf.mxu1  ;;  %v10878_v11 = vor.u32 %v12751_v24, %v10875_v36  ;;  %v11115_v33 = vld [vmem:[%s14186_s23 + $0xf18] sm:$0xf0]  ;;  %v12903_v37 = vld [vmem:[%s14186_s23 + $0x11ec] sm:$0xf] }
 0x469   : > { %8563 = vmatpush.bf16.msra.mxu0 %v10926_v18  ;;  %v12811_v18 = vld [vmem:[%s14186_s23 + $0xf0c] sm:$0xf]  ;;  %v11483_v39 = vld [vmem:[%s14186_s23 + $0x11f8] sm:$0xf0] }
 0x46a   : > { %8576 = vmatpush.bf16.msra.mxu1 %v11054_v8  ;;  %v10987_v8 = vld [vmem:[%s14186_s23 + $0xe18] sm:$0xf0]  ;;  %v12967_v38 = vld [vmem:[%s14186_s23 + $0x13ec] sm:$0xf]  ;;  %v11118_v45 = vor.u32 %v12811_v18, %v11115_v33 }
 0x46b   : > { %8589 = vmatpush.bf16.msra.mxu2 %v11182_v2  ;;  %v12859_v2 = vld [vmem:[%s14186_s23 + $0x108c] sm:$0xf]  ;;  %v11739_v43 = vld [vmem:[%s14186_s23 + $0x13f8] sm:$0xf0]  ;;  %v10990_v47 = vor.u32 %v12779_v35, %v10987_v8 }
 0x46c   : > { %8554 = vmatpush.bf16.msrb.mxu3 %v10734_v9  ;;  %v11310_v41 = vor.u32 %v12859_v2, %v11307_v19  ;;  %v12935_v44 = vld [vmem:[%s14186_s23 + $0x12ec] sm:$0xf]  ;;  %v11611_v9 = vld [vmem:[%s14186_s23 + $0x12f8] sm:$0xf0]  ;;  %v11742_v4 = vor.u32 %v12967_v38, %v11739_v43 }
 0x46d   : > { %8564 = vmatpush.bf16.msra.mxu0 %v10910_v50  ;;  %v12855_v50 = vld [vmem:[%s14186_s23 + $0x106c] sm:$0xf]  ;;  %v11614_v49 = vor.u32 %v12935_v44, %v11611_v9  ;;  %v11723_v58 = vld [vmem:[%s14186_s23 + $0x13d8] sm:$0xf0] }
 0x46e   : > { %8577 = vmatpush.bf16.msra.mxu1 %v11038_v42  ;;  %v12899_v51 = vld [vmem:[%s14186_s23 + $0x11cc] sm:$0xf]  ;;  %v11467_v42 = vld [vmem:[%s14186_s23 + $0x11d8] sm:$0xf0] }
 0x46f   : > { %8590 = vmatpush.bf16.msra.mxu2 %v11166_v48  ;;  %8555 = vmatmul.bf16.vlgmr.msrb.gmra.mxu3 %v14490_v54  ;;  %v10859_v54 = vld [vmem:[%s14186_s23 + $0xd18] sm:$0xf0]  ;;  %v12963_v53 = vld [vmem:[%s14186_s23 + $0x13cc] sm:$0xf] }
 0x470   : > { %8599 = vmatpush.bf16.msra.mxu3 %v11358_v46  ;;  %v10862_v10 = vor.u32 %v12747_v28, %v10859_v54  ;;  %v11486_v46 = vor.u32 %v12903_v37, %v11483_v39  ;;  %v11291_v48 = vld [vmem:[%s14186_s23 + $0x1078] sm:$0xf0]  ;;  %v12931_v59 = vld [vmem:[%s14186_s23 + $0x12cc] sm:$0xf]  ;;  %v11726_v0 = vor.u32 %v12963_v53, %v11723_v58 }
 0x471   : > { %8565 = vmatpush.bf16.msra.mxu0 %v10894_v20  ;;  %v11595_v60 = vld [vmem:[%s14186_s23 + $0x12d8] sm:$0xf0]  ;;  %v11294_v62 = vor.u32 %v12855_v50, %v11291_v48  ;;  %v12851_v20 = vld [vmem:[%s14186_s23 + $0x104c] sm:$0xf]  ;;  %v8335_v24 = vpop.f32.mrf.mxu2 }
 0x472   : > { %8578 = vmatpush.bf16.msra.mxu1 %v11022_v1  ;;  %v11598_v25 = vor.u32 %v12931_v59, %v11595_v60  ;;  %v12895_v1 = vld [vmem:[%s14186_s23 + $0x11ac] sm:$0xf]  ;;  %v11451_v36 = vld [vmem:[%s14186_s23 + $0x11b8] sm:$0xf0]  ;;  %v8336_v30 = vadd.f32 %v8335_v24, %v15818_v29  ;;  %v8348_v63 = vpop.f32.mrf.mxu3 }
 0x473   : > { %8591 = vmatpush.bf16.msra.mxu2 %v11150_v34  ;;  %v11275_v34 = vld [vmem:[%s14186_s23 + $0x1058] sm:$0xf0]  ;;  %v12959_v6 = vld [vmem:[%s14186_s23 + $0x13ac] sm:$0xf] }
 0x474   : > { %8600 = vmatpush.bf16.msra.mxu3 %v11342_v52  ;;  %v11470_v52 = vor.u32 %v12899_v51, %v11467_v42  ;;  %v11707_v3 = vld [vmem:[%s14186_s23 + $0x13b8] sm:$0xf0]  ;;  %v12927_v23 = vld [vmem:[%s14186_s23 + $0x12ac] sm:$0xf] }
 0x475   : > { %8566 = vmatpush.bf16.msra.mxu0 %v10878_v11  ;;  %v11579_v40 = vld [vmem:[%s14186_s23 + $0x12b8] sm:$0xf0]  ;;  %v12847_v28 = vld [vmem:[%s14186_s23 + $0x102c] sm:$0xf]  ;;  %v11710_v54 = vor.u32 %v12959_v6, %v11707_v3 }
 0x476   : > { %8579 = vmatpush.bf16.msra.mxu1 %v11006_v32  ;;  %v11259_v29 = vld [vmem:[%s14186_s23 + $0x1038] sm:$0xf0]  ;;  %v11582_v11 = vor.u32 %v12927_v23, %v11579_v40  ;;  %v12955_v2 = vld [vmem:[%s14186_s23 + $0x138c] sm:$0xf] }
 0x477   : > { %8592 = vmatpush.bf16.msra.mxu2 %v11134_v16  ;;  %v12891_v16 = vld [vmem:[%s14186_s23 + $0x118c] sm:$0xf]  ;;  %v11435_v18 = vld [vmem:[%s14186_s23 + $0x1198] sm:$0xf0]  ;;  %v11262_v33 = vor.u32 %v12847_v28, %v11259_v29 }
 0x478   : > { %8601 = vmatpush.bf16.msra.mxu3 %v11326_v7  ;;  %v11278_v7 = vor.u32 %v12851_v20, %v11275_v34  ;;  %v11691_v19 = vld [vmem:[%s14186_s23 + $0x1398] sm:$0xf0]  ;;  %v12843_v35 = vld [vmem:[%s14186_s23 + $0x100c] sm:$0xf]  ;;  %v11438_v8 = vor.u32 %v12891_v16, %v11435_v18 }
 0x479   : > { %8567 = vmatpush.bf16.msra.mxu0 %v10862_v10  ;;  %v11563_v32 = vld [vmem:[%s14186_s23 + $0x1298] sm:$0xf0]  ;;  %v12887_v39 = vld [vmem:[%s14186_s23 + $0x116c] sm:$0xf]  ;;  %v8337_v43 = vpop.f32.mrf.mxu2  ;;  %v11694_v44 = vor.u32 %v12955_v2, %v11691_v19 }
 0x47a   : > { %8580 = vmatpush.bf16.msra.mxu1 %v10990_v47  ;;  %v11243_v37 = vld [vmem:[%s14186_s23 + $0x1018] sm:$0xf0]  ;;  %v12951_v10 = vld [vmem:[%s14186_s23 + $0x136c] sm:$0xf]  ;;  %v8374_v50 = vpop.f32.mrf.mxu1  ;;  %v8350_v51 = vpop.f32.mrf.mxu3 }
 0x47b   : > { %8593 = vmatpush.bf16.msra.mxu2 %v11118_v45  ;;  %v11419_v38 = vld [vmem:[%s14186_s23 + $0x1178] sm:$0xf0]  ;;  %v12999_v45 = vld [vmem:[%s14186_s23 + $0x14ec] sm:$0xf]  ;;  %v11246_v42 = vor.u32 %v12843_v35, %v11243_v37 }
 0x47c   : > { %8602 = vmatpush.bf16.msra.mxu3 %v11310_v41  ;;  %8568 = vmatmul.bf16.vlgmr.msra.gmra.mxu0 %v14494_v56  ;;  %v8349_v56 = vadd.f32 %v8348_v63, %v8336_v30  ;;  %v8361_v41 = vpop.f32.mrf.mxu0  ;;  %v11867_v47 = vld [vmem:[%s14186_s23 + $0x14f8] sm:$0xf0]  ;;  %v11422_v58 = vor.u32 %v12887_v39, %v11419_v38  ;;  %v12883_v60 = vld [vmem:[%s14186_s23 + $0x114c] sm:$0xf] }
 0x47d   : > { %8612 = vmatpush.bf16.msrb.mxu0 %v11486_v46  ;;  %8581 = vmatmul.bf16.vlgmr.msra.gmra.mxu1 %v14492_v55  ;;  %v12923_v55 = vld [vmem:[%s14186_s23 + $0x128c] sm:$0xf]  ;;  %v11675_v48 = vld [vmem:[%s14186_s23 + $0x1378] sm:$0xf0]  ;;  %v11870_v59 = vor.u32 %v12999_v45, %v11867_v47 }
 0x47e   : > { %8625 = vmatpush.bf16.msrb.mxu1 %v11614_v49  ;;  %8594 = vmatmul.bf16.vlgmr.msra.gmra.mxu2 %v14496_v57  ;;  %v11454_v57 = vor.u32 %v12895_v1, %v11451_v36  ;;  %v11566_v9 = vor.u32 %v12923_v55, %v11563_v32  ;;  %v8362_v46 = vadd.f32 %v8361_v41, %v8349_v56  ;;  %v11547_v49 = vld [vmem:[%s14186_s23 + $0x1278] sm:$0xf0]  ;;  %v12947_v34 = vld [vmem:[%s14186_s23 + $0x134c] sm:$0xf] }
 0x47f   : > { %8638 = vmatpush.bf16.msrb.mxu2 %v11742_v4  ;;  %v12919_v4 = vld [vmem:[%s14186_s23 + $0x126c] sm:$0xf]  ;;  %v11531_v36 = vld [vmem:[%s14186_s23 + $0x1258] sm:$0xf0] }
 0x480   : > { %8603 = vmatpush.bf16.msra.mxu3 %v11294_v62  ;;  %v8375_v53 = vadd.f32 %v8374_v50, %v8362_v46  ;;  %v11403_v62 = vld [vmem:[%s14186_s23 + $0x1158] sm:$0xf0]  ;;  %v11550_v20 = vor.u32 %v12919_v4, %v11547_v49  ;;  %v12995_v24 = vld [vmem:[%s14186_s23 + $0x14cc] sm:$0xf] }
 0x481   : > { %8613 = vmatpush.bf16.msrb.mxu0 %v11470_v52  ;;  %v11678_v52 = vor.u32 %v12951_v10, %v11675_v48  ;;  %v12915_v1 = vld [vmem:[%s14186_s23 + $0x124c] sm:$0xf]  ;;  %v11406_v6 = vor.u32 %v12883_v60, %v11403_v62  ;;  %v11387_v3 = vld [vmem:[%s14186_s23 + $0x1138] sm:$0xf0]  ;;  %v8387_v23 = vpop.f32.mrf.mxu2 }
 0x482   : > { %8626 = vmatpush.bf16.msrb.mxu1 %v11598_v25  ;;  %v11659_v25 = vld [vmem:[%s14186_s23 + $0x1358] sm:$0xf0]  ;;  %v12879_v63 = vld [vmem:[%s14186_s23 + $0x112c] sm:$0xf]  ;;  %v8376_v2 = vpop.f32.mrf.mxu1 }
 0x483   : > { %8639 = vmatpush.bf16.msrb.mxu2 %v11726_v0  ;;  %v11851_v0 = vld [vmem:[%s14186_s23 + $0x14d8] sm:$0xf0]  ;;  %v11662_v40 = vor.u32 %v12947_v34, %v11659_v25  ;;  %v12943_v56 = vld [vmem:[%s14186_s23 + $0x132c] sm:$0xf] }
 0x484   : > { %8604 = vmatpush.bf16.msra.mxu3 %v11278_v7  ;;  %v11854_v30 = vor.u32 %v12995_v24, %v11851_v0  ;;  %v11534_v7 = vor.u32 %v12915_v1, %v11531_v36  ;;  %v11835_v28 = vld [vmem:[%s14186_s23 + $0x14b8] sm:$0xf0]  ;;  %v8363_v29 = vpop.f32.mrf.mxu0  ;;  %v12911_v16 = vld [vmem:[%s14186_s23 + $0x122c] sm:$0xf] }
 0x485   : > { %8614 = vmatpush.bf16.msrb.mxu0 %v11454_v57  ;;  %v12991_v57 = vld [vmem:[%s14186_s23 + $0x14ac] sm:$0xf]  ;;  %v11515_v18 = vld [vmem:[%s14186_s23 + $0x1238] sm:$0xf0] }
 0x486   : > { %8627 = vmatpush.bf16.msrb.mxu1 %v11582_v11  ;;  %v11643_v11 = vld [vmem:[%s14186_s23 + $0x1338] sm:$0xf0]  ;;  %v12875_v19 = vld [vmem:[%s14186_s23 + $0x110c] sm:$0xf]  ;;  %v11838_v32 = vor.u32 %v12991_v57, %v11835_v28  ;;  %v11518_v37 = vor.u32 %v12911_v16, %v11515_v18  ;;  %v13185_v57 = vld [vmem:[%s14625_s8] sm:$0xf] }
 0x487   : > { %8640 = vmatpush.bf16.msrb.mxu2 %v11710_v54  ;;  %v15903_v54 = vadd.f32 %v8387_v23, %v8375_v53  ;;  %v12939_v35 = vld [vmem:[%s14186_s23 + $0x130c] sm:$0xf]  ;;  %v11627_v39 = vld [vmem:[%s14186_s23 + $0x1318] sm:$0xf0]  ;;  %v3431_v28 = vperm.slane %v13185_v57, 3 }
 0x488   : > { %8605 = vmatpush.bf16.msra.mxu3 %v11262_v33  ;;  %v11371_v33 = vld [vmem:[%s14186_s23 + $0x1118] sm:$0xf0]  ;;  %v12987_v38 = vld [vmem:[%s14186_s23 + $0x148c] sm:$0xf]  ;;  %v11630_v49 = vor.u32 %v12939_v35, %v11627_v39 }
 0x489   : > { %8615 = vmatpush.bf16.msrb.mxu0 %v11438_v8  ;;  %v8718_v55 = vmax.f32 %v15903_v54, 0.0  ;;  %v11646_v8 = vor.u32 %v12943_v56, %v11643_v11  ;;  %v11819_v41 = vld [vmem:[%s14186_s23 + $0x1498] sm:$0xf0]  ;;  %v12907_v43 = vld [vmem:[%s14186_s23 + $0x120c] sm:$0xf]  ;;  %v11374_v46 = vor.u32 %v12875_v19, %v11371_v33 }
 0x48a   : > { %8628 = vmatpush.bf16.msrb.mxu1 %v11566_v9  ;;  %v13031_v9 = vld [vmem:[%s14186_s23 + $0x15ec] sm:$0xf]  ;;  %v11995_v10 = vld [vmem:[%s14186_s23 + $0x15f8] sm:$0xf0]  ;;  %v11822_v50 = vor.u32 %v12987_v38, %v11819_v41 }
 0x48b   : > { %8641 = vmatpush.bf16.msrb.mxu2 %v11694_v44  ;;  %v11499_v44 = vld [vmem:[%s14186_s23 + $0x1218] sm:$0xf0]  ;;  %v13095_v45 = vld [vmem:[%s14186_s23 + $0x17ec] sm:$0xf] }
 0x48c   : > { %8606 = vmatpush.bf16.msra.mxu3 %v11246_v42  ;;  %v12251_v47 = vld [vmem:[%s14186_s23 + $0x17f8] sm:$0xf0]  ;;  %v13063_v48 = vld [vmem:[%s14186_s23 + $0x16ec] sm:$0xf]  ;;  %v11502_v51 = vor.u32 %v12907_v43, %v11499_v44 }
 0x48d   : > { %8616 = vmatpush.bf16.msrb.mxu0 %v11422_v58  ;;  %v12123_v4 = vld [vmem:[%s14186_s23 + $0x16f8] sm:$0xf0]  ;;  %v12983_v42 = vld [vmem:[%s14186_s23 + $0x146c] sm:$0xf]  ;;  %v8389_v58 = vpop.f32.mrf.mxu2  ;;  %v12254_v60 = vor.u32 %v13095_v45, %v12251_v47 }
 0x48e   : > { %8629 = vmatpush.bf16.msrb.mxu1 %v11550_v20  ;;  %v11803_v53 = vld [vmem:[%s14186_s23 + $0x1478] sm:$0xf0]  ;;  %v13027_v62 = vld [vmem:[%s14186_s23 + $0x15cc] sm:$0xf] }
 0x48f   : > { %8642 = vmatpush.bf16.msrb.mxu2 %v11678_v52  ;;  %8607 = vmatmul.bf16.vlgmr.msra.gmra.mxu3 %v14580_v17  ;;  %v11390_v17 = vor.u32 %v12879_v63, %v11387_v3  ;;  %v12126_v52 = vor.u32 %v13063_v48, %v12123_v4  ;;  %v11979_v20 = vld [vmem:[%s14186_s23 + $0x15d8] sm:$0xf0]  ;;  %v13091_v34 = vld [vmem:[%s14186_s23 + $0x17cc] sm:$0xf]  ;;  %v11806_v0 = vor.u32 %v12983_v42, %v11803_v53 }
 0x490   : > { %8651 = vmatpush.bf16.msrb.mxu3 %v11870_v59  ;;  %v11998_v59 = vor.u32 %v13031_v9, %v11995_v10  ;;  %v12235_v24 = vld [vmem:[%s14186_s23 + $0x17d8] sm:$0xf0]  ;;  %v13059_v25 = vld [vmem:[%s14186_s23 + $0x16cc] sm:$0xf] }
 0x491   : > { %8617 = vmatpush.bf16.msrb.mxu0 %v11406_v6  ;;  %v12107_v1 = vld [vmem:[%s14186_s23 + $0x16d8] sm:$0xf0]  ;;  %v12979_v36 = vld [vmem:[%s14186_s23 + $0x144c] sm:$0xf]  ;;  %v12238_v63 = vor.u32 %v13091_v34, %v12235_v24 }
 0x492   : > { %8630 = vmatpush.bf16.msrb.mxu1 %v11534_v7  ;;  %v11787_v6 = vld [vmem:[%s14186_s23 + $0x1458] sm:$0xf0]  ;;  %v13023_v3 = vld [vmem:[%s14186_s23 + $0x15ac] sm:$0xf]  ;;  %v8400_v29 = vpop.f32.mrf.mxu3 }
 0x493   : > { %8643 = vmatpush.bf16.msrb.mxu2 %v11662_v40  ;;  %v11963_v23 = vld [vmem:[%s14186_s23 + $0x15b8] sm:$0xf0]  ;;  %v12110_v40 = vor.u32 %v13059_v25, %v12107_v1  ;;  %v13087_v7 = vld [vmem:[%s14186_s23 + $0x17ac] sm:$0xf]  ;;  %v11790_v11 = vor.u32 %v12979_v36, %v11787_v6 }
 0x494   : > { %8652 = vmatpush.bf16.msrb.mxu3 %v11854_v30  ;;  %v11982_v30 = vor.u32 %v13027_v62, %v11979_v20  ;;  %v12219_v56 = vld [vmem:[%s14186_s23 + $0x17b8] sm:$0xf0]  ;;  %v13055_v16 = vld [vmem:[%s14186_s23 + $0x16ac] sm:$0xf]  ;;  %v11966_v19 = vor.u32 %v13023_v3, %v11963_v23 }
 0x495   : > { %8618 = vmatpush.bf16.msrb.mxu0 %v11390_v17  ;;  %v12091_v18 = vld [vmem:[%s14186_s23 + $0x16b8] sm:$0xf0]  ;;  %v12222_v17 = vor.u32 %v13087_v7, %v12219_v56  ;;  %v13083_v35 = vld [vmem:[%s14186_s23 + $0x178c] sm:$0xf] }
 0x496   : > { %8631 = vmatpush.bf16.msrb.mxu1 %v11518_v37  ;;  %v11771_v2 = vld [vmem:[%s14186_s23 + $0x1438] sm:$0xf0]  ;;  %v13051_v39 = vld [vmem:[%s14186_s23 + $0x168c] sm:$0xf] }
 0x497   : > { %8644 = vmatpush.bf16.msrb.mxu2 %v11646_v8  ;;  %v11947_v33 = vld [vmem:[%s14186_s23 + $0x1598] sm:$0xf0]  ;;  %v12971_v41 = vld [vmem:[%s14186_s23 + $0x140c] sm:$0xf] }
 0x498   : > { %8653 = vmatpush.bf16.msrb.mxu3 %v11838_v32  ;;  %v13019_v32 = vld [vmem:[%s14186_s23 + $0x158c] sm:$0xf]  ;;  %v12203_v8 = vld [vmem:[%s14186_s23 + $0x1798] sm:$0xf0] }
 0x499   : > { %8619 = vmatpush.bf16.msrb.mxu0 %v11374_v46  ;;  %v12075_v38 = vld [vmem:[%s14186_s23 + $0x1698] sm:$0xf0]  ;;  %v11950_v44 = vor.u32 %v13019_v32, %v11947_v33  ;;  %v12206_v9 = vor.u32 %v13083_v35, %v12203_v8  ;;  %v13015_v10 = vld [vmem:[%s14186_s23 + $0x156c] sm:$0xf]  ;;  %v8413_v46 = vpop.f32.mrf.mxu0 }
 0x49a   : > { %8632 = vmatpush.bf16.msrb.mxu1 %v11502_v51  ;;  %v11755_v43 = vld [vmem:[%s14186_s23 + $0x1418] sm:$0xf0]  ;;  %v13111_v45 = vld [vmem:[%s14186_s23 + $0x186c] sm:$0xf]  ;;  %v8402_v42 = vpop.f32.mrf.mxu3 }
 0x49b   : > { %8645 = vmatpush.bf16.msrb.mxu2 %v11630_v49  ;;  %v12315_v47 = vld [vmem:[%s14186_s23 + $0x1878] sm:$0xf0]  ;;  %v13079_v4 = vld [vmem:[%s14186_s23 + $0x176c] sm:$0xf]  ;;  %v11758_v53 = vor.u32 %v12971_v41, %v11755_v43 }
 0x49c   : > { %8654 = vmatpush.bf16.msrb.mxu3 %v11822_v50  ;;  %8620 = vmatmul.bf16.vlgmr.msrb.gmra.mxu0 %v14592_v22  ;;  %v12975_v22 = vld [vmem:[%s14186_s23 + $0x142c] sm:$0xf]  ;;  %v12078_v50 = vor.u32 %v13051_v39, %v12075_v38  ;;  %v11931_v48 = vld [vmem:[%s14186_s23 + $0x1578] sm:$0xf0]  ;;  %v12318_v62 = vor.u32 %v13111_v45, %v12315_v47 }
 0x49d   : > { %8664 = vmatpush.bf16.msra.mxu0 %v11998_v59  ;;  %8633 = vmatmul.bf16.vlgmr.msrb.gmra.mxu1 %v14590_v21  ;;  %v8401_v21 = vadd.f32 %v8400_v29, %v3431_v28  ;;  %v11774_v37 = vor.u32 %v12975_v22, %v11771_v2  ;;  %v12187_v49 = vld [vmem:[%s14186_s23 + $0x1778] sm:$0xf0]  ;;  %v13047_v58 = vld [vmem:[%s14186_s23 + $0x166c] sm:$0xf]  ;;  %v11934_v20 = vor.u32 %v13015_v10, %v11931_v48 }
 0x49e   : > { %8677 = vmatpush.bf16.msra.mxu1 %v12126_v52  ;;  %8646 = vmatmul.bf16.vlgmr.msrb.gmra.mxu2 %v14594_v26  ;;  %v12094_v26 = vor.u32 %v13055_v16, %v12091_v18  ;;  %v12059_v59 = vld [vmem:[%s14186_s23 + $0x1678] sm:$0xf0]  ;;  %v12190_v34 = vor.u32 %v13079_v4, %v12187_v49  ;;  %v13011_v24 = vld [vmem:[%s14186_s23 + $0x154c] sm:$0xf] }
 0x49f   : > { %8690 = vmatpush.bf16.msra.mxu2 %v12254_v60  ;;  %v8414_v51 = vadd.f32 %v8413_v46, %v8401_v21  ;;  %v8426_v60 = vpop.f32.mrf.mxu1  ;;  %v12299_v25 = vld [vmem:[%s14186_s23 + $0x1858] sm:$0xf0]  ;;  %v12062_v1 = vor.u32 %v13047_v58, %v12059_v59  ;;  %v13075_v6 = vld [vmem:[%s14186_s23 + $0x174c] sm:$0xf] }
 0x4a0   : > { %8655 = vmatpush.bf16.msrb.mxu3 %v11806_v0  ;;  %v13107_v0 = vld [vmem:[%s14186_s23 + $0x184c] sm:$0xf]  ;;  %v11915_v36 = vld [vmem:[%s14186_s23 + $0x1558] sm:$0xf0] }
 0x4a1   : > { %8665 = vmatpush.bf16.msra.mxu0 %v11982_v30  ;;  %v8427_v52 = vadd.f32 %v8426_v60, %v8414_v51  ;;  %v12171_v30 = vld [vmem:[%s14186_s23 + $0x1758] sm:$0xf0]  ;;  %v12302_v23 = vor.u32 %v13107_v0, %v12299_v25  ;;  %v11918_v7 = vor.u32 %v13011_v24, %v11915_v36  ;;  %v13007_v57 = vld [vmem:[%s14186_s23 + $0x152c] sm:$0xf]  ;;  %v8415_v16 = vpop.f32.mrf.mxu0 }
 0x4a2   : > { %8678 = vmatpush.bf16.msra.mxu1 %v12110_v40  ;;  %v12043_v3 = vld [vmem:[%s14186_s23 + $0x1658] sm:$0xf0]  ;;  %v8439_v40 = vpop.f32.mrf.mxu2  ;;  %v12174_v56 = vor.u32 %v13075_v6, %v12171_v30  ;;  %v13103_v28 = vld [vmem:[%s14186_s23 + $0x182c] sm:$0xf] }
 0x4a3   : > { %8691 = vmatpush.bf16.msra.mxu2 %v12238_v63  ;;  %v13043_v63 = vld [vmem:[%s14186_s23 + $0x164c] sm:$0xf]  ;;  %v12283_v29 = vld [vmem:[%s14186_s23 + $0x1838] sm:$0xf0] }
 0x4a4   : > { %8656 = vmatpush.bf16.msrb.mxu3 %v11790_v11  ;;  %v8440_v11 = vadd.f32 %v8439_v40, %v8427_v52  ;;  %v12046_v18 = vor.u32 %v13043_v63, %v12043_v3  ;;  %v11899_v22 = vld [vmem:[%s14186_s23 + $0x1538] sm:$0xf0]  ;;  %v13071_v2 = vld [vmem:[%s14186_s23 + $0x172c] sm:$0xf]  ;;  %v12286_v33 = vor.u32 %v13103_v28, %v12283_v29 }
 0x4a5   : > { %8666 = vmatpush.bf16.msra.mxu0 %v11966_v19  ;;  %v12155_v19 = vld [vmem:[%s14186_s23 + $0x1738] sm:$0xf0]  ;;  %v11902_v35 = vor.u32 %v13007_v57, %v11899_v22  ;;  %v13099_v21 = vld [vmem:[%s14186_s23 + $0x180c] sm:$0xf] }
 0x4a6   : > { %8679 = vmatpush.bf16.msra.mxu1 %v12094_v26  ;;  %v12027_v32 = vld [vmem:[%s14186_s23 + $0x1638] sm:$0xf0]  ;;  %v12158_v8 = vor.u32 %v13071_v2, %v12155_v19  ;;  %v13067_v41 = vld [vmem:[%s14186_s23 + $0x170c] sm:$0xf] }
 0x4a7   : > { %8692 = vmatpush.bf16.msra.mxu2 %v12222_v17  ;;  %v13039_v17 = vld [vmem:[%s14186_s23 + $0x162c] sm:$0xf]  ;;  %v8428_v26 = vpop.f32.mrf.mxu1  ;;  %v11883_v38 = vld [vmem:[%s14186_s23 + $0x1518] sm:$0xf0] }
 0x4a8   : > { %8657 = vmatpush.bf16.msrb.mxu3 %v11774_v37  ;;  %v12267_v37 = vld [vmem:[%s14186_s23 + $0x1818] sm:$0xf0]  ;;  %v12030_v39 = vor.u32 %v13039_v17, %v12027_v32  ;;  %v13186_v49 = vld [vmem:[#allocation1] sm:$0xff] }
 0x4a9   : > { %8667 = vmatpush.bf16.msra.mxu0 %v11950_v44  ;;  %v12139_v43 = vld [vmem:[%s14186_s23 + $0x1718] sm:$0xf0]  ;;  %v13035_v44 = vld [vmem:[%s14186_s23 + $0x160c] sm:$0xf]  ;;  %v12270_v10 = vor.u32 %v13099_v21, %v12267_v37 }
 0x4aa   : > { %8680 = vmatpush.bf16.msra.mxu1 %v12078_v50  ;;  %v8441_v45 = vpop.f32.mrf.mxu2  ;;  %v12142_v46 = vor.u32 %v13067_v41, %v12139_v43 }
 0x4ab   : > { %8693 = vmatpush.bf16.msra.mxu2 %v12206_v9  ;;  %v12011_v9 = vld [vmem:[%s14186_s23 + $0x1618] sm:$0xf0] }
 0x4ac   : > { %8658 = vmatpush.bf16.msrb.mxu3 %v11758_v53  ;;  %v12014_v50 = vor.u32 %v13035_v44, %v12011_v9 }
 0x4ad   : > { %8668 = vmatpush.bf16.msra.mxu0 %v11934_v20 }
 0x4ae   : > { %8681 = vmatpush.bf16.msra.mxu1 %v12062_v1 }
 0x4af   : > { %8694 = vmatpush.bf16.msra.mxu2 %v12190_v34  ;;  %8659 = vmatmul.bf16.vlgmr.msrb.gmra.mxu3 %v14634_v12  ;;  %v13003_v12 = vld [vmem:[%s14186_s23 + $0x150c] sm:$0xf] }
 0x4b0   : > { %8707 = vmatpush.bf16.msra.mxu3 %v12318_v62  ;;  %v11886_v47 = vor.u32 %v13003_v12, %v11883_v38 }
 0x4b1   : > { %8669 = vmatpush.bf16.msra.mxu0 %v11918_v7 }
 0x4b2   : > { %8682 = vmatpush.bf16.msra.mxu1 %v12046_v18  ;;  %v8452_v48 = vpop.f32.mrf.mxu3 }
 0x4b3   : > { %8695 = vmatpush.bf16.msra.mxu2 %v12174_v56  ;;  %v8453_v4 = vadd.f32 %v8452_v48, %v8440_v11 }
 0x4b4   : > { %8708 = vmatpush.bf16.msra.mxu3 %v12302_v23 }
 0x4b5   : > { %8670 = vmatpush.bf16.msra.mxu0 %v11902_v35 }
 0x4b6   : > { %8683 = vmatpush.bf16.msra.mxu1 %v12030_v39 }
 0x4b7   : > { %8696 = vmatpush.bf16.msra.mxu2 %v12158_v8 }
 0x4b8   : > { %8709 = vmatpush.bf16.msra.mxu3 %v12286_v33 }
 0x4b9   : > { %8671 = vmatpush.bf16.msra.mxu0 %v11886_v47  ;;  %v8465_v51 = vpop.f32.mrf.mxu0 }
 0x4ba   : > { %8684 = vmatpush.bf16.msra.mxu1 %v12014_v50  ;;  %v8454_v42 = vpop.f32.mrf.mxu3  ;;  %v8466_v53 = vadd.f32 %v8465_v51, %v8453_v4  ;;  %v8478_v58 = vpop.f32.mrf.mxu1 }
 0x4bb   : > { %8697 = vmatpush.bf16.msra.mxu2 %v12142_v46 }
 0x4bc   : > { %8710 = vmatpush.bf16.msra.mxu3 %v12270_v10  ;;  %8672 = vmatmul.bf16.vlgmr.msra.gmra.mxu0 %v14638_v14  ;;  %v8479_v59 = vadd.f32 %v8478_v58, %v8466_v53 }
 0x4bd   : > { %8685 = vmatmul.bf16.vlgmr.msra.gmra.mxu1 %v14636_v13 }
 0x4be   : > { %8698 = vmatmul.bf16.vlgmr.msra.gmra.mxu2 %v14640_v15 }
 0x4bf   : > { %12322 = vmatmul.msk.bf16.vlgmr.msra.gmra.mxu3 %vm7413_vm0, %v13186_v49 }
 0x4c1   : > { %v8491_v60 = vpop.f32.mrf.mxu2  ;;  %v8467_v52 = vpop.f32.mrf.mxu0 }
 0x4c2   : > { %v8492_v62 = vadd.f32 %v8491_v60, %v8479_v59  ;;  %v8480_v20 = vpop.f32.mrf.mxu1 }
 0x4c9   : > { %v8493_v34 = vpop.f32.mrf.mxu2 }
 0x4d2   : > { %v8504_v24 = vpop.f32.mrf.mxu3 }
 0x4d3   : > { %v8505_v14 = vadd.f32 %v8504_v24, %v8492_v62 }
 0x4d9   : > { %v8517_v0 = vpop.f32.mrf.mxu0 }
 0x4da   : > { %v8518_v15 = vadd.f32 %v8517_v0, %v8505_v14  ;;  %v8506_v25 = vpop.f32.mrf.mxu3  ;;  %v8530_v1 = vpop.f32.mrf.mxu1 }
 0x4dc   : > { %v8531_v13 = vadd.f32 %v8530_v1, %v8518_v15 }
 0x4e1   : > { %v8543_v36 = vpop.f32.mrf.mxu2  ;;  %v8519_v30 = vpop.f32.mrf.mxu0 }
 0x4e2   : > { %v8544_v6 = vadd.f32 %v8543_v36, %v8531_v13  ;;  %v8532_v63 = vpop.f32.mrf.mxu1 }
 0x4e9   : > { %v8545_v3 = vpop.f32.mrf.mxu2 }
 0x4f2   : > { %v8556_v23 = vpop.f32.mrf.mxu3 }
 0x4f3   : > { %v8557_v32 = vadd.f32 %v8556_v23, %v8544_v6 }
 0x4f9   : > { %v8569_v40 = vpop.f32.mrf.mxu0 }
 0x4fa   : > { %v8558_v7 = vpop.f32.mrf.mxu3  ;;  %v8582_v56 = vpop.f32.mrf.mxu1  ;;  %v8570_v33 = vadd.f32 %v8569_v40, %v8557_v32 }
 0x4fc   : > { %v8583_v35 = vadd.f32 %v8582_v56, %v8570_v33 }
 0x501   : > { %v8595_v57 = vpop.f32.mrf.mxu2  ;;  %v8571_v28 = vpop.f32.mrf.mxu0 }
 0x502   : > { %v8584_v29 = vpop.f32.mrf.mxu1  ;;  %v8596_v12 = vadd.f32 %v8595_v57, %v8583_v35 }
 0x509   : > { %v8597_v11 = vpop.f32.mrf.mxu2 }
 0x512   : > { %v8608_v16 = vpop.f32.mrf.mxu3 }
 0x513   : > { %v8609_v21 = vadd.f32 %v8608_v16, %v8596_v12 }
 0x519   : > { %v8621_v18 = vpop.f32.mrf.mxu0 }
 0x51a   : > { %v8610_v22 = vpop.f32.mrf.mxu3  ;;  %v8634_v2 = vpop.f32.mrf.mxu1  ;;  %v8622_v37 = vadd.f32 %v8621_v18, %v8609_v21 }
 0x51c   : > { %v8635_v38 = vadd.f32 %v8634_v2, %v8622_v37 }
 0x521   : > { %v8647_v19 = vpop.f32.mrf.mxu2  ;;  %v8623_v17 = vpop.f32.mrf.mxu0 }
 0x522   : > { %v8636_v26 = vpop.f32.mrf.mxu1  ;;  %v8648_v41 = vadd.f32 %v8647_v19, %v8635_v38 }
 0x529   : > { %v8649_v8 = vpop.f32.mrf.mxu2 }
 0x532   : > { %v8660_v39 = vpop.f32.mrf.mxu3 }
 0x533   : > { %v8661_v43 = vadd.f32 %v8660_v39, %v8648_v41 }
 0x539   : > { %v8673_v44 = vpop.f32.mrf.mxu0 }
 0x53a   : > { %v8662_v9 = vpop.f32.mrf.mxu3  ;;  %v8674_v10 = vadd.f32 %v8673_v44, %v8661_v43  ;;  %v8686_v45 = vpop.f32.mrf.mxu1 }
 0x53c   : > { %v8687_v47 = vadd.f32 %v8686_v45, %v8674_v10 }
 0x541   : > { %v8699_v46 = vpop.f32.mrf.mxu2  ;;  %v8675_v48 = vpop.f32.mrf.mxu0 }
 0x542   : > { %v8700_v50 = vadd.f32 %v8699_v46, %v8687_v47  ;;  %v8712_v4 = vpop.f32.mrf.mxu3  ;;  %v8688_v49 = vpop.f32.mrf.mxu1 }
 0x544   : > { %v15990_v51 = vadd.f32 %v8712_v4, %v8700_v50 }
 0x546   : > { %v8719_v42 = vmax.f32 %v15990_v51, 0.0  ;;  %8723 = sbr.rel (%p12323_p11) target bundleno = 1360 (0x550), region = 81 }
 0x549   : > { %v8701_v53 = vpop.f32.mrf.mxu2 }
 0x54a   : > { %v8714_v58 = vpop.f32.mrf.mxu3 }
 0x54b   : > { %v8728_v59 = vrot.slane %v8717_v5, 6  ;;  %v8729_v60 = vrot.slane %v8718_v55, 4  ;;  %v8730_v62 = vrot.slane %v8719_v42, 2  ;;  %vm8731_vm1 = vcmask 1041408  }
 0x54c   : > { %vm8733_vm2 = vcmask 1045508   ;;  %vm8735_vm3 = vcmask 1043456  }
 0x54d   : > { %v8732_v52 = vsel %vm8731_vm1, %v8716_v31, %v8728_v59  ;;  %v8734_v20 = vsel %vm8733_vm2, %v8729_v60, %v8730_v62 }
 0x54e   : > { %v8736_v34 = vsel %vm8735_vm3, %v8732_v52, %v8734_v20 }
 0x54f   : > { %8738 = vst [vmem:[#allocation2] sm:$0xff] %v8736_v34 }
 0x550 PF: > { %p12324_p12 = scmp.ne.s32.totalorder %s13328_s21, 1 }
 0x552   : > { %8742 = sbr.rel (%p12324_p12) target bundleno = 1710 (0x6ae), region = 85 }
 0x557   : > { %v8807_v24 = vld [vmem:[%s16417_s3 + $0x178] sm:$0xff]  ;;  %v8806_v0 = vld [vmem:[%s16417_s3 + $0x170] sm:$0xff]  ;;  %v8805_v13 = vld [vmem:[%s16417_s3 + $0x168] sm:$0xff]  ;;  %v8747_v53 = vrot.slane %v8717_v5, 6  ;;  %v8748_v58 = vrot.slane %v8718_v55, 4  ;;  %v8749_v59 = vrot.slane %v8719_v42, 2 }
 0x558   : > { %v8775_v14 = vld [vmem:[%s16417_s3 + $0x78] sm:$0xff]  ;;  %8953 = vmatpush.msra.mxu2 %v8807_v24  ;;  %v8774_v25 = vld [vmem:[%s16417_s3 + $0x70] sm:$0xff]  ;;  %v8773_v6 = vld [vmem:[%s16417_s3 + $0x68] sm:$0xff]  ;;  %vm8750_vm4 = vcmask 1041408   ;;  %vm8752_vm5 = vcmask 1045508   ;;  %vm8754_vm6 = vcmask 1043456  }
 0x559   : > { %8913 = vmatpush.msra.mxu0 %v8775_v14  ;;  %v8823_v15 = vld [vmem:[%s16417_s3 + $0x1f8] sm:$0xff]  ;;  %v8822_v36 = vld [vmem:[%s16417_s3 + $0x1f0] sm:$0xff]  ;;  %v8821_v63 = vld [vmem:[%s16417_s3 + $0x1e8] sm:$0xff]  ;;  %v8751_v54 = vsel %vm8750_vm4, %v8716_v31, %v8747_v53  ;;  %v8753_v55 = vsel %vm8752_vm5, %v8748_v58, %v8749_v59  ;;  %vm9079_vm7 = vcmask 41984  }
 0x55a   : > { %v8791_v1 = vld [vmem:[%s16417_s3 + $0xf8] sm:$0xff]  ;;  %8973 = vmatpush.msra.mxu3 %v8823_v15  ;;  %8954 = vmatpush.msra.mxu2 %v8806_v0  ;;  %v8790_v30 = vld [vmem:[%s16417_s3 + $0xf0] sm:$0xff]  ;;  %v8804_v3 = vld [vmem:[%s16417_s3 + $0x160] sm:$0xff]  ;;  %v8755_v52 = vsel %vm8754_vm6, %v8751_v54, %v8753_v55 }
 0x55b   : > { %8933 = vmatpush.msra.mxu1 %v8791_v1  ;;  %8914 = vmatpush.msra.mxu0 %v8774_v25  ;;  %v8772_v23 = vld [vmem:[%s16417_s3 + $0x60] sm:$0xff]  ;;  %v8789_v40 = vld [vmem:[%s16417_s3 + $0xe8] sm:$0xff]  ;;  %v8803_v57 = vld [vmem:[%s16417_s3 + $0x158] sm:$0xff]  ;;  %8896 = vst [vmem:[#allocation1 + $0x20] ss:$4 sm:$0xff] %v8755_v52 }
 0x55c   : > { %8974 = vmatpush.msra.mxu3 %v8822_v36  ;;  %8955 = vmatpush.msra.mxu2 %v8805_v13  ;;  %v8820_v7 = vld [vmem:[%s16417_s3 + $0x1e0] sm:$0xff]  ;;  %v8771_v28 = vld [vmem:[%s16417_s3 + $0x58] sm:$0xff]  ;;  %v8802_v16 = vld [vmem:[%s16417_s3 + $0x150] sm:$0xff] }
 0x55d   : > { %8934 = vmatpush.msra.mxu1 %v8790_v30  ;;  %8915 = vmatpush.msra.mxu0 %v8773_v6  ;;  %v8788_v56 = vld [vmem:[%s16417_s3 + $0xe0] sm:$0xff]  ;;  %v8819_v29 = vld [vmem:[%s16417_s3 + $0x1d8] sm:$0xff]  ;;  %v8770_v18 = vld [vmem:[%s16417_s3 + $0x50] sm:$0xff] }
 0x55e   : > { %8975 = vmatpush.msra.mxu3 %v8821_v63  ;;  %8956 = vmatpush.msra.mxu2 %v8804_v3  ;;  %v8787_v11 = vld [vmem:[%s16417_s3 + $0xd8] sm:$0xff]  ;;  %v8818_v22 = vld [vmem:[%s16417_s3 + $0x1d0] sm:$0xff]  ;;  %v8801_v19 = vld [vmem:[%s16417_s3 + $0x148] sm:$0xff] }
 0x55f   : > { %8935 = vmatpush.msra.mxu1 %v8789_v40  ;;  %8916 = vmatpush.msra.mxu0 %v8772_v23  ;;  %v8786_v2 = vld [vmem:[%s16417_s3 + $0xd0] sm:$0xff]  ;;  %v8769_v17 = vld [vmem:[%s16417_s3 + $0x48] sm:$0xff]  ;;  %v8800_v33 = vld [vmem:[%s16417_s3 + $0x140] sm:$0xff] }
 0x560   : > { %8976 = vmatpush.msra.mxu3 %v8820_v7  ;;  %8957 = vmatpush.msra.mxu2 %v8803_v57  ;;  %v8817_v32 = vld [vmem:[%s16417_s3 + $0x1c8] sm:$0xff]  ;;  %v8768_v35 = vld [vmem:[%s16417_s3 + $0x40] sm:$0xff]  ;;  %v8799_v21 = vld [vmem:[%s16417_s3 + $0x138] sm:$0xff] }
 0x561   : > { %8936 = vmatpush.msra.mxu1 %v8788_v56  ;;  %8917 = vmatpush.msra.mxu0 %v8771_v28  ;;  %v8785_v26 = vld [vmem:[%s16417_s3 + $0xc8] sm:$0xff]  ;;  %v8816_v8 = vld [vmem:[%s16417_s3 + $0x1c0] sm:$0xff]  ;;  %v8767_v37 = vld [vmem:[%s16417_s3 + $0x38] sm:$0xff] }
 0x562   : > { %8977 = vmatpush.msra.mxu3 %v8819_v29  ;;  %8958 = vmatpush.msra.mxu2 %v8802_v16  ;;  %v8784_v12 = vld [vmem:[%s16417_s3 + $0xc0] sm:$0xff]  ;;  %v8815_v39 = vld [vmem:[%s16417_s3 + $0x1b8] sm:$0xff]  ;;  %v8798_v41 = vld [vmem:[%s16417_s3 + $0x130] sm:$0xff] }
 0x563   : > { %8937 = vmatpush.msra.mxu1 %v8787_v11  ;;  %8918 = vmatpush.msra.mxu0 %v8770_v18  ;;  %v8783_v38 = vld [vmem:[%s16417_s3 + $0xb8] sm:$0xff]  ;;  %v8766_v43 = vld [vmem:[%s16417_s3 + $0x30] sm:$0xff]  ;;  %v8797_v10 = vld [vmem:[%s16417_s3 + $0x128] sm:$0xff] }
 0x564   : > { %8978 = vmatpush.msra.mxu3 %v8818_v22  ;;  %8959 = vmatpush.msra.mxu2 %v8801_v19  ;;  %v8814_v44 = vld [vmem:[%s16417_s3 + $0x1b0] sm:$0xff]  ;;  %v8765_v45 = vld [vmem:[%s16417_s3 + $0x28] sm:$0xff]  ;;  %v8796_v50 = vld [vmem:[%s16417_s3 + $0x120] sm:$0xff] }
 0x565   : > { %8938 = vmatpush.msra.mxu1 %v8786_v2  ;;  %8919 = vmatpush.msra.mxu0 %v8769_v17  ;;  %v8782_v9 = vld [vmem:[%s16417_s3 + $0xb0] sm:$0xff]  ;;  %v8813_v47 = vld [vmem:[%s16417_s3 + $0x1a8] sm:$0xff]  ;;  %v8764_v48 = vld [vmem:[%s16417_s3 + $0x20] sm:$0xff] }
 0x566   : > { %8979 = vmatpush.msra.mxu3 %v8817_v32  ;;  %8960 = vmatpush.msra.mxu2 %v8800_v33  ;;  %v8781_v46 = vld [vmem:[%s16417_s3 + $0xa8] sm:$0xff]  ;;  %v8812_v4 = vld [vmem:[%s16417_s3 + $0x1a0] sm:$0xff]  ;;  %v8795_v60 = vld [vmem:[%s16417_s3 + $0x118] sm:$0xff] }
 0x567   : > { %8939 = vmatpush.msra.mxu1 %v8785_v26  ;;  %8920 = vmatpush.msra.mxu0 %v8768_v35  ;;  %v8780_v49 = vld [vmem:[%s16417_s3 + $0xa0] sm:$0xff]  ;;  %v8763_v62 = vld [vmem:[%s16417_s3 + $0x18] sm:$0xff]  ;;  %v8794_v51 = vld [vmem:[%s16417_s3 + $0x110] sm:$0xff] }
 0x568   : > { %8980 = vmatpush.msra.mxu3 %v8816_v8  ;;  %8961 = vmatpush.msra.mxu2 %v8799_v21  ;;  %v8811_v61 = vld [vmem:[%s16417_s3 + $0x198] sm:$0xff]  ;;  %v8762_v42 = vld [vmem:[%s16417_s3 + $0x10] sm:$0xff]  ;;  %v8793_v20 = vld [vmem:[%s16417_s3 + $0x108] sm:$0xff] }
 0x569   : > { %8940 = vmatpush.msra.mxu1 %v8784_v12  ;;  %8921 = vmatpush.msra.mxu0 %v8767_v37  ;;  %v8779_v5 = vld [vmem:[%s16417_s3 + $0x98] sm:$0xff]  ;;  %v8810_v27 = vld [vmem:[%s16417_s3 + $0x190] sm:$0xff]  ;;  %v8761_v34 = vld [vmem:[%s16417_s3 + $0x8] sm:$0xff] }
 0x56a   : > { %8981 = vmatpush.msra.mxu3 %v8815_v39  ;;  %8962 = vmatpush.msra.mxu2 %v8798_v41  ;;  %v8778_v31 = vld [vmem:[%s16417_s3 + $0x90] sm:$0xff]  ;;  %v8809_v24 = vld [vmem:[%s16417_s3 + $0x188] sm:$0xff]  ;;  %v8792_v0 = vld [vmem:[%s16417_s3 + $0x100] sm:$0xff] }
 0x56b   : > { %8941 = vmatpush.msra.mxu1 %v8783_v38  ;;  %8922 = vmatpush.msra.mxu0 %v8766_v43  ;;  %v8777_v14 = vld [vmem:[%s16417_s3 + $0x88] sm:$0xff]  ;;  %v8760_v15 = vld [vmem:[%s16417_s3] sm:$0xff]  ;;  %v8871_v25 = vld [vmem:[%s16417_s3 + $0x378] sm:$0xff] }
 0x56c   : > { %8982 = vmatpush.msra.mxu3 %v8814_v44  ;;  %8963 = vmatpush.msra.mxu2 %v8797_v10  ;;  %v8808_v1 = vld [vmem:[%s16417_s3 + $0x180] sm:$0xff]  ;;  %v8839_v13 = vld [vmem:[%s16417_s3 + $0x278] sm:$0xff]  ;;  %v8870_v6 = vld [vmem:[%s16417_s3 + $0x370] sm:$0xff] }
 0x56d   : > { %8942 = vmatpush.msra.mxu1 %v8782_v9  ;;  %8923 = vmatpush.msra.mxu0 %v8765_v45  ;;  %v8887_v36 = vld [vmem:[%s16417_s3 + $0x3f8] sm:$0xff]  ;;  %v8776_v30 = vld [vmem:[%s16417_s3 + $0x80] sm:$0xff]  ;;  %v8838_v63 = vld [vmem:[%s16417_s3 + $0x270] sm:$0xff] }
 0x56e   : > { %8983 = vmatpush.msra.mxu3 %v8813_v47  ;;  %8964 = vmatpush.msra.mxu2 %v8796_v50  ;;  %v8855_v3 = vld [vmem:[%s16417_s3 + $0x2f8] sm:$0xff]  ;;  %v8869_v23 = vld [vmem:[%s16417_s3 + $0x368] sm:$0xff]  ;;  %v8886_v40 = vld [vmem:[%s16417_s3 + $0x3f0] sm:$0xff] }
 0x56f   : > { %8943 = vmatpush.msra.mxu1 %v8781_v46  ;;  %8924 = vmatpush.msra.mxu0 %v8764_v48  ;;  %v8837_v7 = vld [vmem:[%s16417_s3 + $0x268] sm:$0xff]  ;;  %v8854_v56 = vld [vmem:[%s16417_s3 + $0x2f0] sm:$0xff]  ;;  %v8868_v57 = vld [vmem:[%s16417_s3 + $0x360] sm:$0xff] }
 0x570   : > { %8984 = vmatpush.msra.mxu3 %v8812_v4  ;;  %8965 = vmatpush.msra.mxu2 %v8795_v60  ;;  %v8885_v28 = vld [vmem:[%s16417_s3 + $0x3e8] sm:$0xff]  ;;  %v8836_v29 = vld [vmem:[%s16417_s3 + $0x260] sm:$0xff]  ;;  %v8867_v18 = vld [vmem:[%s16417_s3 + $0x358] sm:$0xff] }
 0x571   : > { %8944 = vmatpush.msra.mxu1 %v8780_v49  ;;  %8925 = vmatpush.msra.mxu0 %v8763_v62  ;;  %v8853_v11 = vld [vmem:[%s16417_s3 + $0x2e8] sm:$0xff]  ;;  %v8884_v22 = vld [vmem:[%s16417_s3 + $0x3e0] sm:$0xff]  ;;  %v8835_v2 = vld [vmem:[%s16417_s3 + $0x258] sm:$0xff] }
 0x572   : > { %8985 = vmatpush.msra.mxu3 %v8811_v61  ;;  %8966 = vmatpush.msra.mxu2 %v8794_v51  ;;  %v8758_v16 = vld [vmem:[#allocation2] sm:$0xff]  ;;  %v8852_v19 = vld [vmem:[%s16417_s3 + $0x2e0] sm:$0xff]  ;;  %v8866_v17 = vld [vmem:[%s16417_s3 + $0x350] sm:$0xff] }
 0x573   : > { %8945 = vmatpush.msra.mxu1 %v8779_v5  ;;  %8926 = vmatpush.msra.mxu0 %v8762_v42  ;;  %8894 = vst [vmem:[#allocation1] ss:$4 sm:$0xff] %v8758_v16  ;;  %v8883_v32 = vld [vmem:[%s16417_s3 + $0x3d8] sm:$0xff]  ;;  %v8834_v26 = vld [vmem:[%s16417_s3 + $0x250] sm:$0xff]  ;;  %v8865_v35 = vld [vmem:[%s16417_s3 + $0x348] sm:$0xff] }
 0x574   : > { %8986 = vmatpush.msra.mxu3 %v8810_v27  ;;  %8967 = vmatpush.msra.mxu2 %v8793_v20  ;;  %v8851_v33 = vld [vmem:[%s16417_s3 + $0x2d8] sm:$0xff]  ;;  %v8882_v8 = vld [vmem:[%s16417_s3 + $0x3d0] sm:$0xff]  ;;  %v8833_v12 = vld [vmem:[%s16417_s3 + $0x248] sm:$0xff] }
 0x575   : > { %8946 = vmatpush.msra.mxu1 %v8778_v31  ;;  %8927 = vmatpush.msra.mxu0 %v8761_v34  ;;  %v8850_v21 = vld [vmem:[%s16417_s3 + $0x2d0] sm:$0xff]  ;;  %v8864_v37 = vld [vmem:[%s16417_s3 + $0x340] sm:$0xff]  ;;  %v8881_v39 = vld [vmem:[%s16417_s3 + $0x3c8] sm:$0xff] }
 0x576   : > { %8987 = vmatpush.msra.mxu3 %v8809_v24  ;;  %8968 = vmatpush.msra.mxu2 %v8792_v0  ;;  %v8832_v38 = vld [vmem:[%s16417_s3 + $0x240] sm:$0xff]  ;;  %v8849_v41 = vld [vmem:[%s16417_s3 + $0x2c8] sm:$0xff]  ;;  %v8863_v43 = vld [vmem:[%s16417_s3 + $0x338] sm:$0xff] }
 0x577   : > { %8947 = vmatpush.msra.mxu1 %v8777_v14  ;;  %8928 = vmatpush.msra.mxu0 %v8760_v15  ;;  %v8880_v44 = vld [vmem:[%s16417_s3 + $0x3c0] sm:$0xff]  ;;  %v8831_v9 = vld [vmem:[%s16417_s3 + $0x238] sm:$0xff]  ;;  %v8862_v45 = vld [vmem:[%s16417_s3 + $0x330] sm:$0xff] }
 0x578   : > { %9033 = vmatpush.msrb.mxu2 %v8871_v25  ;;  %8988 = vmatpush.msra.mxu3 %v8808_v1  ;;  %v8848_v10 = vld [vmem:[%s16417_s3 + $0x2c0] sm:$0xff]  ;;  %v8879_v47 = vld [vmem:[%s16417_s3 + $0x3b8] sm:$0xff]  ;;  %v8830_v46 = vld [vmem:[%s16417_s3 + $0x230] sm:$0xff] }
 0x579   : > { %8993 = vmatpush.msrb.mxu0 %v8839_v13  ;;  %8948 = vmatpush.msra.mxu1 %v8776_v30  ;;  %v8847_v50 = vld [vmem:[%s16417_s3 + $0x2b8] sm:$0xff]  ;;  %v8861_v48 = vld [vmem:[%s16417_s3 + $0x328] sm:$0xff]  ;;  %v8878_v4 = vld [vmem:[%s16417_s3 + $0x3b0] sm:$0xff] }
 0x57a   : > { %9053 = vmatpush.msrb.mxu3 %v8887_v36  ;;  %9034 = vmatpush.msrb.mxu2 %v8870_v6  ;;  %v8829_v49 = vld [vmem:[%s16417_s3 + $0x228] sm:$0xff]  ;;  %v8846_v53 = vld [vmem:[%s16417_s3 + $0x2b0] sm:$0xff]  ;;  %v8860_v58 = vld [vmem:[%s16417_s3 + $0x320] sm:$0xff] }
 0x57b   : > { %8994 = vmatpush.msrb.mxu0 %v8838_v63  ;;  %9013 = vmatpush.msrb.mxu1 %v8855_v3  ;;  %v8877_v59 = vld [vmem:[%s16417_s3 + $0x3a8] sm:$0xff]  ;;  %v8899_v60 = vld.sshfl [vmem:[#allocation1 + $0x10] sm:$0xff pattern:$0x73625140]  ;;  %v8828_v62 = vld [vmem:[%s16417_s3 + $0x220] sm:$0xff] }
 0x57c   : > { %9035 = vmatpush.msrb.mxu2 %v8869_v23  ;;  %9054 = vmatpush.msrb.mxu3 %v8886_v40  ;;  %v8845_v61 = vld [vmem:[%s16417_s3 + $0x2a8] sm:$0xff]  ;;  %v8859_v5 = vld [vmem:[%s16417_s3 + $0x318] sm:$0xff]  ;;  %v8876_v54 = vld [vmem:[%s16417_s3 + $0x3a0] sm:$0xff] }
 0x57d   : > { %8995 = vmatpush.msrb.mxu0 %v8837_v7  ;;  %9014 = vmatpush.msrb.mxu1 %v8854_v56  ;;  %v8897_v55 = vld.sshfl [vmem:[#allocation1] sm:$0xff pattern:$0x73625140]  ;;  %v8900_v51 = vld.sshfl [vmem:[#allocation1 + $0x18] sm:$0xff pattern:$0x73625140] }
 0x57e   : > { %9036 = vmatpush.msrb.mxu2 %v8868_v57  ;;  %9055 = vmatpush.msrb.mxu3 %v8885_v28  ;;  %v8827_v42 = vld [vmem:[%s16417_s3 + $0x218] sm:$0xff]  ;;  %v8844_v52 = vld [vmem:[%s16417_s3 + $0x2a0] sm:$0xff]  ;;  %v8858_v27 = vld [vmem:[%s16417_s3 + $0x310] sm:$0xff]  ;;  %v13279_v56 = vmov 6  }
 0x57f   : > { %8996 = vmatpush.msrb.mxu0 %v8836_v29  ;;  %9015 = vmatpush.msrb.mxu1 %v8853_v11  ;;  %v8875_v31 = vld [vmem:[%s16417_s3 + $0x398] sm:$0xff]  ;;  %v8898_v20 = vld.sshfl [vmem:[#allocation1 + $0x8] sm:$0xff pattern:$0x73625140]  ;;  %v8826_v34 = vld [vmem:[%s16417_s3 + $0x210] sm:$0xff] }
 0x580   : > { %9037 = vmatpush.msrb.mxu2 %v8867_v18  ;;  %9056 = vmatpush.msrb.mxu3 %v8884_v22  ;;  %v8843_v24 = vld [vmem:[%s16417_s3 + $0x298] sm:$0xff]  ;;  %v8857_v14 = vld [vmem:[%s16417_s3 + $0x308] sm:$0xff]  ;;  %v8874_v0 = vld [vmem:[%s16417_s3 + $0x390] sm:$0xff] }
 0x581   : > { %8997 = vmatpush.msrb.mxu0 %v8835_v2  ;;  %9016 = vmatpush.msrb.mxu1 %v8852_v19  ;;  %v8825_v15 = vld [vmem:[%s16417_s3 + $0x208] sm:$0xff]  ;;  %v8842_v25 = vld [vmem:[%s16417_s3 + $0x290] sm:$0xff]  ;;  %v8856_v1 = vld [vmem:[%s16417_s3 + $0x300] sm:$0xff] }
 0x582   : > { %9038 = vmatpush.msrb.mxu2 %v8866_v17  ;;  %9057 = vmatpush.msrb.mxu3 %v8883_v32  ;;  %v8873_v13 = vld [vmem:[%s16417_s3 + $0x388] sm:$0xff]  ;;  %v8903_v36 = vld.sshfl [vmem:[#allocation1 + $0x30] sm:$0xff pattern:$0x73625140]  ;;  %v8824_v6 = vld [vmem:[%s16417_s3 + $0x200] sm:$0xff] }
 0x583   : > { %8998 = vmatpush.msrb.mxu0 %v8834_v26  ;;  %9017 = vmatpush.msrb.mxu1 %v8851_v33  ;;  %v8841_v30 = vld [vmem:[%s16417_s3 + $0x288] sm:$0xff]  ;;  %v8872_v63 = vld [vmem:[%s16417_s3 + $0x380] sm:$0xff]  ;;  %v8904_v23 = vld.sshfl [vmem:[#allocation1 + $0x38] sm:$0xff pattern:$0x73625140] }
 0x584   : > { %9039 = vmatpush.msrb.mxu2 %v8865_v35  ;;  %9058 = vmatpush.msrb.mxu3 %v8882_v8  ;;  %v8901_v3 = vld.sshfl [vmem:[#allocation1 + $0x20] sm:$0xff pattern:$0x73625140]  ;;  %v8902_v7 = vld.sshfl [vmem:[#allocation1 + $0x28] sm:$0xff pattern:$0x73625140] }
 0x585   : > { %8999 = vmatpush.msrb.mxu0 %v8833_v12  ;;  %9018 = vmatpush.msrb.mxu1 %v8850_v21  ;;  %v8840_v40 = vld [vmem:[%s16417_s3 + $0x280] sm:$0xff] }
 0x586   : > { %9040 = vmatpush.msrb.mxu2 %v8864_v37  ;;  %9059 = vmatpush.msrb.mxu3 %v8881_v39  ;;  %v13188_v57 = vld [vmem:[%s16418_s4] ss:$0 sm:$0xff]  ;;  %v13280_v39 = vmov 6.0  }
 0x587   : > { %9000 = vmatpush.msrb.mxu0 %v8832_v38  ;;  %9019 = vmatpush.msrb.mxu1 %v8849_v41  ;;  %13189 = vrcp.f32 %v13280_v39 }
 0x588   : > { %9041 = vmatpush.msrb.mxu2 %v8863_v43  ;;  %9060 = vmatpush.msrb.mxu3 %v8880_v44 }
 0x589   : > { %9001 = vmatpush.msrb.mxu0 %v8831_v9  ;;  %9020 = vmatpush.msrb.mxu1 %v8848_v10 }
 0x58a   : > { %9042 = vmatpush.msrb.mxu2 %v8862_v45  ;;  %9061 = vmatpush.msrb.mxu3 %v8879_v47 }
 0x58b   : > { %9002 = vmatpush.msrb.mxu0 %v8830_v46  ;;  %9021 = vmatpush.msrb.mxu1 %v8847_v50 }
 0x58c   : > { %9043 = vmatpush.msrb.mxu2 %v8861_v48  ;;  %9062 = vmatpush.msrb.mxu3 %v8878_v4 }
 0x58d   : > { %9003 = vmatpush.msrb.mxu0 %v8829_v49  ;;  %9022 = vmatpush.msrb.mxu1 %v8846_v53  ;;  %v13190_v38 = vpop.eup %13189 }
 0x58e   : > { %9044 = vmatpush.msrb.mxu2 %v8860_v58  ;;  %9063 = vmatpush.msrb.mxu3 %v8877_v59  ;;  %v9084_v41 = vmul.f32 6.0, %v13190_v38  ;;  %vm9088_vm8 = vweird.f32 %v13190_v38 }
 0x58f   : > { %8969 = vmatmul.f32.vlgmr.msra.gmra.mxu2 %v8899_v60  ;;  %9004 = vmatpush.msrb.mxu0 %v8828_v62 }
 0x590   : > { %9023 = vmatpush.msrb.mxu1 %v8845_v61  ;;  %9045 = vmatpush.msrb.mxu2 %v8859_v5  ;;  %v9085_v43 = vsub.f32 1.0, %v9084_v41 }
 0x591   : > { %9064 = vmatpush.msrb.mxu3 %v8876_v54  ;;  %8929 = vmatmul.f32.vlgmr.msra.gmra.mxu0 %v8897_v55 }
 0x592   : > { %8989 = vmatmul.f32.vlgmr.msra.gmra.mxu3 %v8900_v51  ;;  %9005 = vmatpush.msrb.mxu0 %v8827_v42  ;;  %v9086_v44 = vmul.f32 %v13190_v38, %v9085_v43 }
 0x593   : > { %9024 = vmatpush.msrb.mxu1 %v8844_v52  ;;  %9046 = vmatpush.msrb.mxu2 %v8858_v27 }
 0x594   : > { %9065 = vmatpush.msrb.mxu3 %v8875_v31  ;;  %8949 = vmatmul.f32.vlgmr.msra.gmra.mxu1 %v8898_v20  ;;  %v9087_v10 = vadd.f32 %v13190_v38, %v9086_v44 }
 0x595   : > { %9006 = vmatpush.msrb.mxu0 %v8826_v34  ;;  %9025 = vmatpush.msrb.mxu1 %v8843_v24 }
 0x596   : > { %9047 = vmatpush.msrb.mxu2 %v8857_v14  ;;  %9066 = vmatpush.msrb.mxu3 %v8874_v0  ;;  %v9089_v45 = vsel %vm9088_vm8, %v13190_v38, %v9087_v10 }
 0x597   : > { %9007 = vmatpush.msrb.mxu0 %v8825_v15  ;;  %9026 = vmatpush.msrb.mxu1 %v8842_v25 }
 0x598   : > { %9048 = vmatpush.msrb.mxu2 %v8856_v1  ;;  %9067 = vmatpush.msrb.mxu3 %v8873_v13 }
 0x599   : > { %9049 = vmatmul.f32.vlgmr.msrb.gmra.mxu2 %v8903_v36  ;;  %9008 = vmatpush.msrb.mxu0 %v8824_v6 }
 0x59a   : > { %9027 = vmatpush.msrb.mxu1 %v8841_v30  ;;  %9068 = vmatpush.msrb.mxu3 %v8872_v63 }
 0x59b   : > { %9009 = vmatmul.f32.vlgmr.msrb.gmra.mxu0 %v8901_v3  ;;  %9069 = vmatmul.f32.vlgmr.msrb.gmra.mxu3 %v8904_v23 }
 0x59c   : > { %9028 = vmatpush.msrb.mxu1 %v8840_v40  ;;  %13187 = vset.pattern.permute.xlu0 %v13279_v56 }
 0x59d   : > { %9029 = vmatmul.f32.vlgmr.msrb.gmra.mxu1 %v8902_v7 }
 0x60e   : > { %v8930_v28 = vpop.f32.mrf.mxu0 }
 0x60f   : > { %v8931_v29 = vadd.f32 %v13188_v57, %v8930_v28 }
 0x611   : > { %v8950_v11 = vpop.f32.mrf.mxu1 }
 0x612   : > { %v8951_v16 = vadd.f32 %v8950_v11, %v8931_v29  ;;  %v8970_v18 = vpop.f32.mrf.mxu2 }
 0x614   : > { %v8971_v22 = vadd.f32 %v8970_v18, %v8951_v16 }
 0x615   : > { %v8990_v2 = vpop.f32.mrf.mxu3 }
 0x616   : > { %v8991_v19 = vadd.f32 %v8990_v2, %v8971_v22 }
 0x618   : > { %v9010_v17 = vpop.f32.mrf.mxu0 }
 0x619   : > { %v9011_v32 = vadd.f32 %v9010_v17, %v8991_v19 }
 0x61a   : > { %v9030_v26 = vpop.f32.mrf.mxu1 }
 0x61b   : > { %v9031_v33 = vadd.f32 %v9030_v26, %v9011_v32 }
 0x61c   : > { %v9050_v35 = vpop.f32.mrf.mxu2 }
 0x61d   : > { %v9051_v8 = vadd.f32 %v9050_v35, %v9031_v33 }
 0x61e   : > { %v9070_v12 = vpop.f32.mrf.mxu3 }
 0x61f   : > { %v9071_v21 = vadd.f32 %v9070_v12, %v9051_v8 }
 0x621   : > { %v9080_v37 = vsel %vm9079_vm7, %v9071_v21, 0.0 }
 0x622   : > { %9081 = vadd.xlane.f32.xlu0 %v9080_v37 }
 0x636   : > { %9075 = vperm.xlu0 %13187, %v9071_v21  }
 0x695   : > { %v9082_v9 = vpop.xlane.xlu0 %9081 }
 0x696   : > { %v9090_v46 = vmul.f32 %v9089_v45, %v9082_v9 }
 0x6a8   : > { %v9076_v47 = vpop.permute.xlu0 %9075 }
 0x6a9   : > { %v9078_v50 = vadd.f32 %v9076_v47, %v9071_v21 }
 0x6ab   : > { %v9091_v48 = vsub.f32 %v9078_v50, %v9090_v46 }
 0x6ad   : > { %9092 = vst.msk [vmem:[#allocation4] sm:$0x3] %vm9079_vm7, %v9091_v48 }
 0x6ae PF: > { %p13120_p13 = scmp.eq.s32.totalorder %s13328_s21, 1  ;;  %s13281_s17 = smov [#allocation4]  }
 0x6af   : > { %s9099_s23 = sshll.u32 %s13281_s17, 4  ;;  %s9101_s24 = sshll.u32 %s16419_s5, 4  ;;  %s9100_s23 = int_to_ptr.vmem [resolvable:$true] %s9099_s23  ;;  %s9102_s24 = int_to_ptr.hbm [resolvable:$true] %s9101_s24 }
 0x6b0   : > { %13117 = dma.vmem_to_hbm [thread:$0]  (%p13120_p13), %s9100_s23, 32, %s9102_s24, [#allocation5]  }
 0x6b1   : > { %13248 = dma.done.wait (%p13120_p13), [#allocation5], 32  }
 0x6b2   : > { %13250 = vsyncadd (%p13120_p13), [#allocation5], 4294967264 }
 0x6b3 PF: > { %p13_p0 = scmp.ge.s32.totalorder %s13331_s22, 4   ;;  %s16426_s18 = smov %s13257_s19 }
 0x6b4   : > { %s16427_s19 = smov %s13340_s25  ;;  %s16428_s20 = smov %s13331_s22 }
 0x6b5   :  { %15 = sbr.rel (!%p13_p0) target bundleno = 2 (0x2), region = 134 }
 0x6ba   :  { %9115 = vsyncpa [#allocation5], 1 }
 0x6bb   :  { %9117 = vsyncpa [#allocation5 + $0x1], 1 }

</bundles_post_ra>
